<compile_context>
chip_gen: v6e
topology: v6e:2x2x1
jax: 0.10.0
libtpu: 0.0.40
codegen_flags: <defaults>
</compile_context>

<pallas_src>
import functools

import jax
import jax.numpy as jnp
from jax.experimental import pallas as pl
from jax.experimental.pallas import tpu as pltpu


# ----------------------------------------------------------------------------
# helpers
# ----------------------------------------------------------------------------
def _round_up(x, m):
    return (x + m - 1) // m * m


_VMEM = pl.BlockSpec(memory_space=pltpu.MemorySpace.VMEM)


def _tiles(Np, Kp):
    # 256-wide tiles only when they map exactly; otherwise 128 (exact for v5e MXU,
    # still efficient on v6e/v7x at these latency-bound sizes).
    tn = 256 if (Np >= 256 and Np % 256 == 0) else 128
    tk = 256 if (Kp >= 256 and Kp % 256 == 0) else 128
    return tn, tk


def _gemm_specs(tm, tn, tk):
    a_spec = pl.BlockSpec((tm, tk), lambda j, k: (0, k))
    b_spec = pl.BlockSpec((tk, tn), lambda j, k: (k, j))
    v_spec = pl.BlockSpec((1, tn), lambda j, k: (0, j))
    o_spec = pl.BlockSpec((tm, tn), lambda j, k: (0, j))
    return a_spec, b_spec, v_spec, o_spec


_DIMSEM = pltpu.CompilerParams(dimension_semantics=("parallel", "arbitrary"))


# ----------------------------------------------------------------------------
# Pallas kernels
# ----------------------------------------------------------------------------
def _gemm_bias_kernel(a_ref, b_ref, bias_ref, o_ref, acc_ref):
    """Plain GEMM + bias (fc layer and 1x1 shortcut conv).  Grid = (N_tiles, K_tiles)."""
    @pl.when(pl.program_id(1) == 0)
    def _():
        acc_ref[...] = jnp.zeros_like(acc_ref)

    acc_ref[...] += jnp.dot(a_ref[...], b_ref[...],
                            preferred_element_type=jnp.float32)

    @pl.when(pl.program_id(1) == pl.num_programs(1) - 1)
    def _():
        o_ref[...] = (acc_ref[...] + bias_ref[...]).astype(o_ref.dtype)


def _bn_epilogue(acc, g, be, res, *, m_valid, eps, relu):
    """Training-mode BN (batch stats over the real M rows) + residual + ReLU.

    Padded A rows produce zero accumulator rows, so sum/M gives the exact mean;
    the iota mask excludes padded rows from the (two-pass, centered) variance.
    """
    inv = 1.0 / float(m_valid)
    mean = jnp.sum(acc, axis=0, keepdims=True) * inv
    rows = jax.lax.broadcasted_iota(jnp.int32, acc.shape, 0)
    xc = jnp.where(rows < m_valid, acc - mean, 0.0)
    var = jnp.sum(xc * xc, axis=0, keepdims=True) * inv
    scale = g * jax.lax.rsqrt(var + eps)          # rsqrt -> EUP slot
    y = xc * scale + be
    if res is not None:
        y = y + res.astype(jnp.float32)
    if relu:
        y = jnp.maximum(y, 0.0)
    return y


def _gemm_bn_kernel(a_ref, b_ref, g_ref, be_ref, o_ref, acc_ref, *,
                    m_valid, eps, relu):
    @pl.when(pl.program_id(1) == 0)
    def _():
        acc_ref[...] = jnp.zeros_like(acc_ref)

    acc_ref[...] += jnp.dot(a_ref[...], b_ref[...],
                            preferred_element_type=jnp.float32)

    @pl.when(pl.program_id(1) == pl.num_programs(1) - 1)
    def _():
        y = _bn_epilogue(acc_ref[...], g_ref[...], be_ref[...], None,
                         m_valid=m_valid, eps=eps, relu=relu)
        o_ref[...] = y.astype(o_ref.dtype)


def _gemm_bn_res_kernel(a_ref, b_ref, g_ref, be_ref, r_ref, o_ref, acc_ref, *,
                        m_valid, eps, relu):
    @pl.when(pl.program_id(1) == 0)
    def _():
        acc_ref[...] = jnp.zeros_like(acc_ref)

    acc_ref[...] += jnp.dot(a_ref[...], b_ref[...],
                            preferred_element_type=jnp.float32)

    @pl.when(pl.program_id(1) == pl.num_programs(1) - 1)
    def _():
        y = _bn_epilogue(acc_ref[...], g_ref[...], be_ref[...], r_ref[...],
                         m_valid=m_valid, eps=eps, relu=relu)
        o_ref[...] = y.astype(o_ref.dtype)


def _max_reduce_kernel(x_ref, o_ref):
    o_ref[...] = jnp.max(x_ref[...], axis=0)


def _avg_reduce_kernel(x_ref, o_ref, *, count):
    o_ref[...] = jnp.sum(x_ref[...].astype(jnp.float32), axis=0) * (1.0 / count)


# ----------------------------------------------------------------------------
# GEMM wrappers
# ----------------------------------------------------------------------------
def gemm_bias(a, wk, bias_p, out_dtype):
    """a:[M,K] bf16; wk:[Kp,Np] bf16 pre-packed; bias_p:[1,Np] f32."""
    M, K = a.shape
    Kp, Np = wk.shape
    Mp = _round_up(M, 16)
    tn, tk = _tiles(Np, Kp)
    tm = Mp
    a_p = jnp.pad(a, ((0, Mp - M), (0, Kp - K)))
    a_spec, b_spec, v_spec, o_spec = _gemm_specs(tm, tn, tk)
    out = pl.pallas_call(
        _gemm_bias_kernel,
        out_shape=jax.ShapeDtypeStruct((Mp, Np), out_dtype),
        grid=(Np // tn, Kp // tk),
        in_specs=[a_spec, b_spec, v_spec],
        out_specs=o_spec,
        scratch_shapes=[pltpu.VMEM((tm, tn), jnp.float32)],
        compiler_params=_DIMSEM,
    )(a_p, wk, bias_p)
    return out[:M]


def gemm_bn_act(a, wk, gamma_p, beta_p, relu, residual=None, eps=1e-5):
    """Fused GEMM + batch-stat BN (+ residual) (+ ReLU); one full-M tile."""
    M, K = a.shape
    Kp, Np = wk.shape
    Mp = _round_up(M, 16)
    assert Mp <= 512  # TODO(synk): tile M with two-pass stats for larger batches
    tn, tk = _tiles(Np, Kp)
    tm = Mp
    a_p = jnp.pad(a, ((0, Mp - M), (0, Kp - K)))
    a_spec, b_spec, v_spec, o_spec = _gemm_specs(tm, tn, tk)
    kwargs = dict(m_valid=M, eps=eps, relu=relu)
    common = dict(
        out_shape=jax.ShapeDtypeStruct((Mp, Np), jnp.bfloat16),
        grid=(Np // tn, Kp // tk),
        out_specs=o_spec,
        scratch_shapes=[pltpu.VMEM((tm, tn), jnp.float32)],
        compiler_params=_DIMSEM,
    )
    if residual is None:
        out = pl.pallas_call(
            functools.partial(_gemm_bn_kernel, **kwargs),
            in_specs=[a_spec, b_spec, v_spec, v_spec],
            **common,
        )(a_p, wk, gamma_p, beta_p)
    else:
        r_p = jnp.pad(residual, ((0, Mp - M), (0, Np - residual.shape[1])))
        r_spec = pl.BlockSpec((tm, tn), lambda j, k: (0, j))
        out = pl.pallas_call(
            functools.partial(_gemm_bn_res_kernel, **kwargs),
            in_specs=[a_spec, b_spec, v_spec, v_spec, r_spec],
            **common,
        )(a_p, wk, gamma_p, beta_p, r_p)
    return out[:M]


# ----------------------------------------------------------------------------
# layers
# ----------------------------------------------------------------------------
def _im2col(x, kh, kw, stride, padding):
    """x: [N,H,W,C] bf16 -> patches [N*Ho*Wo, kh*kw*C] bf16 (tap-major, channel-minor)."""
    N, H, W, C = x.shape
    Ho = (H + 2 * padding - kh) // stride + 1
    Wo = (W + 2 * padding - kw) // stride + 1
    if padding:
        x = jnp.pad(x, ((0, 0), (padding, padding), (padding, padding), (0, 0)))
    cols = [x[:, i:i + stride * Ho:stride, j:j + stride * Wo:stride, :]
            for i in range(kh) for j in range(kw)]
    patches = jnp.stack(cols, axis=3).reshape(N * Ho * Wo, kh * kw * C)
    # TODO(synk): move the (kh,kw) taps into the GEMM reduction grid to avoid the
    # im2col materialization once activations grow beyond MNIST size.
    return patches, (N, Ho, Wo)


def conv_bn_act(x, wk, gamma, beta, kh, kw, cout, stride, padding,
                relu=True, residual=None):
    """Conv (bias dropped; cancelled by BN) + training-mode BN (+ residual) (+ ReLU)."""
    patches, (N, Ho, Wo) = _im2col(x, kh, kw, stride, padding)
    res2d = None
    if residual is not None:
        res2d = residual.reshape(N * Ho * Wo, cout)
    out = gemm_bn_act(patches, wk, gamma, beta, relu=relu, residual=res2d)
    return out[:, :cout].reshape(N, Ho, Wo, cout)


def conv_bias(x, wk, bias, kh, kw, cout, stride, padding):
    """1x1 shortcut conv: bias survives (no BN follows it in the Residual block)."""
    patches, (N, Ho, Wo) = _im2col(x, kh, kw, stride, padding)
    out = gemm_bias(patches, wk, bias, out_dtype=jnp.bfloat16)
    return out[:, :cout].reshape(N, Ho, Wo, cout)


def maxpool_3x3_s2_p1(x):
    # TODO(synk): for large activations, read the padded slab once inside the kernel
    # (strided in-VMEM slices) instead of stacking 9 shifted bf16 copies.
    N, H, W, C = x.shape
    Ho = (H + 2 - 3) // 2 + 1
    Wo = (W + 2 - 3) // 2 + 1
    xp = jnp.pad(x, ((0, 0), (1, 1), (1, 1), (0, 0)), constant_values=-jnp.inf)
    wins = [xp[:, i:i + 2 * Ho:2, j:j + 2 * Wo:2, :]
            for i in range(3) for j in range(3)]
    M = N * Ho * Wo
    stk = jnp.stack(wins, axis=0).reshape(9, M, C)
    Mp, Cp = _round_up(M, 8), _round_up(C, 128)
    stk = jnp.pad(stk, ((0, 0), (0, Mp - M), (0, Cp - C)))
    out = pl.pallas_call(
        _max_reduce_kernel,
        out_shape=jax.ShapeDtypeStruct((Mp, Cp), x.dtype),
        in_specs=[_VMEM],
        out_specs=_VMEM,
    )(stk)
    return out[:M, :C].reshape(N, Ho, Wo, C)


def global_avgpool(x):
    """AdaptiveAvgPool2d((1,1)) + Flatten -> [N, C] f32 (f32 accumulation)."""
    N, H, W, C = x.shape
    HW = H * W
    x3 = x.reshape(N, HW, C).transpose(1, 0, 2)              # [HW, N, C]
    Npad, Cp = _round_up(N, 8), _round_up(C, 128)
    xp = jnp.pad(x3, ((0, 0), (0, Npad - N), (0, Cp - C)))
    out = pl.pallas_call(
        functools.partial(_avg_reduce_kernel, count=float(HW)),
        out_shape=jax.ShapeDtypeStruct((Npad, Cp), jnp.float32),
        in_specs=[_VMEM],
        out_specs=_VMEM,
    )(xp)
    return out[:N, :C]


def linear(x, wk, bias, dout):
    out = gemm_bias(x.astype(jnp.bfloat16), wk, bias, out_dtype=jnp.float32)
    return out[:, :dout]


# ----------------------------------------------------------------------------
# ResNet structure
# ----------------------------------------------------------------------------
# (input_channels, num_channels, use_1x1conv, stride) for each Residual block
RES_CFG = [
    (64, 64, False, 1), (64, 64, False, 1),      # b2 (first_block=True)
    (64, 128, True, 2), (128, 128, False, 1),    # b3
    (128, 256, True, 2), (256, 256, False, 1),   # b4
    (256, 512, True, 2), (512, 512, False, 1),   # b5
]


def residual_forward(x, rp, cfg):
    cin, cout, use_1x1, stride = cfg
    y = conv_bn_act(x, rp['wk1'], rp['g1'], rp['be1'],
                    kh=3, kw=3, cout=cout, stride=stride, padding=1, relu=True)
    if use_1x1:
        shortcut = conv_bias(x, rp['wk3'], rp['bias3'],
                             kh=1, kw=1, cout=cout, stride=stride, padding=0)
    else:
        shortcut = x
    return conv_bn_act(y, rp['wk2'], rp['g2'], rp['be2'],
                       kh=3, kw=3, cout=cout, stride=1, padding=1,
                       relu=True, residual=shortcut)


def resnet_forward(params, x_nchw):
    x = jnp.transpose(x_nchw, (0, 2, 3, 1)).astype(jnp.bfloat16)   # NCHW -> NHWC bf16
    # b1: 7x7 conv s2 p3 + BN + ReLU (fused), maxpool 3x3 s2 p1
    b1 = params['b1']
    y = conv_bn_act(x, b1['wk'], b1['gamma'], b1['beta'],
                    kh=7, kw=7, cout=64, stride=2, padding=3, relu=True)
    y = maxpool_3x3_s2_p1(y)
    # b2..b5
    for cfg, rp in zip(RES_CFG, params['blocks']):
        y = residual_forward(y, rp, cfg)
    # pool + dense
    feat = global_avgpool(y)                                        # [N, 512] f32
    return linear(feat, params['fc']['wk'], params['fc']['bias'], dout=10)


# ----------------------------------------------------------------------------
# deterministic synthetic parameters (pre-packed once: [Kp,Np] bf16 weights)
# ----------------------------------------------------------------------------
def _conv_w(key, cin, cout, k):
    fan_in = cin * k * k
    return jax.random.normal(key, (cout, cin, k, k), jnp.float32) / jnp.sqrt(float(fan_in))


def _pack_w_oihw(w):
    cout, cin, kh, kw = w.shape
    K = kh * kw * cin
    Kp, Np = _round_up(K, 128), _round_up(cout, 128)
    wm = jnp.transpose(w, (2, 3, 1, 0)).reshape(K, cout)
    return jnp.pad(wm, ((0, Kp - K), (0, Np - cout))).astype(jnp.bfloat16)


def _pack_vec(v):
    C = v.shape[0]
    Cp = _round_up(C, 128)
    return jnp.pad(v.reshape(1, C).astype(jnp.float32), ((0, 0), (0, Cp - C)))


def init_params(key):
    # Note: biases of convs feeding a batch-stat BN are omitted — they are
    # mathematically cancelled by the mean subtraction (zero numerical effect).
    keys = iter(jax.random.split(key, 64))
    params = {'b1': {'wk': _pack_w_oihw(_conv_w(next(keys), 1, 64, 7)),
                     'gamma': _pack_vec(jnp.ones((64,), jnp.float32)),
                     'beta': _pack_vec(jnp.zeros((64,), jnp.float32))}}
    blocks = []
    for (cin, cout, use_1x1, _stride) in RES_CFG:
        rp = {'wk1': _pack_w_oihw(_conv_w(next(keys), cin, cout, 3)),
              'wk2': _pack_w_oihw(_conv_w(next(keys), cout, cout, 3)),
              'g1': _pack_vec(jnp.ones((cout,), jnp.float32)),
              'be1': _pack_vec(jnp.zeros((cout,), jnp.float32)),
              'g2': _pack_vec(jnp.ones((cout,), jnp.float32)),
              'be2': _pack_vec(jnp.zeros((cout,), jnp.float32))}
        if use_1x1:
            kw_, kb_ = jax.random.split(next(keys))
            rp['wk3'] = _pack_w_oihw(_conv_w(kw_, cin, cout, 1))
            rp['bias3'] = _pack_vec(jax.random.normal(kb_, (cout,), jnp.float32) * 0.01)
        blocks.append(rp)
    params['blocks'] = blocks
    kfc_w, kfc_b = jax.random.split(next(keys))
    fc_w = jax.random.normal(kfc_w, (10, 512), jnp.float32) / jnp.sqrt(512.0)
    fc_b = jax.random.normal(kfc_b, (10,), jnp.float32) * 0.01
    params['fc'] = {
        'wk': jnp.pad(fc_w.T, ((0, 0), (0, 128 - 10))).astype(jnp.bfloat16),
        'bias': _pack_vec(fc_b),
    }
    return params


# ----------------------------------------------------------------------------
# main
# ----------------------------------------------------------------------------
if __name__ == "__main__":
    root = jax.random.PRNGKey(0)
    pkey, xkey = jax.random.split(root)
    params = init_params(pkey)        # one-time weight packing, outside jit
    # MNIST-like input, PyTorch NCHW: batch=2, 1 channel, 28x28
    x = jax.random.normal(xkey, (2, 1, 28, 28), jnp.float32)

    fwd = jax.jit(resnet_forward)
    logits = jax.block_until_ready(fwd(params, x))

    assert logits.shape == (2, 10), logits.shape
    assert bool(jnp.all(jnp.isfinite(logits)))
    print("KERNEL_OK")
</pallas_src>

<mosaic_0001>
module attributes {stable_mosaic.version = 11 : i64} {
  func.func @_gemm_bn_kernel(%arg0: i32, %arg1: i32, %arg2: memref<400x128xbf16, #tpu.memory_space<vmem>>, %arg3: memref<128x128xbf16, #tpu.memory_space<vmem>>, %arg4: memref<1x128xf32, #tpu.memory_space<vmem>>, %arg5: memref<1x128xf32, #tpu.memory_space<vmem>>, %arg6: memref<400x128xbf16, #tpu.memory_space<vmem>>, %arg7: memref<400x128xf32, #tpu.memory_space<vmem>>) attributes {dimension_semantics = [#tpu.dimension_semantics<parallel>, #tpu.dimension_semantics<arbitrary>], iteration_bounds = array<i64: 1, 1>, scalar_prefetch = 0 : i64, scratch_operands = 1 : i64, tpu.core_type = #tpu.core_type<tc>, window_params = [{transform_indices = @transform_0, window_bounds = array<i64: 400, 128>}, {transform_indices = @transform_1, window_bounds = array<i64: 128, 128>}, {transform_indices = @transform_2, window_bounds = array<i64: 1, 128>}, {transform_indices = @transform_3, window_bounds = array<i64: 1, 128>}, {transform_indices = @transform_4, window_bounds = array<i64: 400, 128>}]} {
    %c0_i32 = arith.constant 0 : i32
    %0 = arith.cmpi eq, %arg1, %c0_i32 : i32
    %1 = arith.extui %0 : i1 to i32
    %c0_i32_0 = arith.constant 0 : i32
    %2 = arith.cmpi ne, %1, %c0_i32_0 : i32
    scf.if %2 {
      %cst_10 = arith.constant 0.000000e+00 : f32
      %12 = vector.broadcast %cst_10 : f32 to vector<400x128xf32>
      %c0_11 = arith.constant 0 : index
      %c0_12 = arith.constant 0 : index
      %13 = vector.load %arg7[%c0_11, %c0_12] : memref<400x128xf32, #tpu.memory_space<vmem>>, vector<400x128xf32>
      tpu.vector_store %arg7[%c0_11, %c0_12], %12 {strides = array<i32>} : memref<400x128xf32, #tpu.memory_space<vmem>>, vector<400x128xf32>,
    } else {
    }
    %c0 = arith.constant 0 : index
    %c0_1 = arith.constant 0 : index
    %3 = vector.load %arg7[%c0, %c0_1] : memref<400x128xf32, #tpu.memory_space<vmem>>, vector<400x128xf32>
    %c0_2 = arith.constant 0 : index
    %c0_3 = arith.constant 0 : index
    %4 = vector.load %arg2[%c0_2, %c0_3] : memref<400x128xbf16, #tpu.memory_space<vmem>>, vector<400x128xbf16>
    %c0_4 = arith.constant 0 : index
    %c0_5 = arith.constant 0 : index
    %5 = vector.load %arg3[%c0_4, %c0_5] : memref<128x128xbf16, #tpu.memory_space<vmem>>, vector<128x128xbf16>
    %cst = arith.constant dense<0.000000e+00> : vector<400x128xf32>
    %6 = tpu.matmul %4, %5, %cst {dimension_numbers = #tpu.dot_dimension_numbers<[1], [0], [0], [1], [0, 0, 1, 1], [], []>} : vector<400x128xbf16>, vector<128x128xbf16>, vector<400x128xf32> -> vector<400x128xf32>
    %7 = arith.addf %3, %6 : vector<400x128xf32>
    %c0_6 = arith.constant 0 : index
    %c0_7 = arith.constant 0 : index
    %8 = vector.load %arg7[%c0_6, %c0_7] : memref<400x128xf32, #tpu.memory_space<vmem>>, vector<400x128xf32>
    tpu.vector_store %arg7[%c0_6, %c0_7], %7 {strides = array<i32>} : memref<400x128xf32, #tpu.memory_space<vmem>>, vector<400x128xf32>,
    %c0_i32_8 = arith.constant 0 : i32
    %9 = arith.cmpi eq, %arg1, %c0_i32_8 : i32
    %10 = arith.extui %9 : i1 to i32
    %c0_i32_9 = arith.constant 0 : i32
    %11 = arith.cmpi ne, %10, %c0_i32_9 : i32
    scf.if %11 {
      %c0_10 = arith.constant 0 : index
      %c0_11 = arith.constant 0 : index
      %12 = vector.load %arg7[%c0_10, %c0_11] : memref<400x128xf32, #tpu.memory_space<vmem>>, vector<400x128xf32>
      %c0_12 = arith.constant 0 : index
      %c0_13 = arith.constant 0 : index
      %13 = vector.load %arg4[%c0_12, %c0_13] : memref<1x128xf32, #tpu.memory_space<vmem>>, vector<1x128xf32>
      %c0_14 = arith.constant 0 : index
      %c0_15 = arith.constant 0 : index
      %14 = vector.load %arg5[%c0_14, %c0_15] : memref<1x128xf32, #tpu.memory_space<vmem>>, vector<1x128xf32>
      %cst_16 = arith.constant dense<0.000000e+00> : vector<128xf32>
      %15 = vector.multi_reduction <add>, %12, %cst_16 [0] : vector<400x128xf32> to vector<128xf32>
      %16 = vector.shape_cast %15 : vector<128xf32> to vector<1x128xf32>
      %cst_17 = arith.constant 0.00255102036 : f32
      %17 = vector.broadcast %cst_17 : f32 to vector<1x128xf32>
      %18 = arith.mulf %16, %17 : vector<1x128xf32>
      %19 = tpu.iota {dimensions = array<i32: 0>} : vector<400x128xi32>
      %c392_i32 = arith.constant 392 : i32
      %20 = vector.broadcast %c392_i32 : i32 to vector<400x128xi32>
      %21 = arith.cmpi slt, %19, %20 : vector<400x128xi32>
      %22 = vector.broadcast %18 : vector<1x128xf32> to vector<400x128xf32>
      %23 = arith.subf %12, %22 : vector<400x128xf32>
      %cst_18 = arith.constant 0.000000e+00 : f32
      %24 = vector.broadcast %cst_18 : f32 to vector<400x128xf32>
      %25 = arith.select %21, %23, %24 : vector<400x128xi1>, vector<400x128xf32>
      %26 = arith.mulf %25, %25 : vector<400x128xf32>
      %cst_19 = arith.constant dense<0.000000e+00> : vector<128xf32>
      %27 = vector.multi_reduction <add>, %26, %cst_19 [0] : vector<400x128xf32> to vector<128xf32>
      %28 = vector.shape_cast %27 : vector<128xf32> to vector<1x128xf32>
      %cst_20 = arith.constant 0.00255102036 : f32
      %29 = vector.broadcast %cst_20 : f32 to vector<1x128xf32>
      %30 = arith.mulf %28, %29 : vector<1x128xf32>
      %cst_21 = arith.constant 9.99999974E-6 : f32
      %31 = vector.broadcast %cst_21 : f32 to vector<1x128xf32>
      %32 = arith.addf %30, %31 : vector<1x128xf32>
      %33 = math.rsqrt %32 : vector<1x128xf32>
      %34 = arith.mulf %13, %33 : vector<1x128xf32>
      %35 = vector.broadcast %34 : vector<1x128xf32> to vector<400x128xf32>
      %36 = arith.mulf %25, %35 : vector<400x128xf32>
      %37 = vector.broadcast %14 : vector<1x128xf32> to vector<400x128xf32>
      %38 = arith.addf %36, %37 : vector<400x128xf32>
      %cst_22 = arith.constant 0.000000e+00 : f32
      %39 = vector.broadcast %cst_22 : f32 to vector<400x128xf32>
      %40 = arith.maximumf %38, %39 : vector<400x128xf32>
      %41 = arith.truncf %40 : vector<400x128xf32> to vector<400x128xbf16>
      %c0_23 = arith.constant 0 : index
      %c0_24 = arith.constant 0 : index
      %42 = vector.load %arg6[%c0_23, %c0_24] : memref<400x128xbf16, #tpu.memory_space<vmem>>, vector<400x128xbf16>
      tpu.vector_store %arg6[%c0_23, %c0_24], %41 {strides = array<i32>} : memref<400x128xbf16, #tpu.memory_space<vmem>>, vector<400x128xbf16>,
    } else {
    }
    return
  }
  func.func @transform_0(%arg0: i32, %arg1: i32) -> (i32, i32) {
    %c0_i32 = arith.constant 0 : i32
    %c0_i32_0 = arith.constant 0 : i32
    return %c0_i32, %arg1 : i32, i32
  }
  func.func @transform_1(%arg0: i32, %arg1: i32) -> (i32, i32) {
    %c0_i32 = arith.constant 0 : i32
    return %arg1, %arg0 : i32, i32
  }
  func.func @transform_2(%arg0: i32, %arg1: i32) -> (i32, i32) {
    %c0_i32 = arith.constant 0 : i32
    %c0_i32_0 = arith.constant 0 : i32
    return %c0_i32, %arg0 : i32, i32
  }
  func.func @transform_3(%arg0: i32, %arg1: i32) -> (i32, i32) {
    %c0_i32 = arith.constant 0 : i32
    %c0_i32_0 = arith.constant 0 : i32
    return %c0_i32, %arg0 : i32, i32
  }
  func.func @transform_4(%arg0: i32, %arg1: i32) -> (i32, i32) {
    %c0_i32 = arith.constant 0 : i32
    %c0_i32_0 = arith.constant 0 : i32
    return %c0_i32, %arg0 : i32, i32
  }
}

module attributes {stable_mosaic.version = 11 : i64} {
  func.func @_max_reduce_kernel(%arg0: memref<9x104x128xbf16, #tpu.memory_space<vmem>>, %arg1: memref<104x128xbf16, #tpu.memory_space<vmem>>) attributes {dimension_semantics = [], scalar_prefetch = 0 : i64, scratch_operands = 0 : i64, tpu.core_type = #tpu.core_type<tc>} {
    %c0 = arith.constant 0 : index
    %c0_0 = arith.constant 0 : index
    %c0_1 = arith.constant 0 : index
    %0 = vector.load %arg0[%c0, %c0_0, %c0_1] : memref<9x104x128xbf16, #tpu.memory_space<vmem>>, vector<9x104x128xbf16>
    %cst = arith.constant dense<0xFF80> : vector<104x128xbf16>
    %1 = vector.multi_reduction <maximumf>, %0, %cst [0] : vector<9x104x128xbf16> to vector<104x128xbf16>
    %c0_2 = arith.constant 0 : index
    %c0_3 = arith.constant 0 : index
    %2 = vector.load %arg1[%c0_2, %c0_3] : memref<104x128xbf16, #tpu.memory_space<vmem>>, vector<104x128xbf16>
    tpu.vector_store %arg1[%c0_2, %c0_3], %1 {strides = array<i32>} : memref<104x128xbf16, #tpu.memory_space<vmem>>, vector<104x128xbf16>,
    return
  }
}

module attributes {stable_mosaic.version = 11 : i64} {
  func.func @_gemm_bn_kernel(%arg0: i32, %arg1: i32, %arg2: memref<112x128xbf16, #tpu.memory_space<vmem>>, %arg3: memref<128x128xbf16, #tpu.memory_space<vmem>>, %arg4: memref<1x128xf32, #tpu.memory_space<vmem>>, %arg5: memref<1x128xf32, #tpu.memory_space<vmem>>, %arg6: memref<112x128xbf16, #tpu.memory_space<vmem>>, %arg7: memref<112x128xf32, #tpu.memory_space<vmem>>) attributes {dimension_semantics = [#tpu.dimension_semantics<parallel>, #tpu.dimension_semantics<arbitrary>], iteration_bounds = array<i64: 1, 5>, scalar_prefetch = 0 : i64, scratch_operands = 1 : i64, tpu.core_type = #tpu.core_type<tc>, window_params = [{transform_indices = @transform_0, window_bounds = array<i64: 112, 128>}, {transform_indices = @transform_1, window_bounds = array<i64: 128, 128>}, {transform_indices = @transform_2, window_bounds = array<i64: 1, 128>}, {transform_indices = @transform_3, window_bounds = array<i64: 1, 128>}, {transform_indices = @transform_4, window_bounds = array<i64: 112, 128>}]} {
    %c0_i32 = arith.constant 0 : i32
    %0 = arith.cmpi eq, %arg1, %c0_i32 : i32
    %1 = arith.extui %0 : i1 to i32
    %c0_i32_0 = arith.constant 0 : i32
    %2 = arith.cmpi ne, %1, %c0_i32_0 : i32
    scf.if %2 {
      %cst_9 = arith.constant 0.000000e+00 : f32
      %12 = vector.broadcast %cst_9 : f32 to vector<112x128xf32>
      %c0_10 = arith.constant 0 : index
      %c0_11 = arith.constant 0 : index
      %13 = vector.load %arg7[%c0_10, %c0_11] : memref<112x128xf32, #tpu.memory_space<vmem>>, vector<112x128xf32>
      tpu.vector_store %arg7[%c0_10, %c0_11], %12 {strides = array<i32>} : memref<112x128xf32, #tpu.memory_space<vmem>>, vector<112x128xf32>,
    } else {
    }
    %c0 = arith.constant 0 : index
    %c0_1 = arith.constant 0 : index
    %3 = vector.load %arg7[%c0, %c0_1] : memref<112x128xf32, #tpu.memory_space<vmem>>, vector<112x128xf32>
    %c0_2 = arith.constant 0 : index
    %c0_3 = arith.constant 0 : index
    %4 = vector.load %arg2[%c0_2, %c0_3] : memref<112x128xbf16, #tpu.memory_space<vmem>>, vector<112x128xbf16>
    %c0_4 = arith.constant 0 : index
    %c0_5 = arith.constant 0 : index
    %5 = vector.load %arg3[%c0_4, %c0_5] : memref<128x128xbf16, #tpu.memory_space<vmem>>, vector<128x128xbf16>
    %cst = arith.constant dense<0.000000e+00> : vector<112x128xf32>
    %6 = tpu.matmul %4, %5, %cst {dimension_numbers = #tpu.dot_dimension_numbers<[1], [0], [0], [1], [0, 0, 1, 1], [], []>} : vector<112x128xbf16>, vector<128x128xbf16>, vector<112x128xf32> -> vector<112x128xf32>
    %7 = arith.addf %3, %6 : vector<112x128xf32>
    %c0_6 = arith.constant 0 : index
    %c0_7 = arith.constant 0 : index
    %8 = vector.load %arg7[%c0_6, %c0_7] : memref<112x128xf32, #tpu.memory_space<vmem>>, vector<112x128xf32>
    tpu.vector_store %arg7[%c0_6, %c0_7], %7 {strides = array<i32>} : memref<112x128xf32, #tpu.memory_space<vmem>>, vector<112x128xf32>,
    %c4_i32 = arith.constant 4 : i32
    %9 = arith.cmpi eq, %arg1, %c4_i32 : i32
    %10 = arith.extui %9 : i1 to i32
    %c0_i32_8 = arith.constant 0 : i32
    %11 = arith.cmpi ne, %10, %c0_i32_8 : i32
    scf.if %11 {
      %c0_9 = arith.constant 0 : index
      %c0_10 = arith.constant 0 : index
      %12 = vector.load %arg7[%c0_9, %c0_10] : memref<112x128xf32, #tpu.memory_space<vmem>>, vector<112x128xf32>
      %c0_11 = arith.constant 0 : index
      %c0_12 = arith.constant 0 : index
      %13 = vector.load %arg4[%c0_11, %c0_12] : memref<1x128xf32, #tpu.memory_space<vmem>>, vector<1x128xf32>
      %c0_13 = arith.constant 0 : index
      %c0_14 = arith.constant 0 : index
      %14 = vector.load %arg5[%c0_13, %c0_14] : memref<1x128xf32, #tpu.memory_space<vmem>>, vector<1x128xf32>
      %cst_15 = arith.constant dense<0.000000e+00> : vector<128xf32>
      %15 = vector.multi_reduction <add>, %12, %cst_15 [0] : vector<112x128xf32> to vector<128xf32>
      %16 = vector.shape_cast %15 : vector<128xf32> to vector<1x128xf32>
      %cst_16 = arith.constant 0.0102040814 : f32
      %17 = vector.broadcast %cst_16 : f32 to vector<1x128xf32>
      %18 = arith.mulf %16, %17 : vector<1x128xf32>
      %19 = tpu.iota {dimensions = array<i32: 0>} : vector<112x128xi32>
      %c98_i32 = arith.constant 98 : i32
      %20 = vector.broadcast %c98_i32 : i32 to vector<112x128xi32>
      %21 = arith.cmpi slt, %19, %20 : vector<112x128xi32>
      %22 = vector.broadcast %18 : vector<1x128xf32> to vector<112x128xf32>
      %23 = arith.subf %12, %22 : vector<112x128xf32>
      %cst_17 = arith.constant 0.000000e+00 : f32
      %24 = vector.broadcast %cst_17 : f32 to vector<112x128xf32>
      %25 = arith.select %21, %23, %24 : vector<112x128xi1>, vector<112x128xf32>
      %26 = arith.mulf %25, %25 : vector<112x128xf32>
      %cst_18 = arith.constant dense<0.000000e+00> : vector<128xf32>
      %27 = vector.multi_reduction <add>, %26, %cst_18 [0] : vector<112x128xf32> to vector<128xf32>
      %28 = vector.shape_cast %27 : vector<128xf32> to vector<1x128xf32>
      %cst_19 = arith.constant 0.0102040814 : f32
      %29 = vector.broadcast %cst_19 : f32 to vector<1x128xf32>
      %30 = arith.mulf %28, %29 : vector<1x128xf32>
      %cst_20 = arith.constant 9.99999974E-6 : f32
      %31 = vector.broadcast %cst_20 : f32 to vector<1x128xf32>
      %32 = arith.addf %30, %31 : vector<1x128xf32>
      %33 = math.rsqrt %32 : vector<1x128xf32>
      %34 = arith.mulf %13, %33 : vector<1x128xf32>
      %35 = vector.broadcast %34 : vector<1x128xf32> to vector<112x128xf32>
      %36 = arith.mulf %25, %35 : vector<112x128xf32>
      %37 = vector.broadcast %14 : vector<1x128xf32> to vector<112x128xf32>
      %38 = arith.addf %36, %37 : vector<112x128xf32>
      %cst_21 = arith.constant 0.000000e+00 : f32
      %39 = vector.broadcast %cst_21 : f32 to vector<112x128xf32>
      %40 = arith.maximumf %38, %39 : vector<112x128xf32>
      %41 = arith.truncf %40 : vector<112x128xf32> to vector<112x128xbf16>
      %c0_22 = arith.constant 0 : index
      %c0_23 = arith.constant 0 : index
      %42 = vector.load %arg6[%c0_22, %c0_23] : memref<112x128xbf16, #tpu.memory_space<vmem>>, vector<112x128xbf16>
      tpu.vector_store %arg6[%c0_22, %c0_23], %41 {strides = array<i32>} : memref<112x128xbf16, #tpu.memory_space<vmem>>, vector<112x128xbf16>,
    } else {
    }
    return
  }
  func.func @transform_0(%arg0: i32, %arg1: i32) -> (i32, i32) {
    %c0_i32 = arith.constant 0 : i32
    %c0_i32_0 = arith.constant 0 : i32
    return %c0_i32, %arg1 : i32, i32
  }
  func.func @transform_1(%arg0: i32, %arg1: i32) -> (i32, i32) {
    %c0_i32 = arith.constant 0 : i32
    return %arg1, %arg0 : i32, i32
  }
  func.func @transform_2(%arg0: i32, %arg1: i32) -> (i32, i32) {
    %c0_i32 = arith.constant 0 : i32
    %c0_i32_0 = arith.constant 0 : i32
    return %c0_i32, %arg0 : i32, i32
  }
  func.func @transform_3(%arg0: i32, %arg1: i32) -> (i32, i32) {
    %c0_i32 = arith.constant 0 : i32
    %c0_i32_0 = arith.constant 0 : i32
    return %c0_i32, %arg0 : i32, i32
  }
  func.func @transform_4(%arg0: i32, %arg1: i32) -> (i32, i32) {
    %c0_i32 = arith.constant 0 : i32
    %c0_i32_0 = arith.constant 0 : i32
    return %c0_i32, %arg0 : i32, i32
  }
}

module attributes {stable_mosaic.version = 11 : i64} {
  func.func @_gemm_bn_res_kernel(%arg0: i32, %arg1: i32, %arg2: memref<112x128xbf16, #tpu.memory_space<vmem>>, %arg3: memref<128x128xbf16, #tpu.memory_space<vmem>>, %arg4: memref<1x128xf32, #tpu.memory_space<vmem>>, %arg5: memref<1x128xf32, #tpu.memory_space<vmem>>, %arg6: memref<112x128xbf16, #tpu.memory_space<vmem>>, %arg7: memref<112x128xbf16, #tpu.memory_space<vmem>>, %arg8: memref<112x128xf32, #tpu.memory_space<vmem>>) attributes {dimension_semantics = [#tpu.dimension_semantics<parallel>, #tpu.dimension_semantics<arbitrary>], iteration_bounds = array<i64: 1, 5>, scalar_prefetch = 0 : i64, scratch_operands = 1 : i64, tpu.core_type = #tpu.core_type<tc>, window_params = [{transform_indices = @transform_0, window_bounds = array<i64: 112, 128>}, {transform_indices = @transform_1, window_bounds = array<i64: 128, 128>}, {transform_indices = @transform_2, window_bounds = array<i64: 1, 128>}, {transform_indices = @transform_3, window_bounds = array<i64: 1, 128>}, {transform_indices = @transform_4, window_bounds = array<i64: 112, 128>}, {transform_indices = @transform_5, window_bounds = array<i64: 112, 128>}]} {
    %c0_i32 = arith.constant 0 : i32
    %0 = arith.cmpi eq, %arg1, %c0_i32 : i32
    %1 = arith.extui %0 : i1 to i32
    %c0_i32_0 = arith.constant 0 : i32
    %2 = arith.cmpi ne, %1, %c0_i32_0 : i32
    scf.if %2 {
      %cst_9 = arith.constant 0.000000e+00 : f32
      %12 = vector.broadcast %cst_9 : f32 to vector<112x128xf32>
      %c0_10 = arith.constant 0 : index
      %c0_11 = arith.constant 0 : index
      %13 = vector.load %arg8[%c0_10, %c0_11] : memref<112x128xf32, #tpu.memory_space<vmem>>, vector<112x128xf32>
      tpu.vector_store %arg8[%c0_10, %c0_11], %12 {strides = array<i32>} : memref<112x128xf32, #tpu.memory_space<vmem>>, vector<112x128xf32>,
    } else {
    }
    %c0 = arith.constant 0 : index
    %c0_1 = arith.constant 0 : index
    %3 = vector.load %arg8[%c0, %c0_1] : memref<112x128xf32, #tpu.memory_space<vmem>>, vector<112x128xf32>
    %c0_2 = arith.constant 0 : index
    %c0_3 = arith.constant 0 : index
    %4 = vector.load %arg2[%c0_2, %c0_3] : memref<112x128xbf16, #tpu.memory_space<vmem>>, vector<112x128xbf16>
    %c0_4 = arith.constant 0 : index
    %c0_5 = arith.constant 0 : index
    %5 = vector.load %arg3[%c0_4, %c0_5] : memref<128x128xbf16, #tpu.memory_space<vmem>>, vector<128x128xbf16>
    %cst = arith.constant dense<0.000000e+00> : vector<112x128xf32>
    %6 = tpu.matmul %4, %5, %cst {dimension_numbers = #tpu.dot_dimension_numbers<[1], [0], [0], [1], [0, 0, 1, 1], [], []>} : vector<112x128xbf16>, vector<128x128xbf16>, vector<112x128xf32> -> vector<112x128xf32>
    %7 = arith.addf %3, %6 : vector<112x128xf32>
    %c0_6 = arith.constant 0 : index
    %c0_7 = arith.constant 0 : index
    %8 = vector.load %arg8[%c0_6, %c0_7] : memref<112x128xf32, #tpu.memory_space<vmem>>, vector<112x128xf32>
    tpu.vector_store %arg8[%c0_6, %c0_7], %7 {strides = array<i32>} : memref<112x128xf32, #tpu.memory_space<vmem>>, vector<112x128xf32>,
    %c4_i32 = arith.constant 4 : i32
    %9 = arith.cmpi eq, %arg1, %c4_i32 : i32
    %10 = arith.extui %9 : i1 to i32
    %c0_i32_8 = arith.constant 0 : i32
    %11 = arith.cmpi ne, %10, %c0_i32_8 : i32
    scf.if %11 {
      %c0_9 = arith.constant 0 : index
      %c0_10 = arith.constant 0 : index
      %12 = vector.load %arg8[%c0_9, %c0_10] : memref<112x128xf32, #tpu.memory_space<vmem>>, vector<112x128xf32>
      %c0_11 = arith.constant 0 : index
      %c0_12 = arith.constant 0 : index
      %13 = vector.load %arg4[%c0_11, %c0_12] : memref<1x128xf32, #tpu.memory_space<vmem>>, vector<1x128xf32>
      %c0_13 = arith.constant 0 : index
      %c0_14 = arith.constant 0 : index
      %14 = vector.load %arg5[%c0_13, %c0_14] : memref<1x128xf32, #tpu.memory_space<vmem>>, vector<1x128xf32>
      %c0_15 = arith.constant 0 : index
      %c0_16 = arith.constant 0 : index
      %15 = vector.load %arg6[%c0_15, %c0_16] : memref<112x128xbf16, #tpu.memory_space<vmem>>, vector<112x128xbf16>
      %cst_17 = arith.constant dense<0.000000e+00> : vector<128xf32>
      %16 = vector.multi_reduction <add>, %12, %cst_17 [0] : vector<112x128xf32> to vector<128xf32>
      %17 = vector.shape_cast %16 : vector<128xf32> to vector<1x128xf32>
      %cst_18 = arith.constant 0.0102040814 : f32
      %18 = vector.broadcast %cst_18 : f32 to vector<1x128xf32>
      %19 = arith.mulf %17, %18 : vector<1x128xf32>
      %20 = tpu.iota {dimensions = array<i32: 0>} : vector<112x128xi32>
      %c98_i32 = arith.constant 98 : i32
      %21 = vector.broadcast %c98_i32 : i32 to vector<112x128xi32>
      %22 = arith.cmpi slt, %20, %21 : vector<112x128xi32>
      %23 = vector.broadcast %19 : vector<1x128xf32> to vector<112x128xf32>
      %24 = arith.subf %12, %23 : vector<112x128xf32>
      %cst_19 = arith.constant 0.000000e+00 : f32
      %25 = vector.broadcast %cst_19 : f32 to vector<112x128xf32>
      %26 = arith.select %22, %24, %25 : vector<112x128xi1>, vector<112x128xf32>
      %27 = arith.mulf %26, %26 : vector<112x128xf32>
      %cst_20 = arith.constant dense<0.000000e+00> : vector<128xf32>
      %28 = vector.multi_reduction <add>, %27, %cst_20 [0] : vector<112x128xf32> to vector<128xf32>
      %29 = vector.shape_cast %28 : vector<128xf32> to vector<1x128xf32>
      %cst_21 = arith.constant 0.0102040814 : f32
      %30 = vector.broadcast %cst_21 : f32 to vector<1x128xf32>
      %31 = arith.mulf %29, %30 : vector<1x128xf32>
      %cst_22 = arith.constant 9.99999974E-6 : f32
      %32 = vector.broadcast %cst_22 : f32 to vector<1x128xf32>
      %33 = arith.addf %31, %32 : vector<1x128xf32>
      %34 = math.rsqrt %33 : vector<1x128xf32>
      %35 = arith.mulf %13, %34 : vector<1x128xf32>
      %36 = vector.broadcast %35 : vector<1x128xf32> to vector<112x128xf32>
      %37 = arith.mulf %26, %36 : vector<112x128xf32>
      %38 = vector.broadcast %14 : vector<1x128xf32> to vector<112x128xf32>
      %39 = arith.addf %37, %38 : vector<112x128xf32>
      %40 = arith.extf %15 : vector<112x128xbf16> to vector<112x128xf32>
      %41 = arith.addf %39, %40 : vector<112x128xf32>
      %cst_23 = arith.constant 0.000000e+00 : f32
      %42 = vector.broadcast %cst_23 : f32 to vector<112x128xf32>
      %43 = arith.maximumf %41, %42 : vector<112x128xf32>
      %44 = arith.truncf %43 : vector<112x128xf32> to vector<112x128xbf16>
      %c0_24 = arith.constant 0 : index
      %c0_25 = arith.constant 0 : index
      %45 = vector.load %arg7[%c0_24, %c0_25] : memref<112x128xbf16, #tpu.memory_space<vmem>>, vector<112x128xbf16>
      tpu.vector_store %arg7[%c0_24, %c0_25], %44 {strides = array<i32>} : memref<112x128xbf16, #tpu.memory_space<vmem>>, vector<112x128xbf16>,
    } else {
    }
    return
  }
  func.func @transform_0(%arg0: i32, %arg1: i32) -> (i32, i32) {
    %c0_i32 = arith.constant 0 : i32
    %c0_i32_0 = arith.constant 0 : i32
    return %c0_i32, %arg1 : i32, i32
  }
  func.func @transform_1(%arg0: i32, %arg1: i32) -> (i32, i32) {
    %c0_i32 = arith.constant 0 : i32
    return %arg1, %arg0 : i32, i32
  }
  func.func @transform_2(%arg0: i32, %arg1: i32) -> (i32, i32) {
    %c0_i32 = arith.constant 0 : i32
    %c0_i32_0 = arith.constant 0 : i32
    return %c0_i32, %arg0 : i32, i32
  }
  func.func @transform_3(%arg0: i32, %arg1: i32) -> (i32, i32) {
    %c0_i32 = arith.constant 0 : i32
    %c0_i32_0 = arith.constant 0 : i32
    return %c0_i32, %arg0 : i32, i32
  }
  func.func @transform_4(%arg0: i32, %arg1: i32) -> (i32, i32) {
    %c0_i32 = arith.constant 0 : i32
    %c0_i32_0 = arith.constant 0 : i32
    return %c0_i32, %arg0 : i32, i32
  }
  func.func @transform_5(%arg0: i32, %arg1: i32) -> (i32, i32) {
    %c0_i32 = arith.constant 0 : i32
    %c0_i32_0 = arith.constant 0 : i32
    return %c0_i32, %arg0 : i32, i32
  }
}

module attributes {stable_mosaic.version = 11 : i64} {
  func.func @_gemm_bn_kernel(%arg0: i32, %arg1: i32, %arg2: memref<32x128xbf16, #tpu.memory_space<vmem>>, %arg3: memref<128x128xbf16, #tpu.memory_space<vmem>>, %arg4: memref<1x128xf32, #tpu.memory_space<vmem>>, %arg5: memref<1x128xf32, #tpu.memory_space<vmem>>, %arg6: memref<32x128xbf16, #tpu.memory_space<vmem>>, %arg7: memref<32x128xf32, #tpu.memory_space<vmem>>) attributes {dimension_semantics = [#tpu.dimension_semantics<parallel>, #tpu.dimension_semantics<arbitrary>], iteration_bounds = array<i64: 1, 5>, scalar_prefetch = 0 : i64, scratch_operands = 1 : i64, tpu.core_type = #tpu.core_type<tc>, window_params = [{transform_indices = @transform_0, window_bounds = array<i64: 32, 128>}, {transform_indices = @transform_1, window_bounds = array<i64: 128, 128>}, {transform_indices = @transform_2, window_bounds = array<i64: 1, 128>}, {transform_indices = @transform_3, window_bounds = array<i64: 1, 128>}, {transform_indices = @transform_4, window_bounds = array<i64: 32, 128>}]} {
    %c0_i32 = arith.constant 0 : i32
    %0 = arith.cmpi eq, %arg1, %c0_i32 : i32
    %1 = arith.extui %0 : i1 to i32
    %c0_i32_0 = arith.constant 0 : i32
    %2 = arith.cmpi ne, %1, %c0_i32_0 : i32
    scf.if %2 {
      %cst_9 = arith.constant 0.000000e+00 : f32
      %12 = vector.broadcast %cst_9 : f32 to vector<32x128xf32>
      %c0_10 = arith.constant 0 : index
      %c0_11 = arith.constant 0 : index
      %13 = vector.load %arg7[%c0_10, %c0_11] : memref<32x128xf32, #tpu.memory_space<vmem>>, vector<32x128xf32>
      tpu.vector_store %arg7[%c0_10, %c0_11], %12 {strides = array<i32>} : memref<32x128xf32, #tpu.memory_space<vmem>>, vector<32x128xf32>,
    } else {
    }
    %c0 = arith.constant 0 : index
    %c0_1 = arith.constant 0 : index
    %3 = vector.load %arg7[%c0, %c0_1] : memref<32x128xf32, #tpu.memory_space<vmem>>, vector<32x128xf32>
    %c0_2 = arith.constant 0 : index
    %c0_3 = arith.constant 0 : index
    %4 = vector.load %arg2[%c0_2, %c0_3] : memref<32x128xbf16, #tpu.memory_space<vmem>>, vector<32x128xbf16>
    %c0_4 = arith.constant 0 : index
    %c0_5 = arith.constant 0 : index
    %5 = vector.load %arg3[%c0_4, %c0_5] : memref<128x128xbf16, #tpu.memory_space<vmem>>, vector<128x128xbf16>
    %cst = arith.constant dense<0.000000e+00> : vector<32x128xf32>
    %6 = tpu.matmul %4, %5, %cst {dimension_numbers = #tpu.dot_dimension_numbers<[1], [0], [0], [1], [0, 0, 1, 1], [], []>} : vector<32x128xbf16>, vector<128x128xbf16>, vector<32x128xf32> -> vector<32x128xf32>
    %7 = arith.addf %3, %6 : vector<32x128xf32>
    %c0_6 = arith.constant 0 : index
    %c0_7 = arith.constant 0 : index
    %8 = vector.load %arg7[%c0_6, %c0_7] : memref<32x128xf32, #tpu.memory_space<vmem>>, vector<32x128xf32>
    tpu.vector_store %arg7[%c0_6, %c0_7], %7 {strides = array<i32>} : memref<32x128xf32, #tpu.memory_space<vmem>>, vector<32x128xf32>,
    %c4_i32 = arith.constant 4 : i32
    %9 = arith.cmpi eq, %arg1, %c4_i32 : i32
    %10 = arith.extui %9 : i1 to i32
    %c0_i32_8 = arith.constant 0 : i32
    %11 = arith.cmpi ne, %10, %c0_i32_8 : i32
    scf.if %11 {
      %c0_9 = arith.constant 0 : index
      %c0_10 = arith.constant 0 : index
      %12 = vector.load %arg7[%c0_9, %c0_10] : memref<32x128xf32, #tpu.memory_space<vmem>>, vector<32x128xf32>
      %c0_11 = arith.constant 0 : index
      %c0_12 = arith.constant 0 : index
      %13 = vector.load %arg4[%c0_11, %c0_12] : memref<1x128xf32, #tpu.memory_space<vmem>>, vector<1x128xf32>
      %c0_13 = arith.constant 0 : index
      %c0_14 = arith.constant 0 : index
      %14 = vector.load %arg5[%c0_13, %c0_14] : memref<1x128xf32, #tpu.memory_space<vmem>>, vector<1x128xf32>
      %cst_15 = arith.constant dense<0.000000e+00> : vector<128xf32>
      %15 = vector.multi_reduction <add>, %12, %cst_15 [0] : vector<32x128xf32> to vector<128xf32>
      %16 = vector.shape_cast %15 : vector<128xf32> to vector<1x128xf32>
      %cst_16 = arith.constant 3.125000e-02 : f32
      %17 = vector.broadcast %cst_16 : f32 to vector<1x128xf32>
      %18 = arith.mulf %16, %17 : vector<1x128xf32>
      %19 = tpu.iota {dimensions = array<i32: 0>} : vector<32x128xi32>
      %c32_i32 = arith.constant 32 : i32
      %20 = vector.broadcast %c32_i32 : i32 to vector<32x128xi32>
      %21 = arith.cmpi slt, %19, %20 : vector<32x128xi32>
      %22 = vector.broadcast %18 : vector<1x128xf32> to vector<32x128xf32>
      %23 = arith.subf %12, %22 : vector<32x128xf32>
      %cst_17 = arith.constant 0.000000e+00 : f32
      %24 = vector.broadcast %cst_17 : f32 to vector<32x128xf32>
      %25 = arith.select %21, %23, %24 : vector<32x128xi1>, vector<32x128xf32>
      %26 = arith.mulf %25, %25 : vector<32x128xf32>
      %cst_18 = arith.constant dense<0.000000e+00> : vector<128xf32>
      %27 = vector.multi_reduction <add>, %26, %cst_18 [0] : vector<32x128xf32> to vector<128xf32>
      %28 = vector.shape_cast %27 : vector<128xf32> to vector<1x128xf32>
      %cst_19 = arith.constant 3.125000e-02 : f32
      %29 = vector.broadcast %cst_19 : f32 to vector<1x128xf32>
      %30 = arith.mulf %28, %29 : vector<1x128xf32>
      %cst_20 = arith.constant 9.99999974E-6 : f32
      %31 = vector.broadcast %cst_20 : f32 to vector<1x128xf32>
      %32 = arith.addf %30, %31 : vector<1x128xf32>
      %33 = math.rsqrt %32 : vector<1x128xf32>
      %34 = arith.mulf %13, %33 : vector<1x128xf32>
      %35 = vector.broadcast %34 : vector<1x128xf32> to vector<32x128xf32>
      %36 = arith.mulf %25, %35 : vector<32x128xf32>
      %37 = vector.broadcast %14 : vector<1x128xf32> to vector<32x128xf32>
      %38 = arith.addf %36, %37 : vector<32x128xf32>
      %cst_21 = arith.constant 0.000000e+00 : f32
      %39 = vector.broadcast %cst_21 : f32 to vector<32x128xf32>
      %40 = arith.maximumf %38, %39 : vector<32x128xf32>
      %41 = arith.truncf %40 : vector<32x128xf32> to vector<32x128xbf16>
      %c0_22 = arith.constant 0 : index
      %c0_23 = arith.constant 0 : index
      %42 = vector.load %arg6[%c0_22, %c0_23] : memref<32x128xbf16, #tpu.memory_space<vmem>>, vector<32x128xbf16>
      tpu.vector_store %arg6[%c0_22, %c0_23], %41 {strides = array<i32>} : memref<32x128xbf16, #tpu.memory_space<vmem>>, vector<32x128xbf16>,
    } else {
    }
    return
  }
  func.func @transform_0(%arg0: i32, %arg1: i32) -> (i32, i32) {
    %c0_i32 = arith.constant 0 : i32
    %c0_i32_0 = arith.constant 0 : i32
    return %c0_i32, %arg1 : i32, i32
  }
  func.func @transform_1(%arg0: i32, %arg1: i32) -> (i32, i32) {
    %c0_i32 = arith.constant 0 : i32
    return %arg1, %arg0 : i32, i32
  }
  func.func @transform_2(%arg0: i32, %arg1: i32) -> (i32, i32) {
    %c0_i32 = arith.constant 0 : i32
    %c0_i32_0 = arith.constant 0 : i32
    return %c0_i32, %arg0 : i32, i32
  }
  func.func @transform_3(%arg0: i32, %arg1: i32) -> (i32, i32) {
    %c0_i32 = arith.constant 0 : i32
    %c0_i32_0 = arith.constant 0 : i32
    return %c0_i32, %arg0 : i32, i32
  }
  func.func @transform_4(%arg0: i32, %arg1: i32) -> (i32, i32) {
    %c0_i32 = arith.constant 0 : i32
    %c0_i32_0 = arith.constant 0 : i32
    return %c0_i32, %arg0 : i32, i32
  }
}

module attributes {stable_mosaic.version = 11 : i64} {
  func.func @_gemm_bn_res_kernel(%arg0: i32, %arg1: i32, %arg2: memref<32x128xbf16, #tpu.memory_space<vmem>>, %arg3: memref<128x128xbf16, #tpu.memory_space<vmem>>, %arg4: memref<1x128xf32, #tpu.memory_space<vmem>>, %arg5: memref<1x128xf32, #tpu.memory_space<vmem>>, %arg6: memref<32x128xbf16, #tpu.memory_space<vmem>>, %arg7: memref<32x128xbf16, #tpu.memory_space<vmem>>, %arg8: memref<32x128xf32, #tpu.memory_space<vmem>>) attributes {dimension_semantics = [#tpu.dimension_semantics<parallel>, #tpu.dimension_semantics<arbitrary>], iteration_bounds = array<i64: 1, 9>, scalar_prefetch = 0 : i64, scratch_operands = 1 : i64, tpu.core_type = #tpu.core_type<tc>, window_params = [{transform_indices = @transform_0, window_bounds = array<i64: 32, 128>}, {transform_indices = @transform_1, window_bounds = array<i64: 128, 128>}, {transform_indices = @transform_2, window_bounds = array<i64: 1, 128>}, {transform_indices = @transform_3, window_bounds = array<i64: 1, 128>}, {transform_indices = @transform_4, window_bounds = array<i64: 32, 128>}, {transform_indices = @transform_5, window_bounds = array<i64: 32, 128>}]} {
    %c0_i32 = arith.constant 0 : i32
    %0 = arith.cmpi eq, %arg1, %c0_i32 : i32
    %1 = arith.extui %0 : i1 to i32
    %c0_i32_0 = arith.constant 0 : i32
    %2 = arith.cmpi ne, %1, %c0_i32_0 : i32
    scf.if %2 {
      %cst_9 = arith.constant 0.000000e+00 : f32
      %12 = vector.broadcast %cst_9 : f32 to vector<32x128xf32>
      %c0_10 = arith.constant 0 : index
      %c0_11 = arith.constant 0 : index
      %13 = vector.load %arg8[%c0_10, %c0_11] : memref<32x128xf32, #tpu.memory_space<vmem>>, vector<32x128xf32>
      tpu.vector_store %arg8[%c0_10, %c0_11], %12 {strides = array<i32>} : memref<32x128xf32, #tpu.memory_space<vmem>>, vector<32x128xf32>,
    } else {
    }
    %c0 = arith.constant 0 : index
    %c0_1 = arith.constant 0 : index
    %3 = vector.load %arg8[%c0, %c0_1] : memref<32x128xf32, #tpu.memory_space<vmem>>, vector<32x128xf32>
    %c0_2 = arith.constant 0 : index
    %c0_3 = arith.constant 0 : index
    %4 = vector.load %arg2[%c0_2, %c0_3] : memref<32x128xbf16, #tpu.memory_space<vmem>>, vector<32x128xbf16>
    %c0_4 = arith.constant 0 : index
    %c0_5 = arith.constant 0 : index
    %5 = vector.load %arg3[%c0_4, %c0_5] : memref<128x128xbf16, #tpu.memory_space<vmem>>, vector<128x128xbf16>
    %cst = arith.constant dense<0.000000e+00> : vector<32x128xf32>
    %6 = tpu.matmul %4, %5, %cst {dimension_numbers = #tpu.dot_dimension_numbers<[1], [0], [0], [1], [0, 0, 1, 1], [], []>} : vector<32x128xbf16>, vector<128x128xbf16>, vector<32x128xf32> -> vector<32x128xf32>
    %7 = arith.addf %3, %6 : vector<32x128xf32>
    %c0_6 = arith.constant 0 : index
    %c0_7 = arith.constant 0 : index
    %8 = vector.load %arg8[%c0_6, %c0_7] : memref<32x128xf32, #tpu.memory_space<vmem>>, vector<32x128xf32>
    tpu.vector_store %arg8[%c0_6, %c0_7], %7 {strides = array<i32>} : memref<32x128xf32, #tpu.memory_space<vmem>>, vector<32x128xf32>,
    %c8_i32 = arith.constant 8 : i32
    %9 = arith.cmpi eq, %arg1, %c8_i32 : i32
    %10 = arith.extui %9 : i1 to i32
    %c0_i32_8 = arith.constant 0 : i32
    %11 = arith.cmpi ne, %10, %c0_i32_8 : i32
    scf.if %11 {
      %c0_9 = arith.constant 0 : index
      %c0_10 = arith.constant 0 : index
      %12 = vector.load %arg8[%c0_9, %c0_10] : memref<32x128xf32, #tpu.memory_space<vmem>>, vector<32x128xf32>
      %c0_11 = arith.constant 0 : index
      %c0_12 = arith.constant 0 : index
      %13 = vector.load %arg4[%c0_11, %c0_12] : memref<1x128xf32, #tpu.memory_space<vmem>>, vector<1x128xf32>
      %c0_13 = arith.constant 0 : index
      %c0_14 = arith.constant 0 : index
      %14 = vector.load %arg5[%c0_13, %c0_14] : memref<1x128xf32, #tpu.memory_space<vmem>>, vector<1x128xf32>
      %c0_15 = arith.constant 0 : index
      %c0_16 = arith.constant 0 : index
      %15 = vector.load %arg6[%c0_15, %c0_16] : memref<32x128xbf16, #tpu.memory_space<vmem>>, vector<32x128xbf16>
      %cst_17 = arith.constant dense<0.000000e+00> : vector<128xf32>
      %16 = vector.multi_reduction <add>, %12, %cst_17 [0] : vector<32x128xf32> to vector<128xf32>
      %17 = vector.shape_cast %16 : vector<128xf32> to vector<1x128xf32>
      %cst_18 = arith.constant 3.125000e-02 : f32
      %18 = vector.broadcast %cst_18 : f32 to vector<1x128xf32>
      %19 = arith.mulf %17, %18 : vector<1x128xf32>
      %20 = tpu.iota {dimensions = array<i32: 0>} : vector<32x128xi32>
      %c32_i32 = arith.constant 32 : i32
      %21 = vector.broadcast %c32_i32 : i32 to vector<32x128xi32>
      %22 = arith.cmpi slt, %20, %21 : vector<32x128xi32>
      %23 = vector.broadcast %19 : vector<1x128xf32> to vector<32x128xf32>
      %24 = arith.subf %12, %23 : vector<32x128xf32>
      %cst_19 = arith.constant 0.000000e+00 : f32
      %25 = vector.broadcast %cst_19 : f32 to vector<32x128xf32>
      %26 = arith.select %22, %24, %25 : vector<32x128xi1>, vector<32x128xf32>
      %27 = arith.mulf %26, %26 : vector<32x128xf32>
      %cst_20 = arith.constant dense<0.000000e+00> : vector<128xf32>
      %28 = vector.multi_reduction <add>, %27, %cst_20 [0] : vector<32x128xf32> to vector<128xf32>
      %29 = vector.shape_cast %28 : vector<128xf32> to vector<1x128xf32>
      %cst_21 = arith.constant 3.125000e-02 : f32
      %30 = vector.broadcast %cst_21 : f32 to vector<1x128xf32>
      %31 = arith.mulf %29, %30 : vector<1x128xf32>
      %cst_22 = arith.constant 9.99999974E-6 : f32
      %32 = vector.broadcast %cst_22 : f32 to vector<1x128xf32>
      %33 = arith.addf %31, %32 : vector<1x128xf32>
      %34 = math.rsqrt %33 : vector<1x128xf32>
      %35 = arith.mulf %13, %34 : vector<1x128xf32>
      %36 = vector.broadcast %35 : vector<1x128xf32> to vector<32x128xf32>
      %37 = arith.mulf %26, %36 : vector<32x128xf32>
      %38 = vector.broadcast %14 : vector<1x128xf32> to vector<32x128xf32>
      %39 = arith.addf %37, %38 : vector<32x128xf32>
      %40 = arith.extf %15 : vector<32x128xbf16> to vector<32x128xf32>
      %41 = arith.addf %39, %40 : vector<32x128xf32>
      %cst_23 = arith.constant 0.000000e+00 : f32
      %42 = vector.broadcast %cst_23 : f32 to vector<32x128xf32>
      %43 = arith.maximumf %41, %42 : vector<32x128xf32>
      %44 = arith.truncf %43 : vector<32x128xf32> to vector<32x128xbf16>
      %c0_24 = arith.constant 0 : index
      %c0_25 = arith.constant 0 : index
      %45 = vector.load %arg7[%c0_24, %c0_25] : memref<32x128xbf16, #tpu.memory_space<vmem>>, vector<32x128xbf16>
      tpu.vector_store %arg7[%c0_24, %c0_25], %44 {strides = array<i32>} : memref<32x128xbf16, #tpu.memory_space<vmem>>, vector<32x128xbf16>,
    } else {
    }
    return
  }
  func.func @transform_0(%arg0: i32, %arg1: i32) -> (i32, i32) {
    %c0_i32 = arith.constant 0 : i32
    %c0_i32_0 = arith.constant 0 : i32
    return %c0_i32, %arg1 : i32, i32
  }
  func.func @transform_1(%arg0: i32, %arg1: i32) -> (i32, i32) {
    %c0_i32 = arith.constant 0 : i32
    return %arg1, %arg0 : i32, i32
  }
  func.func @transform_2(%arg0: i32, %arg1: i32) -> (i32, i32) {
    %c0_i32 = arith.constant 0 : i32
    %c0_i32_0 = arith.constant 0 : i32
    return %c0_i32, %arg0 : i32, i32
  }
  func.func @transform_3(%arg0: i32, %arg1: i32) -> (i32, i32) {
    %c0_i32 = arith.constant 0 : i32
    %c0_i32_0 = arith.constant 0 : i32
    return %c0_i32, %arg0 : i32, i32
  }
  func.func @transform_4(%arg0: i32, %arg1: i32) -> (i32, i32) {
    %c0_i32 = arith.constant 0 : i32
    %c0_i32_0 = arith.constant 0 : i32
    return %c0_i32, %arg0 : i32, i32
  }
  func.func @transform_5(%arg0: i32, %arg1: i32) -> (i32, i32) {
    %c0_i32 = arith.constant 0 : i32
    %c0_i32_0 = arith.constant 0 : i32
    return %c0_i32, %arg0 : i32, i32
  }
}

module attributes {stable_mosaic.version = 11 : i64} {
  func.func @_gemm_bias_kernel(%arg0: i32, %arg1: i32, %arg2: memref<32x128xbf16, #tpu.memory_space<vmem>>, %arg3: memref<128x128xbf16, #tpu.memory_space<vmem>>, %arg4: memref<1x128xf32, #tpu.memory_space<vmem>>, %arg5: memref<32x128xbf16, #tpu.memory_space<vmem>>, %arg6: memref<32x128xf32, #tpu.memory_space<vmem>>) attributes {dimension_semantics = [#tpu.dimension_semantics<parallel>, #tpu.dimension_semantics<arbitrary>], iteration_bounds = array<i64: 1, 1>, scalar_prefetch = 0 : i64, scratch_operands = 1 : i64, tpu.core_type = #tpu.core_type<tc>, window_params = [{transform_indices = @transform_0, window_bounds = array<i64: 32, 128>}, {transform_indices = @transform_1, window_bounds = array<i64: 128, 128>}, {transform_indices = @transform_2, window_bounds = array<i64: 1, 128>}, {transform_indices = @transform_3, window_bounds = array<i64: 32, 128>}]} {
    %c0_i32 = arith.constant 0 : i32
    %0 = arith.cmpi eq, %arg1, %c0_i32 : i32
    %1 = arith.extui %0 : i1 to i32
    %c0_i32_0 = arith.constant 0 : i32
    %2 = arith.cmpi ne, %1, %c0_i32_0 : i32
    scf.if %2 {
      %cst_10 = arith.constant 0.000000e+00 : f32
      %12 = vector.broadcast %cst_10 : f32 to vector<32x128xf32>
      %c0_11 = arith.constant 0 : index
      %c0_12 = arith.constant 0 : index
      %13 = vector.load %arg6[%c0_11, %c0_12] : memref<32x128xf32, #tpu.memory_space<vmem>>, vector<32x128xf32>
      tpu.vector_store %arg6[%c0_11, %c0_12], %12 {strides = array<i32>} : memref<32x128xf32, #tpu.memory_space<vmem>>, vector<32x128xf32>,
    } else {
    }
    %c0 = arith.constant 0 : index
    %c0_1 = arith.constant 0 : index
    %3 = vector.load %arg6[%c0, %c0_1] : memref<32x128xf32, #tpu.memory_space<vmem>>, vector<32x128xf32>
    %c0_2 = arith.constant 0 : index
    %c0_3 = arith.constant 0 : index
    %4 = vector.load %arg2[%c0_2, %c0_3] : memref<32x128xbf16, #tpu.memory_space<vmem>>, vector<32x128xbf16>
    %c0_4 = arith.constant 0 : index
    %c0_5 = arith.constant 0 : index
    %5 = vector.load %arg3[%c0_4, %c0_5] : memref<128x128xbf16, #tpu.memory_space<vmem>>, vector<128x128xbf16>
    %cst = arith.constant dense<0.000000e+00> : vector<32x128xf32>
    %6 = tpu.matmul %4, %5, %cst {dimension_numbers = #tpu.dot_dimension_numbers<[1], [0], [0], [1], [0, 0, 1, 1], [], []>} : vector<32x128xbf16>, vector<128x128xbf16>, vector<32x128xf32> -> vector<32x128xf32>
    %7 = arith.addf %3, %6 : vector<32x128xf32>
    %c0_6 = arith.constant 0 : index
    %c0_7 = arith.constant 0 : index
    %8 = vector.load %arg6[%c0_6, %c0_7] : memref<32x128xf32, #tpu.memory_space<vmem>>, vector<32x128xf32>
    tpu.vector_store %arg6[%c0_6, %c0_7], %7 {strides = array<i32>} : memref<32x128xf32, #tpu.memory_space<vmem>>, vector<32x128xf32>,
    %c0_i32_8 = arith.constant 0 : i32
    %9 = arith.cmpi eq, %arg1, %c0_i32_8 : i32
    %10 = arith.extui %9 : i1 to i32
    %c0_i32_9 = arith.constant 0 : i32
    %11 = arith.cmpi ne, %10, %c0_i32_9 : i32
    scf.if %11 {
      %c0_10 = arith.constant 0 : index
      %c0_11 = arith.constant 0 : index
      %12 = vector.load %arg6[%c0_10, %c0_11] : memref<32x128xf32, #tpu.memory_space<vmem>>, vector<32x128xf32>
      %c0_12 = arith.constant 0 : index
      %c0_13 = arith.constant 0 : index
      %13 = vector.load %arg4[%c0_12, %c0_13] : memref<1x128xf32, #tpu.memory_space<vmem>>, vector<1x128xf32>
      %14 = vector.broadcast %13 : vector<1x128xf32> to vector<32x128xf32>
      %15 = arith.addf %12, %14 : vector<32x128xf32>
      %16 = arith.truncf %15 : vector<32x128xf32> to vector<32x128xbf16>
      %c0_14 = arith.constant 0 : index
      %c0_15 = arith.constant 0 : index
      %17 = vector.load %arg5[%c0_14, %c0_15] : memref<32x128xbf16, #tpu.memory_space<vmem>>, vector<32x128xbf16>
      tpu.vector_store %arg5[%c0_14, %c0_15], %16 {strides = array<i32>} : memref<32x128xbf16, #tpu.memory_space<vmem>>, vector<32x128xbf16>,
    } else {
    }
    return
  }
  func.func @transform_0(%arg0: i32, %arg1: i32) -> (i32, i32) {
    %c0_i32 = arith.constant 0 : i32
    %c0_i32_0 = arith.constant 0 : i32
    return %c0_i32, %arg1 : i32, i32
  }
  func.func @transform_1(%arg0: i32, %arg1: i32) -> (i32, i32) {
    %c0_i32 = arith.constant 0 : i32
    return %arg1, %arg0 : i32, i32
  }
  func.func @transform_2(%arg0: i32, %arg1: i32) -> (i32, i32) {
    %c0_i32 = arith.constant 0 : i32
    %c0_i32_0 = arith.constant 0 : i32
    return %c0_i32, %arg0 : i32, i32
  }
  func.func @transform_3(%arg0: i32, %arg1: i32) -> (i32, i32) {
    %c0_i32 = arith.constant 0 : i32
    %c0_i32_0 = arith.constant 0 : i32
    return %c0_i32, %arg0 : i32, i32
  }
}

module attributes {stable_mosaic.version = 11 : i64} {
  func.func @_gemm_bn_kernel(%arg0: i32, %arg1: i32, %arg2: memref<32x128xbf16, #tpu.memory_space<vmem>>, %arg3: memref<128x128xbf16, #tpu.memory_space<vmem>>, %arg4: memref<1x128xf32, #tpu.memory_space<vmem>>, %arg5: memref<1x128xf32, #tpu.memory_space<vmem>>, %arg6: memref<32x128xbf16, #tpu.memory_space<vmem>>, %arg7: memref<32x128xf32, #tpu.memory_space<vmem>>) attributes {dimension_semantics = [#tpu.dimension_semantics<parallel>, #tpu.dimension_semantics<arbitrary>], iteration_bounds = array<i64: 1, 9>, scalar_prefetch = 0 : i64, scratch_operands = 1 : i64, tpu.core_type = #tpu.core_type<tc>, window_params = [{transform_indices = @transform_0, window_bounds = array<i64: 32, 128>}, {transform_indices = @transform_1, window_bounds = array<i64: 128, 128>}, {transform_indices = @transform_2, window_bounds = array<i64: 1, 128>}, {transform_indices = @transform_3, window_bounds = array<i64: 1, 128>}, {transform_indices = @transform_4, window_bounds = array<i64: 32, 128>}]} {
    %c0_i32 = arith.constant 0 : i32
    %0 = arith.cmpi eq, %arg1, %c0_i32 : i32
    %1 = arith.extui %0 : i1 to i32
    %c0_i32_0 = arith.constant 0 : i32
    %2 = arith.cmpi ne, %1, %c0_i32_0 : i32
    scf.if %2 {
      %cst_9 = arith.constant 0.000000e+00 : f32
      %12 = vector.broadcast %cst_9 : f32 to vector<32x128xf32>
      %c0_10 = arith.constant 0 : index
      %c0_11 = arith.constant 0 : index
      %13 = vector.load %arg7[%c0_10, %c0_11] : memref<32x128xf32, #tpu.memory_space<vmem>>, vector<32x128xf32>
      tpu.vector_store %arg7[%c0_10, %c0_11], %12 {strides = array<i32>} : memref<32x128xf32, #tpu.memory_space<vmem>>, vector<32x128xf32>,
    } else {
    }
    %c0 = arith.constant 0 : index
    %c0_1 = arith.constant 0 : index
    %3 = vector.load %arg7[%c0, %c0_1] : memref<32x128xf32, #tpu.memory_space<vmem>>, vector<32x128xf32>
    %c0_2 = arith.constant 0 : index
    %c0_3 = arith.constant 0 : index
    %4 = vector.load %arg2[%c0_2, %c0_3] : memref<32x128xbf16, #tpu.memory_space<vmem>>, vector<32x128xbf16>
    %c0_4 = arith.constant 0 : index
    %c0_5 = arith.constant 0 : index
    %5 = vector.load %arg3[%c0_4, %c0_5] : memref<128x128xbf16, #tpu.memory_space<vmem>>, vector<128x128xbf16>
    %cst = arith.constant dense<0.000000e+00> : vector<32x128xf32>
    %6 = tpu.matmul %4, %5, %cst {dimension_numbers = #tpu.dot_dimension_numbers<[1], [0], [0], [1], [0, 0, 1, 1], [], []>} : vector<32x128xbf16>, vector<128x128xbf16>, vector<32x128xf32> -> vector<32x128xf32>
    %7 = arith.addf %3, %6 : vector<32x128xf32>
    %c0_6 = arith.constant 0 : index
    %c0_7 = arith.constant 0 : index
    %8 = vector.load %arg7[%c0_6, %c0_7] : memref<32x128xf32, #tpu.memory_space<vmem>>, vector<32x128xf32>
    tpu.vector_store %arg7[%c0_6, %c0_7], %7 {strides = array<i32>} : memref<32x128xf32, #tpu.memory_space<vmem>>, vector<32x128xf32>,
    %c8_i32 = arith.constant 8 : i32
    %9 = arith.cmpi eq, %arg1, %c8_i32 : i32
    %10 = arith.extui %9 : i1 to i32
    %c0_i32_8 = arith.constant 0 : i32
    %11 = arith.cmpi ne, %10, %c0_i32_8 : i32
    scf.if %11 {
      %c0_9 = arith.constant 0 : index
      %c0_10 = arith.constant 0 : index
      %12 = vector.load %arg7[%c0_9, %c0_10] : memref<32x128xf32, #tpu.memory_space<vmem>>, vector<32x128xf32>
      %c0_11 = arith.constant 0 : index
      %c0_12 = arith.constant 0 : index
      %13 = vector.load %arg4[%c0_11, %c0_12] : memref<1x128xf32, #tpu.memory_space<vmem>>, vector<1x128xf32>
      %c0_13 = arith.constant 0 : index
      %c0_14 = arith.constant 0 : index
      %14 = vector.load %arg5[%c0_13, %c0_14] : memref<1x128xf32, #tpu.memory_space<vmem>>, vector<1x128xf32>
      %cst_15 = arith.constant dense<0.000000e+00> : vector<128xf32>
      %15 = vector.multi_reduction <add>, %12, %cst_15 [0] : vector<32x128xf32> to vector<128xf32>
      %16 = vector.shape_cast %15 : vector<128xf32> to vector<1x128xf32>
      %cst_16 = arith.constant 3.125000e-02 : f32
      %17 = vector.broadcast %cst_16 : f32 to vector<1x128xf32>
      %18 = arith.mulf %16, %17 : vector<1x128xf32>
      %19 = tpu.iota {dimensions = array<i32: 0>} : vector<32x128xi32>
      %c32_i32 = arith.constant 32 : i32
      %20 = vector.broadcast %c32_i32 : i32 to vector<32x128xi32>
      %21 = arith.cmpi slt, %19, %20 : vector<32x128xi32>
      %22 = vector.broadcast %18 : vector<1x128xf32> to vector<32x128xf32>
      %23 = arith.subf %12, %22 : vector<32x128xf32>
      %cst_17 = arith.constant 0.000000e+00 : f32
      %24 = vector.broadcast %cst_17 : f32 to vector<32x128xf32>
      %25 = arith.select %21, %23, %24 : vector<32x128xi1>, vector<32x128xf32>
      %26 = arith.mulf %25, %25 : vector<32x128xf32>
      %cst_18 = arith.constant dense<0.000000e+00> : vector<128xf32>
      %27 = vector.multi_reduction <add>, %26, %cst_18 [0] : vector<32x128xf32> to vector<128xf32>
      %28 = vector.shape_cast %27 : vector<128xf32> to vector<1x128xf32>
      %cst_19 = arith.constant 3.125000e-02 : f32
      %29 = vector.broadcast %cst_19 : f32 to vector<1x128xf32>
      %30 = arith.mulf %28, %29 : vector<1x128xf32>
      %cst_20 = arith.constant 9.99999974E-6 : f32
      %31 = vector.broadcast %cst_20 : f32 to vector<1x128xf32>
      %32 = arith.addf %30, %31 : vector<1x128xf32>
      %33 = math.rsqrt %32 : vector<1x128xf32>
      %34 = arith.mulf %13, %33 : vector<1x128xf32>
      %35 = vector.broadcast %34 : vector<1x128xf32> to vector<32x128xf32>
      %36 = arith.mulf %25, %35 : vector<32x128xf32>
      %37 = vector.broadcast %14 : vector<1x128xf32> to vector<32x128xf32>
      %38 = arith.addf %36, %37 : vector<32x128xf32>
      %cst_21 = arith.constant 0.000000e+00 : f32
      %39 = vector.broadcast %cst_21 : f32 to vector<32x128xf32>
      %40 = arith.maximumf %38, %39 : vector<32x128xf32>
      %41 = arith.truncf %40 : vector<32x128xf32> to vector<32x128xbf16>
      %c0_22 = arith.constant 0 : index
      %c0_23 = arith.constant 0 : index
      %42 = vector.load %arg6[%c0_22, %c0_23] : memref<32x128xbf16, #tpu.memory_space<vmem>>, vector<32x128xbf16>
      tpu.vector_store %arg6[%c0_22, %c0_23], %41 {strides = array<i32>} : memref<32x128xbf16, #tpu.memory_space<vmem>>, vector<32x128xbf16>,
    } else {
    }
    return
  }
  func.func @transform_0(%arg0: i32, %arg1: i32) -> (i32, i32) {
    %c0_i32 = arith.constant 0 : i32
    %c0_i32_0 = arith.constant 0 : i32
    return %c0_i32, %arg1 : i32, i32
  }
  func.func @transform_1(%arg0: i32, %arg1: i32) -> (i32, i32) {
    %c0_i32 = arith.constant 0 : i32
    return %arg1, %arg0 : i32, i32
  }
  func.func @transform_2(%arg0: i32, %arg1: i32) -> (i32, i32) {
    %c0_i32 = arith.constant 0 : i32
    %c0_i32_0 = arith.constant 0 : i32
    return %c0_i32, %arg0 : i32, i32
  }
  func.func @transform_3(%arg0: i32, %arg1: i32) -> (i32, i32) {
    %c0_i32 = arith.constant 0 : i32
    %c0_i32_0 = arith.constant 0 : i32
    return %c0_i32, %arg0 : i32, i32
  }
  func.func @transform_4(%arg0: i32, %arg1: i32) -> (i32, i32) {
    %c0_i32 = arith.constant 0 : i32
    %c0_i32_0 = arith.constant 0 : i32
    return %c0_i32, %arg0 : i32, i32
  }
}

module attributes {stable_mosaic.version = 11 : i64} {
  func.func @_gemm_bn_kernel(%arg0: i32, %arg1: i32, %arg2: memref<16x128xbf16, #tpu.memory_space<vmem>>, %arg3: memref<128x256xbf16, #tpu.memory_space<vmem>>, %arg4: memref<1x256xf32, #tpu.memory_space<vmem>>, %arg5: memref<1x256xf32, #tpu.memory_space<vmem>>, %arg6: memref<16x256xbf16, #tpu.memory_space<vmem>>, %arg7: memref<16x256xf32, #tpu.memory_space<vmem>>) attributes {dimension_semantics = [#tpu.dimension_semantics<parallel>, #tpu.dimension_semantics<arbitrary>], iteration_bounds = array<i64: 1, 9>, scalar_prefetch = 0 : i64, scratch_operands = 1 : i64, tpu.core_type = #tpu.core_type<tc>, window_params = [{transform_indices = @transform_0, window_bounds = array<i64: 16, 128>}, {transform_indices = @transform_1, window_bounds = array<i64: 128, 256>}, {transform_indices = @transform_2, window_bounds = array<i64: 1, 256>}, {transform_indices = @transform_3, window_bounds = array<i64: 1, 256>}, {transform_indices = @transform_4, window_bounds = array<i64: 16, 256>}]} {
    %c0_i32 = arith.constant 0 : i32
    %0 = arith.cmpi eq, %arg1, %c0_i32 : i32
    %1 = arith.extui %0 : i1 to i32
    %c0_i32_0 = arith.constant 0 : i32
    %2 = arith.cmpi ne, %1, %c0_i32_0 : i32
    scf.if %2 {
      %cst_9 = arith.constant 0.000000e+00 : f32
      %12 = vector.broadcast %cst_9 : f32 to vector<16x256xf32>
      %c0_10 = arith.constant 0 : index
      %c0_11 = arith.constant 0 : index
      %13 = vector.load %arg7[%c0_10, %c0_11] : memref<16x256xf32, #tpu.memory_space<vmem>>, vector<16x256xf32>
      tpu.vector_store %arg7[%c0_10, %c0_11], %12 {strides = array<i32>} : memref<16x256xf32, #tpu.memory_space<vmem>>, vector<16x256xf32>,
    } else {
    }
    %c0 = arith.constant 0 : index
    %c0_1 = arith.constant 0 : index
    %3 = vector.load %arg7[%c0, %c0_1] : memref<16x256xf32, #tpu.memory_space<vmem>>, vector<16x256xf32>
    %c0_2 = arith.constant 0 : index
    %c0_3 = arith.constant 0 : index
    %4 = vector.load %arg2[%c0_2, %c0_3] : memref<16x128xbf16, #tpu.memory_space<vmem>>, vector<16x128xbf16>
    %c0_4 = arith.constant 0 : index
    %c0_5 = arith.constant 0 : index
    %5 = vector.load %arg3[%c0_4, %c0_5] : memref<128x256xbf16, #tpu.memory_space<vmem>>, vector<128x256xbf16>
    %cst = arith.constant dense<0.000000e+00> : vector<16x256xf32>
    %6 = tpu.matmul %4, %5, %cst {dimension_numbers = #tpu.dot_dimension_numbers<[1], [0], [0], [1], [0, 0, 1, 1], [], []>} : vector<16x128xbf16>, vector<128x256xbf16>, vector<16x256xf32> -> vector<16x256xf32>
    %7 = arith.addf %3, %6 : vector<16x256xf32>
    %c0_6 = arith.constant 0 : index
    %c0_7 = arith.constant 0 : index
    %8 = vector.load %arg7[%c0_6, %c0_7] : memref<16x256xf32, #tpu.memory_space<vmem>>, vector<16x256xf32>
    tpu.vector_store %arg7[%c0_6, %c0_7], %7 {strides = array<i32>} : memref<16x256xf32, #tpu.memory_space<vmem>>, vector<16x256xf32>,
    %c8_i32 = arith.constant 8 : i32
    %9 = arith.cmpi eq, %arg1, %c8_i32 : i32
    %10 = arith.extui %9 : i1 to i32
    %c0_i32_8 = arith.constant 0 : i32
    %11 = arith.cmpi ne, %10, %c0_i32_8 : i32
    scf.if %11 {
      %c0_9 = arith.constant 0 : index
      %c0_10 = arith.constant 0 : index
      %12 = vector.load %arg7[%c0_9, %c0_10] : memref<16x256xf32, #tpu.memory_space<vmem>>, vector<16x256xf32>
      %c0_11 = arith.constant 0 : index
      %c0_12 = arith.constant 0 : index
      %13 = vector.load %arg4[%c0_11, %c0_12] : memref<1x256xf32, #tpu.memory_space<vmem>>, vector<1x256xf32>
      %c0_13 = arith.constant 0 : index
      %c0_14 = arith.constant 0 : index
      %14 = vector.load %arg5[%c0_13, %c0_14] : memref<1x256xf32, #tpu.memory_space<vmem>>, vector<1x256xf32>
      %cst_15 = arith.constant dense<0.000000e+00> : vector<256xf32>
      %15 = vector.multi_reduction <add>, %12, %cst_15 [0] : vector<16x256xf32> to vector<256xf32>
      %16 = vector.shape_cast %15 : vector<256xf32> to vector<1x256xf32>
      %cst_16 = arith.constant 1.250000e-01 : f32
      %17 = vector.broadcast %cst_16 : f32 to vector<1x256xf32>
      %18 = arith.mulf %16, %17 : vector<1x256xf32>
      %19 = tpu.iota {dimensions = array<i32: 0>} : vector<16x256xi32>
      %c8_i32_17 = arith.constant 8 : i32
      %20 = vector.broadcast %c8_i32_17 : i32 to vector<16x256xi32>
      %21 = arith.cmpi slt, %19, %20 : vector<16x256xi32>
      %22 = vector.broadcast %18 : vector<1x256xf32> to vector<16x256xf32>
      %23 = arith.subf %12, %22 : vector<16x256xf32>
      %cst_18 = arith.constant 0.000000e+00 : f32
      %24 = vector.broadcast %cst_18 : f32 to vector<16x256xf32>
      %25 = arith.select %21, %23, %24 : vector<16x256xi1>, vector<16x256xf32>
      %26 = arith.mulf %25, %25 : vector<16x256xf32>
      %cst_19 = arith.constant dense<0.000000e+00> : vector<256xf32>
      %27 = vector.multi_reduction <add>, %26, %cst_19 [0] : vector<16x256xf32> to vector<256xf32>
      %28 = vector.shape_cast %27 : vector<256xf32> to vector<1x256xf32>
      %cst_20 = arith.constant 1.250000e-01 : f32
      %29 = vector.broadcast %cst_20 : f32 to vector<1x256xf32>
      %30 = arith.mulf %28, %29 : vector<1x256xf32>
      %cst_21 = arith.constant 9.99999974E-6 : f32
      %31 = vector.broadcast %cst_21 : f32 to vector<1x256xf32>
      %32 = arith.addf %30, %31 : vector<1x256xf32>
      %33 = math.rsqrt %32 : vector<1x256xf32>
      %34 = arith.mulf %13, %33 : vector<1x256xf32>
      %35 = vector.broadcast %34 : vector<1x256xf32> to vector<16x256xf32>
      %36 = arith.mulf %25, %35 : vector<16x256xf32>
      %37 = vector.broadcast %14 : vector<1x256xf32> to vector<16x256xf32>
      %38 = arith.addf %36, %37 : vector<16x256xf32>
      %cst_22 = arith.constant 0.000000e+00 : f32
      %39 = vector.broadcast %cst_22 : f32 to vector<16x256xf32>
      %40 = arith.maximumf %38, %39 : vector<16x256xf32>
      %41 = arith.truncf %40 : vector<16x256xf32> to vector<16x256xbf16>
      %c0_23 = arith.constant 0 : index
      %c0_24 = arith.constant 0 : index
      %42 = vector.load %arg6[%c0_23, %c0_24] : memref<16x256xbf16, #tpu.memory_space<vmem>>, vector<16x256xbf16>
      tpu.vector_store %arg6[%c0_23, %c0_24], %41 {strides = array<i32>} : memref<16x256xbf16, #tpu.memory_space<vmem>>, vector<16x256xbf16>,
    } else {
    }
    return
  }
  func.func @transform_0(%arg0: i32, %arg1: i32) -> (i32, i32) {
    %c0_i32 = arith.constant 0 : i32
    %c0_i32_0 = arith.constant 0 : i32
    return %c0_i32, %arg1 : i32, i32
  }
  func.func @transform_1(%arg0: i32, %arg1: i32) -> (i32, i32) {
    %c0_i32 = arith.constant 0 : i32
    return %arg1, %arg0 : i32, i32
  }
  func.func @transform_2(%arg0: i32, %arg1: i32) -> (i32, i32) {
    %c0_i32 = arith.constant 0 : i32
    %c0_i32_0 = arith.constant 0 : i32
    return %c0_i32, %arg0 : i32, i32
  }
  func.func @transform_3(%arg0: i32, %arg1: i32) -> (i32, i32) {
    %c0_i32 = arith.constant 0 : i32
    %c0_i32_0 = arith.constant 0 : i32
    return %c0_i32, %arg0 : i32, i32
  }
  func.func @transform_4(%arg0: i32, %arg1: i32) -> (i32, i32) {
    %c0_i32 = arith.constant 0 : i32
    %c0_i32_0 = arith.constant 0 : i32
    return %c0_i32, %arg0 : i32, i32
  }
}

module attributes {stable_mosaic.version = 11 : i64} {
  func.func @_gemm_bias_kernel(%arg0: i32, %arg1: i32, %arg2: memref<16x128xbf16, #tpu.memory_space<vmem>>, %arg3: memref<128x256xbf16, #tpu.memory_space<vmem>>, %arg4: memref<1x256xf32, #tpu.memory_space<vmem>>, %arg5: memref<16x256xbf16, #tpu.memory_space<vmem>>, %arg6: memref<16x256xf32, #tpu.memory_space<vmem>>) attributes {dimension_semantics = [#tpu.dimension_semantics<parallel>, #tpu.dimension_semantics<arbitrary>], iteration_bounds = array<i64: 1, 1>, scalar_prefetch = 0 : i64, scratch_operands = 1 : i64, tpu.core_type = #tpu.core_type<tc>, window_params = [{transform_indices = @transform_0, window_bounds = array<i64: 16, 128>}, {transform_indices = @transform_1, window_bounds = array<i64: 128, 256>}, {transform_indices = @transform_2, window_bounds = array<i64: 1, 256>}, {transform_indices = @transform_3, window_bounds = array<i64: 16, 256>}]} {
    %c0_i32 = arith.constant 0 : i32
    %0 = arith.cmpi eq, %arg1, %c0_i32 : i32
    %1 = arith.extui %0 : i1 to i32
    %c0_i32_0 = arith.constant 0 : i32
    %2 = arith.cmpi ne, %1, %c0_i32_0 : i32
    scf.if %2 {
      %cst_10 = arith.constant 0.000000e+00 : f32
      %12 = vector.broadcast %cst_10 : f32 to vector<16x256xf32>
      %c0_11 = arith.constant 0 : index
      %c0_12 = arith.constant 0 : index
      %13 = vector.load %arg6[%c0_11, %c0_12] : memref<16x256xf32, #tpu.memory_space<vmem>>, vector<16x256xf32>
      tpu.vector_store %arg6[%c0_11, %c0_12], %12 {strides = array<i32>} : memref<16x256xf32, #tpu.memory_space<vmem>>, vector<16x256xf32>,
    } else {
    }
    %c0 = arith.constant 0 : index
    %c0_1 = arith.constant 0 : index
    %3 = vector.load %arg6[%c0, %c0_1] : memref<16x256xf32, #tpu.memory_space<vmem>>, vector<16x256xf32>
    %c0_2 = arith.constant 0 : index
    %c0_3 = arith.constant 0 : index
    %4 = vector.load %arg2[%c0_2, %c0_3] : memref<16x128xbf16, #tpu.memory_space<vmem>>, vector<16x128xbf16>
    %c0_4 = arith.constant 0 : index
    %c0_5 = arith.constant 0 : index
    %5 = vector.load %arg3[%c0_4, %c0_5] : memref<128x256xbf16, #tpu.memory_space<vmem>>, vector<128x256xbf16>
    %cst = arith.constant dense<0.000000e+00> : vector<16x256xf32>
    %6 = tpu.matmul %4, %5, %cst {dimension_numbers = #tpu.dot_dimension_numbers<[1], [0], [0], [1], [0, 0, 1, 1], [], []>} : vector<16x128xbf16>, vector<128x256xbf16>, vector<16x256xf32> -> vector<16x256xf32>
    %7 = arith.addf %3, %6 : vector<16x256xf32>
    %c0_6 = arith.constant 0 : index
    %c0_7 = arith.constant 0 : index
    %8 = vector.load %arg6[%c0_6, %c0_7] : memref<16x256xf32, #tpu.memory_space<vmem>>, vector<16x256xf32>
    tpu.vector_store %arg6[%c0_6, %c0_7], %7 {strides = array<i32>} : memref<16x256xf32, #tpu.memory_space<vmem>>, vector<16x256xf32>,
    %c0_i32_8 = arith.constant 0 : i32
    %9 = arith.cmpi eq, %arg1, %c0_i32_8 : i32
    %10 = arith.extui %9 : i1 to i32
    %c0_i32_9 = arith.constant 0 : i32
    %11 = arith.cmpi ne, %10, %c0_i32_9 : i32
    scf.if %11 {
      %c0_10 = arith.constant 0 : index
      %c0_11 = arith.constant 0 : index
      %12 = vector.load %arg6[%c0_10, %c0_11] : memref<16x256xf32, #tpu.memory_space<vmem>>, vector<16x256xf32>
      %c0_12 = arith.constant 0 : index
      %c0_13 = arith.constant 0 : index
      %13 = vector.load %arg4[%c0_12, %c0_13] : memref<1x256xf32, #tpu.memory_space<vmem>>, vector<1x256xf32>
      %14 = vector.broadcast %13 : vector<1x256xf32> to vector<16x256xf32>
      %15 = arith.addf %12, %14 : vector<16x256xf32>
      %16 = arith.truncf %15 : vector<16x256xf32> to vector<16x256xbf16>
      %c0_14 = arith.constant 0 : index
      %c0_15 = arith.constant 0 : index
      %17 = vector.load %arg5[%c0_14, %c0_15] : memref<16x256xbf16, #tpu.memory_space<vmem>>, vector<16x256xbf16>
      tpu.vector_store %arg5[%c0_14, %c0_15], %16 {strides = array<i32>} : memref<16x256xbf16, #tpu.memory_space<vmem>>, vector<16x256xbf16>,
    } else {
    }
    return
  }
  func.func @transform_0(%arg0: i32, %arg1: i32) -> (i32, i32) {
    %c0_i32 = arith.constant 0 : i32
    %c0_i32_0 = arith.constant 0 : i32
    return %c0_i32, %arg1 : i32, i32
  }
  func.func @transform_1(%arg0: i32, %arg1: i32) -> (i32, i32) {
    %c0_i32 = arith.constant 0 : i32
    return %arg1, %arg0 : i32, i32
  }
  func.func @transform_2(%arg0: i32, %arg1: i32) -> (i32, i32) {
    %c0_i32 = arith.constant 0 : i32
    %c0_i32_0 = arith.constant 0 : i32
    return %c0_i32, %arg0 : i32, i32
  }
  func.func @transform_3(%arg0: i32, %arg1: i32) -> (i32, i32) {
    %c0_i32 = arith.constant 0 : i32
    %c0_i32_0 = arith.constant 0 : i32
    return %c0_i32, %arg0 : i32, i32
  }
}

module attributes {stable_mosaic.version = 11 : i64} {
  func.func @_gemm_bn_res_kernel(%arg0: i32, %arg1: i32, %arg2: memref<16x256xbf16, #tpu.memory_space<vmem>>, %arg3: memref<256x256xbf16, #tpu.memory_space<vmem>>, %arg4: memref<1x256xf32, #tpu.memory_space<vmem>>, %arg5: memref<1x256xf32, #tpu.memory_space<vmem>>, %arg6: memref<16x256xbf16, #tpu.memory_space<vmem>>, %arg7: memref<16x256xbf16, #tpu.memory_space<vmem>>, %arg8: memref<16x256xf32, #tpu.memory_space<vmem>>) attributes {dimension_semantics = [#tpu.dimension_semantics<parallel>, #tpu.dimension_semantics<arbitrary>], iteration_bounds = array<i64: 1, 9>, scalar_prefetch = 0 : i64, scratch_operands = 1 : i64, tpu.core_type = #tpu.core_type<tc>, window_params = [{transform_indices = @transform_0, window_bounds = array<i64: 16, 256>}, {transform_indices = @transform_1, window_bounds = array<i64: 256, 256>}, {transform_indices = @transform_2, window_bounds = array<i64: 1, 256>}, {transform_indices = @transform_3, window_bounds = array<i64: 1, 256>}, {transform_indices = @transform_4, window_bounds = array<i64: 16, 256>}, {transform_indices = @transform_5, window_bounds = array<i64: 16, 256>}]} {
    %c0_i32 = arith.constant 0 : i32
    %0 = arith.cmpi eq, %arg1, %c0_i32 : i32
    %1 = arith.extui %0 : i1 to i32
    %c0_i32_0 = arith.constant 0 : i32
    %2 = arith.cmpi ne, %1, %c0_i32_0 : i32
    scf.if %2 {
      %cst_9 = arith.constant 0.000000e+00 : f32
      %12 = vector.broadcast %cst_9 : f32 to vector<16x256xf32>
      %c0_10 = arith.constant 0 : index
      %c0_11 = arith.constant 0 : index
      %13 = vector.load %arg8[%c0_10, %c0_11] : memref<16x256xf32, #tpu.memory_space<vmem>>, vector<16x256xf32>
      tpu.vector_store %arg8[%c0_10, %c0_11], %12 {strides = array<i32>} : memref<16x256xf32, #tpu.memory_space<vmem>>, vector<16x256xf32>,
    } else {
    }
    %c0 = arith.constant 0 : index
    %c0_1 = arith.constant 0 : index
    %3 = vector.load %arg8[%c0, %c0_1] : memref<16x256xf32, #tpu.memory_space<vmem>>, vector<16x256xf32>
    %c0_2 = arith.constant 0 : index
    %c0_3 = arith.constant 0 : index
    %4 = vector.load %arg2[%c0_2, %c0_3] : memref<16x256xbf16, #tpu.memory_space<vmem>>, vector<16x256xbf16>
    %c0_4 = arith.constant 0 : index
    %c0_5 = arith.constant 0 : index
    %5 = vector.load %arg3[%c0_4, %c0_5] : memref<256x256xbf16, #tpu.memory_space<vmem>>, vector<256x256xbf16>
    %cst = arith.constant dense<0.000000e+00> : vector<16x256xf32>
    %6 = tpu.matmul %4, %5, %cst {dimension_numbers = #tpu.dot_dimension_numbers<[1], [0], [0], [1], [0, 0, 1, 1], [], []>} : vector<16x256xbf16>, vector<256x256xbf16>, vector<16x256xf32> -> vector<16x256xf32>
    %7 = arith.addf %3, %6 : vector<16x256xf32>
    %c0_6 = arith.constant 0 : index
    %c0_7 = arith.constant 0 : index
    %8 = vector.load %arg8[%c0_6, %c0_7] : memref<16x256xf32, #tpu.memory_space<vmem>>, vector<16x256xf32>
    tpu.vector_store %arg8[%c0_6, %c0_7], %7 {strides = array<i32>} : memref<16x256xf32, #tpu.memory_space<vmem>>, vector<16x256xf32>,
    %c8_i32 = arith.constant 8 : i32
    %9 = arith.cmpi eq, %arg1, %c8_i32 : i32
    %10 = arith.extui %9 : i1 to i32
    %c0_i32_8 = arith.constant 0 : i32
    %11 = arith.cmpi ne, %10, %c0_i32_8 : i32
    scf.if %11 {
      %c0_9 = arith.constant 0 : index
      %c0_10 = arith.constant 0 : index
      %12 = vector.load %arg8[%c0_9, %c0_10] : memref<16x256xf32, #tpu.memory_space<vmem>>, vector<16x256xf32>
      %c0_11 = arith.constant 0 : index
      %c0_12 = arith.constant 0 : index
      %13 = vector.load %arg4[%c0_11, %c0_12] : memref<1x256xf32, #tpu.memory_space<vmem>>, vector<1x256xf32>
      %c0_13 = arith.constant 0 : index
      %c0_14 = arith.constant 0 : index
      %14 = vector.load %arg5[%c0_13, %c0_14] : memref<1x256xf32, #tpu.memory_space<vmem>>, vector<1x256xf32>
      %c0_15 = arith.constant 0 : index
      %c0_16 = arith.constant 0 : index
      %15 = vector.load %arg6[%c0_15, %c0_16] : memref<16x256xbf16, #tpu.memory_space<vmem>>, vector<16x256xbf16>
      %cst_17 = arith.constant dense<0.000000e+00> : vector<256xf32>
      %16 = vector.multi_reduction <add>, %12, %cst_17 [0] : vector<16x256xf32> to vector<256xf32>
      %17 = vector.shape_cast %16 : vector<256xf32> to vector<1x256xf32>
      %cst_18 = arith.constant 1.250000e-01 : f32
      %18 = vector.broadcast %cst_18 : f32 to vector<1x256xf32>
      %19 = arith.mulf %17, %18 : vector<1x256xf32>
      %20 = tpu.iota {dimensions = array<i32: 0>} : vector<16x256xi32>
      %c8_i32_19 = arith.constant 8 : i32
      %21 = vector.broadcast %c8_i32_19 : i32 to vector<16x256xi32>
      %22 = arith.cmpi slt, %20, %21 : vector<16x256xi32>
      %23 = vector.broadcast %19 : vector<1x256xf32> to vector<16x256xf32>
      %24 = arith.subf %12, %23 : vector<16x256xf32>
      %cst_20 = arith.constant 0.000000e+00 : f32
      %25 = vector.broadcast %cst_20 : f32 to vector<16x256xf32>
      %26 = arith.select %22, %24, %25 : vector<16x256xi1>, vector<16x256xf32>
      %27 = arith.mulf %26, %26 : vector<16x256xf32>
      %cst_21 = arith.constant dense<0.000000e+00> : vector<256xf32>
      %28 = vector.multi_reduction <add>, %27, %cst_21 [0] : vector<16x256xf32> to vector<256xf32>
      %29 = vector.shape_cast %28 : vector<256xf32> to vector<1x256xf32>
      %cst_22 = arith.constant 1.250000e-01 : f32
      %30 = vector.broadcast %cst_22 : f32 to vector<1x256xf32>
      %31 = arith.mulf %29, %30 : vector<1x256xf32>
      %cst_23 = arith.constant 9.99999974E-6 : f32
      %32 = vector.broadcast %cst_23 : f32 to vector<1x256xf32>
      %33 = arith.addf %31, %32 : vector<1x256xf32>
      %34 = math.rsqrt %33 : vector<1x256xf32>
      %35 = arith.mulf %13, %34 : vector<1x256xf32>
      %36 = vector.broadcast %35 : vector<1x256xf32> to vector<16x256xf32>
      %37 = arith.mulf %26, %36 : vector<16x256xf32>
      %38 = vector.broadcast %14 : vector<1x256xf32> to vector<16x256xf32>
      %39 = arith.addf %37, %38 : vector<16x256xf32>
      %40 = arith.extf %15 : vector<16x256xbf16> to vector<16x256xf32>
      %41 = arith.addf %39, %40 : vector<16x256xf32>
      %cst_24 = arith.constant 0.000000e+00 : f32
      %42 = vector.broadcast %cst_24 : f32 to vector<16x256xf32>
      %43 = arith.maximumf %41, %42 : vector<16x256xf32>
      %44 = arith.truncf %43 : vector<16x256xf32> to vector<16x256xbf16>
      %c0_25 = arith.constant 0 : index
      %c0_26 = arith.constant 0 : index
      %45 = vector.load %arg7[%c0_25, %c0_26] : memref<16x256xbf16, #tpu.memory_space<vmem>>, vector<16x256xbf16>
      tpu.vector_store %arg7[%c0_25, %c0_26], %44 {strides = array<i32>} : memref<16x256xbf16, #tpu.memory_space<vmem>>, vector<16x256xbf16>,
    } else {
    }
    return
  }
  func.func @transform_0(%arg0: i32, %arg1: i32) -> (i32, i32) {
    %c0_i32 = arith.constant 0 : i32
    %c0_i32_0 = arith.constant 0 : i32
    return %c0_i32, %arg1 : i32, i32
  }
  func.func @transform_1(%arg0: i32, %arg1: i32) -> (i32, i32) {
    %c0_i32 = arith.constant 0 : i32
    return %arg1, %arg0 : i32, i32
  }
  func.func @transform_2(%arg0: i32, %arg1: i32) -> (i32, i32) {
    %c0_i32 = arith.constant 0 : i32
    %c0_i32_0 = arith.constant 0 : i32
    return %c0_i32, %arg0 : i32, i32
  }
  func.func @transform_3(%arg0: i32, %arg1: i32) -> (i32, i32) {
    %c0_i32 = arith.constant 0 : i32
    %c0_i32_0 = arith.constant 0 : i32
    return %c0_i32, %arg0 : i32, i32
  }
  func.func @transform_4(%arg0: i32, %arg1: i32) -> (i32, i32) {
    %c0_i32 = arith.constant 0 : i32
    %c0_i32_0 = arith.constant 0 : i32
    return %c0_i32, %arg0 : i32, i32
  }
  func.func @transform_5(%arg0: i32, %arg1: i32) -> (i32, i32) {
    %c0_i32 = arith.constant 0 : i32
    %c0_i32_0 = arith.constant 0 : i32
    return %c0_i32, %arg0 : i32, i32
  }
}

module attributes {stable_mosaic.version = 11 : i64} {
  func.func @_gemm_bn_kernel(%arg0: i32, %arg1: i32, %arg2: memref<16x256xbf16, #tpu.memory_space<vmem>>, %arg3: memref<256x256xbf16, #tpu.memory_space<vmem>>, %arg4: memref<1x256xf32, #tpu.memory_space<vmem>>, %arg5: memref<1x256xf32, #tpu.memory_space<vmem>>, %arg6: memref<16x256xbf16, #tpu.memory_space<vmem>>, %arg7: memref<16x256xf32, #tpu.memory_space<vmem>>) attributes {dimension_semantics = [#tpu.dimension_semantics<parallel>, #tpu.dimension_semantics<arbitrary>], iteration_bounds = array<i64: 1, 9>, scalar_prefetch = 0 : i64, scratch_operands = 1 : i64, tpu.core_type = #tpu.core_type<tc>, window_params = [{transform_indices = @transform_0, window_bounds = array<i64: 16, 256>}, {transform_indices = @transform_1, window_bounds = array<i64: 256, 256>}, {transform_indices = @transform_2, window_bounds = array<i64: 1, 256>}, {transform_indices = @transform_3, window_bounds = array<i64: 1, 256>}, {transform_indices = @transform_4, window_bounds = array<i64: 16, 256>}]} {
    %c0_i32 = arith.constant 0 : i32
    %0 = arith.cmpi eq, %arg1, %c0_i32 : i32
    %1 = arith.extui %0 : i1 to i32
    %c0_i32_0 = arith.constant 0 : i32
    %2 = arith.cmpi ne, %1, %c0_i32_0 : i32
    scf.if %2 {
      %cst_9 = arith.constant 0.000000e+00 : f32
      %12 = vector.broadcast %cst_9 : f32 to vector<16x256xf32>
      %c0_10 = arith.constant 0 : index
      %c0_11 = arith.constant 0 : index
      %13 = vector.load %arg7[%c0_10, %c0_11] : memref<16x256xf32, #tpu.memory_space<vmem>>, vector<16x256xf32>
      tpu.vector_store %arg7[%c0_10, %c0_11], %12 {strides = array<i32>} : memref<16x256xf32, #tpu.memory_space<vmem>>, vector<16x256xf32>,
    } else {
    }
    %c0 = arith.constant 0 : index
    %c0_1 = arith.constant 0 : index
    %3 = vector.load %arg7[%c0, %c0_1] : memref<16x256xf32, #tpu.memory_space<vmem>>, vector<16x256xf32>
    %c0_2 = arith.constant 0 : index
    %c0_3 = arith.constant 0 : index
    %4 = vector.load %arg2[%c0_2, %c0_3] : memref<16x256xbf16, #tpu.memory_space<vmem>>, vector<16x256xbf16>
    %c0_4 = arith.constant 0 : index
    %c0_5 = arith.constant 0 : index
    %5 = vector.load %arg3[%c0_4, %c0_5] : memref<256x256xbf16, #tpu.memory_space<vmem>>, vector<256x256xbf16>
    %cst = arith.constant dense<0.000000e+00> : vector<16x256xf32>
    %6 = tpu.matmul %4, %5, %cst {dimension_numbers = #tpu.dot_dimension_numbers<[1], [0], [0], [1], [0, 0, 1, 1], [], []>} : vector<16x256xbf16>, vector<256x256xbf16>, vector<16x256xf32> -> vector<16x256xf32>
    %7 = arith.addf %3, %6 : vector<16x256xf32>
    %c0_6 = arith.constant 0 : index
    %c0_7 = arith.constant 0 : index
    %8 = vector.load %arg7[%c0_6, %c0_7] : memref<16x256xf32, #tpu.memory_space<vmem>>, vector<16x256xf32>
    tpu.vector_store %arg7[%c0_6, %c0_7], %7 {strides = array<i32>} : memref<16x256xf32, #tpu.memory_space<vmem>>, vector<16x256xf32>,
    %c8_i32 = arith.constant 8 : i32
    %9 = arith.cmpi eq, %arg1, %c8_i32 : i32
    %10 = arith.extui %9 : i1 to i32
    %c0_i32_8 = arith.constant 0 : i32
    %11 = arith.cmpi ne, %10, %c0_i32_8 : i32
    scf.if %11 {
      %c0_9 = arith.constant 0 : index
      %c0_10 = arith.constant 0 : index
      %12 = vector.load %arg7[%c0_9, %c0_10] : memref<16x256xf32, #tpu.memory_space<vmem>>, vector<16x256xf32>
      %c0_11 = arith.constant 0 : index
      %c0_12 = arith.constant 0 : index
      %13 = vector.load %arg4[%c0_11, %c0_12] : memref<1x256xf32, #tpu.memory_space<vmem>>, vector<1x256xf32>
      %c0_13 = arith.constant 0 : index
      %c0_14 = arith.constant 0 : index
      %14 = vector.load %arg5[%c0_13, %c0_14] : memref<1x256xf32, #tpu.memory_space<vmem>>, vector<1x256xf32>
      %cst_15 = arith.constant dense<0.000000e+00> : vector<256xf32>
      %15 = vector.multi_reduction <add>, %12, %cst_15 [0] : vector<16x256xf32> to vector<256xf32>
      %16 = vector.shape_cast %15 : vector<256xf32> to vector<1x256xf32>
      %cst_16 = arith.constant 1.250000e-01 : f32
      %17 = vector.broadcast %cst_16 : f32 to vector<1x256xf32>
      %18 = arith.mulf %16, %17 : vector<1x256xf32>
      %19 = tpu.iota {dimensions = array<i32: 0>} : vector<16x256xi32>
      %c8_i32_17 = arith.constant 8 : i32
      %20 = vector.broadcast %c8_i32_17 : i32 to vector<16x256xi32>
      %21 = arith.cmpi slt, %19, %20 : vector<16x256xi32>
      %22 = vector.broadcast %18 : vector<1x256xf32> to vector<16x256xf32>
      %23 = arith.subf %12, %22 : vector<16x256xf32>
      %cst_18 = arith.constant 0.000000e+00 : f32
      %24 = vector.broadcast %cst_18 : f32 to vector<16x256xf32>
      %25 = arith.select %21, %23, %24 : vector<16x256xi1>, vector<16x256xf32>
      %26 = arith.mulf %25, %25 : vector<16x256xf32>
      %cst_19 = arith.constant dense<0.000000e+00> : vector<256xf32>
      %27 = vector.multi_reduction <add>, %26, %cst_19 [0] : vector<16x256xf32> to vector<256xf32>
      %28 = vector.shape_cast %27 : vector<256xf32> to vector<1x256xf32>
      %cst_20 = arith.constant 1.250000e-01 : f32
      %29 = vector.broadcast %cst_20 : f32 to vector<1x256xf32>
      %30 = arith.mulf %28, %29 : vector<1x256xf32>
      %cst_21 = arith.constant 9.99999974E-6 : f32
      %31 = vector.broadcast %cst_21 : f32 to vector<1x256xf32>
      %32 = arith.addf %30, %31 : vector<1x256xf32>
      %33 = math.rsqrt %32 : vector<1x256xf32>
      %34 = arith.mulf %13, %33 : vector<1x256xf32>
      %35 = vector.broadcast %34 : vector<1x256xf32> to vector<16x256xf32>
      %36 = arith.mulf %25, %35 : vector<16x256xf32>
      %37 = vector.broadcast %14 : vector<1x256xf32> to vector<16x256xf32>
      %38 = arith.addf %36, %37 : vector<16x256xf32>
      %cst_22 = arith.constant 0.000000e+00 : f32
      %39 = vector.broadcast %cst_22 : f32 to vector<16x256xf32>
      %40 = arith.maximumf %38, %39 : vector<16x256xf32>
      %41 = arith.truncf %40 : vector<16x256xf32> to vector<16x256xbf16>
      %c0_23 = arith.constant 0 : index
      %c0_24 = arith.constant 0 : index
      %42 = vector.load %arg6[%c0_23, %c0_24] : memref<16x256xbf16, #tpu.memory_space<vmem>>, vector<16x256xbf16>
      tpu.vector_store %arg6[%c0_23, %c0_24], %41 {strides = array<i32>} : memref<16x256xbf16, #tpu.memory_space<vmem>>, vector<16x256xbf16>,
    } else {
    }
    return
  }
  func.func @transform_0(%arg0: i32, %arg1: i32) -> (i32, i32) {
    %c0_i32 = arith.constant 0 : i32
    %c0_i32_0 = arith.constant 0 : i32
    return %c0_i32, %arg1 : i32, i32
  }
  func.func @transform_1(%arg0: i32, %arg1: i32) -> (i32, i32) {
    %c0_i32 = arith.constant 0 : i32
    return %arg1, %arg0 : i32, i32
  }
  func.func @transform_2(%arg0: i32, %arg1: i32) -> (i32, i32) {
    %c0_i32 = arith.constant 0 : i32
    %c0_i32_0 = arith.constant 0 : i32
    return %c0_i32, %arg0 : i32, i32
  }
  func.func @transform_3(%arg0: i32, %arg1: i32) -> (i32, i32) {
    %c0_i32 = arith.constant 0 : i32
    %c0_i32_0 = arith.constant 0 : i32
    return %c0_i32, %arg0 : i32, i32
  }
  func.func @transform_4(%arg0: i32, %arg1: i32) -> (i32, i32) {
    %c0_i32 = arith.constant 0 : i32
    %c0_i32_0 = arith.constant 0 : i32
    return %c0_i32, %arg0 : i32, i32
  }
}

module attributes {stable_mosaic.version = 11 : i64} {
  func.func @_gemm_bn_kernel(%arg0: i32, %arg1: i32, %arg2: memref<16x256xbf16, #tpu.memory_space<vmem>>, %arg3: memref<256x256xbf16, #tpu.memory_space<vmem>>, %arg4: memref<1x256xf32, #tpu.memory_space<vmem>>, %arg5: memref<1x256xf32, #tpu.memory_space<vmem>>, %arg6: memref<16x256xbf16, #tpu.memory_space<vmem>>, %arg7: memref<16x256xf32, #tpu.memory_space<vmem>>) attributes {dimension_semantics = [#tpu.dimension_semantics<parallel>, #tpu.dimension_semantics<arbitrary>], iteration_bounds = array<i64: 2, 9>, scalar_prefetch = 0 : i64, scratch_operands = 1 : i64, tpu.core_type = #tpu.core_type<tc>, window_params = [{transform_indices = @transform_0, window_bounds = array<i64: 16, 256>}, {transform_indices = @transform_1, window_bounds = array<i64: 256, 256>}, {transform_indices = @transform_2, window_bounds = array<i64: 1, 256>}, {transform_indices = @transform_3, window_bounds = array<i64: 1, 256>}, {transform_indices = @transform_4, window_bounds = array<i64: 16, 256>}]} {
    %c0_i32 = arith.constant 0 : i32
    %0 = arith.cmpi eq, %arg1, %c0_i32 : i32
    %1 = arith.extui %0 : i1 to i32
    %c0_i32_0 = arith.constant 0 : i32
    %2 = arith.cmpi ne, %1, %c0_i32_0 : i32
    scf.if %2 {
      %cst_9 = arith.constant 0.000000e+00 : f32
      %12 = vector.broadcast %cst_9 : f32 to vector<16x256xf32>
      %c0_10 = arith.constant 0 : index
      %c0_11 = arith.constant 0 : index
      %13 = vector.load %arg7[%c0_10, %c0_11] : memref<16x256xf32, #tpu.memory_space<vmem>>, vector<16x256xf32>
      tpu.vector_store %arg7[%c0_10, %c0_11], %12 {strides = array<i32>} : memref<16x256xf32, #tpu.memory_space<vmem>>, vector<16x256xf32>,
    } else {
    }
    %c0 = arith.constant 0 : index
    %c0_1 = arith.constant 0 : index
    %3 = vector.load %arg7[%c0, %c0_1] : memref<16x256xf32, #tpu.memory_space<vmem>>, vector<16x256xf32>
    %c0_2 = arith.constant 0 : index
    %c0_3 = arith.constant 0 : index
    %4 = vector.load %arg2[%c0_2, %c0_3] : memref<16x256xbf16, #tpu.memory_space<vmem>>, vector<16x256xbf16>
    %c0_4 = arith.constant 0 : index
    %c0_5 = arith.constant 0 : index
    %5 = vector.load %arg3[%c0_4, %c0_5] : memref<256x256xbf16, #tpu.memory_space<vmem>>, vector<256x256xbf16>
    %cst = arith.constant dense<0.000000e+00> : vector<16x256xf32>
    %6 = tpu.matmul %4, %5, %cst {dimension_numbers = #tpu.dot_dimension_numbers<[1], [0], [0], [1], [0, 0, 1, 1], [], []>} : vector<16x256xbf16>, vector<256x256xbf16>, vector<16x256xf32> -> vector<16x256xf32>
    %7 = arith.addf %3, %6 : vector<16x256xf32>
    %c0_6 = arith.constant 0 : index
    %c0_7 = arith.constant 0 : index
    %8 = vector.load %arg7[%c0_6, %c0_7] : memref<16x256xf32, #tpu.memory_space<vmem>>, vector<16x256xf32>
    tpu.vector_store %arg7[%c0_6, %c0_7], %7 {strides = array<i32>} : memref<16x256xf32, #tpu.memory_space<vmem>>, vector<16x256xf32>,
    %c8_i32 = arith.constant 8 : i32
    %9 = arith.cmpi eq, %arg1, %c8_i32 : i32
    %10 = arith.extui %9 : i1 to i32
    %c0_i32_8 = arith.constant 0 : i32
    %11 = arith.cmpi ne, %10, %c0_i32_8 : i32
    scf.if %11 {
      %c0_9 = arith.constant 0 : index
      %c0_10 = arith.constant 0 : index
      %12 = vector.load %arg7[%c0_9, %c0_10] : memref<16x256xf32, #tpu.memory_space<vmem>>, vector<16x256xf32>
      %c0_11 = arith.constant 0 : index
      %c0_12 = arith.constant 0 : index
      %13 = vector.load %arg4[%c0_11, %c0_12] : memref<1x256xf32, #tpu.memory_space<vmem>>, vector<1x256xf32>
      %c0_13 = arith.constant 0 : index
      %c0_14 = arith.constant 0 : index
      %14 = vector.load %arg5[%c0_13, %c0_14] : memref<1x256xf32, #tpu.memory_space<vmem>>, vector<1x256xf32>
      %cst_15 = arith.constant dense<0.000000e+00> : vector<256xf32>
      %15 = vector.multi_reduction <add>, %12, %cst_15 [0] : vector<16x256xf32> to vector<256xf32>
      %16 = vector.shape_cast %15 : vector<256xf32> to vector<1x256xf32>
      %cst_16 = arith.constant 5.000000e-01 : f32
      %17 = vector.broadcast %cst_16 : f32 to vector<1x256xf32>
      %18 = arith.mulf %16, %17 : vector<1x256xf32>
      %19 = tpu.iota {dimensions = array<i32: 0>} : vector<16x256xi32>
      %c2_i32 = arith.constant 2 : i32
      %20 = vector.broadcast %c2_i32 : i32 to vector<16x256xi32>
      %21 = arith.cmpi slt, %19, %20 : vector<16x256xi32>
      %22 = vector.broadcast %18 : vector<1x256xf32> to vector<16x256xf32>
      %23 = arith.subf %12, %22 : vector<16x256xf32>
      %cst_17 = arith.constant 0.000000e+00 : f32
      %24 = vector.broadcast %cst_17 : f32 to vector<16x256xf32>
      %25 = arith.select %21, %23, %24 : vector<16x256xi1>, vector<16x256xf32>
      %26 = arith.mulf %25, %25 : vector<16x256xf32>
      %cst_18 = arith.constant dense<0.000000e+00> : vector<256xf32>
      %27 = vector.multi_reduction <add>, %26, %cst_18 [0] : vector<16x256xf32> to vector<256xf32>
      %28 = vector.shape_cast %27 : vector<256xf32> to vector<1x256xf32>
      %cst_19 = arith.constant 5.000000e-01 : f32
      %29 = vector.broadcast %cst_19 : f32 to vector<1x256xf32>
      %30 = arith.mulf %28, %29 : vector<1x256xf32>
      %cst_20 = arith.constant 9.99999974E-6 : f32
      %31 = vector.broadcast %cst_20 : f32 to vector<1x256xf32>
      %32 = arith.addf %30, %31 : vector<1x256xf32>
      %33 = math.rsqrt %32 : vector<1x256xf32>
      %34 = arith.mulf %13, %33 : vector<1x256xf32>
      %35 = vector.broadcast %34 : vector<1x256xf32> to vector<16x256xf32>
      %36 = arith.mulf %25, %35 : vector<16x256xf32>
      %37 = vector.broadcast %14 : vector<1x256xf32> to vector<16x256xf32>
      %38 = arith.addf %36, %37 : vector<16x256xf32>
      %cst_21 = arith.constant 0.000000e+00 : f32
      %39 = vector.broadcast %cst_21 : f32 to vector<16x256xf32>
      %40 = arith.maximumf %38, %39 : vector<16x256xf32>
      %41 = arith.truncf %40 : vector<16x256xf32> to vector<16x256xbf16>
      %c0_22 = arith.constant 0 : index
      %c0_23 = arith.constant 0 : index
      %42 = vector.load %arg6[%c0_22, %c0_23] : memref<16x256xbf16, #tpu.memory_space<vmem>>, vector<16x256xbf16>
      tpu.vector_store %arg6[%c0_22, %c0_23], %41 {strides = array<i32>} : memref<16x256xbf16, #tpu.memory_space<vmem>>, vector<16x256xbf16>,
    } else {
    }
    return
  }
  func.func @transform_0(%arg0: i32, %arg1: i32) -> (i32, i32) {
    %c0_i32 = arith.constant 0 : i32
    %c0_i32_0 = arith.constant 0 : i32
    return %c0_i32, %arg1 : i32, i32
  }
  func.func @transform_1(%arg0: i32, %arg1: i32) -> (i32, i32) {
    %c0_i32 = arith.constant 0 : i32
    return %arg1, %arg0 : i32, i32
  }
  func.func @transform_2(%arg0: i32, %arg1: i32) -> (i32, i32) {
    %c0_i32 = arith.constant 0 : i32
    %c0_i32_0 = arith.constant 0 : i32
    return %c0_i32, %arg0 : i32, i32
  }
  func.func @transform_3(%arg0: i32, %arg1: i32) -> (i32, i32) {
    %c0_i32 = arith.constant 0 : i32
    %c0_i32_0 = arith.constant 0 : i32
    return %c0_i32, %arg0 : i32, i32
  }
  func.func @transform_4(%arg0: i32, %arg1: i32) -> (i32, i32) {
    %c0_i32 = arith.constant 0 : i32
    %c0_i32_0 = arith.constant 0 : i32
    return %c0_i32, %arg0 : i32, i32
  }
}

module attributes {stable_mosaic.version = 11 : i64} {
  func.func @_gemm_bias_kernel(%arg0: i32, %arg1: i32, %arg2: memref<16x256xbf16, #tpu.memory_space<vmem>>, %arg3: memref<256x256xbf16, #tpu.memory_space<vmem>>, %arg4: memref<1x256xf32, #tpu.memory_space<vmem>>, %arg5: memref<16x256xbf16, #tpu.memory_space<vmem>>, %arg6: memref<16x256xf32, #tpu.memory_space<vmem>>) attributes {dimension_semantics = [#tpu.dimension_semantics<parallel>, #tpu.dimension_semantics<arbitrary>], iteration_bounds = array<i64: 2, 1>, scalar_prefetch = 0 : i64, scratch_operands = 1 : i64, tpu.core_type = #tpu.core_type<tc>, window_params = [{transform_indices = @transform_0, window_bounds = array<i64: 16, 256>}, {transform_indices = @transform_1, window_bounds = array<i64: 256, 256>}, {transform_indices = @transform_2, window_bounds = array<i64: 1, 256>}, {transform_indices = @transform_3, window_bounds = array<i64: 16, 256>}]} {
    %c0_i32 = arith.constant 0 : i32
    %0 = arith.cmpi eq, %arg1, %c0_i32 : i32
    %1 = arith.extui %0 : i1 to i32
    %c0_i32_0 = arith.constant 0 : i32
    %2 = arith.cmpi ne, %1, %c0_i32_0 : i32
    scf.if %2 {
      %cst_10 = arith.constant 0.000000e+00 : f32
      %12 = vector.broadcast %cst_10 : f32 to vector<16x256xf32>
      %c0_11 = arith.constant 0 : index
      %c0_12 = arith.constant 0 : index
      %13 = vector.load %arg6[%c0_11, %c0_12] : memref<16x256xf32, #tpu.memory_space<vmem>>, vector<16x256xf32>
      tpu.vector_store %arg6[%c0_11, %c0_12], %12 {strides = array<i32>} : memref<16x256xf32, #tpu.memory_space<vmem>>, vector<16x256xf32>,
    } else {
    }
    %c0 = arith.constant 0 : index
    %c0_1 = arith.constant 0 : index
    %3 = vector.load %arg6[%c0, %c0_1] : memref<16x256xf32, #tpu.memory_space<vmem>>, vector<16x256xf32>
    %c0_2 = arith.constant 0 : index
    %c0_3 = arith.constant 0 : index
    %4 = vector.load %arg2[%c0_2, %c0_3] : memref<16x256xbf16, #tpu.memory_space<vmem>>, vector<16x256xbf16>
    %c0_4 = arith.constant 0 : index
    %c0_5 = arith.constant 0 : index
    %5 = vector.load %arg3[%c0_4, %c0_5] : memref<256x256xbf16, #tpu.memory_space<vmem>>, vector<256x256xbf16>
    %cst = arith.constant dense<0.000000e+00> : vector<16x256xf32>
    %6 = tpu.matmul %4, %5, %cst {dimension_numbers = #tpu.dot_dimension_numbers<[1], [0], [0], [1], [0, 0, 1, 1], [], []>} : vector<16x256xbf16>, vector<256x256xbf16>, vector<16x256xf32> -> vector<16x256xf32>
    %7 = arith.addf %3, %6 : vector<16x256xf32>
    %c0_6 = arith.constant 0 : index
    %c0_7 = arith.constant 0 : index
    %8 = vector.load %arg6[%c0_6, %c0_7] : memref<16x256xf32, #tpu.memory_space<vmem>>, vector<16x256xf32>
    tpu.vector_store %arg6[%c0_6, %c0_7], %7 {strides = array<i32>} : memref<16x256xf32, #tpu.memory_space<vmem>>, vector<16x256xf32>,
    %c0_i32_8 = arith.constant 0 : i32
    %9 = arith.cmpi eq, %arg1, %c0_i32_8 : i32
    %10 = arith.extui %9 : i1 to i32
    %c0_i32_9 = arith.constant 0 : i32
    %11 = arith.cmpi ne, %10, %c0_i32_9 : i32
    scf.if %11 {
      %c0_10 = arith.constant 0 : index
      %c0_11 = arith.constant 0 : index
      %12 = vector.load %arg6[%c0_10, %c0_11] : memref<16x256xf32, #tpu.memory_space<vmem>>, vector<16x256xf32>
      %c0_12 = arith.constant 0 : index
      %c0_13 = arith.constant 0 : index
      %13 = vector.load %arg4[%c0_12, %c0_13] : memref<1x256xf32, #tpu.memory_space<vmem>>, vector<1x256xf32>
      %14 = vector.broadcast %13 : vector<1x256xf32> to vector<16x256xf32>
      %15 = arith.addf %12, %14 : vector<16x256xf32>
      %16 = arith.truncf %15 : vector<16x256xf32> to vector<16x256xbf16>
      %c0_14 = arith.constant 0 : index
      %c0_15 = arith.constant 0 : index
      %17 = vector.load %arg5[%c0_14, %c0_15] : memref<16x256xbf16, #tpu.memory_space<vmem>>, vector<16x256xbf16>
      tpu.vector_store %arg5[%c0_14, %c0_15], %16 {strides = array<i32>} : memref<16x256xbf16, #tpu.memory_space<vmem>>, vector<16x256xbf16>,
    } else {
    }
    return
  }
  func.func @transform_0(%arg0: i32, %arg1: i32) -> (i32, i32) {
    %c0_i32 = arith.constant 0 : i32
    %c0_i32_0 = arith.constant 0 : i32
    return %c0_i32, %arg1 : i32, i32
  }
  func.func @transform_1(%arg0: i32, %arg1: i32) -> (i32, i32) {
    %c0_i32 = arith.constant 0 : i32
    return %arg1, %arg0 : i32, i32
  }
  func.func @transform_2(%arg0: i32, %arg1: i32) -> (i32, i32) {
    %c0_i32 = arith.constant 0 : i32
    %c0_i32_0 = arith.constant 0 : i32
    return %c0_i32, %arg0 : i32, i32
  }
  func.func @transform_3(%arg0: i32, %arg1: i32) -> (i32, i32) {
    %c0_i32 = arith.constant 0 : i32
    %c0_i32_0 = arith.constant 0 : i32
    return %c0_i32, %arg0 : i32, i32
  }
}

module attributes {stable_mosaic.version = 11 : i64} {
  func.func @_gemm_bn_res_kernel(%arg0: i32, %arg1: i32, %arg2: memref<16x256xbf16, #tpu.memory_space<vmem>>, %arg3: memref<256x256xbf16, #tpu.memory_space<vmem>>, %arg4: memref<1x256xf32, #tpu.memory_space<vmem>>, %arg5: memref<1x256xf32, #tpu.memory_space<vmem>>, %arg6: memref<16x256xbf16, #tpu.memory_space<vmem>>, %arg7: memref<16x256xbf16, #tpu.memory_space<vmem>>, %arg8: memref<16x256xf32, #tpu.memory_space<vmem>>) attributes {dimension_semantics = [#tpu.dimension_semantics<parallel>, #tpu.dimension_semantics<arbitrary>], iteration_bounds = array<i64: 2, 18>, scalar_prefetch = 0 : i64, scratch_operands = 1 : i64, tpu.core_type = #tpu.core_type<tc>, window_params = [{transform_indices = @transform_0, window_bounds = array<i64: 16, 256>}, {transform_indices = @transform_1, window_bounds = array<i64: 256, 256>}, {transform_indices = @transform_2, window_bounds = array<i64: 1, 256>}, {transform_indices = @transform_3, window_bounds = array<i64: 1, 256>}, {transform_indices = @transform_4, window_bounds = array<i64: 16, 256>}, {transform_indices = @transform_5, window_bounds = array<i64: 16, 256>}]} {
    %c0_i32 = arith.constant 0 : i32
    %0 = arith.cmpi eq, %arg1, %c0_i32 : i32
    %1 = arith.extui %0 : i1 to i32
    %c0_i32_0 = arith.constant 0 : i32
    %2 = arith.cmpi ne, %1, %c0_i32_0 : i32
    scf.if %2 {
      %cst_9 = arith.constant 0.000000e+00 : f32
      %12 = vector.broadcast %cst_9 : f32 to vector<16x256xf32>
      %c0_10 = arith.constant 0 : index
      %c0_11 = arith.constant 0 : index
      %13 = vector.load %arg8[%c0_10, %c0_11] : memref<16x256xf32, #tpu.memory_space<vmem>>, vector<16x256xf32>
      tpu.vector_store %arg8[%c0_10, %c0_11], %12 {strides = array<i32>} : memref<16x256xf32, #tpu.memory_space<vmem>>, vector<16x256xf32>,
    } else {
    }
    %c0 = arith.constant 0 : index
    %c0_1 = arith.constant 0 : index
    %3 = vector.load %arg8[%c0, %c0_1] : memref<16x256xf32, #tpu.memory_space<vmem>>, vector<16x256xf32>
    %c0_2 = arith.constant 0 : index
    %c0_3 = arith.constant 0 : index
    %4 = vector.load %arg2[%c0_2, %c0_3] : memref<16x256xbf16, #tpu.memory_space<vmem>>, vector<16x256xbf16>
    %c0_4 = arith.constant 0 : index
    %c0_5 = arith.constant 0 : index
    %5 = vector.load %arg3[%c0_4, %c0_5] : memref<256x256xbf16, #tpu.memory_space<vmem>>, vector<256x256xbf16>
    %cst = arith.constant dense<0.000000e+00> : vector<16x256xf32>
    %6 = tpu.matmul %4, %5, %cst {dimension_numbers = #tpu.dot_dimension_numbers<[1], [0], [0], [1], [0, 0, 1, 1], [], []>} : vector<16x256xbf16>, vector<256x256xbf16>, vector<16x256xf32> -> vector<16x256xf32>
    %7 = arith.addf %3, %6 : vector<16x256xf32>
    %c0_6 = arith.constant 0 : index
    %c0_7 = arith.constant 0 : index
    %8 = vector.load %arg8[%c0_6, %c0_7] : memref<16x256xf32, #tpu.memory_space<vmem>>, vector<16x256xf32>
    tpu.vector_store %arg8[%c0_6, %c0_7], %7 {strides = array<i32>} : memref<16x256xf32, #tpu.memory_space<vmem>>, vector<16x256xf32>,
    %c17_i32 = arith.constant 17 : i32
    %9 = arith.cmpi eq, %arg1, %c17_i32 : i32
    %10 = arith.extui %9 : i1 to i32
    %c0_i32_8 = arith.constant 0 : i32
    %11 = arith.cmpi ne, %10, %c0_i32_8 : i32
    scf.if %11 {
      %c0_9 = arith.constant 0 : index
      %c0_10 = arith.constant 0 : index
      %12 = vector.load %arg8[%c0_9, %c0_10] : memref<16x256xf32, #tpu.memory_space<vmem>>, vector<16x256xf32>
      %c0_11 = arith.constant 0 : index
      %c0_12 = arith.constant 0 : index
      %13 = vector.load %arg4[%c0_11, %c0_12] : memref<1x256xf32, #tpu.memory_space<vmem>>, vector<1x256xf32>
      %c0_13 = arith.constant 0 : index
      %c0_14 = arith.constant 0 : index
      %14 = vector.load %arg5[%c0_13, %c0_14] : memref<1x256xf32, #tpu.memory_space<vmem>>, vector<1x256xf32>
      %c0_15 = arith.constant 0 : index
      %c0_16 = arith.constant 0 : index
      %15 = vector.load %arg6[%c0_15, %c0_16] : memref<16x256xbf16, #tpu.memory_space<vmem>>, vector<16x256xbf16>
      %cst_17 = arith.constant dense<0.000000e+00> : vector<256xf32>
      %16 = vector.multi_reduction <add>, %12, %cst_17 [0] : vector<16x256xf32> to vector<256xf32>
      %17 = vector.shape_cast %16 : vector<256xf32> to vector<1x256xf32>
      %cst_18 = arith.constant 5.000000e-01 : f32
      %18 = vector.broadcast %cst_18 : f32 to vector<1x256xf32>
      %19 = arith.mulf %17, %18 : vector<1x256xf32>
      %20 = tpu.iota {dimensions = array<i32: 0>} : vector<16x256xi32>
      %c2_i32 = arith.constant 2 : i32
      %21 = vector.broadcast %c2_i32 : i32 to vector<16x256xi32>
      %22 = arith.cmpi slt, %20, %21 : vector<16x256xi32>
      %23 = vector.broadcast %19 : vector<1x256xf32> to vector<16x256xf32>
      %24 = arith.subf %12, %23 : vector<16x256xf32>
      %cst_19 = arith.constant 0.000000e+00 : f32
      %25 = vector.broadcast %cst_19 : f32 to vector<16x256xf32>
      %26 = arith.select %22, %24, %25 : vector<16x256xi1>, vector<16x256xf32>
      %27 = arith.mulf %26, %26 : vector<16x256xf32>
      %cst_20 = arith.constant dense<0.000000e+00> : vector<256xf32>
      %28 = vector.multi_reduction <add>, %27, %cst_20 [0] : vector<16x256xf32> to vector<256xf32>
      %29 = vector.shape_cast %28 : vector<256xf32> to vector<1x256xf32>
      %cst_21 = arith.constant 5.000000e-01 : f32
      %30 = vector.broadcast %cst_21 : f32 to vector<1x256xf32>
      %31 = arith.mulf %29, %30 : vector<1x256xf32>
      %cst_22 = arith.constant 9.99999974E-6 : f32
      %32 = vector.broadcast %cst_22 : f32 to vector<1x256xf32>
      %33 = arith.addf %31, %32 : vector<1x256xf32>
      %34 = math.rsqrt %33 : vector<1x256xf32>
      %35 = arith.mulf %13, %34 : vector<1x256xf32>
      %36 = vector.broadcast %35 : vector<1x256xf32> to vector<16x256xf32>
      %37 = arith.mulf %26, %36 : vector<16x256xf32>
      %38 = vector.broadcast %14 : vector<1x256xf32> to vector<16x256xf32>
      %39 = arith.addf %37, %38 : vector<16x256xf32>
      %40 = arith.extf %15 : vector<16x256xbf16> to vector<16x256xf32>
      %41 = arith.addf %39, %40 : vector<16x256xf32>
      %cst_23 = arith.constant 0.000000e+00 : f32
      %42 = vector.broadcast %cst_23 : f32 to vector<16x256xf32>
      %43 = arith.maximumf %41, %42 : vector<16x256xf32>
      %44 = arith.truncf %43 : vector<16x256xf32> to vector<16x256xbf16>
      %c0_24 = arith.constant 0 : index
      %c0_25 = arith.constant 0 : index
      %45 = vector.load %arg7[%c0_24, %c0_25] : memref<16x256xbf16, #tpu.memory_space<vmem>>, vector<16x256xbf16>
      tpu.vector_store %arg7[%c0_24, %c0_25], %44 {strides = array<i32>} : memref<16x256xbf16, #tpu.memory_space<vmem>>, vector<16x256xbf16>,
    } else {
    }
    return
  }
  func.func @transform_0(%arg0: i32, %arg1: i32) -> (i32, i32) {
    %c0_i32 = arith.constant 0 : i32
    %c0_i32_0 = arith.constant 0 : i32
    return %c0_i32, %arg1 : i32, i32
  }
  func.func @transform_1(%arg0: i32, %arg1: i32) -> (i32, i32) {
    %c0_i32 = arith.constant 0 : i32
    return %arg1, %arg0 : i32, i32
  }
  func.func @transform_2(%arg0: i32, %arg1: i32) -> (i32, i32) {
    %c0_i32 = arith.constant 0 : i32
    %c0_i32_0 = arith.constant 0 : i32
    return %c0_i32, %arg0 : i32, i32
  }
  func.func @transform_3(%arg0: i32, %arg1: i32) -> (i32, i32) {
    %c0_i32 = arith.constant 0 : i32
    %c0_i32_0 = arith.constant 0 : i32
    return %c0_i32, %arg0 : i32, i32
  }
  func.func @transform_4(%arg0: i32, %arg1: i32) -> (i32, i32) {
    %c0_i32 = arith.constant 0 : i32
    %c0_i32_0 = arith.constant 0 : i32
    return %c0_i32, %arg0 : i32, i32
  }
  func.func @transform_5(%arg0: i32, %arg1: i32) -> (i32, i32) {
    %c0_i32 = arith.constant 0 : i32
    %c0_i32_0 = arith.constant 0 : i32
    return %c0_i32, %arg0 : i32, i32
  }
}

module attributes {stable_mosaic.version = 11 : i64} {
  func.func @_gemm_bn_kernel(%arg0: i32, %arg1: i32, %arg2: memref<16x256xbf16, #tpu.memory_space<vmem>>, %arg3: memref<256x256xbf16, #tpu.memory_space<vmem>>, %arg4: memref<1x256xf32, #tpu.memory_space<vmem>>, %arg5: memref<1x256xf32, #tpu.memory_space<vmem>>, %arg6: memref<16x256xbf16, #tpu.memory_space<vmem>>, %arg7: memref<16x256xf32, #tpu.memory_space<vmem>>) attributes {dimension_semantics = [#tpu.dimension_semantics<parallel>, #tpu.dimension_semantics<arbitrary>], iteration_bounds = array<i64: 2, 18>, scalar_prefetch = 0 : i64, scratch_operands = 1 : i64, tpu.core_type = #tpu.core_type<tc>, window_params = [{transform_indices = @transform_0, window_bounds = array<i64: 16, 256>}, {transform_indices = @transform_1, window_bounds = array<i64: 256, 256>}, {transform_indices = @transform_2, window_bounds = array<i64: 1, 256>}, {transform_indices = @transform_3, window_bounds = array<i64: 1, 256>}, {transform_indices = @transform_4, window_bounds = array<i64: 16, 256>}]} {
    %c0_i32 = arith.constant 0 : i32
    %0 = arith.cmpi eq, %arg1, %c0_i32 : i32
    %1 = arith.extui %0 : i1 to i32
    %c0_i32_0 = arith.constant 0 : i32
    %2 = arith.cmpi ne, %1, %c0_i32_0 : i32
    scf.if %2 {
      %cst_9 = arith.constant 0.000000e+00 : f32
      %12 = vector.broadcast %cst_9 : f32 to vector<16x256xf32>
      %c0_10 = arith.constant 0 : index
      %c0_11 = arith.constant 0 : index
      %13 = vector.load %arg7[%c0_10, %c0_11] : memref<16x256xf32, #tpu.memory_space<vmem>>, vector<16x256xf32>
      tpu.vector_store %arg7[%c0_10, %c0_11], %12 {strides = array<i32>} : memref<16x256xf32, #tpu.memory_space<vmem>>, vector<16x256xf32>,
    } else {
    }
    %c0 = arith.constant 0 : index
    %c0_1 = arith.constant 0 : index
    %3 = vector.load %arg7[%c0, %c0_1] : memref<16x256xf32, #tpu.memory_space<vmem>>, vector<16x256xf32>
    %c0_2 = arith.constant 0 : index
    %c0_3 = arith.constant 0 : index
    %4 = vector.load %arg2[%c0_2, %c0_3] : memref<16x256xbf16, #tpu.memory_space<vmem>>, vector<16x256xbf16>
    %c0_4 = arith.constant 0 : index
    %c0_5 = arith.constant 0 : index
    %5 = vector.load %arg3[%c0_4, %c0_5] : memref<256x256xbf16, #tpu.memory_space<vmem>>, vector<256x256xbf16>
    %cst = arith.constant dense<0.000000e+00> : vector<16x256xf32>
    %6 = tpu.matmul %4, %5, %cst {dimension_numbers = #tpu.dot_dimension_numbers<[1], [0], [0], [1], [0, 0, 1, 1], [], []>} : vector<16x256xbf16>, vector<256x256xbf16>, vector<16x256xf32> -> vector<16x256xf32>
    %7 = arith.addf %3, %6 : vector<16x256xf32>
    %c0_6 = arith.constant 0 : index
    %c0_7 = arith.constant 0 : index
    %8 = vector.load %arg7[%c0_6, %c0_7] : memref<16x256xf32, #tpu.memory_space<vmem>>, vector<16x256xf32>
    tpu.vector_store %arg7[%c0_6, %c0_7], %7 {strides = array<i32>} : memref<16x256xf32, #tpu.memory_space<vmem>>, vector<16x256xf32>,
    %c17_i32 = arith.constant 17 : i32
    %9 = arith.cmpi eq, %arg1, %c17_i32 : i32
    %10 = arith.extui %9 : i1 to i32
    %c0_i32_8 = arith.constant 0 : i32
    %11 = arith.cmpi ne, %10, %c0_i32_8 : i32
    scf.if %11 {
      %c0_9 = arith.constant 0 : index
      %c0_10 = arith.constant 0 : index
      %12 = vector.load %arg7[%c0_9, %c0_10] : memref<16x256xf32, #tpu.memory_space<vmem>>, vector<16x256xf32>
      %c0_11 = arith.constant 0 : index
      %c0_12 = arith.constant 0 : index
      %13 = vector.load %arg4[%c0_11, %c0_12] : memref<1x256xf32, #tpu.memory_space<vmem>>, vector<1x256xf32>
      %c0_13 = arith.constant 0 : index
      %c0_14 = arith.constant 0 : index
      %14 = vector.load %arg5[%c0_13, %c0_14] : memref<1x256xf32, #tpu.memory_space<vmem>>, vector<1x256xf32>
      %cst_15 = arith.constant dense<0.000000e+00> : vector<256xf32>
      %15 = vector.multi_reduction <add>, %12, %cst_15 [0] : vector<16x256xf32> to vector<256xf32>
      %16 = vector.shape_cast %15 : vector<256xf32> to vector<1x256xf32>
      %cst_16 = arith.constant 5.000000e-01 : f32
      %17 = vector.broadcast %cst_16 : f32 to vector<1x256xf32>
      %18 = arith.mulf %16, %17 : vector<1x256xf32>
      %19 = tpu.iota {dimensions = array<i32: 0>} : vector<16x256xi32>
      %c2_i32 = arith.constant 2 : i32
      %20 = vector.broadcast %c2_i32 : i32 to vector<16x256xi32>
      %21 = arith.cmpi slt, %19, %20 : vector<16x256xi32>
      %22 = vector.broadcast %18 : vector<1x256xf32> to vector<16x256xf32>
      %23 = arith.subf %12, %22 : vector<16x256xf32>
      %cst_17 = arith.constant 0.000000e+00 : f32
      %24 = vector.broadcast %cst_17 : f32 to vector<16x256xf32>
      %25 = arith.select %21, %23, %24 : vector<16x256xi1>, vector<16x256xf32>
      %26 = arith.mulf %25, %25 : vector<16x256xf32>
      %cst_18 = arith.constant dense<0.000000e+00> : vector<256xf32>
      %27 = vector.multi_reduction <add>, %26, %cst_18 [0] : vector<16x256xf32> to vector<256xf32>
      %28 = vector.shape_cast %27 : vector<256xf32> to vector<1x256xf32>
      %cst_19 = arith.constant 5.000000e-01 : f32
      %29 = vector.broadcast %cst_19 : f32 to vector<1x256xf32>
      %30 = arith.mulf %28, %29 : vector<1x256xf32>
      %cst_20 = arith.constant 9.99999974E-6 : f32
      %31 = vector.broadcast %cst_20 : f32 to vector<1x256xf32>
      %32 = arith.addf %30, %31 : vector<1x256xf32>
      %33 = math.rsqrt %32 : vector<1x256xf32>
      %34 = arith.mulf %13, %33 : vector<1x256xf32>
      %35 = vector.broadcast %34 : vector<1x256xf32> to vector<16x256xf32>
      %36 = arith.mulf %25, %35 : vector<16x256xf32>
      %37 = vector.broadcast %14 : vector<1x256xf32> to vector<16x256xf32>
      %38 = arith.addf %36, %37 : vector<16x256xf32>
      %cst_21 = arith.constant 0.000000e+00 : f32
      %39 = vector.broadcast %cst_21 : f32 to vector<16x256xf32>
      %40 = arith.maximumf %38, %39 : vector<16x256xf32>
      %41 = arith.truncf %40 : vector<16x256xf32> to vector<16x256xbf16>
      %c0_22 = arith.constant 0 : index
      %c0_23 = arith.constant 0 : index
      %42 = vector.load %arg6[%c0_22, %c0_23] : memref<16x256xbf16, #tpu.memory_space<vmem>>, vector<16x256xbf16>
      tpu.vector_store %arg6[%c0_22, %c0_23], %41 {strides = array<i32>} : memref<16x256xbf16, #tpu.memory_space<vmem>>, vector<16x256xbf16>,
    } else {
    }
    return
  }
  func.func @transform_0(%arg0: i32, %arg1: i32) -> (i32, i32) {
    %c0_i32 = arith.constant 0 : i32
    %c0_i32_0 = arith.constant 0 : i32
    return %c0_i32, %arg1 : i32, i32
  }
  func.func @transform_1(%arg0: i32, %arg1: i32) -> (i32, i32) {
    %c0_i32 = arith.constant 0 : i32
    return %arg1, %arg0 : i32, i32
  }
  func.func @transform_2(%arg0: i32, %arg1: i32) -> (i32, i32) {
    %c0_i32 = arith.constant 0 : i32
    %c0_i32_0 = arith.constant 0 : i32
    return %c0_i32, %arg0 : i32, i32
  }
  func.func @transform_3(%arg0: i32, %arg1: i32) -> (i32, i32) {
    %c0_i32 = arith.constant 0 : i32
    %c0_i32_0 = arith.constant 0 : i32
    return %c0_i32, %arg0 : i32, i32
  }
  func.func @transform_4(%arg0: i32, %arg1: i32) -> (i32, i32) {
    %c0_i32 = arith.constant 0 : i32
    %c0_i32_0 = arith.constant 0 : i32
    return %c0_i32, %arg0 : i32, i32
  }
}

module attributes {stable_mosaic.version = 11 : i64} {
  func.func @_avg_reduce_kernel(%arg0: memref<1x8x512xbf16, #tpu.memory_space<vmem>>, %arg1: memref<8x512xf32, #tpu.memory_space<vmem>>) attributes {dimension_semantics = [], scalar_prefetch = 0 : i64, scratch_operands = 0 : i64, tpu.core_type = #tpu.core_type<tc>} {
    %c0 = arith.constant 0 : index
    %c0_0 = arith.constant 0 : index
    %c0_1 = arith.constant 0 : index
    %0 = vector.load %arg0[%c0, %c0_0, %c0_1] : memref<1x8x512xbf16, #tpu.memory_space<vmem>>, vector<1x8x512xbf16>
    %1 = arith.extf %0 : vector<1x8x512xbf16> to vector<1x8x512xf32>
    %cst = arith.constant dense<0.000000e+00> : vector<8x512xf32>
    %2 = vector.multi_reduction <add>, %1, %cst [0] : vector<1x8x512xf32> to vector<8x512xf32>
    %cst_2 = arith.constant 1.000000e+00 : f32
    %3 = vector.broadcast %cst_2 : f32 to vector<8x512xf32>
    %4 = arith.mulf %2, %3 : vector<8x512xf32>
    %c0_3 = arith.constant 0 : index
    %c0_4 = arith.constant 0 : index
    %5 = vector.load %arg1[%c0_3, %c0_4] : memref<8x512xf32, #tpu.memory_space<vmem>>, vector<8x512xf32>
    tpu.vector_store %arg1[%c0_3, %c0_4], %4 {strides = array<i32>} : memref<8x512xf32, #tpu.memory_space<vmem>>, vector<8x512xf32>,
    return
  }
}

module attributes {stable_mosaic.version = 11 : i64} {
  func.func @_gemm_bias_kernel(%arg0: i32, %arg1: i32, %arg2: memref<16x256xbf16, #tpu.memory_space<vmem>>, %arg3: memref<256x128xbf16, #tpu.memory_space<vmem>>, %arg4: memref<1x128xf32, #tpu.memory_space<vmem>>, %arg5: memref<16x128xf32, #tpu.memory_space<vmem>>, %arg6: memref<16x128xf32, #tpu.memory_space<vmem>>) attributes {dimension_semantics = [#tpu.dimension_semantics<parallel>, #tpu.dimension_semantics<arbitrary>], iteration_bounds = array<i64: 1, 2>, scalar_prefetch = 0 : i64, scratch_operands = 1 : i64, tpu.core_type = #tpu.core_type<tc>, window_params = [{transform_indices = @transform_0, window_bounds = array<i64: 16, 256>}, {transform_indices = @transform_1, window_bounds = array<i64: 256, 128>}, {transform_indices = @transform_2, window_bounds = array<i64: 1, 128>}, {transform_indices = @transform_3, window_bounds = array<i64: 16, 128>}]} {
    %c0_i32 = arith.constant 0 : i32
    %0 = arith.cmpi eq, %arg1, %c0_i32 : i32
    %1 = arith.extui %0 : i1 to i32
    %c0_i32_0 = arith.constant 0 : i32
    %2 = arith.cmpi ne, %1, %c0_i32_0 : i32
    scf.if %2 {
      %cst_9 = arith.constant 0.000000e+00 : f32
      %12 = vector.broadcast %cst_9 : f32 to vector<16x128xf32>
      %c0_10 = arith.constant 0 : index
      %c0_11 = arith.constant 0 : index
      %13 = vector.load %arg6[%c0_10, %c0_11] : memref<16x128xf32, #tpu.memory_space<vmem>>, vector<16x128xf32>
      tpu.vector_store %arg6[%c0_10, %c0_11], %12 {strides = array<i32>} : memref<16x128xf32, #tpu.memory_space<vmem>>, vector<16x128xf32>,
    } else {
    }
    %c0 = arith.constant 0 : index
    %c0_1 = arith.constant 0 : index
    %3 = vector.load %arg6[%c0, %c0_1] : memref<16x128xf32, #tpu.memory_space<vmem>>, vector<16x128xf32>
    %c0_2 = arith.constant 0 : index
    %c0_3 = arith.constant 0 : index
    %4 = vector.load %arg2[%c0_2, %c0_3] : memref<16x256xbf16, #tpu.memory_space<vmem>>, vector<16x256xbf16>
    %c0_4 = arith.constant 0 : index
    %c0_5 = arith.constant 0 : index
    %5 = vector.load %arg3[%c0_4, %c0_5] : memref<256x128xbf16, #tpu.memory_space<vmem>>, vector<256x128xbf16>
    %cst = arith.constant dense<0.000000e+00> : vector<16x128xf32>
    %6 = tpu.matmul %4, %5, %cst {dimension_numbers = #tpu.dot_dimension_numbers<[1], [0], [0], [1], [0, 0, 1, 1], [], []>} : vector<16x256xbf16>, vector<256x128xbf16>, vector<16x128xf32> -> vector<16x128xf32>
    %7 = arith.addf %3, %6 : vector<16x128xf32>
    %c0_6 = arith.constant 0 : index
    %c0_7 = arith.constant 0 : index
    %8 = vector.load %arg6[%c0_6, %c0_7] : memref<16x128xf32, #tpu.memory_space<vmem>>, vector<16x128xf32>
    tpu.vector_store %arg6[%c0_6, %c0_7], %7 {strides = array<i32>} : memref<16x128xf32, #tpu.memory_space<vmem>>, vector<16x128xf32>,
    %c1_i32 = arith.constant 1 : i32
    %9 = arith.cmpi eq, %arg1, %c1_i32 : i32
    %10 = arith.extui %9 : i1 to i32
    %c0_i32_8 = arith.constant 0 : i32
    %11 = arith.cmpi ne, %10, %c0_i32_8 : i32
    scf.if %11 {
      %c0_9 = arith.constant 0 : index
      %c0_10 = arith.constant 0 : index
      %12 = vector.load %arg6[%c0_9, %c0_10] : memref<16x128xf32, #tpu.memory_space<vmem>>, vector<16x128xf32>
      %c0_11 = arith.constant 0 : index
      %c0_12 = arith.constant 0 : index
      %13 = vector.load %arg4[%c0_11, %c0_12] : memref<1x128xf32, #tpu.memory_space<vmem>>, vector<1x128xf32>
      %14 = vector.broadcast %13 : vector<1x128xf32> to vector<16x128xf32>
      %15 = arith.addf %12, %14 : vector<16x128xf32>
      %c0_13 = arith.constant 0 : index
      %c0_14 = arith.constant 0 : index
      %16 = vector.load %arg5[%c0_13, %c0_14] : memref<16x128xf32, #tpu.memory_space<vmem>>, vector<16x128xf32>
      tpu.vector_store %arg5[%c0_13, %c0_14], %15 {strides = array<i32>} : memref<16x128xf32, #tpu.memory_space<vmem>>, vector<16x128xf32>,
    } else {
    }
    return
  }
  func.func @transform_0(%arg0: i32, %arg1: i32) -> (i32, i32) {
    %c0_i32 = arith.constant 0 : i32
    %c0_i32_0 = arith.constant 0 : i32
    return %c0_i32, %arg1 : i32, i32
  }
  func.func @transform_1(%arg0: i32, %arg1: i32) -> (i32, i32) {
    %c0_i32 = arith.constant 0 : i32
    return %arg1, %arg0 : i32, i32
  }
  func.func @transform_2(%arg0: i32, %arg1: i32) -> (i32, i32) {
    %c0_i32 = arith.constant 0 : i32
    %c0_i32_0 = arith.constant 0 : i32
    return %c0_i32, %arg0 : i32, i32
  }
  func.func @transform_3(%arg0: i32, %arg1: i32) -> (i32, i32) {
    %c0_i32 = arith.constant 0 : i32
    %c0_i32_0 = arith.constant 0 : i32
    return %c0_i32, %arg0 : i32, i32
  }
}

</mosaic_0001>

<bundles_post_ra>
// kernel: resnet_forward.24
= control target key start
LH: loop header
LB: loop body
LE: loop exit
PB: predicated region body
PF: predicated region fallthrough
CT: control target
= control target key end

     0   :  { %vm126_vm0 = vcmask 1043456   ;;  %s1140_s0 = inlined_call_operand.vmem [shape: bf16[9,104,128], index: 0, kind: input, shape index: {}]   ;;  %s1141_s1 = inlined_call_operand.vmem [shape: bf16[104,128], index: 1, kind: output, shape index: {}]  }
   0x1   :  { %v9_v0 = vld [vmem:[%s1140_s0] sm:$0xf]  ;;  %v22_v1 = vld [vmem:[%s1140_s0 + $0x34] sm:$0xf]  ;;  %v35_v2 = vld [vmem:[%s1140_s0 + $0x68] sm:$0xf] }
   0x2   :  { %v10_v3 = vld [vmem:[%s1140_s0 + $0x4] sm:$0xf]  ;;  %v23_v4 = vld [vmem:[%s1140_s0 + $0x38] sm:$0xf]  ;;  %v36_v5 = vld [vmem:[%s1140_s0 + $0x6c] sm:$0xf] }
   0x3   :  { %v48_v6 = vld [vmem:[%s1140_s0 + $0x9c] sm:$0xf]  ;;  %v129_v7 = vsel %vm126_vm0, %v9_v0, 4286644096  ;;  %v132_v8 = vsel %vm126_vm0, %v22_v1, 4286644096 }
   0x4   :  { %v136_v9 = vsel %vm126_vm0, %v35_v2, 4286644096  ;;  %v61_v10 = vld [vmem:[%s1140_s0 + $0xd0] sm:$0xf]  ;;  %v134_v11 = vmax.bf16 %v132_v8, %v129_v7  ;;  %v49_v12 = vld [vmem:[%s1140_s0 + $0xa0] sm:$0xf] }
   0x5   :  { %v74_v13 = vld [vmem:[%s1140_s0 + $0x104] sm:$0xf]  ;;  %v140_v14 = vsel %vm126_vm0, %v48_v6, 4286644096  ;;  %v164_v16 = vsel %vm126_vm0, %v10_v3, 4286644096 }
   0x6   :  { %v138_v15 = vmax.bf16 %v136_v9, %v134_v11  ;;  %v167_v17 = vsel %vm126_vm0, %v23_v4, 4286644096  ;;  %v171_v18 = vsel %vm126_vm0, %v36_v5, 4286644096  ;;  %v62_v19 = vld [vmem:[%s1140_s0 + $0xd4] sm:$0xf] }
   0x7   :  { %v144_v20 = vsel %vm126_vm0, %v61_v10, 4286644096  ;;  %v169_v21 = vmax.bf16 %v167_v17, %v164_v16  ;;  %v75_v22 = vld [vmem:[%s1140_s0 + $0x108] sm:$0xf]  ;;  %v87_v23 = vld [vmem:[%s1140_s0 + $0x138] sm:$0xf] }
   0x8   :  { %v142_v24 = vmax.bf16 %v140_v14, %v138_v15  ;;  %v175_v25 = vsel %vm126_vm0, %v49_v12, 4286644096  ;;  %v88_v26 = vld [vmem:[%s1140_s0 + $0x13c] sm:$0xf]  ;;  %v148_v27 = vsel %vm126_vm0, %v74_v13, 4286644096 }
   0x9   :  { %v173_v28 = vmax.bf16 %v171_v18, %v169_v21  ;;  %v100_v29 = vld [vmem:[%s1140_s0 + $0x16c] sm:$0xf]  ;;  %v113_v30 = vld [vmem:[%s1140_s0 + $0x1a0] sm:$0xf]  ;;  %v179_v32 = vsel %vm126_vm0, %v62_v19, 4286644096 }
   0xa   :  { %v146_v31 = vmax.bf16 %v144_v20, %v142_v24  ;;  %v101_v33 = vld [vmem:[%s1140_s0 + $0x170] sm:$0xf]  ;;  %v152_v34 = vsel %vm126_vm0, %v87_v23, 4286644096  ;;  %v183_v36 = vsel %vm126_vm0, %v75_v22, 4286644096 }
   0xb   :  { %v177_v35 = vmax.bf16 %v175_v25, %v173_v28  ;;  %v114_v37 = vld [vmem:[%s1140_s0 + $0x1a4] sm:$0xf]  ;;  %v11_v39 = vld [vmem:[%s1140_s0 + $0x8] sm:$0xf]  ;;  %v24_v40 = vld [vmem:[%s1140_s0 + $0x3c] sm:$0xf] }
   0xc   :  { %v150_v38 = vmax.bf16 %v148_v27, %v146_v31  ;;  %v37_v41 = vld [vmem:[%s1140_s0 + $0x70] sm:$0xf]  ;;  %v156_v42 = vsel %vm126_vm0, %v100_v29, 4286644096  ;;  %v160_v43 = vsel %vm126_vm0, %v113_v30, 4286644096 }
   0xd   :  { %v181_v44 = vmax.bf16 %v179_v32, %v177_v35  ;;  %v187_v45 = vsel %vm126_vm0, %v88_v26, 4286644096  ;;  %v12_v47 = vld [vmem:[%s1140_s0 + $0xc] sm:$0xf]  ;;  %v50_v48 = vld [vmem:[%s1140_s0 + $0xa4] sm:$0xf] }
   0xe   :  { %v154_v46 = vmax.bf16 %v152_v34, %v150_v38  ;;  %v63_v49 = vld [vmem:[%s1140_s0 + $0xd8] sm:$0xf]  ;;  %v199_v51 = vsel %vm126_vm0, %v11_v39, 4286644096  ;;  %v202_v52 = vsel %vm126_vm0, %v24_v40, 4286644096 }
   0xf   :  { %v185_v50 = vmax.bf16 %v183_v36, %v181_v44  ;;  %v206_v53 = vsel %vm126_vm0, %v37_v41, 4286644096  ;;  %v191_v55 = vsel %vm126_vm0, %v101_v33, 4286644096  ;;  %v25_v56 = vld [vmem:[%s1140_s0 + $0x40] sm:$0xf]  ;;  %v204_v58 = vmax.bf16 %v202_v52, %v199_v51 }
  0x10   :  { %v158_v54 = vmax.bf16 %v156_v42, %v154_v46  ;;  %v38_v57 = vld [vmem:[%s1140_s0 + $0x74] sm:$0xf]  ;;  %v195_v60 = vsel %vm126_vm0, %v114_v37, 4286644096  ;;  %v51_v61 = vld [vmem:[%s1140_s0 + $0xa8] sm:$0xf] }
  0x11   :  { %v189_v59 = vmax.bf16 %v187_v45, %v185_v50  ;;  %v210_v62 = vsel %vm126_vm0, %v50_v48, 4286644096  ;;  %v76_v63 = vld [vmem:[%s1140_s0 + $0x10c] sm:$0xf]  ;;  %v208_v0 = vmax.bf16 %v206_v53, %v204_v58  ;;  %v214_v1 = vsel %vm126_vm0, %v63_v49, 4286644096 }
  0x12   :  { %v234_v2 = vsel %vm126_vm0, %v12_v47, 4286644096  ;;  %v162_v3 = vmax.bf16 %v160_v43, %v158_v54  ;;  %v237_v5 = vsel %vm126_vm0, %v25_v56, 4286644096  ;;  %v241_v6 = vsel %vm126_vm0, %v38_v57, 4286644096 }
  0x13   :  { %v193_v4 = vmax.bf16 %v191_v55, %v189_v59  ;;  %v64_v7 = vld [vmem:[%s1140_s0 + $0xdc] sm:$0xf]  ;;  %v89_v8 = vld [vmem:[%s1140_s0 + $0x140] sm:$0xf]  ;;  %v212_v9 = vmax.bf16 %v210_v62, %v208_v0  ;;  %v239_v10 = vmax.bf16 %v237_v5, %v234_v2  ;;  %v218_v12 = vsel %vm126_vm0, %v76_v63, 4286644096 }
  0x14   :  { %v245_v13 = vsel %vm126_vm0, %v51_v61, 4286644096  ;;  %v77_v14 = vld [vmem:[%s1140_s0 + $0x110] sm:$0xf]  ;;  %v90_v15 = vld [vmem:[%s1140_s0 + $0x144] sm:$0xf] }
  0x15   :  { %v197_v11 = vmax.bf16 %v195_v60, %v193_v4  ;;  %v102_v16 = vld [vmem:[%s1140_s0 + $0x174] sm:$0xf]  ;;  %v216_v17 = vmax.bf16 %v214_v1, %v212_v9  ;;  %v243_v18 = vmax.bf16 %v241_v6, %v239_v10  ;;  %v115_v20 = vld [vmem:[%s1140_s0 + $0x1a8] sm:$0xf]  ;;  %v222_v21 = vsel %vm126_vm0, %v89_v8, 4286644096 }
  0x16   :  { %v249_v22 = vsel %vm126_vm0, %v64_v7, 4286644096  ;;  %v103_v23 = vld [vmem:[%s1140_s0 + $0x178] sm:$0xf]  ;;  %v13_v26 = vld [vmem:[%s1140_s0 + $0x10] sm:$0xf] }
  0x17   :  { %v630_v19 = vcombine.low %v162_v3, %v197_v11  ;;  %v220_v24 = vmax.bf16 %v218_v12, %v216_v17  ;;  %v247_v25 = vmax.bf16 %v245_v13, %v243_v18  ;;  %v26_v27 = vld [vmem:[%s1140_s0 + $0x44] sm:$0xf]  ;;  %v39_v28 = vld [vmem:[%s1140_s0 + $0x78] sm:$0xf]  ;;  %v116_v29 = vld [vmem:[%s1140_s0 + $0x1ac] sm:$0xf] }
  0x18   :  { %v226_v30 = vsel %vm126_vm0, %v102_v16, 4286644096  ;;  %v253_v31 = vsel %vm126_vm0, %v77_v14, 4286644096  ;;  %v230_v33 = vsel %vm126_vm0, %v115_v20, 4286644096 }
  0x19   :  { %604 = vst [vmem:[%s1141_s1] sm:$0xff] %v630_v19   ;;  %v224_v32 = vmax.bf16 %v222_v21, %v220_v24  ;;  %v251_v34 = vmax.bf16 %v249_v22, %v247_v25  ;;  %v257_v35 = vsel %vm126_vm0, %v90_v15, 4286644096  ;;  %v52_v36 = vld [vmem:[%s1140_s0 + $0xac] sm:$0xf]  ;;  %v269_v37 = vsel %vm126_vm0, %v13_v26, 4286644096 }
  0x1a   :  { %v272_v38 = vsel %vm126_vm0, %v26_v27, 4286644096  ;;  %v276_v39 = vsel %vm126_vm0, %v39_v28, 4286644096  ;;  %v14_v42 = vld [vmem:[%s1140_s0 + $0x14] sm:$0xf] }
  0x1b   :  { %v228_v40 = vmax.bf16 %v226_v30, %v224_v32  ;;  %v255_v41 = vmax.bf16 %v253_v31, %v251_v34  ;;  %v27_v43 = vld [vmem:[%s1140_s0 + $0x48] sm:$0xf]  ;;  %v65_v44 = vld [vmem:[%s1140_s0 + $0xe0] sm:$0xf]  ;;  %v274_v45 = vmax.bf16 %v272_v38, %v269_v37  ;;  %v261_v46 = vsel %vm126_vm0, %v103_v23, 4286644096 }
  0x1c   :  { %v40_v47 = vld [vmem:[%s1140_s0 + $0x7c] sm:$0xf]  ;;  %v280_v48 = vsel %vm126_vm0, %v52_v36, 4286644096  ;;  %v265_v50 = vsel %vm126_vm0, %v116_v29, 4286644096 }
  0x1d   :  { %v259_v49 = vmax.bf16 %v257_v35, %v255_v41  ;;  %v53_v51 = vld [vmem:[%s1140_s0 + $0xb0] sm:$0xf]  ;;  %v78_v52 = vld [vmem:[%s1140_s0 + $0x114] sm:$0xf]  ;;  %v278_v53 = vmax.bf16 %v276_v39, %v274_v45  ;;  %v232_v54 = vmax.bf16 %v230_v33, %v228_v40  ;;  %v284_v55 = vsel %vm126_vm0, %v65_v44, 4286644096 }
  0x1e   :  { %v304_v56 = vsel %vm126_vm0, %v14_v42, 4286644096  ;;  %v307_v57 = vsel %vm126_vm0, %v27_v43, 4286644096  ;;  %v66_v59 = vld [vmem:[%s1140_s0 + $0xe4] sm:$0xf] }
  0x1f   :  { %v263_v58 = vmax.bf16 %v261_v46, %v259_v49  ;;  %v91_v60 = vld [vmem:[%s1140_s0 + $0x148] sm:$0xf]  ;;  %v282_v61 = vmax.bf16 %v280_v48, %v278_v53  ;;  %v309_v62 = vmax.bf16 %v307_v57, %v304_v56  ;;  %v311_v63 = vsel %vm126_vm0, %v40_v47, 4286644096  ;;  %v79_v3 = vld [vmem:[%s1140_s0 + $0x118] sm:$0xf] }
  0x20   :  { %v288_v0 = vsel %vm126_vm0, %v78_v52, 4286644096  ;;  %v315_v1 = vsel %vm126_vm0, %v53_v51, 4286644096  ;;  %v92_v4 = vld [vmem:[%s1140_s0 + $0x14c] sm:$0xf] }
  0x21   :  { %v267_v2 = vmax.bf16 %v265_v50, %v263_v58  ;;  %v104_v5 = vld [vmem:[%s1140_s0 + $0x17c] sm:$0xf]  ;;  %v286_v6 = vmax.bf16 %v284_v55, %v282_v61  ;;  %v313_v7 = vmax.bf16 %v311_v63, %v309_v62  ;;  %v117_v8 = vld [vmem:[%s1140_s0 + $0x1b0] sm:$0xf]  ;;  %v292_v9 = vsel %vm126_vm0, %v91_v60, 4286644096 }
  0x22   :  { %v319_v10 = vsel %vm126_vm0, %v66_v59, 4286644096  ;;  %v105_v12 = vld [vmem:[%s1140_s0 + $0x180] sm:$0xf]  ;;  %v15_v15 = vld [vmem:[%s1140_s0 + $0x18] sm:$0xf] }
  0x23   :  { %v631_v11 = vcombine.low %v232_v54, %v267_v2  ;;  %v290_v13 = vmax.bf16 %v288_v0, %v286_v6  ;;  %v317_v14 = vmax.bf16 %v315_v1, %v313_v7  ;;  %v28_v16 = vld [vmem:[%s1140_s0 + $0x4c] sm:$0xf]  ;;  %v41_v17 = vld [vmem:[%s1140_s0 + $0x80] sm:$0xf]  ;;  %v118_v18 = vld [vmem:[%s1140_s0 + $0x1b4] sm:$0xf] }
  0x24   :  { %v296_v19 = vsel %vm126_vm0, %v104_v5, 4286644096  ;;  %v323_v20 = vsel %vm126_vm0, %v79_v3, 4286644096  ;;  %v327_v23 = vsel %vm126_vm0, %v92_v4, 4286644096 }
  0x25   :  { %632 = vst [vmem:[%s1141_s1 + $0x8] sm:$0xff] %v631_v11   ;;  %v294_v21 = vmax.bf16 %v292_v9, %v290_v13  ;;  %v321_v22 = vmax.bf16 %v319_v10, %v317_v14  ;;  %v16_v24 = vld [vmem:[%s1140_s0 + $0x1c] sm:$0xf]  ;;  %v54_v25 = vld [vmem:[%s1140_s0 + $0xb4] sm:$0xf] }
  0x26   :  { %v339_v26 = vsel %vm126_vm0, %v15_v15, 4286644096  ;;  %v342_v27 = vsel %vm126_vm0, %v28_v16, 4286644096  ;;  %v346_v28 = vsel %vm126_vm0, %v41_v17, 4286644096 }
  0x27   :  { %v298_v29 = vmax.bf16 %v296_v19, %v294_v21  ;;  %v300_v30 = vsel %vm126_vm0, %v117_v8, 4286644096  ;;  %v325_v31 = vmax.bf16 %v323_v20, %v321_v22  ;;  %v29_v32 = vld [vmem:[%s1140_s0 + $0x50] sm:$0xf]  ;;  %v67_v33 = vld [vmem:[%s1140_s0 + $0xe8] sm:$0xf]  ;;  %v344_v34 = vmax.bf16 %v342_v27, %v339_v26 }
  0x28   :  { %v331_v35 = vsel %vm126_vm0, %v105_v12, 4286644096  ;;  %v42_v36 = vld [vmem:[%s1140_s0 + $0x84] sm:$0xf]  ;;  %v350_v37 = vsel %vm126_vm0, %v54_v25, 4286644096 }
  0x29   :  { %v329_v38 = vmax.bf16 %v327_v23, %v325_v31  ;;  %v335_v39 = vsel %vm126_vm0, %v118_v18, 4286644096  ;;  %v55_v40 = vld [vmem:[%s1140_s0 + $0xb8] sm:$0xf]  ;;  %v80_v41 = vld [vmem:[%s1140_s0 + $0x11c] sm:$0xf]  ;;  %v348_v42 = vmax.bf16 %v346_v28, %v344_v34  ;;  %v302_v43 = vmax.bf16 %v300_v30, %v298_v29 }
  0x2a   :  { %v354_v44 = vsel %vm126_vm0, %v67_v33, 4286644096  ;;  %v374_v45 = vsel %vm126_vm0, %v16_v24, 4286644096  ;;  %v377_v46 = vsel %vm126_vm0, %v29_v32, 4286644096 }
  0x2b   :  { %v333_v47 = vmax.bf16 %v331_v35, %v329_v38  ;;  %v68_v48 = vld [vmem:[%s1140_s0 + $0xec] sm:$0xf]  ;;  %v93_v49 = vld [vmem:[%s1140_s0 + $0x150] sm:$0xf]  ;;  %v352_v50 = vmax.bf16 %v350_v37, %v348_v42  ;;  %v379_v51 = vmax.bf16 %v377_v46, %v374_v45  ;;  %v381_v52 = vsel %vm126_vm0, %v42_v36, 4286644096 }
  0x2c   :  { %v358_v53 = vsel %vm126_vm0, %v80_v41, 4286644096  ;;  %v385_v54 = vsel %vm126_vm0, %v55_v40, 4286644096  ;;  %v81_v56 = vld [vmem:[%s1140_s0 + $0x120] sm:$0xf] }
  0x2d   :  { %v337_v55 = vmax.bf16 %v335_v39, %v333_v47  ;;  %v94_v57 = vld [vmem:[%s1140_s0 + $0x154] sm:$0xf]  ;;  %v106_v58 = vld [vmem:[%s1140_s0 + $0x184] sm:$0xf]  ;;  %v356_v59 = vmax.bf16 %v354_v44, %v352_v50  ;;  %v383_v60 = vmax.bf16 %v381_v52, %v379_v51  ;;  %v119_v61 = vld [vmem:[%s1140_s0 + $0x1b8] sm:$0xf] }
  0x2e   :  { %v362_v62 = vsel %vm126_vm0, %v93_v49, 4286644096  ;;  %v389_v63 = vsel %vm126_vm0, %v68_v48, 4286644096  ;;  %v107_v1 = vld [vmem:[%s1140_s0 + $0x188] sm:$0xf] }
  0x2f   :  { %v633_v0 = vcombine.low %v302_v43, %v337_v55  ;;  %v360_v2 = vmax.bf16 %v358_v53, %v356_v59  ;;  %v387_v3 = vmax.bf16 %v385_v54, %v383_v60  ;;  %v17_v4 = vld [vmem:[%s1140_s0 + $0x20] sm:$0xf]  ;;  %v30_v5 = vld [vmem:[%s1140_s0 + $0x54] sm:$0xf]  ;;  %v43_v6 = vld [vmem:[%s1140_s0 + $0x88] sm:$0xf] }
  0x30   :  { %v120_v7 = vld [vmem:[%s1140_s0 + $0x1bc] sm:$0xf]  ;;  %v366_v8 = vsel %vm126_vm0, %v106_v58, 4286644096  ;;  %v393_v9 = vsel %vm126_vm0, %v81_v56, 4286644096 }
  0x31   :  { %634 = vst [vmem:[%s1141_s1 + $0x10] sm:$0xff] %v633_v0   ;;  %v364_v10 = vmax.bf16 %v362_v62, %v360_v2  ;;  %v391_v11 = vmax.bf16 %v389_v63, %v387_v3  ;;  %v397_v12 = vsel %vm126_vm0, %v94_v57, 4286644096  ;;  %v18_v13 = vld [vmem:[%s1140_s0 + $0x24] sm:$0xf] }
  0x32   :  { %v56_v14 = vld [vmem:[%s1140_s0 + $0xbc] sm:$0xf]  ;;  %v409_v15 = vsel %vm126_vm0, %v17_v4, 4286644096  ;;  %v412_v16 = vsel %vm126_vm0, %v30_v5, 4286644096 }
  0x33   :  { %v416_v17 = vsel %vm126_vm0, %v43_v6, 4286644096  ;;  %v368_v18 = vmax.bf16 %v366_v8, %v364_v10  ;;  %v370_v19 = vsel %vm126_vm0, %v119_v61, 4286644096  ;;  %v395_v20 = vmax.bf16 %v393_v9, %v391_v11  ;;  %v31_v21 = vld [vmem:[%s1140_s0 + $0x58] sm:$0xf] }
  0x34   :  { %v69_v22 = vld [vmem:[%s1140_s0 + $0xf0] sm:$0xf]  ;;  %v414_v23 = vmax.bf16 %v412_v16, %v409_v15  ;;  %v401_v24 = vsel %vm126_vm0, %v107_v1, 4286644096  ;;  %v44_v25 = vld [vmem:[%s1140_s0 + $0x8c] sm:$0xf] }
  0x35   :  { %v420_v26 = vsel %vm126_vm0, %v56_v14, 4286644096  ;;  %v399_v27 = vmax.bf16 %v397_v12, %v395_v20  ;;  %v405_v28 = vsel %vm126_vm0, %v120_v7, 4286644096  ;;  %v57_v29 = vld [vmem:[%s1140_s0 + $0xc0] sm:$0xf]  ;;  %v372_v32 = vmax.bf16 %v370_v19, %v368_v18 }
  0x36   :  { %v82_v30 = vld [vmem:[%s1140_s0 + $0x124] sm:$0xf]  ;;  %v418_v31 = vmax.bf16 %v416_v17, %v414_v23  ;;  %v424_v33 = vsel %vm126_vm0, %v69_v22, 4286644096  ;;  %v444_v34 = vsel %vm126_vm0, %v18_v13, 4286644096 }
  0x37   :  { %v447_v35 = vsel %vm126_vm0, %v31_v21, 4286644096  ;;  %v403_v36 = vmax.bf16 %v401_v24, %v399_v27  ;;  %v70_v37 = vld [vmem:[%s1140_s0 + $0xf4] sm:$0xf]  ;;  %v95_v38 = vld [vmem:[%s1140_s0 + $0x158] sm:$0xf] }
  0x38   :  { %v422_v39 = vmax.bf16 %v420_v26, %v418_v31  ;;  %v449_v40 = vmax.bf16 %v447_v35, %v444_v34  ;;  %v451_v41 = vsel %vm126_vm0, %v44_v25, 4286644096  ;;  %v428_v42 = vsel %vm126_vm0, %v82_v30, 4286644096  ;;  %v83_v45 = vld [vmem:[%s1140_s0 + $0x128] sm:$0xf] }
  0x39   :  { %v455_v43 = vsel %vm126_vm0, %v57_v29, 4286644096  ;;  %v407_v44 = vmax.bf16 %v405_v28, %v403_v36  ;;  %v96_v46 = vld [vmem:[%s1140_s0 + $0x15c] sm:$0xf]  ;;  %v108_v47 = vld [vmem:[%s1140_s0 + $0x18c] sm:$0xf] }
  0x3a   :  { %v426_v48 = vmax.bf16 %v424_v33, %v422_v39  ;;  %v453_v49 = vmax.bf16 %v451_v41, %v449_v40  ;;  %v121_v50 = vld [vmem:[%s1140_s0 + $0x1c0] sm:$0xf]  ;;  %v432_v51 = vsel %vm126_vm0, %v95_v38, 4286644096  ;;  %v459_v52 = vsel %vm126_vm0, %v70_v37, 4286644096 }
  0x3b   :  { %v635_v53 = vcombine.low %v372_v32, %v407_v44  ;;  %v109_v54 = vld [vmem:[%s1140_s0 + $0x190] sm:$0xf]  ;;  %v19_v57 = vld [vmem:[%s1140_s0 + $0x28] sm:$0xf]  ;;  %v32_v58 = vld [vmem:[%s1140_s0 + $0x5c] sm:$0xf] }
  0x3c   :  { %v430_v55 = vmax.bf16 %v428_v42, %v426_v48  ;;  %v457_v56 = vmax.bf16 %v455_v43, %v453_v49  ;;  %v45_v59 = vld [vmem:[%s1140_s0 + $0x90] sm:$0xf]  ;;  %v122_v60 = vld [vmem:[%s1140_s0 + $0x1c4] sm:$0xf]  ;;  %v436_v61 = vsel %vm126_vm0, %v108_v47, 4286644096 }
  0x3d   :  { %v463_v62 = vsel %vm126_vm0, %v83_v45, 4286644096  ;;  %636 = vst [vmem:[%s1141_s1 + $0x18] sm:$0xff] %v635_v53   ;;  %v467_v1 = vsel %vm126_vm0, %v96_v46, 4286644096 }
  0x3e   :  { %v434_v63 = vmax.bf16 %v432_v51, %v430_v55  ;;  %v461_v0 = vmax.bf16 %v459_v52, %v457_v56  ;;  %v20_v2 = vld [vmem:[%s1140_s0 + $0x2c] sm:$0xf]  ;;  %v33_v3 = vld [vmem:[%s1140_s0 + $0x60] sm:$0xf]  ;;  %v58_v4 = vld [vmem:[%s1140_s0 + $0xc4] sm:$0xf] }
  0x3f   :  { %v479_v5 = vsel %vm126_vm0, %v19_v57, 4286644096  ;;  %v482_v6 = vsel %vm126_vm0, %v32_v58, 4286644096  ;;  %v486_v7 = vsel %vm126_vm0, %v45_v59, 4286644096 }
  0x40   :  { %v438_v8 = vmax.bf16 %v436_v61, %v434_v63  ;;  %v440_v9 = vsel %vm126_vm0, %v121_v50, 4286644096  ;;  %v465_v10 = vmax.bf16 %v463_v62, %v461_v0  ;;  %v46_v11 = vld [vmem:[%s1140_s0 + $0x94] sm:$0xf]  ;;  %v71_v12 = vld [vmem:[%s1140_s0 + $0xf8] sm:$0xf]  ;;  %v484_v13 = vmax.bf16 %v482_v6, %v479_v5 }
  0x41   :  { %v471_v14 = vsel %vm126_vm0, %v109_v54, 4286644096  ;;  %v59_v15 = vld [vmem:[%s1140_s0 + $0xc8] sm:$0xf]  ;;  %v490_v16 = vsel %vm126_vm0, %v58_v4, 4286644096 }
  0x42   :  { %v469_v17 = vmax.bf16 %v467_v1, %v465_v10  ;;  %v475_v18 = vsel %vm126_vm0, %v122_v60, 4286644096  ;;  %v72_v19 = vld [vmem:[%s1140_s0 + $0xfc] sm:$0xf]  ;;  %v84_v20 = vld [vmem:[%s1140_s0 + $0x12c] sm:$0xf]  ;;  %v488_v21 = vmax.bf16 %v486_v7, %v484_v13  ;;  %v442_v22 = vmax.bf16 %v440_v9, %v438_v8 }
  0x43   :  { %v494_v23 = vsel %vm126_vm0, %v71_v12, 4286644096  ;;  %v514_v24 = vsel %vm126_vm0, %v20_v2, 4286644096  ;;  %v517_v25 = vsel %vm126_vm0, %v33_v3, 4286644096 }
  0x44   :  { %v473_v26 = vmax.bf16 %v471_v14, %v469_v17  ;;  %v97_v27 = vld [vmem:[%s1140_s0 + $0x160] sm:$0xf]  ;;  %v110_v28 = vld [vmem:[%s1140_s0 + $0x194] sm:$0xf]  ;;  %v492_v29 = vmax.bf16 %v490_v16, %v488_v21  ;;  %v519_v30 = vmax.bf16 %v517_v25, %v514_v24  ;;  %v521_v31 = vsel %vm126_vm0, %v46_v11, 4286644096 }
  0x45   :  { %v498_v32 = vsel %vm126_vm0, %v84_v20, 4286644096  ;;  %v525_v33 = vsel %vm126_vm0, %v59_v15, 4286644096  ;;  %v21_v34 = vld [vmem:[%s1140_s0 + $0x30] sm:$0xf] }
  0x46   :  { %v477_v35 = vmax.bf16 %v475_v18, %v473_v26  ;;  %v85_v36 = vld [vmem:[%s1140_s0 + $0x130] sm:$0xf]  ;;  %v496_v37 = vmax.bf16 %v494_v23, %v492_v29  ;;  %v523_v38 = vmax.bf16 %v521_v31, %v519_v30  ;;  %v34_v39 = vld [vmem:[%s1140_s0 + $0x64] sm:$0xf]  ;;  %v47_v40 = vld [vmem:[%s1140_s0 + $0x98] sm:$0xf] }
  0x47   :  { %v502_v41 = vsel %vm126_vm0, %v97_v27, 4286644096  ;;  %v506_v42 = vsel %vm126_vm0, %v110_v28, 4286644096  ;;  %v529_v43 = vsel %vm126_vm0, %v72_v19, 4286644096 }
  0x48   :  { %v637_v44 = vcombine.low %v442_v22, %v477_v35  ;;  %v98_v45 = vld [vmem:[%s1140_s0 + $0x164] sm:$0xf]  ;;  %v500_v46 = vmax.bf16 %v498_v32, %v496_v37  ;;  %v527_v47 = vmax.bf16 %v525_v33, %v523_v38  ;;  %v60_v48 = vld [vmem:[%s1140_s0 + $0xcc] sm:$0xf]  ;;  %v549_v49 = vsel %vm126_vm0, %v21_v34, 4286644096 }
  0x49   :  { %v533_v50 = vsel %vm126_vm0, %v85_v36, 4286644096  ;;  %v552_v51 = vsel %vm126_vm0, %v34_v39, 4286644096  ;;  %v556_v52 = vsel %vm126_vm0, %v47_v40, 4286644096 }
  0x4a   :  { %638 = vst [vmem:[%s1141_s1 + $0x20] sm:$0xff] %v637_v44   ;;  %v111_v53 = vld [vmem:[%s1140_s0 + $0x198] sm:$0xf]  ;;  %v123_v54 = vld [vmem:[%s1140_s0 + $0x1c8] sm:$0xf]  ;;  %v504_v55 = vmax.bf16 %v502_v41, %v500_v46  ;;  %v531_v56 = vmax.bf16 %v529_v43, %v527_v47  ;;  %v554_v58 = vmax.bf16 %v552_v51, %v549_v49 }
  0x4b   :  { %v73_v57 = vld [vmem:[%s1140_s0 + $0x100] sm:$0xf]  ;;  %v537_v59 = vsel %vm126_vm0, %v98_v45, 4286644096  ;;  %v560_v60 = vsel %vm126_vm0, %v60_v48, 4286644096 }
  0x4c   :  { %v124_v61 = vld [vmem:[%s1140_s0 + $0x1cc] sm:$0xf]  ;;  %v508_v62 = vmax.bf16 %v506_v42, %v504_v55  ;;  %v535_v63 = vmax.bf16 %v533_v50, %v531_v56  ;;  %v86_v0 = vld [vmem:[%s1140_s0 + $0x134] sm:$0xf]  ;;  %v558_v1 = vmax.bf16 %v556_v52, %v554_v58  ;;  %v510_v2 = vsel %vm126_vm0, %v123_v54, 4286644096 }
  0x4d   :  { %v541_v3 = vsel %vm126_vm0, %v111_v53, 4286644096  ;;  %v564_v4 = vsel %vm126_vm0, %v73_v57, 4286644096  ;;  %v99_v6 = vld [vmem:[%s1140_s0 + $0x168] sm:$0xf] }
  0x4e   :  { %v539_v5 = vmax.bf16 %v537_v59, %v535_v63  ;;  %v562_v7 = vmax.bf16 %v560_v60, %v558_v1  ;;  %v545_v8 = vsel %vm126_vm0, %v124_v61, 4286644096  ;;  %v568_v9 = vsel %vm126_vm0, %v86_v0, 4286644096  ;;  %v112_v12 = vld [vmem:[%s1140_s0 + $0x19c] sm:$0xf] }
  0x4f   :  { %v512_v10 = vmax.bf16 %v510_v2, %v508_v62  ;;  %v572_v14 = vsel %vm126_vm0, %v99_v6, 4286644096  ;;  %v125_v16 = vld [vmem:[%s1140_s0 + $0x1d0] sm:$0xf]  ;;  %v576_v18 = vsel %vm126_vm0, %v112_v12, 4286644096 }
  0x50   :  { %v543_v11 = vmax.bf16 %v541_v3, %v539_v5  ;;  %v566_v13 = vmax.bf16 %v564_v4, %v562_v7  ;;  %v580_v21 = vsel %vm126_vm0, %v125_v16, 4286644096 }
  0x52   :  { %v547_v15 = vmax.bf16 %v545_v8, %v543_v11  ;;  %v570_v17 = vmax.bf16 %v568_v9, %v566_v13 }
  0x54   :  { %v639_v19 = vcombine.low %v512_v10, %v547_v15  ;;  %v574_v20 = vmax.bf16 %v572_v14, %v570_v17 }
  0x56   :  { %640 = vst [vmem:[%s1141_s1 + $0x28] sm:$0xff] %v639_v19   ;;  %v578_v22 = vmax.bf16 %v576_v18, %v574_v20 }
  0x58   :  { %v582_v23 = vmax.bf16 %v580_v21, %v578_v22 }
  0x5a   :  { %595 = vst [vmem:[%s1141_s1 + $0x30] sm:$0xf] %v582_v23 }

// kernel: resnet_forward.23
= control target key start
LH: loop header
LB: loop body
LE: loop exit
PB: predicated region body
PF: predicated region fallthrough
CT: control target
= control target key end

     0   :  { %v2041_v0 = vmov 0.0   ;;  %vm2042_vm0 = vmmov 0   ;;  %s3008_s1 = inlined_call_operand.vmem [shape: bf16[128,128], index: 1, kind: input, shape index: {}]   ;;  %s3009_s0 = inlined_call_operand.vmem [shape: bf16[400,128], index: 0, kind: input, shape index: {}]   ;;  %s3010_s2 = inlined_call_operand.vmem [shape: f32[1,128], index: 2, kind: input, shape index: {}]   ;;  %s3011_s3 = inlined_call_operand.vmem [shape: f32[1,128], index: 3, kind: input, shape index: {}]   ;;  %s3012_s4 = inlined_call_operand.vmem [shape: bf16[400,128], index: 4, kind: output, shape index: {}]  }
   0x1   :  { %1872 = vmatprep.subr.bf16.mxu0 %v2041_v0  ;;  %v2006_v1 = vld [vmem:[%s3008_s1 + $0x38] sm:$0xff]   ;;  %1888 = vmatprep.mubr.msk.bf16.mxu0 %vm2042_vm0, %v2041_v0  ;;  %v2007_v2 = vld [vmem:[%s3008_s1 + $0x30] sm:$0xff]   ;;  %v2008_v3 = vld [vmem:[%s3008_s1 + $0x28] sm:$0xff]  }
   0x2   :  { %1988 = vmatprep.subr.bf16.mxu1 %v2041_v0  ;;  %1940 = vmatprep.mubr.msk.bf16.mxu1 %vm2042_vm0, %v2041_v0  ;;  %v2009_v4 = vld [vmem:[%s3008_s1 + $0x20] sm:$0xff]   ;;  %v2010_v5 = vld [vmem:[%s3008_s1 + $0x18] sm:$0xff]   ;;  %v2011_v6 = vld [vmem:[%s3008_s1 + $0x10] sm:$0xff]  }
   0x3   :  { %1873 = vmatpush3.bf16.msra.mxu0 %v2006_v1  ;;  %1996 = vmatpush3.bf16.msra.mxu1 %v2006_v1  ;;  %v2012_v7 = vld [vmem:[%s3008_s1 + $0x8] sm:$0xff]   ;;  %v2013_v8 = vld [vmem:[%s3008_s1] sm:$0xff]   ;;  %v2023_v12 = vld [vmem:[%s3009_s0 + $0x70] sm:$0xff]  }
   0x4   :  { %1874 = vmatprep.subr.bf16.mxu0 %v2041_v0  ;;  %1989 = vmatprep.subr.bf16.mxu1 %v2041_v0  ;;  %v2014_v9 = vld [vmem:[%s3009_s0] sm:$0xff]   ;;  %v2021_v10 = vld [vmem:[%s3009_s0 + $0x68] sm:$0xff]   ;;  %v2016_v13 = vld [vmem:[%s3009_s0 + $0x10] sm:$0xff]  }
   0x5   :  { %v2015_v11 = vld [vmem:[%s3009_s0 + $0x8] sm:$0xff]   ;;  %v2025_v14 = vld [vmem:[%s3009_s0 + $0x78] sm:$0xff]   ;;  %v2027_v16 = vld [vmem:[%s3009_s0 + $0x80] sm:$0xff]  }
   0x6   :  { %v2017_v15 = vld [vmem:[%s3009_s0 + $0x18] sm:$0xff]   ;;  %v2018_v17 = vld [vmem:[%s3009_s0 + $0x20] sm:$0xff]   ;;  %v2029_v18 = vld [vmem:[%s3009_s0 + $0x88] sm:$0xff]  }
   0x7   :  { %1875 = vmatpush3.bf16.msra.mxu0 %v2007_v2  ;;  %1997 = vmatpush3.bf16.msra.mxu1 %v2007_v2  ;;  %v2019_v19 = vld [vmem:[%s3009_s0 + $0x28] sm:$0xff]   ;;  %v2031_v20 = vld [vmem:[%s3009_s0 + $0x90] sm:$0xff]   ;;  %v2033_v22 = vld [vmem:[%s3009_s0 + $0x98] sm:$0xff]  }
   0x8   :  { %1876 = vmatprep.subr.bf16.mxu0 %v2041_v0  ;;  %1990 = vmatprep.subr.bf16.mxu1 %v2041_v0  ;;  %v2020_v21 = vld [vmem:[%s3009_s0 + $0x30] sm:$0xff]   ;;  %v2022_v23 = vld [vmem:[%s3009_s0 + $0x38] sm:$0xff]   ;;  %v2034_v24 = vld [vmem:[%s3009_s0 + $0xa0] sm:$0xff]  }
   0x9   :  { %v2024_v25 = vld [vmem:[%s3009_s0 + $0x40] sm:$0xff]   ;;  %v2035_v26 = vld [vmem:[%s3009_s0 + $0xa8] sm:$0xff]   ;;  %v2036_v28 = vld [vmem:[%s3009_s0 + $0xb0] sm:$0xff]  }
   0xa   :  { %v2026_v27 = vld [vmem:[%s3009_s0 + $0x48] sm:$0xff]   ;;  %v2028_v29 = vld [vmem:[%s3009_s0 + $0x50] sm:$0xff]   ;;  %v2037_v30 = vld [vmem:[%s3009_s0 + $0xb8] sm:$0xff]  }
   0xb   :  { %1877 = vmatpush3.bf16.msra.mxu0 %v2008_v3  ;;  %1998 = vmatpush3.bf16.msra.mxu1 %v2008_v3  ;;  %v2030_v31 = vld [vmem:[%s3009_s0 + $0x58] sm:$0xff]   ;;  %v2038_v32 = vld [vmem:[%s3009_s0 + $0xc0] sm:$0xff]  }
   0xc   :  { %1878 = vmatprep.subr.bf16.mxu0 %v2041_v0  ;;  %1991 = vmatprep.subr.bf16.mxu1 %v2041_v0  ;;  %v2032_v33 = vld [vmem:[%s3009_s0 + $0x60] sm:$0xff]  }
   0xf   :  { %1879 = vmatpush3.bf16.msra.mxu0 %v2009_v4  ;;  %1999 = vmatpush3.bf16.msra.mxu1 %v2009_v4 }
  0x10   :  { %1880 = vmatprep.subr.bf16.mxu0 %v2041_v0  ;;  %1992 = vmatprep.subr.bf16.mxu1 %v2041_v0 }
  0x13   :  { %1881 = vmatpush3.bf16.msra.mxu0 %v2010_v5  ;;  %2000 = vmatpush3.bf16.msra.mxu1 %v2010_v5 }
  0x14   :  { %1882 = vmatprep.subr.bf16.mxu0 %v2041_v0  ;;  %1993 = vmatprep.subr.bf16.mxu1 %v2041_v0 }
  0x17   :  { %1883 = vmatpush3.bf16.msra.mxu0 %v2011_v6  ;;  %2001 = vmatpush3.bf16.msra.mxu1 %v2011_v6 }
  0x18   :  { %1884 = vmatprep.subr.bf16.mxu0 %v2041_v0  ;;  %1994 = vmatprep.subr.bf16.mxu1 %v2041_v0 }
  0x1b   :  { %1885 = vmatpush3.bf16.msra.mxu0 %v2012_v7  ;;  %2002 = vmatpush3.bf16.msra.mxu1 %v2012_v7 }
  0x1c   :  { %1886 = vmatprep.subr.bf16.mxu0 %v2041_v0  ;;  %1995 = vmatprep.subr.bf16.mxu1 %v2041_v0 }
  0x1f   :  { %1887 = vmatpush3.bf16.msra.mxu0 %v2013_v8  ;;  %2003 = vmatpush3.bf16.msra.mxu1 %v2013_v8 }
  0x22   :  { %1889 = vmatmul.mubr.bf16.vlgmr.msra.gmra.mxu0 %v2014_v9  ;;  %1941 = vmatmul.mubr.bf16.vlgmr.msra.gmra.mxu1 %v2021_v10 }
  0x23   :  { %1892 = vmatprep.mubr.msk.bf16.mxu0 %vm2042_vm0, %v2041_v0  ;;  %1944 = vmatprep.mubr.msk.bf16.mxu1 %vm2042_vm0, %v2041_v0 }
  0x2a   :  { %1893 = vmatmul.mubr.bf16.gmra.mxu0 %v2015_v11  ;;  %1945 = vmatmul.mubr.bf16.gmra.mxu1 %v2023_v12 }
  0x2b   :  { %1896 = vmatprep.mubr.msk.bf16.mxu0 %vm2042_vm0, %v2041_v0  ;;  %1948 = vmatprep.mubr.msk.bf16.mxu1 %vm2042_vm0, %v2041_v0 }
  0x32   :  { %1897 = vmatmul.mubr.bf16.gmra.mxu0 %v2016_v13  ;;  %1949 = vmatmul.mubr.bf16.gmra.mxu1 %v2025_v14 }
  0x33   :  { %1900 = vmatprep.mubr.msk.bf16.mxu0 %vm2042_vm0, %v2041_v0  ;;  %1952 = vmatprep.mubr.msk.bf16.mxu1 %vm2042_vm0, %v2041_v0 }
  0x3a   :  { %1901 = vmatmul.mubr.bf16.gmra.mxu0 %v2017_v15  ;;  %1953 = vmatmul.mubr.bf16.gmra.mxu1 %v2027_v16 }
  0x3b   :  { %1904 = vmatprep.mubr.msk.bf16.mxu0 %vm2042_vm0, %v2041_v0  ;;  %1956 = vmatprep.mubr.msk.bf16.mxu1 %vm2042_vm0, %v2041_v0 }
  0x42   :  { %1905 = vmatmul.mubr.bf16.gmra.mxu0 %v2018_v17  ;;  %1957 = vmatmul.mubr.bf16.gmra.mxu1 %v2029_v18 }
  0x43   :  { %1908 = vmatprep.mubr.msk.bf16.mxu0 %vm2042_vm0, %v2041_v0  ;;  %1960 = vmatprep.mubr.msk.bf16.mxu1 %vm2042_vm0, %v2041_v0 }
  0x4a   :  { %1909 = vmatmul.mubr.bf16.gmra.mxu0 %v2019_v19  ;;  %1961 = vmatmul.mubr.bf16.gmra.mxu1 %v2031_v20 }
  0x4b   :  { %1912 = vmatprep.mubr.msk.bf16.mxu0 %vm2042_vm0, %v2041_v0  ;;  %1964 = vmatprep.mubr.msk.bf16.mxu1 %vm2042_vm0, %v2041_v0 }
  0x52   :  { %1913 = vmatmul.mubr.bf16.gmra.mxu0 %v2020_v21  ;;  %1965 = vmatmul.mubr.bf16.gmra.mxu1 %v2033_v22 }
  0x53   :  { %1916 = vmatprep.mubr.msk.bf16.mxu0 %vm2042_vm0, %v2041_v0  ;;  %1968 = vmatprep.mubr.msk.bf16.mxu1 %vm2042_vm0, %v2041_v0 }
  0x5a   :  { %1917 = vmatmul.mubr.bf16.gmra.mxu0 %v2022_v23  ;;  %1969 = vmatmul.mubr.bf16.gmra.mxu1 %v2034_v24 }
  0x5b   :  { %1920 = vmatprep.mubr.msk.bf16.mxu0 %vm2042_vm0, %v2041_v0  ;;  %1972 = vmatprep.mubr.msk.bf16.mxu1 %vm2042_vm0, %v2041_v0 }
  0x62   :  { %1921 = vmatmul.mubr.bf16.gmra.mxu0 %v2024_v25  ;;  %1973 = vmatmul.mubr.bf16.gmra.mxu1 %v2035_v26 }
  0x63   :  { %1924 = vmatprep.mubr.msk.bf16.mxu0 %vm2042_vm0, %v2041_v0  ;;  %1976 = vmatprep.mubr.msk.bf16.mxu1 %vm2042_vm0, %v2041_v0 }
  0x6a   :  { %1925 = vmatmul.mubr.bf16.gmra.mxu0 %v2026_v27  ;;  %1977 = vmatmul.mubr.bf16.gmra.mxu1 %v2036_v28 }
  0x6b   :  { %1928 = vmatprep.mubr.msk.bf16.mxu0 %vm2042_vm0, %v2041_v0  ;;  %1980 = vmatprep.mubr.msk.bf16.mxu1 %vm2042_vm0, %v2041_v0 }
  0x72   :  { %1929 = vmatmul.mubr.bf16.gmra.mxu0 %v2028_v29  ;;  %1981 = vmatmul.mubr.bf16.gmra.mxu1 %v2037_v30 }
  0x73   :  { %1932 = vmatprep.mubr.msk.bf16.mxu0 %vm2042_vm0, %v2041_v0  ;;  %1984 = vmatprep.mubr.msk.bf16.mxu1 %vm2042_vm0, %v2041_v0 }
  0x7a   :  { %1933 = vmatmul.mubr.bf16.gmra.mxu0 %v2030_v31  ;;  %1985 = vmatmul.mubr.bf16.gmra.mxu1 %v2038_v32 }
  0x7b   :  { %1936 = vmatprep.mubr.msk.bf16.mxu0 %vm2042_vm0, %v2041_v0 }
  0x82   :  { %1937 = vmatmul.mubr.bf16.gmra.mxu0 %v2032_v33 }
  0xe2   :  { %v2233_v34 = vpop.f32.mrf.mxu0  ;;  %v2235_v35 = vpop.f32.mrf.mxu1 }
  0xe4   :  { %v1890_v36 = vpop.f32.mrf.mxu0  ;;  %v1942_v37 = vpop.f32.mrf.mxu1 }
  0xe6   :  { %v2237_v38 = vpop.f32.mrf.mxu0  ;;  %v2239_v39 = vpop.f32.mrf.mxu1 }
  0xe7   :  { %v774_v24 = vadd.f32 %v2237_v38, %v2233_v34 }
  0xe8   :  { %v1891_v40 = vpop.f32.mrf.mxu0  ;;  %v1943_v41 = vpop.f32.mrf.mxu1 }
  0xea   :  { %v2241_v42 = vpop.f32.mrf.mxu0  ;;  %v2243_v43 = vpop.f32.mrf.mxu1 }
  0xeb   :  { %v775_v27 = vadd.f32 %v774_v24, %v2241_v42 }
  0xec   :  { %v1894_v44 = vpop.f32.mrf.mxu0  ;;  %v1946_v45 = vpop.f32.mrf.mxu1 }
  0xee   :  { %v2245_v46 = vpop.f32.mrf.mxu0  ;;  %v2247_v47 = vpop.f32.mrf.mxu1 }
  0xef   :  { %v776_v30 = vadd.f32 %v775_v27, %v2245_v46 }
  0xf0   :  { %v1895_v48 = vpop.f32.mrf.mxu0  ;;  %v1947_v49 = vpop.f32.mrf.mxu1 }
  0xf2   :  { %v2249_v50 = vpop.f32.mrf.mxu0  ;;  %v2251_v51 = vpop.f32.mrf.mxu1 }
  0xf3   :  { %v777_v33 = vadd.f32 %v776_v30, %v2249_v50 }
  0xf4   :  { %v1898_v52 = vpop.f32.mrf.mxu0  ;;  %v1950_v53 = vpop.f32.mrf.mxu1 }
  0xf6   :  { %v2253_v54 = vpop.f32.mrf.mxu0  ;;  %v2255_v55 = vpop.f32.mrf.mxu1 }
  0xf7   :  { %v778_v40 = vadd.f32 %v777_v33, %v2253_v54 }
  0xf8   :  { %v1899_v56 = vpop.f32.mrf.mxu0  ;;  %v1951_v57 = vpop.f32.mrf.mxu1 }
  0xfa   :  { %v2257_v58 = vpop.f32.mrf.mxu0  ;;  %v2259_v59 = vpop.f32.mrf.mxu1 }
  0xfb   :  { %v779_v45 = vadd.f32 %v778_v40, %v2257_v58 }
  0xfc   :  { %v1902_v60 = vpop.f32.mrf.mxu0  ;;  %v1954_v61 = vpop.f32.mrf.mxu1 }
  0xfe   :  { %v2261_v62 = vpop.f32.mrf.mxu0  ;;  %v2263_v63 = vpop.f32.mrf.mxu1 }
  0xff   :  { %v780_v52 = vadd.f32 %v779_v45, %v2261_v62 }
 0x100   :  { %v1903_v0 = vpop.f32.mrf.mxu0  ;;  %v1955_v1 = vpop.f32.mrf.mxu1 }
 0x102   :  { %v2265_v2 = vpop.f32.mrf.mxu0  ;;  %v2267_v3 = vpop.f32.mrf.mxu1 }
 0x103   :  { %v781_v57 = vadd.f32 %v780_v52, %v2265_v2 }
 0x104   :  { %v1906_v4 = vpop.f32.mrf.mxu0  ;;  %v1958_v5 = vpop.f32.mrf.mxu1 }
 0x106   :  { %v2269_v6 = vpop.f32.mrf.mxu0  ;;  %v2271_v7 = vpop.f32.mrf.mxu1 }
 0x107   :  { %v782_v0 = vadd.f32 %v781_v57, %v2269_v6 }
 0x108   :  { %v1907_v8 = vpop.f32.mrf.mxu0  ;;  %v1959_v9 = vpop.f32.mrf.mxu1 }
 0x10a   :  { %v2273_v10 = vpop.f32.mrf.mxu0  ;;  %v2275_v11 = vpop.f32.mrf.mxu1 }
 0x10b   :  { %v783_v5 = vadd.f32 %v782_v0, %v2273_v10 }
 0x10c   :  { %v1910_v12 = vpop.f32.mrf.mxu0  ;;  %v1962_v13 = vpop.f32.mrf.mxu1 }
 0x10e   :  { %v2277_v14 = vpop.f32.mrf.mxu0  ;;  %v2279_v15 = vpop.f32.mrf.mxu1 }
 0x10f   :  { %v784_v12 = vadd.f32 %v783_v5, %v2277_v14 }
 0x110   :  { %v1911_v16 = vpop.f32.mrf.mxu0  ;;  %v1963_v17 = vpop.f32.mrf.mxu1 }
 0x112   :  { %v2281_v18 = vpop.f32.mrf.mxu0  ;;  %v2283_v19 = vpop.f32.mrf.mxu1 }
 0x113   :  { %v785_v17 = vadd.f32 %v784_v12, %v2281_v18 }
 0x114   :  { %v1914_v20 = vpop.f32.mrf.mxu0  ;;  %v1966_v21 = vpop.f32.mrf.mxu1 }
 0x116   :  { %v2285_v22 = vpop.f32.mrf.mxu0  ;;  %v2287_v23 = vpop.f32.mrf.mxu1 }
 0x117   :  { %v786_v24 = vadd.f32 %v785_v17, %v2285_v22 }
 0x118   :  { %v1915_v25 = vpop.f32.mrf.mxu0  ;;  %v1967_v26 = vpop.f32.mrf.mxu1 }
 0x11a   :  { %v2292_v28 = vpop.f32.mrf.mxu0  ;;  %v2294_v29 = vpop.f32.mrf.mxu1 }
 0x11b   :  { %v787_v27 = vadd.f32 %v786_v24, %v2292_v28 }
 0x11c   :  { %v1918_v31 = vpop.f32.mrf.mxu0  ;;  %v1970_v32 = vpop.f32.mrf.mxu1 }
 0x11e   :  { %v2298_v36 = vpop.f32.mrf.mxu0  ;;  %v2300_v37 = vpop.f32.mrf.mxu1 }
 0x11f   :  { %3018 = vst [vmem:[#allocation3_spill] sm:$0xff] %v2300_v37  ;;  %v788_v32 = vadd.f32 %v787_v27, %v2298_v36 }
 0x120   :  { %v1919_v41 = vpop.f32.mrf.mxu0  ;;  %v1971_v44 = vpop.f32.mrf.mxu1 }
 0x122   :  { %v2304_v48 = vpop.f32.mrf.mxu0  ;;  %v2306_v49 = vpop.f32.mrf.mxu1 }
 0x123   :  { %v789_v41 = vadd.f32 %v788_v32, %v2304_v48 }
 0x124   :  { %v1922_v53 = vpop.f32.mrf.mxu0  ;;  %v1974_v56 = vpop.f32.mrf.mxu1 }
 0x126   :  { %v2310_v60 = vpop.f32.mrf.mxu0  ;;  %v2312_v61 = vpop.f32.mrf.mxu1 }
 0x127   :  { %v790_v52 = vadd.f32 %v789_v41, %v2310_v60 }
 0x128   :  { %v1923_v1 = vpop.f32.mrf.mxu0  ;;  %v1975_v4 = vpop.f32.mrf.mxu1 }
 0x12a   :  { %v2316_v8 = vpop.f32.mrf.mxu0  ;;  %v2318_v9 = vpop.f32.mrf.mxu1 }
 0x12b   :  { %v791_v57 = vadd.f32 %v790_v52, %v2316_v8 }
 0x12c   :  { %v1926_v13 = vpop.f32.mrf.mxu0  ;;  %v1978_v16 = vpop.f32.mrf.mxu1 }
 0x12e   :  { %v2322_v20 = vpop.f32.mrf.mxu0  ;;  %v2324_v21 = vpop.f32.mrf.mxu1 }
 0x12f   :  { %v792_v4 = vadd.f32 %v791_v57, %v2322_v20 }
 0x130   :  { %v1927_v25 = vpop.f32.mrf.mxu0  ;;  %v1979_v26 = vpop.f32.mrf.mxu1 }
 0x132   :  { %v2328_v30 = vpop.f32.mrf.mxu0  ;;  %v2330_v31 = vpop.f32.mrf.mxu1 }
 0x133   :  { %v793_v13 = vadd.f32 %v792_v4, %v2328_v30 }
 0x134   :  { %v1930_v33 = vpop.f32.mrf.mxu0  ;;  %v1982_v40 = vpop.f32.mrf.mxu1 }
 0x136   :  { %v2334_v44 = vpop.f32.mrf.mxu0  ;;  %v2336_v45 = vpop.f32.mrf.mxu1 }
 0x137   :  { %v794_v24 = vadd.f32 %v793_v13, %v2334_v44 }
 0x138   :  { %v1931_v53 = vpop.f32.mrf.mxu0  ;;  %v1983_v56 = vpop.f32.mrf.mxu1 }
 0x13a   :  { %v2340_v0 = vpop.f32.mrf.mxu0  ;;  %v2342_v1 = vpop.f32.mrf.mxu1 }
 0x13b   :  { %v795_v27 = vadd.f32 %v794_v24, %v2340_v0 }
 0x13c   :  { %v1934_v5 = vpop.f32.mrf.mxu0  ;;  %v1986_v12 = vpop.f32.mrf.mxu1 }
 0x13e   :  { %v2346_v16 = vpop.f32.mrf.mxu0  ;;  %v615_v17 = vpop.f32.mrf.mxu1 }
 0x13f   :  { %v796_v33 = vadd.f32 %v795_v27, %v2346_v16 }
 0x140   :  { %v1935_v25 = vpop.f32.mrf.mxu0  ;;  %v1987_v26 = vpop.f32.mrf.mxu1 }
 0x142   :  { %v2350_v32 = vpop.f32.mrf.mxu0 }
 0x143   :  { %v797_v41 = vadd.f32 %v796_v33, %v2350_v32 }
 0x144   :  { %v1938_v40 = vpop.f32.mrf.mxu0 }
 0x146   :  { %v2354_v52 = vpop.f32.mrf.mxu0 }
 0x147   :  { %v798_v53 = vadd.f32 %v797_v41, %v2354_v52 }
 0x148   :  { %v1939_v56 = vpop.f32.mrf.mxu0 }
 0x149   :  { %v799_v57 = vadd.f32 %v798_v53, %v2235_v35 }
 0x14b   :  { %v800_v4 = vadd.f32 %v799_v57, %v2239_v39 }
 0x14d   :  { %v801_v5 = vadd.f32 %v800_v4, %v2243_v43 }
 0x14f   :  { %v802_v12 = vadd.f32 %v801_v5, %v2247_v47 }
 0x151   :  { %v803_v13 = vadd.f32 %v802_v12, %v2251_v51 }
 0x153   :  { %v804_v24 = vadd.f32 %v803_v13, %v2255_v55 }
 0x155   :  { %v805_v25 = vadd.f32 %v804_v24, %v2259_v59 }
 0x157   :  { %v806_v26 = vadd.f32 %v805_v25, %v2263_v63 }
 0x159   :  { %v807_v27 = vadd.f32 %v806_v26, %v2267_v3 }
 0x15b   :  { %v808_v33 = vadd.f32 %v807_v27, %v2271_v7 }
 0x15d   :  { %v809_v40 = vadd.f32 %v808_v33, %v2275_v11 }
 0x15f   :  { %v810_v41 = vadd.f32 %v809_v40, %v2279_v15 }
 0x161   :  { %v811_v53 = vadd.f32 %v810_v41, %v2283_v19 }
 0x163   :  { %v812_v56 = vadd.f32 %v811_v53, %v2287_v23 }
 0x165   :  { %v813_v57 = vadd.f32 %v812_v56, %v2294_v29 }
 0x167   :  { %v814_v4 = vadd.f32 %v813_v57, %v2300_v37 }
 0x169   :  { %v815_v5 = vadd.f32 %v814_v4, %v2306_v49 }
 0x16b   :  { %v816_v12 = vadd.f32 %v815_v5, %v2312_v61 }
 0x16d   :  { %v817_v13 = vadd.f32 %v816_v12, %v2318_v9 }
 0x16f   :  { %v818_v24 = vadd.f32 %v817_v13, %v2324_v21 }
 0x171   :  { %v819_v25 = vadd.f32 %v818_v24, %v2330_v31 }
 0x173   :  { %v820_v26 = vadd.f32 %v819_v25, %v2336_v45 }
 0x175   :  { %v821_v27 = vadd.f32 %v820_v26, %v2342_v1 }
 0x177   :  { %v822_v33 = vadd.f32 %v821_v27, %v615_v17 }
 0x179   :  { %v823_v40 = vrot.slane %v822_v33, 4 }
 0x17b   :  { %v824_v41 = vadd.f32 %v823_v40, %v822_v33 }
 0x17d   :  { %v825_v53 = vrot.slane %v824_v41, 2 }
 0x17f   :  { %v826_v56 = vadd.f32 %v825_v53, %v824_v41 }
 0x181   :  { %v827_v57 = vrot.slane %v826_v56, 1 }
 0x183   :  { %v828_v37 = vadd.f32 %v827_v57, %v826_v56 }
 0x185   :  { %v2380_v4 = vmul.f32 0.0025510204, %v828_v37 }
 0x187   :  { %v2384_v5 = vsub.f32 %v2233_v34, %v2380_v4  ;;  %v2388_v12 = vsub.f32 %v2237_v38, %v2380_v4  ;;  %v2392_v13 = vsub.f32 %v2241_v42, %v2380_v4  ;;  %v2400_v37 = vsub.f32 %v2245_v46, %v2380_v4 }
 0x188   :  { %v2404_v34 = vsub.f32 %v2249_v50, %v2380_v4  ;;  %v2410_v42 = vsub.f32 %v2253_v54, %v2380_v4  ;;  %v2416_v46 = vsub.f32 %v2257_v58, %v2380_v4  ;;  %v2422_v40 = vsub.f32 %v2261_v62, %v2380_v4 }
 0x189   :  { %v1031_v17 = vmul.f32 %v2384_v5, %v2384_v5  ;;  %v1032_v24 = vmul.f32 %v2388_v12, %v2388_v12  ;;  %v1033_v38 = vmul.f32 %v2392_v13, %v2392_v13  ;;  %v1034_v26 = vmul.f32 %v2400_v37, %v2400_v37 }
 0x18a   :  { %v1035_v50 = vmul.f32 %v2404_v34, %v2404_v34  ;;  %v1036_v54 = vmul.f32 %v2410_v42, %v2410_v42  ;;  %v2428_v53 = vsub.f32 %v2265_v2, %v2380_v4  ;;  %v1037_v58 = vmul.f32 %v2416_v46, %v2416_v46 }
 0x18b   :  { %v1081_v25 = vadd.f32 %v1032_v24, %v1031_v17  ;;  %v2434_v57 = vsub.f32 %v2269_v6, %v2380_v4  ;;  %v1038_v62 = vmul.f32 %v2422_v40, %v2422_v40  ;;  %v2440_v24 = vsub.f32 %v2273_v10, %v2380_v4 }
 0x18c   :  { %v1039_v2 = vmul.f32 %v2428_v53, %v2428_v53 }
 0x18d   :  { %v1082_v27 = vadd.f32 %v1081_v25, %v1033_v38  ;;  %v2446_v25 = vsub.f32 %v2277_v14, %v2380_v4  ;;  %v1040_v6 = vmul.f32 %v2434_v57, %v2434_v57  ;;  %v1041_v10 = vmul.f32 %v2440_v24, %v2440_v24 }
 0x18f   :  { %v1083_v33 = vadd.f32 %v1082_v27, %v1034_v26  ;;  %v2452_v27 = vsub.f32 %v2281_v18, %v2380_v4  ;;  %v1042_v14 = vmul.f32 %v2446_v25, %v2446_v25 }
 0x191   :  { %v1084_v41 = vadd.f32 %v1083_v33, %v1035_v50  ;;  %v2458_v33 = vsub.f32 %v2285_v22, %v2380_v4  ;;  %v1043_v18 = vmul.f32 %v2452_v27, %v2452_v27 }
 0x193   :  { %v1085_v56 = vadd.f32 %v1084_v41, %v1036_v54  ;;  %v2464_v41 = vsub.f32 %v2292_v28, %v2380_v4  ;;  %v1044_v22 = vmul.f32 %v2458_v33, %v2458_v33 }
 0x195   :  { %v1086_v17 = vadd.f32 %v1085_v56, %v1037_v58  ;;  %v2470_v56 = vsub.f32 %v2298_v36, %v2380_v4  ;;  %v1045_v28 = vmul.f32 %v2464_v41, %v2464_v41 }
 0x197   :  { %v1087_v38 = vadd.f32 %v1086_v17, %v1038_v62  ;;  %v2476_v17 = vsub.f32 %v2304_v48, %v2380_v4  ;;  %v1046_v36 = vmul.f32 %v2470_v56, %v2470_v56 }
 0x199   :  { %v1088_v26 = vadd.f32 %v1087_v38, %v1039_v2  ;;  %v2482_v38 = vsub.f32 %v2310_v60, %v2380_v4  ;;  %v1047_v48 = vmul.f32 %v2476_v17, %v2476_v17 }
 0x19b   :  { %v1089_v50 = vadd.f32 %v1088_v26, %v1040_v6  ;;  %v2488_v26 = vsub.f32 %v2316_v8, %v2380_v4  ;;  %v1048_v60 = vmul.f32 %v2482_v38, %v2482_v38 }
 0x19d   :  { %v1090_v54 = vadd.f32 %v1089_v50, %v1041_v10  ;;  %v2494_v50 = vsub.f32 %v2322_v20, %v2380_v4  ;;  %v1049_v8 = vmul.f32 %v2488_v26, %v2488_v26 }
 0x19f   :  { %v1091_v58 = vadd.f32 %v1090_v54, %v1042_v14  ;;  %v2500_v54 = vsub.f32 %v2328_v30, %v2380_v4  ;;  %v1050_v20 = vmul.f32 %v2494_v50, %v2494_v50 }
 0x1a1   :  { %v1092_v62 = vadd.f32 %v1091_v58, %v1043_v18  ;;  %v2506_v58 = vsub.f32 %v2334_v44, %v2380_v4  ;;  %v1051_v30 = vmul.f32 %v2500_v54, %v2500_v54 }
 0x1a3   :  { %v1093_v2 = vadd.f32 %v1092_v62, %v1044_v22  ;;  %v2512_v62 = vsub.f32 %v2340_v0, %v2380_v4  ;;  %v1052_v44 = vmul.f32 %v2506_v58, %v2506_v58 }
 0x1a5   :  { %v1094_v6 = vadd.f32 %v1093_v2, %v1045_v28  ;;  %v2518_v2 = vsub.f32 %v2346_v16, %v2380_v4  ;;  %v1053_v0 = vmul.f32 %v2512_v62, %v2512_v62 }
 0x1a7   :  { %v1095_v10 = vadd.f32 %v1094_v6, %v1046_v36  ;;  %v2524_v6 = vsub.f32 %v2350_v32, %v2380_v4  ;;  %v1054_v16 = vmul.f32 %v2518_v2, %v2518_v2 }
 0x1a9   :  { %v1096_v14 = vadd.f32 %v1095_v10, %v1047_v48  ;;  %v2530_v10 = vsub.f32 %v2354_v52, %v2380_v4  ;;  %v1055_v32 = vmul.f32 %v2524_v6, %v2524_v6 }
 0x1ab   :  { %v1097_v18 = vadd.f32 %v1096_v14, %v1048_v60  ;;  %v2536_v14 = vsub.f32 %v2235_v35, %v2380_v4  ;;  %v1056_v52 = vmul.f32 %v2530_v10, %v2530_v10 }
 0x1ad   :  { %v1098_v22 = vadd.f32 %v1097_v18, %v1049_v8  ;;  %v2542_v18 = vsub.f32 %v2239_v39, %v2380_v4  ;;  %v1057_v35 = vmul.f32 %v2536_v14, %v2536_v14 }
 0x1af   :  { %v1099_v28 = vadd.f32 %v1098_v22, %v1050_v20  ;;  %v2548_v22 = vsub.f32 %v2243_v43, %v2380_v4  ;;  %v1058_v39 = vmul.f32 %v2542_v18, %v2542_v18 }
 0x1b1   :  { %v1100_v36 = vadd.f32 %v1099_v28, %v1051_v30  ;;  %v2554_v28 = vsub.f32 %v2247_v47, %v2380_v4  ;;  %v1059_v43 = vmul.f32 %v2548_v22, %v2548_v22 }
 0x1b3   :  { %v1101_v48 = vadd.f32 %v1100_v36, %v1052_v44  ;;  %v2560_v36 = vsub.f32 %v2251_v51, %v2380_v4  ;;  %v1060_v47 = vmul.f32 %v2554_v28, %v2554_v28 }
 0x1b5   :  { %v1102_v60 = vadd.f32 %v1101_v48, %v1053_v0  ;;  %v2566_v48 = vsub.f32 %v2255_v55, %v2380_v4  ;;  %v1061_v51 = vmul.f32 %v2560_v36, %v2560_v36 }
 0x1b7   :  { %v1103_v8 = vadd.f32 %v1102_v60, %v1054_v16  ;;  %v2572_v60 = vsub.f32 %v2259_v59, %v2380_v4  ;;  %v1062_v55 = vmul.f32 %v2566_v48, %v2566_v48 }
 0x1b9   :  { %v1104_v20 = vadd.f32 %v1103_v8, %v1055_v32  ;;  %v2578_v8 = vsub.f32 %v2263_v63, %v2380_v4  ;;  %v1063_v59 = vmul.f32 %v2572_v60, %v2572_v60 }
 0x1bb   :  { %v1105_v30 = vadd.f32 %v1104_v20, %v1056_v52  ;;  %v2584_v20 = vsub.f32 %v2267_v3, %v2380_v4  ;;  %v1064_v63 = vmul.f32 %v2578_v8, %v2578_v8 }
 0x1bd   :  { %v1106_v44 = vadd.f32 %v1105_v30, %v1057_v35  ;;  %v2590_v30 = vsub.f32 %v2271_v7, %v2380_v4  ;;  %v1065_v3 = vmul.f32 %v2584_v20, %v2584_v20 }
 0x1bf   :  { %v1107_v0 = vadd.f32 %v1106_v44, %v1058_v39  ;;  %v2596_v44 = vsub.f32 %v2275_v11, %v2380_v4  ;;  %v1066_v7 = vmul.f32 %v2590_v30, %v2590_v30 }
 0x1c1   :  { %v1108_v16 = vadd.f32 %v1107_v0, %v1059_v43  ;;  %v2602_v0 = vsub.f32 %v2279_v15, %v2380_v4  ;;  %v1067_v11 = vmul.f32 %v2596_v44, %v2596_v44 }
 0x1c3   :  { %v1109_v32 = vadd.f32 %v1108_v16, %v1060_v47  ;;  %v2608_v16 = vsub.f32 %v2283_v19, %v2380_v4  ;;  %v1068_v15 = vmul.f32 %v2602_v0, %v2602_v0 }
 0x1c5   :  { %v1110_v52 = vadd.f32 %v1109_v32, %v1061_v51  ;;  %v2614_v32 = vsub.f32 %v2287_v23, %v2380_v4  ;;  %v1069_v19 = vmul.f32 %v2608_v16, %v2608_v16 }
 0x1c7   :  { %v1111_v35 = vadd.f32 %v1110_v52, %v1062_v55  ;;  %v2620_v52 = vsub.f32 %v2294_v29, %v2380_v4  ;;  %v1070_v23 = vmul.f32 %v2614_v32, %v2614_v32 }
 0x1c9   :  { %v1112_v39 = vadd.f32 %v1111_v35, %v1063_v59  ;;  %v3019_v35 = vld [vmem:[#allocation3_spill] sm:$0xff]  ;;  %v1071_v29 = vmul.f32 %v2620_v52, %v2620_v52 }
 0x1cb   :  { %v1113_v43 = vadd.f32 %v1112_v39, %v1064_v63  ;;  %v2626_v63 = vsub.f32 %v3019_v35, %v2380_v4 }
 0x1cd   :  { %v1114_v47 = vadd.f32 %v1113_v43, %v1065_v3  ;;  %v2632_v3 = vsub.f32 %v2306_v49, %v2380_v4 }
 0x1cf   :  { %v1115_v51 = vadd.f32 %v1114_v47, %v1066_v7  ;;  %v2638_v7 = vsub.f32 %v2312_v61, %v2380_v4  ;;  %v1072_v47 = vmul.f32 %v2626_v63, %v2626_v63  ;;  %v1073_v49 = vmul.f32 %v2632_v3, %v2632_v3 }
 0x1d1   :  { %v1116_v55 = vadd.f32 %v1115_v51, %v1067_v11  ;;  %v2644_v51 = vsub.f32 %v2318_v9, %v2380_v4  ;;  %v1074_v61 = vmul.f32 %v2638_v7, %v2638_v7 }
 0x1d3   :  { %v1117_v59 = vadd.f32 %v1116_v55, %v1068_v15  ;;  %3020 = vst [vmem:[#allocation3_spill] sm:$0xff] %v2644_v51  ;;  %v2650_v55 = vsub.f32 %v2324_v21, %v2380_v4  ;;  %v1075_v9 = vmul.f32 %v2644_v51, %v2644_v51 }
 0x1d5   :  { %v1118_v39 = vadd.f32 %v1117_v59, %v1069_v19  ;;  %3021 = vst [vmem:[#allocation4_spill] sm:$0xff] %v2650_v55  ;;  %v2656_v59 = vsub.f32 %v2330_v31, %v2380_v4  ;;  %v1076_v21 = vmul.f32 %v2650_v55, %v2650_v55 }
 0x1d7   :  { %v1119_v43 = vadd.f32 %v1118_v39, %v1070_v23  ;;  %3022 = vst [vmem:[#allocation5_spill] sm:$0xff] %v2656_v59  ;;  %v2662_v23 = vsub.f32 %v2336_v45, %v2380_v4  ;;  %v1077_v31 = vmul.f32 %v2656_v59, %v2656_v59  ;;  %v1141_v59 = vlaneseq }
 0x1d9   :  { %v1120_v11 = vadd.f32 %v1119_v43, %v1071_v29  ;;  %v2668_v29 = vsub.f32 %v2342_v1, %v2380_v4 }
 0x1db   :  { %v1121_v15 = vadd.f32 %v1120_v11, %v1072_v47  ;;  %3023 = vst [vmem:[#allocation6_spill] sm:$0xff] %v2668_v29  ;;  %v1078_v47 = vmul.f32 %v2662_v23, %v2662_v23  ;;  %v1079_v45 = vmul.f32 %v2668_v29, %v2668_v29 }
 0x1dd   :  { %v1122_v19 = vadd.f32 %v1121_v15, %v1073_v49 }
 0x1df   :  { %v1123_v35 = vadd.f32 %v1122_v19, %v1074_v61 }
 0x1e1   :  { %v1124_v39 = vadd.f32 %v1123_v35, %v1075_v9 }
 0x1e3   :  { %v1125_v43 = vadd.f32 %v1124_v39, %v1076_v21  ;;  %v1142_v21 = vshrl.u32 %v1141_v59, 7  ;;  %v772_v39 = vld [vmem:[%s3010_s2] sm:$0x1] }
 0x1e5   :  { %v1126_v11 = vadd.f32 %v1125_v43, %v1077_v31  ;;  %v1143_v31 = vsub.s32 0, %v1142_v21  ;;  %v3027_v21 = vld [vmem:[#allocation6_spill] sm:$0xff] }
 0x1e7   :  { %v1127_v49 = vadd.f32 %v1126_v11, %v1078_v47 }
 0x1e9   :  { %v1128_v15 = vadd.f32 %v1127_v49, %v1079_v45 }
 0x1eb   :  { %v1130_v61 = vrot.slane %v1128_v15, 4 }
 0x1ed   :  { %v1131_v19 = vadd.f32 %v1130_v61, %v1128_v15 }
 0x1ef   :  { %v1132_v9 = vrot.slane %v1131_v19, 2 }
 0x1f1   :  { %v1133_v35 = vadd.f32 %v1132_v9, %v1131_v19 }
 0x1f3   :  { %v1134_v55 = vrot.slane %v1133_v35, 1 }
 0x1f5   :  { %v1135_v1 = vadd.f32 %v1134_v55, %v1133_v35  ;;  %v3025_v35 = vld [vmem:[#allocation4_spill] sm:$0xff] }
 0x1f7   :  { %v1136_v4 = vmul.f32 0.0025510204, %v1135_v1 }
 0x1f9   :  { %v1137_v51 = vadd.f32 1e-05, %v1136_v4  ;;  %v3026_v4 = vld [vmem:[#allocation5_spill] sm:$0xff] }
 0x1fb   :  { %2039 = vrsqrt.f32 %v1137_v51 }
 0x208   :  { %v2040_v43 = vpop.eup %2039 }
 0x209   :  { %v1139_v29 = vmul.f32 %v2040_v43, %v772_v39 }
 0x20b   :  { %v1144_v47 = vrot.slane %v1139_v29, %v1143_v31 }
 0x20d   :  { %v1146_v11 = vmul.f32 %v1144_v47, %v2384_v5  ;;  %v1147_v45 = vmul.f32 %v1144_v47, %v2388_v12  ;;  %v1148_v49 = vmul.f32 %v1144_v47, %v2392_v13  ;;  %v1149_v55 = vmul.f32 %v1144_v47, %v2400_v37 }
 0x20e   :  { %v1150_v51 = vmul.f32 %v1144_v47, %v2404_v34  ;;  %v1151_v59 = vmul.f32 %v1144_v47, %v2410_v42  ;;  %v1152_v15 = vmul.f32 %v1144_v47, %v2416_v46  ;;  %v1153_v61 = vmul.f32 %v1144_v47, %v2422_v40 }
 0x20f   :  { %v1154_v19 = vmul.f32 %v1144_v47, %v2428_v53  ;;  %v1155_v29 = vmul.f32 %v1144_v47, %v2434_v57  ;;  %v1156_v5 = vmul.f32 %v1144_v47, %v2440_v24  ;;  %v1157_v12 = vmul.f32 %v1144_v47, %v2446_v25 }
 0x210   :  { %v1158_v13 = vmul.f32 %v1144_v47, %v2452_v27  ;;  %v1159_v37 = vmul.f32 %v1144_v47, %v2458_v33  ;;  %v1160_v34 = vmul.f32 %v1144_v47, %v2464_v41  ;;  %v1161_v42 = vmul.f32 %v1144_v47, %v2470_v56 }
 0x211   :  { %v1162_v46 = vmul.f32 %v1144_v47, %v2476_v17  ;;  %v1163_v40 = vmul.f32 %v1144_v47, %v2482_v38  ;;  %v1164_v53 = vmul.f32 %v1144_v47, %v2488_v26  ;;  %v1165_v57 = vmul.f32 %v1144_v47, %v2494_v50 }
 0x212   :  { %v1166_v24 = vmul.f32 %v1144_v47, %v2500_v54  ;;  %v1167_v25 = vmul.f32 %v1144_v47, %v2506_v58  ;;  %v1168_v27 = vmul.f32 %v1144_v47, %v2512_v62  ;;  %v1169_v33 = vmul.f32 %v1144_v47, %v2518_v2 }
 0x213   :  { %v1170_v41 = vmul.f32 %v1144_v47, %v2524_v6  ;;  %v1171_v56 = vmul.f32 %v1144_v47, %v2530_v10  ;;  %v1172_v17 = vmul.f32 %v1144_v47, %v2536_v14  ;;  %v1173_v38 = vmul.f32 %v1144_v47, %v2542_v18  ;;  %v2718_v14 = vld [vmem:[%s3011_s3] ss:$0 sm:$0xff] }
 0x214   :  { %v1174_v26 = vmul.f32 %v1144_v47, %v2548_v22  ;;  %v1175_v50 = vmul.f32 %v1144_v47, %v2554_v28  ;;  %v1176_v54 = vmul.f32 %v1144_v47, %v2560_v36  ;;  %v1177_v58 = vmul.f32 %v1144_v47, %v2566_v48 }
 0x215   :  { %v1178_v62 = vmul.f32 %v1144_v47, %v2572_v60  ;;  %v1179_v2 = vmul.f32 %v1144_v47, %v2578_v8  ;;  %v1180_v6 = vmul.f32 %v1144_v47, %v2584_v20  ;;  %v1181_v10 = vmul.f32 %v1144_v47, %v2590_v30  ;;  %v3024_v30 = vld [vmem:[#allocation3_spill] sm:$0xff] }
 0x216   :  { %v1182_v18 = vmul.f32 %v1144_v47, %v2596_v44  ;;  %v1183_v22 = vmul.f32 %v1144_v47, %v2602_v0  ;;  %v1184_v28 = vmul.f32 %v1144_v47, %v2608_v16  ;;  %v1185_v36 = vmul.f32 %v1144_v47, %v2614_v32 }
 0x217   :  { %v1186_v48 = vmul.f32 %v1144_v47, %v2620_v52  ;;  %v1187_v60 = vmul.f32 %v1144_v47, %v2626_v63  ;;  %v1188_v8 = vmul.f32 %v1144_v47, %v2632_v3  ;;  %v1189_v20 = vmul.f32 %v1144_v47, %v2638_v7 }
 0x218   :  { %v1190_v9 = vmul.f32 %v1144_v47, %v3024_v30  ;;  %v1191_v1 = vmul.f32 %v1144_v47, %v3025_v35  ;;  %v1192_v44 = vmul.f32 %v1144_v47, %v3026_v4  ;;  %v1193_v0 = vmul.f32 %v1144_v47, %v2662_v23 }
 0x219   :  { %v1194_v16 = vmul.f32 %v1144_v47, %v3027_v21  ;;  %v1195_v39 = vmul.f32 0.0, %v1144_v47  ;;  %v2734_v32 = vadd.f32 %v2718_v14, %v1146_v11  ;;  %v2737_v52 = vadd.f32 %v2718_v14, %v1147_v45 }
 0x21a   :  { %v2740_v63 = vadd.f32 %v2718_v14, %v1148_v49  ;;  %v2743_v3 = vadd.f32 %v2718_v14, %v1149_v55  ;;  %v2746_v7 = vadd.f32 %v2718_v14, %v1150_v51  ;;  %v2749_v23 = vadd.f32 %v2718_v14, %v1151_v59 }
 0x21b   :  { %v2752_v31 = vadd.f32 %v2718_v14, %v1152_v15  ;;  %v2755_v43 = vadd.f32 %v2718_v14, %v1153_v61  ;;  %v2758_v47 = vadd.f32 %v2718_v14, %v1154_v19  ;;  %v2761_v11 = vadd.f32 %v2718_v14, %v1155_v29 }
 0x21c   :  { %v2764_v45 = vadd.f32 %v2718_v14, %v1156_v5  ;;  %v2767_v49 = vadd.f32 %v2718_v14, %v1157_v12  ;;  %v2770_v55 = vadd.f32 %v2718_v14, %v1158_v13  ;;  %v2773_v51 = vadd.f32 %v2718_v14, %v1159_v37 }
 0x21d   :  { %v2776_v59 = vadd.f32 %v2718_v14, %v1160_v34  ;;  %v2779_v15 = vadd.f32 %v2718_v14, %v1161_v42  ;;  %v2782_v61 = vadd.f32 %v2718_v14, %v1162_v46  ;;  %v2785_v19 = vadd.f32 %v2718_v14, %v1163_v40 }
 0x21e   :  { %v2788_v29 = vadd.f32 %v2718_v14, %v1164_v53  ;;  %v2791_v5 = vadd.f32 %v2718_v14, %v1165_v57  ;;  %v2794_v12 = vadd.f32 %v2718_v14, %v1166_v24  ;;  %v2797_v13 = vadd.f32 %v2718_v14, %v1167_v25 }
 0x21f   :  { %v2800_v37 = vadd.f32 %v2718_v14, %v1168_v27  ;;  %v2803_v34 = vadd.f32 %v2718_v14, %v1169_v33  ;;  %v2806_v42 = vadd.f32 %v2718_v14, %v1170_v41  ;;  %v2809_v46 = vadd.f32 %v2718_v14, %v1171_v56 }
 0x220   :  { %v2812_v40 = vadd.f32 %v2718_v14, %v1172_v17  ;;  %v2815_v53 = vadd.f32 %v2718_v14, %v1173_v38  ;;  %v2818_v57 = vadd.f32 %v2718_v14, %v1174_v26  ;;  %v2821_v24 = vadd.f32 %v2718_v14, %v1175_v50 }
 0x221   :  { %v2824_v25 = vadd.f32 %v2718_v14, %v1176_v54  ;;  %v2827_v27 = vadd.f32 %v2718_v14, %v1177_v58  ;;  %v2830_v33 = vadd.f32 %v2718_v14, %v1178_v62  ;;  %v2833_v41 = vadd.f32 %v2718_v14, %v1179_v2 }
 0x222   :  { %v2836_v56 = vadd.f32 %v2718_v14, %v1180_v6  ;;  %v2839_v17 = vadd.f32 %v2718_v14, %v1181_v10  ;;  %v2842_v38 = vadd.f32 %v2718_v14, %v1182_v18  ;;  %v2845_v26 = vadd.f32 %v2718_v14, %v1183_v22 }
 0x223   :  { %v2848_v50 = vadd.f32 %v2718_v14, %v1184_v28  ;;  %v2851_v54 = vadd.f32 %v2718_v14, %v1185_v36  ;;  %v2854_v58 = vadd.f32 %v2718_v14, %v1186_v48  ;;  %v2857_v62 = vadd.f32 %v2718_v14, %v1187_v60 }
 0x224   :  { %v2860_v2 = vadd.f32 %v2718_v14, %v1188_v8  ;;  %v2863_v6 = vadd.f32 %v2718_v14, %v1189_v20  ;;  %v2866_v10 = vadd.f32 %v2718_v14, %v1190_v9  ;;  %v2869_v18 = vadd.f32 %v2718_v14, %v1191_v1 }
 0x225   :  { %v2872_v22 = vadd.f32 %v2718_v14, %v1192_v44  ;;  %v2875_v28 = vadd.f32 %v2718_v14, %v1193_v0  ;;  %v2878_v36 = vadd.f32 %v2718_v14, %v1194_v16  ;;  %v2881_v48 = vadd.f32 %v2718_v14, %v1195_v39 }
 0x226   :  { %v1252_v60 = vmax.f32 %v2734_v32, 0.0  ;;  %v1253_v8 = vmax.f32 %v2737_v52, 0.0  ;;  %v1254_v20 = vmax.f32 %v2740_v63, 0.0  ;;  %v1255_v30 = vmax.f32 %v2743_v3, 0.0 }
 0x227   :  { %v1256_v9 = vmax.f32 %v2746_v7, 0.0  ;;  %v1257_v35 = vmax.f32 %v2749_v23, 0.0  ;;  %v1258_v1 = vmax.f32 %v2752_v31, 0.0  ;;  %v1259_v4 = vmax.f32 %v2755_v43, 0.0 }
 0x228   :  { %v1260_v44 = vmax.f32 %v2758_v47, 0.0  ;;  %v1261_v14 = vmax.f32 %v2761_v11, 0.0  ;;  %v1262_v0 = vmax.f32 %v2764_v45, 0.0  ;;  %v1263_v21 = vmax.f32 %v2767_v49, 0.0 }
 0x229   :  { %v1264_v16 = vmax.f32 %v2770_v55, 0.0  ;;  %v1265_v39 = vmax.f32 %v2773_v51, 0.0  ;;  %v1266_v32 = vmax.f32 %v2776_v59, 0.0  ;;  %v1267_v52 = vmax.f32 %v2779_v15, 0.0 }
 0x22a   :  { %v1268_v63 = vmax.f32 %v2782_v61, 0.0  ;;  %v1269_v3 = vmax.f32 %v2785_v19, 0.0  ;;  %v1270_v7 = vmax.f32 %v2788_v29, 0.0  ;;  %v1271_v23 = vmax.f32 %v2791_v5, 0.0 }
 0x22b   :  { %v1272_v31 = vmax.f32 %v2794_v12, 0.0  ;;  %v1273_v43 = vmax.f32 %v2797_v13, 0.0  ;;  %v1274_v47 = vmax.f32 %v2800_v37, 0.0  ;;  %v1275_v11 = vmax.f32 %v2803_v34, 0.0 }
 0x22c   :  { %v1276_v45 = vmax.f32 %v2806_v42, 0.0  ;;  %v1277_v49 = vmax.f32 %v2809_v46, 0.0  ;;  %v1278_v55 = vmax.f32 %v2812_v40, 0.0  ;;  %v1279_v51 = vmax.f32 %v2815_v53, 0.0 }
 0x22d   :  { %v1280_v59 = vmax.f32 %v2818_v57, 0.0  ;;  %v1281_v15 = vmax.f32 %v2821_v24, 0.0  ;;  %v1282_v61 = vmax.f32 %v2824_v25, 0.0  ;;  %v1283_v19 = vmax.f32 %v2827_v27, 0.0 }
 0x22e   :  { %v1284_v29 = vmax.f32 %v2830_v33, 0.0  ;;  %v1285_v5 = vmax.f32 %v2833_v41, 0.0  ;;  %v1286_v12 = vmax.f32 %v2836_v56, 0.0  ;;  %v1287_v13 = vmax.f32 %v2839_v17, 0.0 }
 0x22f   :  { %v1288_v37 = vmax.f32 %v2842_v38, 0.0  ;;  %v1289_v34 = vmax.f32 %v2845_v26, 0.0  ;;  %v1290_v42 = vmax.f32 %v2848_v50, 0.0  ;;  %v1291_v46 = vmax.f32 %v2851_v54, 0.0 }
 0x230   :  { %v1292_v40 = vmax.f32 %v2854_v58, 0.0  ;;  %v1293_v53 = vmax.f32 %v2857_v62, 0.0  ;;  %v1294_v57 = vmax.f32 %v2860_v2, 0.0  ;;  %v1295_v24 = vmax.f32 %v2863_v6, 0.0 }
 0x231   :  { %v1296_v25 = vmax.f32 %v2866_v10, 0.0  ;;  %v1297_v27 = vmax.f32 %v2869_v18, 0.0  ;;  %v1298_v33 = vmax.f32 %v2872_v22, 0.0  ;;  %v1299_v41 = vmax.f32 %v2875_v28, 0.0 }
 0x232   :  { %v1300_v56 = vmax.f32 %v2878_v36, 0.0  ;;  %v1301_v17 = vmax.f32 %v2881_v48, 0.0  ;;  %v1693_v38 = vpack.c.bf16 %v1253_v8, %v1252_v60  ;;  %v1698_v26 = vpack.c.bf16 %v1255_v30, %v1254_v20 }
 0x233   :  { %v1703_v50 = vpack.c.bf16 %v1257_v35, %v1256_v9  ;;  %v1708_v54 = vpack.c.bf16 %v1259_v4, %v1258_v1  ;;  %v1713_v58 = vpack.c.bf16 %v1261_v14, %v1260_v44  ;;  %v1718_v62 = vpack.c.bf16 %v1263_v21, %v1262_v0 }
 0x234   :  { %1694 = vst [vmem:[%s3012_s4] sm:$0xff] %v1693_v38   ;;  %1815 = vst [vmem:[%s3012_s4 + $0x8] sm:$0xff] %v1698_v26   ;;  %v1723_v2 = vpack.c.bf16 %v1265_v39, %v1264_v16  ;;  %v1728_v6 = vpack.c.bf16 %v1267_v52, %v1266_v32  ;;  %v1733_v10 = vpack.c.bf16 %v1269_v3, %v1268_v63 }
 0x235   :  { %v1738_v18 = vpack.c.bf16 %v1271_v23, %v1270_v7  ;;  %1816 = vst [vmem:[%s3012_s4 + $0x10] sm:$0xff] %v1703_v50   ;;  %1817 = vst [vmem:[%s3012_s4 + $0x18] sm:$0xff] %v1708_v54   ;;  %v1743_v22 = vpack.c.bf16 %v1273_v43, %v1272_v31  ;;  %v1748_v28 = vpack.c.bf16 %v1275_v11, %v1274_v47 }
 0x236   :  { %1818 = vst [vmem:[%s3012_s4 + $0x20] sm:$0xff] %v1713_v58   ;;  %1819 = vst [vmem:[%s3012_s4 + $0x28] sm:$0xff] %v1718_v62   ;;  %v1753_v36 = vpack.c.bf16 %v1277_v49, %v1276_v45  ;;  %v1758_v48 = vpack.c.bf16 %v1279_v51, %v1278_v55  ;;  %v1763_v60 = vpack.c.bf16 %v1281_v15, %v1280_v59 }
 0x237   :  { %1820 = vst [vmem:[%s3012_s4 + $0x30] sm:$0xff] %v1723_v2   ;;  %1821 = vst [vmem:[%s3012_s4 + $0x38] sm:$0xff] %v1728_v6   ;;  %v1768_v8 = vpack.c.bf16 %v1283_v19, %v1282_v61  ;;  %v1773_v20 = vpack.c.bf16 %v1285_v5, %v1284_v29  ;;  %v1778_v30 = vpack.c.bf16 %v1287_v13, %v1286_v12 }
 0x238   :  { %1822 = vst [vmem:[%s3012_s4 + $0x40] sm:$0xff] %v1733_v10   ;;  %1823 = vst [vmem:[%s3012_s4 + $0x48] sm:$0xff] %v1738_v18   ;;  %v1783_v9 = vpack.c.bf16 %v1289_v34, %v1288_v37  ;;  %v1788_v35 = vpack.c.bf16 %v1291_v46, %v1290_v42  ;;  %v1793_v1 = vpack.c.bf16 %v1293_v53, %v1292_v40 }
 0x239   :  { %1824 = vst [vmem:[%s3012_s4 + $0x50] sm:$0xff] %v1743_v22   ;;  %1825 = vst [vmem:[%s3012_s4 + $0x58] sm:$0xff] %v1748_v28   ;;  %v1798_v4 = vpack.c.bf16 %v1295_v24, %v1294_v57  ;;  %v1803_v44 = vpack.c.bf16 %v1297_v27, %v1296_v25  ;;  %v1808_v14 = vpack.c.bf16 %v1299_v41, %v1298_v33 }
 0x23a   :  { %1826 = vst [vmem:[%s3012_s4 + $0x60] sm:$0xff] %v1753_v36   ;;  %1827 = vst [vmem:[%s3012_s4 + $0x68] sm:$0xff] %v1758_v48   ;;  %v1813_v0 = vpack.c.bf16 %v1301_v17, %v1300_v56 }
 0x23b   :  { %1828 = vst [vmem:[%s3012_s4 + $0x70] sm:$0xff] %v1763_v60   ;;  %1829 = vst [vmem:[%s3012_s4 + $0x78] sm:$0xff] %v1768_v8  }
 0x23c   :  { %1830 = vst [vmem:[%s3012_s4 + $0x80] sm:$0xff] %v1773_v20   ;;  %1831 = vst [vmem:[%s3012_s4 + $0x88] sm:$0xff] %v1778_v30  }
 0x23d   :  { %1832 = vst [vmem:[%s3012_s4 + $0x90] sm:$0xff] %v1783_v9   ;;  %1833 = vst [vmem:[%s3012_s4 + $0x98] sm:$0xff] %v1788_v35  }
 0x23e   :  { %1834 = vst [vmem:[%s3012_s4 + $0xa0] sm:$0xff] %v1793_v1   ;;  %1835 = vst [vmem:[%s3012_s4 + $0xa8] sm:$0xff] %v1798_v4  }
 0x23f   :  { %1836 = vst [vmem:[%s3012_s4 + $0xb0] sm:$0xff] %v1803_v44   ;;  %1837 = vst [vmem:[%s3012_s4 + $0xb8] sm:$0xff] %v1808_v14  }
 0x240   :  { %1838 = vst [vmem:[%s3012_s4 + $0xc0] sm:$0xff] %v1813_v0  }

// kernel: resnet_forward.25
= control target key start
LH: loop header
LB: loop body
LE: loop exit
PB: predicated region body
PF: predicated region fallthrough
CT: control target
= control target key end

     0   :  { %s1300_s15 = smov 0   ;;  %s1302_s16 = smov 0   ;;  %s1425_s0 = inlined_call_operand.vmem [shape: bf16[112,640], index: 0, kind: input, shape index: {}]   ;;  %s1426_s1 = inlined_call_operand.vmem [shape: bf16[640,128], index: 1, kind: input, shape index: {}]   ;;  %s1427_s2 = inlined_call_operand.vmem [shape: f32[1,128], index: 2, kind: input, shape index: {}]   ;;  %s1428_s3 = inlined_call_operand.vmem [shape: f32[1,128], index: 3, kind: input, shape index: {}]   ;;  %s1429_s4 = inlined_call_operand.vmem [shape: bf16[112,128], index: 4, kind: output, shape index: {}]  }
   0x1   :  { %s1304_s17 = smov 0   ;;  %s1306_s18 = smov 0  }
   0x2   :  { %s1308_s19 = smov 0  }
   0x3 LB: > { %s23_s20 = sadd.s32 1, %s1266_s18  ;;  %p40_p1 = scmp.ne.s32.totalorder %s1258_s16, %s1254_s15  ;;  %s1270_s19 = sphi %s1308_s19, %s14_s19   ;;  %s1266_s18 = sphi %s1306_s18, %s1433_s18   ;;  %s1262_s17 = sphi %s1304_s17, %s1432_s17   ;;  %s1258_s16 = sphi %s1302_s16, %s1431_s16   ;;  %s1254_s15 = sphi %s1300_s15, %s1430_s15  }
   0x4   : > { %p24_p0 = scmp.ge.s32.totalorder %s23_s20, 5  ;;  %p41_p2 = scmp.eq.s32.totalorder %s1270_s19, 0 }
   0x5   : > { %s33_s22 = sadd.s32 1, %s1258_s16  ;;  %p1000_p5 = scmp.ge.s32.totalorder %s1270_s19, 5 }
   0x6   : > { %s1435_s20 = smov (%p24_p0, %s23_s20), 0  ;;  %p42_p3 = por %p41_p2, %p40_p1 }
   0x7   : > { %s30_s21 = ssub.s32 %s1266_s18, %s1435_s20  ;;  %184 = sbr.rel (%p1000_p5) target bundleno = 25 (0x19), region = 24 }
   0x8   : > { %p31_p4 = scmp.eq.s32.totalorder %s30_s21, 0 }
   0xa   : > { %s1335_s23 = scalar_select %p31_p4, %s1258_s16, %s33_s22  }
   0xc   : > { %187 = sbr.rel (!%p42_p3) target bundleno = 25 (0x19), region = 28  ;;  %s189_s24 = sand.u32 (%p42_p3), 1, %s1258_s16  }
   0xd   : > { %s1001_s25 = sshll.u32 (%p42_p3), %s1266_s18, 2  ;;  %s1170_s26 = smul.u32 (%p42_p3), 56, %s189_s24 }
   0xe   : > { %s193_s29 = scalar_lea.vmem (%p42_p3), %s1425_s0, %s1001_s25 }
   0xf   : > { %v210_v0 = vld [vmem:[%s193_s29] sm:$0xf] (%p42_p3)  ;;  %v212_v1 = vld [vmem:[%s193_s29 + $0x14] sm:$0xf] (%p42_p3)  ;;  %v214_v2 = vld [vmem:[%s193_s29 + $0x28] sm:$0xf] (%p42_p3) }
  0x10   : > { %v216_v3 = vld [vmem:[%s193_s29 + $0x3c] sm:$0xf] (%p42_p3)  ;;  %v218_v4 = vld [vmem:[%s193_s29 + $0x50] sm:$0xf] (%p42_p3)  ;;  %s191_s30 = scalar_lea.vmem (%p42_p3), [#allocation3], %s1170_s26 }
  0x11   : > { %211 = vst [vmem:[%s191_s30] sm:$0xf] %v210_v0  ;;  %213 = vst [vmem:[%s191_s30 + $0x4] sm:$0xf] %v212_v1  ;;  %v220_v5 = vld [vmem:[%s193_s29 + $0x64] sm:$0xf] }
  0x12   : > { %215 = vst [vmem:[%s191_s30 + $0x8] sm:$0xf] %v214_v2  ;;  %217 = vst [vmem:[%s191_s30 + $0xc] sm:$0xf] %v216_v3  ;;  %v222_v6 = vld [vmem:[%s193_s29 + $0x78] sm:$0xf] }
  0x13   : > { %219 = vst [vmem:[%s191_s30 + $0x10] sm:$0xf] %v218_v4  ;;  %v224_v7 = vld [vmem:[%s193_s29 + $0x8c] sm:$0xf]  ;;  %221 = vst [vmem:[%s191_s30 + $0x14] sm:$0xf] %v220_v5 }
  0x14   : > { %223 = vst [vmem:[%s191_s30 + $0x18] sm:$0xf] %v222_v6  ;;  %225 = vst [vmem:[%s191_s30 + $0x1c] sm:$0xf] %v224_v7  ;;  %v226_v8 = vld [vmem:[%s193_s29 + $0xa0] sm:$0xf] }
  0x15   : > { %v228_v9 = vld [vmem:[%s193_s29 + $0xb4] sm:$0xf]  ;;  %v230_v10 = vld [vmem:[%s193_s29 + $0xc8] sm:$0xf]  ;;  %227 = vst [vmem:[%s191_s30 + $0x20] sm:$0xf] %v226_v8 }
  0x16   : > { %229 = vst [vmem:[%s191_s30 + $0x24] sm:$0xf] %v228_v9  ;;  %231 = vst [vmem:[%s191_s30 + $0x28] sm:$0xf] %v230_v10  ;;  %v232_v11 = vld [vmem:[%s193_s29 + $0xdc] sm:$0xf] }
  0x17   : > { %v234_v12 = vld [vmem:[%s193_s29 + $0xf0] sm:$0xf]  ;;  %v236_v13 = vld [vmem:[%s193_s29 + $0x104] sm:$0xf]  ;;  %233 = vst [vmem:[%s191_s30 + $0x2c] sm:$0xf] %v232_v11 }
  0x18   : > { %235 = vst [vmem:[%s191_s30 + $0x30] sm:$0xf] %v234_v12  ;;  %237 = vst [vmem:[%s191_s30 + $0x34] sm:$0xf] %v236_v13 }
  0x19 PF: > { %p1002_p6 = scmp.ge.s32.totalorder %s1270_s19, 1  ;;  %p300_p7 = scmp.lt.s32.totalorder %s1270_s19, 6 }
  0x1b   : > { %p301_p8 = pnand %p1002_p6, %p300_p7 }
  0x1c   : > { %s307_s5 = sand.u32 (!%p301_p8), 1, %s1254_s15   ;;  %s1003_s6 = sshll.u32 (!%p301_p8), %s1262_s17, 4 }
  0x1d   : > { %304 = sbr.rel (%p301_p8) target bundleno = 424 (0x1a8), region = 73  ;;  %p346_p9 = scmp.lt.s32.totalorder (!%p301_p8), %s1003_s6, 79 }
  0x1e   : > { %s1171_s7 = smul.u32 (!%p301_p8), 56, %s307_s5  ;;  %p1005_p10 = scmp.ne.s32.totalorder (!%p301_p8), %s1262_s17, 0 }
  0x20   : > { %s1352_s12 = scalar_lea.vmem (!%p301_p8), [#allocation3], %s1171_s7 }
  0x22   : > { %s1437_s6 = smov (!%p346_p9, %s1003_s6), 79  ;;  %368 = sbr.rel (%p1005_p10) target bundleno = 47 (0x2f), region = 81 }
  0x23   : > { %s1004_s8 = sshll.u32 %s1437_s6, 2 }
  0x24   : > { %s1350_s11 = scalar_lea.vmem %s1426_s1, %s1004_s8 }
  0x27   : > { %v1272_v14 = vmov 0.0  }
  0x28   : > { %369 = vst [vmem:[#allocation2 + $0x30] sm:$0xff] %v1272_v14  ;;  %370 = vst [vmem:[#allocation2] sm:$0xff] %v1272_v14 }
  0x29   : > { %371 = vst [vmem:[#allocation2 + $0x58] sm:$0xff] %v1272_v14  ;;  %372 = vst [vmem:[#allocation2 + $0x18] sm:$0xff] %v1272_v14 }
  0x2a   : > { %373 = vst [vmem:[#allocation2 + $0x50] sm:$0xff] %v1272_v14  ;;  %374 = vst [vmem:[#allocation2 + $0x68] sm:$0xff] %v1272_v14 }
  0x2b   : > { %375 = vst [vmem:[#allocation2 + $0x8] sm:$0xff] %v1272_v14  ;;  %376 = vst [vmem:[#allocation2 + $0x48] sm:$0xff] %v1272_v14 }
  0x2c   : > { %377 = vst [vmem:[#allocation2 + $0x40] sm:$0xff] %v1272_v14  ;;  %378 = vst [vmem:[#allocation2 + $0x20] sm:$0xff] %v1272_v14 }
  0x2d   : > { %379 = vst [vmem:[#allocation2 + $0x10] sm:$0xff] %v1272_v14  ;;  %380 = vst [vmem:[#allocation2 + $0x38] sm:$0xff] %v1272_v14 }
  0x2e   : > { %381 = vst [vmem:[#allocation2 + $0x60] sm:$0xff] %v1272_v14  ;;  %382 = vst [vmem:[#allocation2 + $0x28] sm:$0xff] %v1272_v14 }
  0x2f PF: > { %v1215_v15 = vld [vmem:[%s1350_s11 + $0x38] sm:$0xff]   ;;  %v1273_v16 = vmov 0.0   ;;  %v1216_v17 = vld [vmem:[%s1350_s11 + $0x30] sm:$0xff]   ;;  %vm1274_vm0 = vmmov 0   ;;  %v1217_v18 = vld [vmem:[%s1350_s11 + $0x28] sm:$0xff]   ;;  %p1021_p11 = scmp.ne.s32.totalorder %s1262_s17, 4 }
  0x30   : > { %1110 = vmatprep.subr.bf16.mxu0 %v1273_v16  ;;  %1154 = vmatprep.subr.bf16.mxu1 %v1273_v16  ;;  %v1218_v19 = vld [vmem:[%s1350_s11 + $0x20] sm:$0xff]   ;;  %v1219_v20 = vld [vmem:[%s1350_s11 + $0x18] sm:$0xff]   ;;  %v1220_v21 = vld [vmem:[%s1350_s11 + $0x10] sm:$0xff]  }
  0x31   : > { %1111 = vmatpush3.bf16.msra.mxu0 %v1215_v15  ;;  %1162 = vmatpush3.bf16.msra.mxu1 %v1215_v15  ;;  %v1221_v22 = vld [vmem:[%s1350_s11 + $0x8] sm:$0xff]   ;;  %v1222_v23 = vld [vmem:[%s1350_s11] sm:$0xff]   ;;  %v1225_v26 = vld [vmem:[%s1352_s12 + $0x8] sm:$0xff]  }
  0x32   : > { %1112 = vmatprep.subr.bf16.mxu0 %v1273_v16  ;;  %1155 = vmatprep.subr.bf16.mxu1 %v1273_v16  ;;  %v1223_v24 = vld [vmem:[%s1352_s12] sm:$0xff]   ;;  %v1226_v27 = vld [vmem:[%s1352_s12 + $0x28] sm:$0xff]   ;;  %v1227_v28 = vld [vmem:[%s1352_s12 + $0x10] sm:$0xff]  }
  0x33   : > { %1126 = vmatprep.mubr.msk.bf16.mxu0 %vm1274_vm0, %v1273_v16  ;;  %1142 = vmatprep.mubr.msk.bf16.mxu1 %vm1274_vm0, %v1273_v16  ;;  %v1224_v25 = vld [vmem:[%s1352_s12 + $0x20] sm:$0xff]   ;;  %v1228_v29 = vld [vmem:[%s1352_s12 + $0x30] sm:$0xff]   ;;  %v1229_v30 = vld [vmem:[%s1352_s12 + $0x18] sm:$0xff]  }
  0x34   : > { %v383_v31 = vld [vmem:[#allocation2 + $0x30] sm:$0xff]  ;;  %v391_v32 = vld [vmem:[#allocation2 + $0x40] sm:$0xff]  ;;  %v385_v46 = vld [vmem:[#allocation2 + $0x58] sm:$0xff] }
  0x35   : > { %1113 = vmatpush3.bf16.msra.mxu0 %v1216_v17  ;;  %1163 = vmatpush3.bf16.msra.mxu1 %v1216_v17  ;;  %v384_v38 = vld [vmem:[#allocation2] sm:$0xff]  ;;  %v393_v48 = vld [vmem:[#allocation2 + $0x10] sm:$0xff]  ;;  %v386_v54 = vld [vmem:[#allocation2 + $0x18] sm:$0xff] }
  0x36   : > { %1114 = vmatprep.subr.bf16.mxu0 %v1273_v16  ;;  %1156 = vmatprep.subr.bf16.mxu1 %v1273_v16  ;;  %v392_v40 = vld [vmem:[#allocation2 + $0x20] sm:$0xff]  ;;  %v394_v56 = vld [vmem:[#allocation2 + $0x38] sm:$0xff]  ;;  %v387_v62 = vld [vmem:[#allocation2 + $0x50] sm:$0xff] }
  0x37   : > { %v395_v0 = vld [vmem:[#allocation2 + $0x60] sm:$0xff]  ;;  %v388_v6 = vld [vmem:[#allocation2 + $0x68] sm:$0xff] }
  0x38   : > { %v396_v8 = vld [vmem:[#allocation2 + $0x28] sm:$0xff] }
  0x39   : > { %1115 = vmatpush3.bf16.msra.mxu0 %v1217_v18  ;;  %1164 = vmatpush3.bf16.msra.mxu1 %v1217_v18  ;;  %v389_v14 = vld [vmem:[#allocation2 + $0x8] sm:$0xff] }
  0x3a   : > { %1116 = vmatprep.subr.bf16.mxu0 %v1273_v16  ;;  %1157 = vmatprep.subr.bf16.mxu1 %v1273_v16 }
  0x3d   : > { %1117 = vmatpush3.bf16.msra.mxu0 %v1218_v19  ;;  %1165 = vmatpush3.bf16.msra.mxu1 %v1218_v19  ;;  %v390_v19 = vld [vmem:[#allocation2 + $0x48] sm:$0xff] }
  0x3e   : > { %1118 = vmatprep.subr.bf16.mxu0 %v1273_v16  ;;  %1158 = vmatprep.subr.bf16.mxu1 %v1273_v16 }
  0x41   : > { %1119 = vmatpush3.bf16.msra.mxu0 %v1219_v20  ;;  %1166 = vmatpush3.bf16.msra.mxu1 %v1219_v20 }
  0x42   : > { %1120 = vmatprep.subr.bf16.mxu0 %v1273_v16  ;;  %1159 = vmatprep.subr.bf16.mxu1 %v1273_v16 }
  0x45   : > { %1121 = vmatpush3.bf16.msra.mxu0 %v1220_v21  ;;  %1167 = vmatpush3.bf16.msra.mxu1 %v1220_v21 }
  0x46   : > { %1122 = vmatprep.subr.bf16.mxu0 %v1273_v16  ;;  %1160 = vmatprep.subr.bf16.mxu1 %v1273_v16 }
  0x49   : > { %1123 = vmatpush3.bf16.msra.mxu0 %v1221_v22  ;;  %1168 = vmatpush3.bf16.msra.mxu1 %v1221_v22 }
  0x4a   : > { %1124 = vmatprep.subr.bf16.mxu0 %v1273_v16  ;;  %1161 = vmatprep.subr.bf16.mxu1 %v1273_v16 }
  0x4d   : > { %1125 = vmatpush3.bf16.msra.mxu0 %v1222_v23  ;;  %1169 = vmatpush3.bf16.msra.mxu1 %v1222_v23 }
  0x50   : > { %1127 = vmatmul.mubr.bf16.vlgmr.msra.gmra.mxu0 %v1223_v24  ;;  %1143 = vmatmul.mubr.bf16.vlgmr.msra.gmra.mxu1 %v1224_v25 }
  0x51   : > { %1130 = vmatprep.mubr.msk.bf16.mxu0 %vm1274_vm0, %v1273_v16  ;;  %1146 = vmatprep.mubr.msk.bf16.mxu1 %vm1274_vm0, %v1273_v16 }
  0x58   : > { %1131 = vmatmul.mubr.bf16.gmra.mxu0 %v1225_v26  ;;  %1147 = vmatmul.mubr.bf16.gmra.mxu1 %v1226_v27 }
  0x59   : > { %1134 = vmatprep.mubr.msk.bf16.mxu0 %vm1274_vm0, %v1273_v16  ;;  %1150 = vmatprep.mubr.msk.bf16.mxu1 %vm1274_vm0, %v1273_v16 }
  0x60   : > { %1135 = vmatmul.mubr.bf16.gmra.mxu0 %v1227_v28  ;;  %1151 = vmatmul.mubr.bf16.gmra.mxu1 %v1228_v29 }
  0x61   : > { %1138 = vmatprep.mubr.msk.bf16.mxu0 %vm1274_vm0, %v1273_v16 }
  0x68   : > { %1139 = vmatmul.mubr.bf16.gmra.mxu0 %v1229_v30 }
 0x110   : > { %v551_v33 = vpop.f32.mrf.mxu0  ;;  %v583_v34 = vpop.f32.mrf.mxu1 }
 0x111   : > { %v606_v35 = vadd.f32 %v551_v33, %v383_v31  ;;  %v614_v36 = vadd.f32 %v583_v34, %v391_v32 }
 0x112   : > { %v1128_v37 = vpop.f32.mrf.mxu0  ;;  %v1144_v39 = vpop.f32.mrf.mxu1 }
 0x113   : > { %620 = vst [vmem:[#allocation2 + $0x30] sm:$0xff] %v606_v35  ;;  %628 = vst [vmem:[#allocation2 + $0x40] sm:$0xff] %v614_v36 }
 0x114   : > { %v554_v41 = vpop.f32.mrf.mxu0  ;;  %v586_v42 = vpop.f32.mrf.mxu1 }
 0x115   : > { %v607_v43 = vadd.f32 %v554_v41, %v384_v38  ;;  %v615_v44 = vadd.f32 %v586_v42, %v392_v40 }
 0x116   : > { %v1129_v45 = vpop.f32.mrf.mxu0  ;;  %v1145_v47 = vpop.f32.mrf.mxu1 }
 0x117   : > { %621 = vst [vmem:[#allocation2] sm:$0xff] %v607_v43  ;;  %629 = vst [vmem:[#allocation2 + $0x20] sm:$0xff] %v615_v44 }
 0x118   : > { %v559_v49 = vpop.f32.mrf.mxu0  ;;  %v591_v50 = vpop.f32.mrf.mxu1 }
 0x119   : > { %v608_v51 = vadd.f32 %v559_v49, %v385_v46  ;;  %v616_v52 = vadd.f32 %v591_v50, %v393_v48 }
 0x11a   : > { %v1132_v53 = vpop.f32.mrf.mxu0  ;;  %v1148_v55 = vpop.f32.mrf.mxu1 }
 0x11b   : > { %622 = vst [vmem:[#allocation2 + $0x58] sm:$0xff] %v608_v51  ;;  %630 = vst [vmem:[#allocation2 + $0x10] sm:$0xff] %v616_v52 }
 0x11c   : > { %v562_v57 = vpop.f32.mrf.mxu0  ;;  %v594_v58 = vpop.f32.mrf.mxu1 }
 0x11d   : > { %v609_v59 = vadd.f32 %v562_v57, %v386_v54  ;;  %v617_v60 = vadd.f32 %v594_v58, %v394_v56 }
 0x11e   : > { %v1133_v61 = vpop.f32.mrf.mxu0  ;;  %v1149_v63 = vpop.f32.mrf.mxu1 }
 0x11f   : > { %623 = vst [vmem:[#allocation2 + $0x18] sm:$0xff] %v609_v59  ;;  %631 = vst [vmem:[#allocation2 + $0x38] sm:$0xff] %v617_v60 }
 0x120   : > { %v567_v1 = vpop.f32.mrf.mxu0  ;;  %v599_v2 = vpop.f32.mrf.mxu1 }
 0x121   : > { %v610_v3 = vadd.f32 %v567_v1, %v387_v62  ;;  %v618_v4 = vadd.f32 %v599_v2, %v395_v0 }
 0x122   : > { %v1136_v5 = vpop.f32.mrf.mxu0  ;;  %v1152_v7 = vpop.f32.mrf.mxu1 }
 0x123   : > { %624 = vst [vmem:[#allocation2 + $0x50] sm:$0xff] %v610_v3  ;;  %632 = vst [vmem:[#allocation2 + $0x60] sm:$0xff] %v618_v4 }
 0x124   : > { %v570_v9 = vpop.f32.mrf.mxu0  ;;  %v602_v10 = vpop.f32.mrf.mxu1 }
 0x125   : > { %v611_v11 = vadd.f32 %v570_v9, %v388_v6  ;;  %v619_v12 = vadd.f32 %v602_v10, %v396_v8 }
 0x126   : > { %v1137_v13 = vpop.f32.mrf.mxu0  ;;  %v1153_v15 = vpop.f32.mrf.mxu1 }
 0x127   : > { %625 = vst [vmem:[#allocation2 + $0x68] sm:$0xff] %v611_v11  ;;  %633 = vst [vmem:[#allocation2 + $0x28] sm:$0xff] %v619_v12 }
 0x128   : > { %v575_v16 = vpop.f32.mrf.mxu0 }
 0x129   : > { %v612_v17 = vadd.f32 %v575_v16, %v389_v14 }
 0x12a   : > { %v1140_v18 = vpop.f32.mrf.mxu0 }
 0x12b   : > { %626 = vst [vmem:[#allocation2 + $0x8] sm:$0xff] %v612_v17  ;;  %637 = sbr.rel (%p1021_p11) target bundleno = 424 (0x1a8), region = 85 }
 0x12c   : > { %v578_v20 = vpop.f32.mrf.mxu0 }
 0x12d   : > { %v613_v21 = vadd.f32 %v578_v20, %v390_v19 }
 0x12e   : > { %v1141_v22 = vpop.f32.mrf.mxu0 }
 0x12f   : > { %627 = vst [vmem:[#allocation2 + $0x48] sm:$0xff] %v613_v21 }
 0x130   : > { %v638_v23 = vld [vmem:[#allocation2 + $0x30] sm:$0xff]  ;;  %v639_v24 = vld [vmem:[#allocation2] sm:$0xff]  ;;  %v640_v25 = vld [vmem:[#allocation2 + $0x58] sm:$0xff]  ;;  %v674_v1 = vlaneseq }
 0x131   : > { %v654_v26 = vadd.f32 %v639_v24, %v638_v23  ;;  %v641_v27 = vld [vmem:[#allocation2 + $0x18] sm:$0xff]  ;;  %v642_v29 = vld [vmem:[#allocation2 + $0x50] sm:$0xff]  ;;  %v643_v31 = vld [vmem:[#allocation2 + $0x68] sm:$0xff] }
 0x132   : > { %v644_v33 = vld [vmem:[#allocation2 + $0x8] sm:$0xff]  ;;  %v646_v37 = vld [vmem:[#allocation2 + $0x40] sm:$0xff]  ;;  %v648_v41 = vld [vmem:[#allocation2 + $0x10] sm:$0xff]  ;;  %v675_v8 = vshrl.u32 %v674_v1, 7 }
 0x133   : > { %v655_v28 = vadd.f32 %v654_v26, %v640_v25  ;;  %v647_v39 = vld [vmem:[#allocation2 + $0x20] sm:$0xff]  ;;  %v649_v43 = vld [vmem:[#allocation2 + $0x38] sm:$0xff]  ;;  %v651_v47 = vld [vmem:[#allocation2 + $0x28] sm:$0xff] }
 0x134   : > { %v650_v45 = vld [vmem:[#allocation2 + $0x60] sm:$0xff]  ;;  %v687_v15 = vadd.s32 96, %v675_v8 }
 0x135   : > { %v656_v30 = vadd.f32 %v655_v28, %v641_v27 }
 0x136   : > { %v645_v35 = vld [vmem:[#allocation2 + $0x48] sm:$0xff]  ;;  %vm701_vm1 = vcmp.lt.s32.totalorder %v687_v15, 98 }
 0x137   : > { %v657_v32 = vadd.f32 %v656_v30, %v642_v29 }
 0x139   : > { %v658_v34 = vadd.f32 %v657_v32, %v643_v31 }
 0x13b   : > { %v659_v36 = vadd.f32 %v658_v34, %v644_v33 }
 0x13d   : > { %v660_v38 = vadd.f32 %v659_v36, %v645_v35 }
 0x13f   : > { %v661_v40 = vadd.f32 %v660_v38, %v646_v37 }
 0x141   : > { %v662_v42 = vadd.f32 %v661_v40, %v647_v39 }
 0x143   : > { %v663_v44 = vadd.f32 %v662_v42, %v648_v41 }
 0x145   : > { %v664_v46 = vadd.f32 %v663_v44, %v649_v43  ;;  %v771_v44 = vsub.s32 0, %v675_v8 }
 0x147   : > { %v665_v48 = vadd.f32 %v664_v46, %v650_v45 }
 0x149   : > { %v666_v49 = vadd.f32 %v665_v48, %v651_v47  ;;  %v1022_v48 = vld [vmem:[%s1428_s3] ss:$0 sm:$0xff] }
 0x14b   : > { %v667_v50 = vrot.slane %v666_v49, 4 }
 0x14d   : > { %v668_v51 = vadd.f32 %v667_v50, %v666_v49 }
 0x14f   : > { %v669_v52 = vrot.slane %v668_v51, 2 }
 0x151   : > { %v670_v53 = vadd.f32 %v669_v52, %v668_v51 }
 0x153   : > { %v671_v54 = vrot.slane %v670_v53, 1 }
 0x155   : > { %v672_v55 = vadd.f32 %v671_v54, %v670_v53 }
 0x157   : > { %v673_v56 = vmul.f32 0.010204081, %v672_v55 }
 0x159   : > { %v703_v57 = vsub.f32 %v638_v23, %v673_v56  ;;  %v704_v58 = vsub.f32 %v639_v24, %v673_v56  ;;  %v705_v59 = vsub.f32 %v640_v25, %v673_v56  ;;  %v706_v60 = vsub.f32 %v641_v27, %v673_v56 }
 0x15a   : > { %v707_v63 = vsub.f32 %v642_v29, %v673_v56  ;;  %v708_v2 = vsub.f32 %v643_v31, %v673_v56  ;;  %v709_v5 = vsub.f32 %v644_v33, %v673_v56  ;;  %v710_v9 = vsub.f32 %v645_v35, %v673_v56 }
 0x15b   : > { %v731_v61 = vmul.f32 %v703_v57, %v703_v57  ;;  %v732_v62 = vmul.f32 %v704_v58, %v704_v58  ;;  %v733_v0 = vmul.f32 %v705_v59, %v705_v59  ;;  %v734_v3 = vmul.f32 %v706_v60, %v706_v60 }
 0x15c   : > { %v735_v6 = vmul.f32 %v707_v63, %v707_v63  ;;  %v736_v10 = vmul.f32 %v708_v2, %v708_v2  ;;  %v1378_v12 = vsub.f32 %v646_v37, %v673_v56  ;;  %v737_v13 = vmul.f32 %v709_v5, %v709_v5 }
 0x15d   : > { %v745_v4 = vadd.f32 %v732_v62, %v731_v61  ;;  %v712_v16 = vsub.f32 %v647_v39, %v673_v56  ;;  %v738_v17 = vmul.f32 %v710_v9, %v710_v9  ;;  %v713_v19 = vsub.f32 %v648_v41, %v673_v56 }
 0x15e   : > { %v739_v20 = vmul.f32 %v1378_v12, %v1378_v12  ;;  %v715_v22 = vsub.f32 %v650_v45, %v673_v56  ;;  %v714_v23 = vsub.f32 %v649_v43, %v673_v56  ;;  %v652_v43 = vld [vmem:[%s1427_s2] sm:$0x1] }
 0x15f   : > { %v746_v7 = vadd.f32 %v745_v4, %v733_v0  ;;  %v740_v24 = vmul.f32 %v712_v16, %v712_v16  ;;  %v741_v26 = vmul.f32 %v713_v19, %v713_v19 }
 0x160   : > { %v729_v28 = vsel %vm701_vm1, %v715_v22, 0.0  ;;  %v742_v29 = vmul.f32 %v714_v23, %v714_v23 }
 0x161   : > { %v747_v11 = vadd.f32 %v746_v7, %v734_v3  ;;  %v743_v31 = vmul.f32 %v729_v28, %v729_v28 }
 0x163   : > { %v748_v14 = vadd.f32 %v747_v11, %v735_v6 }
 0x165   : > { %v749_v18 = vadd.f32 %v748_v14, %v736_v10 }
 0x167   : > { %v750_v21 = vadd.f32 %v749_v18, %v737_v13 }
 0x169   : > { %v751_v25 = vadd.f32 %v750_v21, %v738_v17 }
 0x16b   : > { %v752_v27 = vadd.f32 %v751_v25, %v739_v20 }
 0x16d   : > { %v753_v30 = vadd.f32 %v752_v27, %v740_v24 }
 0x16f   : > { %v754_v32 = vadd.f32 %v753_v30, %v741_v26 }
 0x171   : > { %v755_v33 = vadd.f32 %v754_v32, %v742_v29 }
 0x173   : > { %v756_v34 = vadd.f32 %v755_v33, %v743_v31 }
 0x175   : > { %v758_v35 = vrot.slane %v756_v34, 4 }
 0x177   : > { %v759_v36 = vadd.f32 %v758_v35, %v756_v34 }
 0x179   : > { %v760_v37 = vrot.slane %v759_v36, 2 }
 0x17b   : > { %v761_v38 = vadd.f32 %v760_v37, %v759_v36 }
 0x17d   : > { %v762_v39 = vrot.slane %v761_v38, 1 }
 0x17f   : > { %v763_v40 = vadd.f32 %v762_v39, %v761_v38 }
 0x181   : > { %v764_v41 = vmul.f32 0.010204081, %v763_v40 }
 0x183   : > { %v765_v42 = vadd.f32 1e-05, %v764_v41 }
 0x185   : > { %1230 = vrsqrt.f32 %v765_v42 }
 0x192   : > { %v1231_v45 = vpop.eup %1230 }
 0x193   : > { %v767_v46 = vmul.f32 %v1231_v45, %v652_v43 }
 0x195   : > { %v772_v47 = vrot.slane %v767_v46, %v771_v44 }
 0x197   : > { %v774_v49 = vmul.f32 %v772_v47, %v703_v57  ;;  %v775_v50 = vmul.f32 %v772_v47, %v704_v58  ;;  %v776_v51 = vmul.f32 %v772_v47, %v705_v59  ;;  %v777_v52 = vmul.f32 %v772_v47, %v706_v60 }
 0x198   : > { %v778_v53 = vmul.f32 %v772_v47, %v707_v63  ;;  %v779_v54 = vmul.f32 %v772_v47, %v708_v2  ;;  %v780_v55 = vmul.f32 %v772_v47, %v709_v5  ;;  %v781_v56 = vmul.f32 %v772_v47, %v710_v9 }
 0x199   : > { %v794_v61 = vadd.f32 %v1022_v48, %v774_v49  ;;  %v795_v62 = vadd.f32 %v1022_v48, %v775_v50  ;;  %v796_v0 = vadd.f32 %v1022_v48, %v776_v51  ;;  %v797_v1 = vadd.f32 %v1022_v48, %v777_v52 }
 0x19a   : > { %v798_v3 = vadd.f32 %v1022_v48, %v778_v53  ;;  %v799_v4 = vadd.f32 %v1022_v48, %v779_v54  ;;  %v800_v6 = vadd.f32 %v1022_v48, %v780_v55  ;;  %v801_v7 = vadd.f32 %v1022_v48, %v781_v56 }
 0x19b   : > { %v808_v8 = vmax.f32 %v794_v61, 0.0  ;;  %v809_v10 = vmax.f32 %v795_v62, 0.0  ;;  %v810_v11 = vmax.f32 %v796_v0, 0.0  ;;  %v811_v13 = vmax.f32 %v797_v1, 0.0 }
 0x19c   : > { %v812_v57 = vmax.f32 %v798_v3, 0.0  ;;  %v813_v58 = vmax.f32 %v799_v4, 0.0  ;;  %v814_v59 = vmax.f32 %v800_v6, 0.0  ;;  %v815_v60 = vmax.f32 %v801_v7, 0.0 }
 0x19d   : > { %v1057_v63 = vpack.c.bf16 %v809_v10, %v808_v8  ;;  %v1062_v2 = vpack.c.bf16 %v811_v13, %v810_v11  ;;  %v782_v5 = vmul.f32 %v772_v47, %v1378_v12  ;;  %v783_v9 = vmul.f32 %v772_v47, %v712_v16 }
 0x19e   : > { %v1067_v14 = vpack.c.bf16 %v813_v58, %v812_v57  ;;  %v1072_v15 = vpack.c.bf16 %v815_v60, %v814_v59  ;;  %v784_v17 = vmul.f32 %v772_v47, %v713_v19  ;;  %v785_v18 = vmul.f32 %v772_v47, %v714_v23 }
 0x19f   : > { %1058 = vst [vmem:[%s1429_s4] sm:$0xff] %v1057_v63   ;;  %1089 = vst [vmem:[%s1429_s4 + $0x8] sm:$0xff] %v1062_v2   ;;  %v802_v20 = vadd.f32 %v1022_v48, %v782_v5  ;;  %v803_v21 = vadd.f32 %v1022_v48, %v783_v9  ;;  %v786_v22 = vmul.f32 %v772_v47, %v729_v28  ;;  %v787_v24 = vmul.f32 0.0, %v772_v47 }
 0x1a0   : > { %1090 = vst [vmem:[%s1429_s4 + $0x10] sm:$0xff] %v1067_v14   ;;  %1091 = vst [vmem:[%s1429_s4 + $0x18] sm:$0xff] %v1072_v15   ;;  %v804_v12 = vadd.f32 %v1022_v48, %v784_v17  ;;  %v805_v16 = vadd.f32 %v1022_v48, %v785_v18 }
 0x1a1   : > { %v816_v19 = vmax.f32 %v802_v20, 0.0  ;;  %v817_v23 = vmax.f32 %v803_v21, 0.0  ;;  %v806_v25 = vadd.f32 %v1022_v48, %v786_v22  ;;  %v807_v26 = vadd.f32 %v1022_v48, %v787_v24 }
 0x1a2   : > { %v818_v27 = vmax.f32 %v804_v12, 0.0  ;;  %v819_v29 = vmax.f32 %v805_v16, 0.0 }
 0x1a3   : > { %v1077_v30 = vpack.c.bf16 %v817_v23, %v816_v19  ;;  %v820_v31 = vmax.f32 %v806_v25, 0.0  ;;  %v821_v28 = vmax.f32 %v807_v26, 0.0 }
 0x1a4   : > { %v1082_v32 = vpack.c.bf16 %v819_v29, %v818_v27 }
 0x1a5   : > { %1092 = vst [vmem:[%s1429_s4 + $0x20] sm:$0xff] %v1077_v30   ;;  %v1087_v33 = vpack.c.bf16 %v821_v28, %v820_v31 }
 0x1a6   : > { %1093 = vst [vmem:[%s1429_s4 + $0x28] sm:$0xff] %v1082_v32  }
 0x1a7   : > { %1094 = vst [vmem:[%s1429_s4 + $0x30] sm:$0xff] %v1087_v33  }
 0x1a8 PF: > { %s14_s19 = sadd.s32 1, %s1270_s19   ;;  %s1430_s15 = smov %s1258_s16 }
 0x1a9   : > { %p11_p12 = scmp.ge.s32.totalorder %s14_s19, 7   ;;  %s1431_s16 = smov %s1335_s23 }
 0x1aa   : > { %s1432_s17 = smov %s1266_s18  ;;  %s1433_s18 = smov %s1435_s20 }
 0x1ab   :  { %13 = sbr.rel (!%p11_p12) target bundleno = 3 (0x3), region = 129 }

// kernel: resnet_forward.26
= control target key start
LH: loop header
LB: loop body
LE: loop exit
PB: predicated region body
PF: predicated region fallthrough
CT: control target
= control target key end

     0   :  { %s1441_s18 = smov 0   ;;  %s1443_s19 = smov 0   ;;  %s1659_s0 = inlined_call_operand.vmem [shape: bf16[112,640], index: 0, kind: input, shape index: {}]   ;;  %s1660_s1 = inlined_call_operand.vmem [shape: bf16[640,128], index: 1, kind: input, shape index: {}]   ;;  %s1661_s2 = inlined_call_operand.vmem [shape: f32[1,128], index: 2, kind: input, shape index: {}]   ;;  %s1662_s3 = inlined_call_operand.vmem [shape: f32[1,128], index: 3, kind: input, shape index: {}]   ;;  %s1663_s4 = inlined_call_operand.vmem [shape: bf16[112,128], index: 4, kind: input, shape index: {}]   ;;  %s1664_s5 = inlined_call_operand.vmem [shape: bf16[112,128], index: 5, kind: output, shape index: {}]  }
   0x1   :  { %s1445_s20 = smov 0   ;;  %s1447_s21 = smov 0  }
   0x2   :  { %s1449_s22 = smov 0  }
   0x3 LB: > { %s24_s23 = sadd.s32 1, %s1402_s21  ;;  %p41_p1 = scmp.ne.s32.totalorder %s1394_s19, %s1390_s18  ;;  %s1406_s22 = sphi %s1449_s22, %s15_s22   ;;  %s1402_s21 = sphi %s1447_s21, %s1668_s21   ;;  %s1398_s20 = sphi %s1445_s20, %s1667_s20   ;;  %s1394_s19 = sphi %s1443_s19, %s1666_s19   ;;  %s1390_s18 = sphi %s1441_s18, %s1665_s18  }
   0x4   : > { %p25_p0 = scmp.ge.s32.totalorder %s24_s23, 5  ;;  %p42_p2 = scmp.eq.s32.totalorder %s1406_s22, 0 }
   0x5   : > { %s34_s25 = sadd.s32 1, %s1394_s19  ;;  %p1102_p5 = scmp.ge.s32.totalorder %s1406_s22, 5 }
   0x6   : > { %s1670_s23 = smov (%p25_p0, %s24_s23), 0  ;;  %p43_p3 = por %p42_p2, %p41_p1 }
   0x7   : > { %s31_s24 = ssub.s32 %s1402_s21, %s1670_s23  ;;  %218 = sbr.rel (%p1102_p5) target bundleno = 25 (0x19), region = 28 }
   0x8   : > { %p32_p4 = scmp.eq.s32.totalorder %s31_s24, 0 }
   0xa   : > { %s1476_s26 = scalar_select %p32_p4, %s1394_s19, %s34_s25  }
   0xc   : > { %221 = sbr.rel (!%p43_p3) target bundleno = 25 (0x19), region = 32  ;;  %s223_s27 = sand.u32 (%p43_p3), 1, %s1394_s19  }
   0xd   : > { %s1103_s28 = sshll.u32 (%p43_p3), %s1402_s21, 2  ;;  %s1306_s29 = smul.u32 (%p43_p3), 56, %s223_s27 }
   0xe   : > { %s227_s7 = scalar_lea.vmem (%p43_p3), %s1659_s0, %s1103_s28 }
   0xf   : > { %v244_v0 = vld [vmem:[%s227_s7] sm:$0xf] (%p43_p3)  ;;  %v246_v1 = vld [vmem:[%s227_s7 + $0x14] sm:$0xf] (%p43_p3)  ;;  %v248_v2 = vld [vmem:[%s227_s7 + $0x28] sm:$0xf] (%p43_p3) }
  0x10   : > { %v250_v3 = vld [vmem:[%s227_s7 + $0x3c] sm:$0xf] (%p43_p3)  ;;  %v252_v4 = vld [vmem:[%s227_s7 + $0x50] sm:$0xf] (%p43_p3)  ;;  %s225_s8 = scalar_lea.vmem (%p43_p3), [#allocation3], %s1306_s29 }
  0x11   : > { %245 = vst [vmem:[%s225_s8] sm:$0xf] %v244_v0  ;;  %247 = vst [vmem:[%s225_s8 + $0x4] sm:$0xf] %v246_v1  ;;  %v254_v5 = vld [vmem:[%s227_s7 + $0x64] sm:$0xf] }
  0x12   : > { %249 = vst [vmem:[%s225_s8 + $0x8] sm:$0xf] %v248_v2  ;;  %251 = vst [vmem:[%s225_s8 + $0xc] sm:$0xf] %v250_v3  ;;  %v256_v6 = vld [vmem:[%s227_s7 + $0x78] sm:$0xf] }
  0x13   : > { %253 = vst [vmem:[%s225_s8 + $0x10] sm:$0xf] %v252_v4  ;;  %v258_v7 = vld [vmem:[%s227_s7 + $0x8c] sm:$0xf]  ;;  %255 = vst [vmem:[%s225_s8 + $0x14] sm:$0xf] %v254_v5 }
  0x14   : > { %257 = vst [vmem:[%s225_s8 + $0x18] sm:$0xf] %v256_v6  ;;  %259 = vst [vmem:[%s225_s8 + $0x1c] sm:$0xf] %v258_v7  ;;  %v260_v8 = vld [vmem:[%s227_s7 + $0xa0] sm:$0xf] }
  0x15   : > { %v262_v9 = vld [vmem:[%s227_s7 + $0xb4] sm:$0xf]  ;;  %v264_v10 = vld [vmem:[%s227_s7 + $0xc8] sm:$0xf]  ;;  %261 = vst [vmem:[%s225_s8 + $0x20] sm:$0xf] %v260_v8 }
  0x16   : > { %263 = vst [vmem:[%s225_s8 + $0x24] sm:$0xf] %v262_v9  ;;  %265 = vst [vmem:[%s225_s8 + $0x28] sm:$0xf] %v264_v10  ;;  %v266_v11 = vld [vmem:[%s227_s7 + $0xdc] sm:$0xf] }
  0x17   : > { %v268_v12 = vld [vmem:[%s227_s7 + $0xf0] sm:$0xf]  ;;  %v270_v13 = vld [vmem:[%s227_s7 + $0x104] sm:$0xf]  ;;  %267 = vst [vmem:[%s225_s8 + $0x2c] sm:$0xf] %v266_v11 }
  0x18   : > { %269 = vst [vmem:[%s225_s8 + $0x30] sm:$0xf] %v268_v12  ;;  %271 = vst [vmem:[%s225_s8 + $0x34] sm:$0xf] %v270_v13 }
  0x19 PF: > { %p1104_p6 = scmp.ge.s32.totalorder %s1406_s22, 1  ;;  %p334_p7 = scmp.lt.s32.totalorder %s1406_s22, 6 }
  0x1b   : > { %p335_p8 = pnand %p1104_p6, %p334_p7 }
  0x1c   : > { %s341_s9 = sand.u32 (!%p335_p8), 1, %s1390_s18   ;;  %s1105_s10 = sshll.u32 (!%p335_p8), %s1398_s20, 4 }
  0x1d   : > { %338 = sbr.rel (%p335_p8) target bundleno = 428 (0x1ac), region = 77  ;;  %p386_p9 = scmp.lt.s32.totalorder (!%p335_p8), %s1105_s10, 79 }
  0x1e   : > { %s1307_s11 = smul.u32 (!%p335_p8), 56, %s341_s9  ;;  %p1107_p10 = scmp.ne.s32.totalorder (!%p335_p8), %s1398_s20, 0 }
  0x20   : > { %s1493_s16 = scalar_lea.vmem (!%p335_p8), [#allocation3], %s1307_s11 }
  0x22   : > { %s1672_s10 = smov (!%p386_p9, %s1105_s10), 79  ;;  %412 = sbr.rel (%p1107_p10) target bundleno = 47 (0x2f), region = 85 }
  0x23   : > { %s1106_s12 = sshll.u32 %s1672_s10, 2 }
  0x24   : > { %s1491_s15 = scalar_lea.vmem %s1660_s1, %s1106_s12 }
  0x27   : > { %v1408_v14 = vmov 0.0  }
  0x28   : > { %413 = vst [vmem:[#allocation2 + $0x30] sm:$0xff] %v1408_v14  ;;  %414 = vst [vmem:[#allocation2] sm:$0xff] %v1408_v14 }
  0x29   : > { %415 = vst [vmem:[#allocation2 + $0x58] sm:$0xff] %v1408_v14  ;;  %416 = vst [vmem:[#allocation2 + $0x18] sm:$0xff] %v1408_v14 }
  0x2a   : > { %417 = vst [vmem:[#allocation2 + $0x50] sm:$0xff] %v1408_v14  ;;  %418 = vst [vmem:[#allocation2 + $0x68] sm:$0xff] %v1408_v14 }
  0x2b   : > { %419 = vst [vmem:[#allocation2 + $0x8] sm:$0xff] %v1408_v14  ;;  %420 = vst [vmem:[#allocation2 + $0x48] sm:$0xff] %v1408_v14 }
  0x2c   : > { %421 = vst [vmem:[#allocation2 + $0x40] sm:$0xff] %v1408_v14  ;;  %422 = vst [vmem:[#allocation2 + $0x20] sm:$0xff] %v1408_v14 }
  0x2d   : > { %423 = vst [vmem:[#allocation2 + $0x10] sm:$0xff] %v1408_v14  ;;  %424 = vst [vmem:[#allocation2 + $0x38] sm:$0xff] %v1408_v14 }
  0x2e   : > { %425 = vst [vmem:[#allocation2 + $0x60] sm:$0xff] %v1408_v14  ;;  %426 = vst [vmem:[#allocation2 + $0x28] sm:$0xff] %v1408_v14 }
  0x2f PF: > { %v1351_v15 = vld [vmem:[%s1491_s15 + $0x38] sm:$0xff]   ;;  %v1409_v16 = vmov 0.0   ;;  %v1352_v17 = vld [vmem:[%s1491_s15 + $0x30] sm:$0xff]   ;;  %vm1410_vm0 = vmmov 0   ;;  %v1353_v18 = vld [vmem:[%s1491_s15 + $0x28] sm:$0xff]   ;;  %p1123_p11 = scmp.ne.s32.totalorder %s1398_s20, 4 }
  0x30   : > { %1246 = vmatprep.subr.bf16.mxu0 %v1409_v16  ;;  %1290 = vmatprep.subr.bf16.mxu1 %v1409_v16  ;;  %v1354_v19 = vld [vmem:[%s1491_s15 + $0x20] sm:$0xff]   ;;  %v1355_v20 = vld [vmem:[%s1491_s15 + $0x18] sm:$0xff]   ;;  %v1356_v21 = vld [vmem:[%s1491_s15 + $0x10] sm:$0xff]  }
  0x31   : > { %1247 = vmatpush3.bf16.msra.mxu0 %v1351_v15  ;;  %1298 = vmatpush3.bf16.msra.mxu1 %v1351_v15  ;;  %v1357_v22 = vld [vmem:[%s1491_s15 + $0x8] sm:$0xff]   ;;  %v1358_v23 = vld [vmem:[%s1491_s15] sm:$0xff]   ;;  %v1361_v26 = vld [vmem:[%s1493_s16 + $0x8] sm:$0xff]  }
  0x32   : > { %1248 = vmatprep.subr.bf16.mxu0 %v1409_v16  ;;  %1291 = vmatprep.subr.bf16.mxu1 %v1409_v16  ;;  %v1359_v24 = vld [vmem:[%s1493_s16] sm:$0xff]   ;;  %v1362_v27 = vld [vmem:[%s1493_s16 + $0x28] sm:$0xff]   ;;  %v1363_v28 = vld [vmem:[%s1493_s16 + $0x10] sm:$0xff]  }
  0x33   : > { %1262 = vmatprep.mubr.msk.bf16.mxu0 %vm1410_vm0, %v1409_v16  ;;  %1278 = vmatprep.mubr.msk.bf16.mxu1 %vm1410_vm0, %v1409_v16  ;;  %v1360_v25 = vld [vmem:[%s1493_s16 + $0x20] sm:$0xff]   ;;  %v1364_v29 = vld [vmem:[%s1493_s16 + $0x30] sm:$0xff]   ;;  %v1365_v30 = vld [vmem:[%s1493_s16 + $0x18] sm:$0xff]  }
  0x34   : > { %v427_v31 = vld [vmem:[#allocation2 + $0x30] sm:$0xff]  ;;  %v435_v32 = vld [vmem:[#allocation2 + $0x40] sm:$0xff]  ;;  %v429_v46 = vld [vmem:[#allocation2 + $0x58] sm:$0xff] }
  0x35   : > { %1249 = vmatpush3.bf16.msra.mxu0 %v1352_v17  ;;  %1299 = vmatpush3.bf16.msra.mxu1 %v1352_v17  ;;  %v428_v38 = vld [vmem:[#allocation2] sm:$0xff]  ;;  %v437_v48 = vld [vmem:[#allocation2 + $0x10] sm:$0xff]  ;;  %v430_v54 = vld [vmem:[#allocation2 + $0x18] sm:$0xff] }
  0x36   : > { %1250 = vmatprep.subr.bf16.mxu0 %v1409_v16  ;;  %1292 = vmatprep.subr.bf16.mxu1 %v1409_v16  ;;  %v436_v40 = vld [vmem:[#allocation2 + $0x20] sm:$0xff]  ;;  %v438_v56 = vld [vmem:[#allocation2 + $0x38] sm:$0xff]  ;;  %v431_v62 = vld [vmem:[#allocation2 + $0x50] sm:$0xff] }
  0x37   : > { %v439_v0 = vld [vmem:[#allocation2 + $0x60] sm:$0xff]  ;;  %v432_v6 = vld [vmem:[#allocation2 + $0x68] sm:$0xff] }
  0x38   : > { %v440_v8 = vld [vmem:[#allocation2 + $0x28] sm:$0xff] }
  0x39   : > { %1251 = vmatpush3.bf16.msra.mxu0 %v1353_v18  ;;  %1300 = vmatpush3.bf16.msra.mxu1 %v1353_v18  ;;  %v433_v14 = vld [vmem:[#allocation2 + $0x8] sm:$0xff] }
  0x3a   : > { %1252 = vmatprep.subr.bf16.mxu0 %v1409_v16  ;;  %1293 = vmatprep.subr.bf16.mxu1 %v1409_v16 }
  0x3d   : > { %1253 = vmatpush3.bf16.msra.mxu0 %v1354_v19  ;;  %1301 = vmatpush3.bf16.msra.mxu1 %v1354_v19  ;;  %v434_v19 = vld [vmem:[#allocation2 + $0x48] sm:$0xff] }
  0x3e   : > { %1254 = vmatprep.subr.bf16.mxu0 %v1409_v16  ;;  %1294 = vmatprep.subr.bf16.mxu1 %v1409_v16 }
  0x41   : > { %1255 = vmatpush3.bf16.msra.mxu0 %v1355_v20  ;;  %1302 = vmatpush3.bf16.msra.mxu1 %v1355_v20 }
  0x42   : > { %1256 = vmatprep.subr.bf16.mxu0 %v1409_v16  ;;  %1295 = vmatprep.subr.bf16.mxu1 %v1409_v16 }
  0x45   : > { %1257 = vmatpush3.bf16.msra.mxu0 %v1356_v21  ;;  %1303 = vmatpush3.bf16.msra.mxu1 %v1356_v21 }
  0x46   : > { %1258 = vmatprep.subr.bf16.mxu0 %v1409_v16  ;;  %1296 = vmatprep.subr.bf16.mxu1 %v1409_v16 }
  0x49   : > { %1259 = vmatpush3.bf16.msra.mxu0 %v1357_v22  ;;  %1304 = vmatpush3.bf16.msra.mxu1 %v1357_v22 }
  0x4a   : > { %1260 = vmatprep.subr.bf16.mxu0 %v1409_v16  ;;  %1297 = vmatprep.subr.bf16.mxu1 %v1409_v16 }
  0x4d   : > { %1261 = vmatpush3.bf16.msra.mxu0 %v1358_v23  ;;  %1305 = vmatpush3.bf16.msra.mxu1 %v1358_v23 }
  0x50   : > { %1263 = vmatmul.mubr.bf16.vlgmr.msra.gmra.mxu0 %v1359_v24  ;;  %1279 = vmatmul.mubr.bf16.vlgmr.msra.gmra.mxu1 %v1360_v25 }
  0x51   : > { %1266 = vmatprep.mubr.msk.bf16.mxu0 %vm1410_vm0, %v1409_v16  ;;  %1282 = vmatprep.mubr.msk.bf16.mxu1 %vm1410_vm0, %v1409_v16 }
  0x58   : > { %1267 = vmatmul.mubr.bf16.gmra.mxu0 %v1361_v26  ;;  %1283 = vmatmul.mubr.bf16.gmra.mxu1 %v1362_v27 }
  0x59   : > { %1270 = vmatprep.mubr.msk.bf16.mxu0 %vm1410_vm0, %v1409_v16  ;;  %1286 = vmatprep.mubr.msk.bf16.mxu1 %vm1410_vm0, %v1409_v16 }
  0x60   : > { %1271 = vmatmul.mubr.bf16.gmra.mxu0 %v1363_v28  ;;  %1287 = vmatmul.mubr.bf16.gmra.mxu1 %v1364_v29 }
  0x61   : > { %1274 = vmatprep.mubr.msk.bf16.mxu0 %vm1410_vm0, %v1409_v16 }
  0x68   : > { %1275 = vmatmul.mubr.bf16.gmra.mxu0 %v1365_v30 }
 0x110   : > { %v595_v33 = vpop.f32.mrf.mxu0  ;;  %v627_v34 = vpop.f32.mrf.mxu1 }
 0x111   : > { %v650_v35 = vadd.f32 %v595_v33, %v427_v31  ;;  %v658_v36 = vadd.f32 %v627_v34, %v435_v32 }
 0x112   : > { %v1264_v37 = vpop.f32.mrf.mxu0  ;;  %v1280_v39 = vpop.f32.mrf.mxu1 }
 0x113   : > { %664 = vst [vmem:[#allocation2 + $0x30] sm:$0xff] %v650_v35  ;;  %672 = vst [vmem:[#allocation2 + $0x40] sm:$0xff] %v658_v36 }
 0x114   : > { %v598_v41 = vpop.f32.mrf.mxu0  ;;  %v630_v42 = vpop.f32.mrf.mxu1 }
 0x115   : > { %v651_v43 = vadd.f32 %v598_v41, %v428_v38  ;;  %v659_v44 = vadd.f32 %v630_v42, %v436_v40 }
 0x116   : > { %v1265_v45 = vpop.f32.mrf.mxu0  ;;  %v1281_v47 = vpop.f32.mrf.mxu1 }
 0x117   : > { %665 = vst [vmem:[#allocation2] sm:$0xff] %v651_v43  ;;  %673 = vst [vmem:[#allocation2 + $0x20] sm:$0xff] %v659_v44 }
 0x118   : > { %v603_v49 = vpop.f32.mrf.mxu0  ;;  %v635_v50 = vpop.f32.mrf.mxu1 }
 0x119   : > { %v652_v51 = vadd.f32 %v603_v49, %v429_v46  ;;  %v660_v52 = vadd.f32 %v635_v50, %v437_v48 }
 0x11a   : > { %v1268_v53 = vpop.f32.mrf.mxu0  ;;  %v1284_v55 = vpop.f32.mrf.mxu1 }
 0x11b   : > { %666 = vst [vmem:[#allocation2 + $0x58] sm:$0xff] %v652_v51  ;;  %674 = vst [vmem:[#allocation2 + $0x10] sm:$0xff] %v660_v52 }
 0x11c   : > { %v606_v57 = vpop.f32.mrf.mxu0  ;;  %v638_v58 = vpop.f32.mrf.mxu1 }
 0x11d   : > { %v653_v59 = vadd.f32 %v606_v57, %v430_v54  ;;  %v661_v60 = vadd.f32 %v638_v58, %v438_v56 }
 0x11e   : > { %v1269_v61 = vpop.f32.mrf.mxu0  ;;  %v1285_v63 = vpop.f32.mrf.mxu1 }
 0x11f   : > { %667 = vst [vmem:[#allocation2 + $0x18] sm:$0xff] %v653_v59  ;;  %675 = vst [vmem:[#allocation2 + $0x38] sm:$0xff] %v661_v60 }
 0x120   : > { %v611_v1 = vpop.f32.mrf.mxu0  ;;  %v643_v2 = vpop.f32.mrf.mxu1 }
 0x121   : > { %v654_v3 = vadd.f32 %v611_v1, %v431_v62  ;;  %v662_v4 = vadd.f32 %v643_v2, %v439_v0 }
 0x122   : > { %v1272_v5 = vpop.f32.mrf.mxu0  ;;  %v1288_v7 = vpop.f32.mrf.mxu1 }
 0x123   : > { %668 = vst [vmem:[#allocation2 + $0x50] sm:$0xff] %v654_v3  ;;  %676 = vst [vmem:[#allocation2 + $0x60] sm:$0xff] %v662_v4 }
 0x124   : > { %v614_v9 = vpop.f32.mrf.mxu0  ;;  %v646_v10 = vpop.f32.mrf.mxu1 }
 0x125   : > { %v655_v11 = vadd.f32 %v614_v9, %v432_v6  ;;  %v663_v12 = vadd.f32 %v646_v10, %v440_v8 }
 0x126   : > { %v1273_v13 = vpop.f32.mrf.mxu0  ;;  %v1289_v15 = vpop.f32.mrf.mxu1 }
 0x127   : > { %669 = vst [vmem:[#allocation2 + $0x68] sm:$0xff] %v655_v11  ;;  %677 = vst [vmem:[#allocation2 + $0x28] sm:$0xff] %v663_v12 }
 0x128   : > { %v619_v16 = vpop.f32.mrf.mxu0 }
 0x129   : > { %v656_v17 = vadd.f32 %v619_v16, %v433_v14 }
 0x12a   : > { %v1276_v18 = vpop.f32.mrf.mxu0 }
 0x12b   : > { %670 = vst [vmem:[#allocation2 + $0x8] sm:$0xff] %v656_v17  ;;  %681 = sbr.rel (%p1123_p11) target bundleno = 428 (0x1ac), region = 89 }
 0x12c   : > { %v622_v20 = vpop.f32.mrf.mxu0 }
 0x12d   : > { %v657_v21 = vadd.f32 %v622_v20, %v434_v19 }
 0x12e   : > { %v1277_v22 = vpop.f32.mrf.mxu0 }
 0x12f   : > { %671 = vst [vmem:[#allocation2 + $0x48] sm:$0xff] %v657_v21 }
 0x130   : > { %v682_v23 = vld [vmem:[#allocation2 + $0x30] sm:$0xff]  ;;  %v683_v24 = vld [vmem:[#allocation2] sm:$0xff]  ;;  %v684_v25 = vld [vmem:[#allocation2 + $0x58] sm:$0xff]  ;;  %v732_v1 = vlaneseq }
 0x131   : > { %v712_v26 = vadd.f32 %v683_v24, %v682_v23  ;;  %v685_v27 = vld [vmem:[#allocation2 + $0x18] sm:$0xff]  ;;  %v686_v29 = vld [vmem:[#allocation2 + $0x50] sm:$0xff]  ;;  %v687_v31 = vld [vmem:[#allocation2 + $0x68] sm:$0xff] }
 0x132   : > { %v688_v33 = vld [vmem:[#allocation2 + $0x8] sm:$0xff]  ;;  %v690_v37 = vld [vmem:[#allocation2 + $0x40] sm:$0xff]  ;;  %v692_v41 = vld [vmem:[#allocation2 + $0x10] sm:$0xff]  ;;  %v733_v8 = vshrl.u32 %v732_v1, 7 }
 0x133   : > { %v713_v28 = vadd.f32 %v712_v26, %v684_v25  ;;  %v691_v39 = vld [vmem:[#allocation2 + $0x20] sm:$0xff]  ;;  %v693_v43 = vld [vmem:[#allocation2 + $0x38] sm:$0xff]  ;;  %v695_v47 = vld [vmem:[#allocation2 + $0x28] sm:$0xff] }
 0x134   : > { %v694_v45 = vld [vmem:[#allocation2 + $0x60] sm:$0xff]  ;;  %v745_v15 = vadd.s32 96, %v733_v8 }
 0x135   : > { %v714_v30 = vadd.f32 %v713_v28, %v685_v27 }
 0x136   : > { %v689_v35 = vld [vmem:[#allocation2 + $0x48] sm:$0xff]  ;;  %vm759_vm1 = vcmp.lt.s32.totalorder %v745_v15, 98 }
 0x137   : > { %v715_v32 = vadd.f32 %v714_v30, %v686_v29 }
 0x139   : > { %v716_v34 = vadd.f32 %v715_v32, %v687_v31 }
 0x13b   : > { %v717_v36 = vadd.f32 %v716_v34, %v688_v33 }
 0x13d   : > { %v718_v38 = vadd.f32 %v717_v36, %v689_v35 }
 0x13f   : > { %v719_v40 = vadd.f32 %v718_v38, %v690_v37 }
 0x141   : > { %v720_v42 = vadd.f32 %v719_v40, %v691_v39 }
 0x143   : > { %v721_v44 = vadd.f32 %v720_v42, %v692_v41 }
 0x145   : > { %v722_v46 = vadd.f32 %v721_v44, %v693_v43  ;;  %v1157_v44 = vld [vmem:[%s1663_s4] sm:$0xff]  }
 0x147   : > { %v723_v48 = vadd.f32 %v722_v46, %v694_v45  ;;  %v829_v46 = vsub.s32 0, %v733_v8  ;;  %v1124_v8 = vld [vmem:[%s1662_s3] ss:$0 sm:$0xff] }
 0x149   : > { %v724_v49 = vadd.f32 %v723_v48, %v695_v47  ;;  %v1220_v47 = vld [vmem:[%s1663_s4 + $0x10] sm:$0xff]   ;;  %v1221_v48 = vld [vmem:[%s1663_s4 + $0x18] sm:$0xff]  }
 0x14a   : > { %v1170_v1 = vunpack.c.l.bf16 %v1221_v48 }
 0x14b   : > { %v725_v50 = vrot.slane %v724_v49, 4 }
 0x14d   : > { %v726_v51 = vadd.f32 %v725_v50, %v724_v49  ;;  %v1589_v50 = vld [vmem:[%s1663_s4 + $0x20] sm:$0xff]  }
 0x14f   : > { %v727_v52 = vrot.slane %v726_v51, 2 }
 0x151   : > { %v728_v53 = vadd.f32 %v727_v52, %v726_v51  ;;  %v1158_v51 = vunpack.c.l.bf16 %v1157_v44  ;;  %v1159_v52 = vunpack.c.h.bf16 %v1157_v44 }
 0x153   : > { %v729_v54 = vrot.slane %v728_v53, 1 }
 0x155   : > { %v730_v55 = vadd.f32 %v729_v54, %v728_v53 }
 0x157   : > { %v731_v56 = vmul.f32 0.010204081, %v730_v55  ;;  %v1594_v55 = vld [vmem:[%s1663_s4 + $0x28] sm:$0xff]  }
 0x159   : > { %v1519_v57 = vsub.f32 %v682_v23, %v731_v56  ;;  %v1521_v58 = vsub.f32 %v683_v24, %v731_v56  ;;  %v1523_v59 = vsub.f32 %v684_v25, %v731_v56  ;;  %v1525_v60 = vsub.f32 %v685_v27, %v731_v56 }
 0x15a   : > { %v1531_v63 = vsub.f32 %v686_v29, %v731_v56  ;;  %v1535_v2 = vsub.f32 %v687_v31, %v731_v56  ;;  %v1539_v5 = vsub.f32 %v688_v33, %v731_v56  ;;  %v1543_v9 = vsub.f32 %v689_v35, %v731_v56 }
 0x15b   : > { %v789_v61 = vmul.f32 %v1519_v57, %v1519_v57  ;;  %v790_v62 = vmul.f32 %v1521_v58, %v1521_v58  ;;  %v791_v0 = vmul.f32 %v1523_v59, %v1523_v59  ;;  %v792_v3 = vmul.f32 %v1525_v60, %v1525_v60 }
 0x15c   : > { %v793_v6 = vmul.f32 %v1531_v63, %v1531_v63  ;;  %v794_v10 = vmul.f32 %v1535_v2, %v1535_v2  ;;  %v1547_v12 = vsub.f32 %v690_v37, %v731_v56  ;;  %v795_v13 = vmul.f32 %v1539_v5, %v1539_v5 }
 0x15d   : > { %v803_v4 = vadd.f32 %v790_v62, %v789_v61  ;;  %v1551_v16 = vsub.f32 %v691_v39, %v731_v56  ;;  %v796_v17 = vmul.f32 %v1543_v9, %v1543_v9  ;;  %v1555_v19 = vsub.f32 %v692_v41, %v731_v56 }
 0x15e   : > { %v797_v20 = vmul.f32 %v1547_v12, %v1547_v12  ;;  %v773_v22 = vsub.f32 %v694_v45, %v731_v56  ;;  %v1559_v23 = vsub.f32 %v693_v43, %v731_v56  ;;  %v696_v43 = vld [vmem:[%s1661_s2] sm:$0x1]  ;;  %v1219_v45 = vld [vmem:[%s1663_s4 + $0x8] sm:$0xff]   ;;  %v1599_v56 = vld [vmem:[%s1663_s4 + $0x30] sm:$0xff]   ;;  %v1166_v62 = vunpack.c.l.bf16 %v1220_v47 }
 0x15f   : > { %v804_v7 = vadd.f32 %v803_v4, %v791_v0  ;;  %v798_v24 = vmul.f32 %v1551_v16, %v1551_v16  ;;  %v799_v26 = vmul.f32 %v1555_v19, %v1555_v19  ;;  %v1162_v54 = vunpack.c.l.bf16 %v1219_v45 }
 0x160   : > { %v1565_v28 = vsel %vm759_vm1, %v773_v22, 0.0  ;;  %v800_v29 = vmul.f32 %v1559_v23, %v1559_v23  ;;  %v1163_v61 = vunpack.c.h.bf16 %v1219_v45  ;;  %v1167_v0 = vunpack.c.h.bf16 %v1220_v47 }
 0x161   : > { %v805_v11 = vadd.f32 %v804_v7, %v792_v3  ;;  %v801_v31 = vmul.f32 %v1565_v28, %v1565_v28  ;;  %v1171_v4 = vunpack.c.h.bf16 %v1221_v48  ;;  %v1175_v7 = vunpack.c.h.bf16 %v1589_v50 }
 0x163   : > { %v806_v14 = vadd.f32 %v805_v11, %v793_v6  ;;  %v1174_v6 = vunpack.c.l.bf16 %v1589_v50  ;;  %v1179_v11 = vunpack.c.h.bf16 %v1594_v55 }
 0x165   : > { %v807_v18 = vadd.f32 %v806_v14, %v794_v10  ;;  %v1178_v10 = vunpack.c.l.bf16 %v1594_v55  ;;  %v1183_v14 = vunpack.c.h.bf16 %v1599_v56 }
 0x167   : > { %v808_v21 = vadd.f32 %v807_v18, %v795_v13  ;;  %v1182_v13 = vunpack.c.l.bf16 %v1599_v56 }
 0x169   : > { %v809_v25 = vadd.f32 %v808_v21, %v796_v17 }
 0x16b   : > { %v810_v27 = vadd.f32 %v809_v25, %v797_v20 }
 0x16d   : > { %v811_v30 = vadd.f32 %v810_v27, %v798_v24 }
 0x16f   : > { %v812_v32 = vadd.f32 %v811_v30, %v799_v26 }
 0x171   : > { %v813_v33 = vadd.f32 %v812_v32, %v800_v29 }
 0x173   : > { %v814_v34 = vadd.f32 %v813_v33, %v801_v31 }
 0x175   : > { %v816_v35 = vrot.slane %v814_v34, 4 }
 0x177   : > { %v817_v36 = vadd.f32 %v816_v35, %v814_v34 }
 0x179   : > { %v818_v37 = vrot.slane %v817_v36, 2 }
 0x17b   : > { %v819_v38 = vadd.f32 %v818_v37, %v817_v36 }
 0x17d   : > { %v820_v39 = vrot.slane %v819_v38, 1 }
 0x17f   : > { %v821_v40 = vadd.f32 %v820_v39, %v819_v38 }
 0x181   : > { %v822_v41 = vmul.f32 0.010204081, %v821_v40 }
 0x183   : > { %v823_v42 = vadd.f32 1e-05, %v822_v41 }
 0x185   : > { %1366 = vrsqrt.f32 %v823_v42 }
 0x192   : > { %v1367_v49 = vpop.eup %1366 }
 0x193   : > { %v825_v53 = vmul.f32 %v1367_v49, %v696_v43 }
 0x195   : > { %v830_v3 = vrot.slane %v825_v53, %v829_v46 }
 0x197   : > { %v832_v15 = vmul.f32 %v830_v3, %v1519_v57  ;;  %v833_v17 = vmul.f32 %v830_v3, %v1521_v58  ;;  %v834_v18 = vmul.f32 %v830_v3, %v1523_v59  ;;  %v835_v20 = vmul.f32 %v830_v3, %v1525_v60 }
 0x198   : > { %v836_v21 = vmul.f32 %v830_v3, %v1531_v63  ;;  %v837_v22 = vmul.f32 %v830_v3, %v1535_v2  ;;  %v838_v24 = vmul.f32 %v830_v3, %v1539_v5  ;;  %v839_v25 = vmul.f32 %v830_v3, %v1543_v9 }
 0x199   : > { %v852_v26 = vadd.f32 %v1124_v8, %v832_v15  ;;  %v853_v27 = vadd.f32 %v1124_v8, %v833_v17  ;;  %v854_v29 = vadd.f32 %v1124_v8, %v834_v18  ;;  %v855_v30 = vadd.f32 %v1124_v8, %v835_v20 }
 0x19a   : > { %v856_v31 = vadd.f32 %v1124_v8, %v836_v21  ;;  %v857_v57 = vadd.f32 %v1124_v8, %v837_v22  ;;  %v858_v32 = vadd.f32 %v1124_v8, %v838_v24  ;;  %v859_v58 = vadd.f32 %v1124_v8, %v839_v25 }
 0x19b   : > { %v880_v33 = vadd.f32 %v1158_v51, %v852_v26  ;;  %v881_v59 = vadd.f32 %v1159_v52, %v853_v27  ;;  %v882_v34 = vadd.f32 %v1162_v54, %v854_v29  ;;  %v883_v60 = vadd.f32 %v1163_v61, %v855_v30 }
 0x19c   : > { %v884_v35 = vadd.f32 %v1166_v62, %v856_v31  ;;  %v885_v63 = vadd.f32 %v1167_v0, %v857_v57  ;;  %v886_v36 = vadd.f32 %v1170_v1, %v858_v32  ;;  %v887_v2 = vadd.f32 %v1171_v4, %v859_v58 }
 0x19d   : > { %v894_v37 = vmax.f32 %v880_v33, 0.0  ;;  %v895_v5 = vmax.f32 %v881_v59, 0.0  ;;  %v896_v38 = vmax.f32 %v882_v34, 0.0  ;;  %v897_v9 = vmax.f32 %v883_v60, 0.0 }
 0x19e   : > { %v898_v39 = vmax.f32 %v884_v35, 0.0  ;;  %v899_v40 = vmax.f32 %v885_v63, 0.0  ;;  %v900_v41 = vmax.f32 %v886_v36, 0.0  ;;  %v901_v42 = vmax.f32 %v887_v2, 0.0 }
 0x19f   : > { %v1187_v43 = vpack.c.bf16 %v895_v5, %v894_v37  ;;  %v1192_v44 = vpack.c.bf16 %v897_v9, %v896_v38  ;;  %v840_v45 = vmul.f32 %v830_v3, %v1547_v12  ;;  %v841_v46 = vmul.f32 %v830_v3, %v1551_v16 }
 0x1a0   : > { %v1197_v47 = vpack.c.bf16 %v899_v40, %v898_v39  ;;  %v1202_v48 = vpack.c.bf16 %v901_v42, %v900_v41  ;;  %v842_v49 = vmul.f32 %v830_v3, %v1555_v19  ;;  %v843_v50 = vmul.f32 %v830_v3, %v1559_v23 }
 0x1a1   : > { %1188 = vst [vmem:[%s1664_s5] sm:$0xff] %v1187_v43   ;;  %1225 = vst [vmem:[%s1664_s5 + $0x8] sm:$0xff] %v1192_v44   ;;  %v860_v51 = vadd.f32 %v1124_v8, %v840_v45  ;;  %v861_v52 = vadd.f32 %v1124_v8, %v841_v46  ;;  %v844_v12 = vmul.f32 %v830_v3, %v1565_v28  ;;  %v845_v53 = vmul.f32 0.0, %v830_v3 }
 0x1a2   : > { %1226 = vst [vmem:[%s1664_s5 + $0x10] sm:$0xff] %v1197_v47   ;;  %1227 = vst [vmem:[%s1664_s5 + $0x18] sm:$0xff] %v1202_v48   ;;  %v862_v16 = vadd.f32 %v1124_v8, %v842_v49  ;;  %v863_v19 = vadd.f32 %v1124_v8, %v843_v50 }
 0x1a3   : > { %v888_v23 = vadd.f32 %v1174_v6, %v860_v51  ;;  %v889_v54 = vadd.f32 %v1175_v7, %v861_v52  ;;  %v864_v55 = vadd.f32 %v1124_v8, %v844_v12  ;;  %v865_v56 = vadd.f32 %v1124_v8, %v845_v53 }
 0x1a4   : > { %v890_v61 = vadd.f32 %v1178_v10, %v862_v16  ;;  %v891_v62 = vadd.f32 %v1179_v11, %v863_v19 }
 0x1a5   : > { %v902_v0 = vmax.f32 %v888_v23, 0.0  ;;  %v903_v1 = vmax.f32 %v889_v54, 0.0  ;;  %v892_v28 = vadd.f32 %v1182_v13, %v864_v55  ;;  %v893_v3 = vadd.f32 %v1183_v14, %v865_v56 }
 0x1a6   : > { %v904_v4 = vmax.f32 %v890_v61, 0.0  ;;  %v905_v15 = vmax.f32 %v891_v62, 0.0 }
 0x1a7   : > { %v1207_v17 = vpack.c.bf16 %v903_v1, %v902_v0  ;;  %v906_v18 = vmax.f32 %v892_v28, 0.0  ;;  %v907_v20 = vmax.f32 %v893_v3, 0.0 }
 0x1a8   : > { %v1212_v21 = vpack.c.bf16 %v905_v15, %v904_v4 }
 0x1a9   : > { %1228 = vst [vmem:[%s1664_s5 + $0x20] sm:$0xff] %v1207_v17   ;;  %v1217_v6 = vpack.c.bf16 %v907_v20, %v906_v18 }
 0x1aa   : > { %1229 = vst [vmem:[%s1664_s5 + $0x28] sm:$0xff] %v1212_v21  }
 0x1ab   : > { %1230 = vst [vmem:[%s1664_s5 + $0x30] sm:$0xff] %v1217_v6  }
 0x1ac PF: > { %s15_s22 = sadd.s32 1, %s1406_s22   ;;  %s1665_s18 = smov %s1394_s19 }
 0x1ad   : > { %p12_p12 = scmp.ge.s32.totalorder %s15_s22, 7   ;;  %s1666_s19 = smov %s1476_s26 }
 0x1ae   : > { %s1667_s20 = smov %s1402_s21  ;;  %s1668_s21 = smov %s1670_s23 }
 0x1af   :  { %14 = sbr.rel (!%p12_p12) target bundleno = 3 (0x3), region = 136 }

// kernel: resnet_forward.29
= control target key start
LH: loop header
LB: loop body
LE: loop exit
PB: predicated region body
PF: predicated region fallthrough
CT: control target
= control target key end

     0   :  { %s871_s15 = smov 0   ;;  %s873_s16 = smov 0   ;;  %s967_s0 = inlined_call_operand.vmem [shape: bf16[32,640], index: 0, kind: input, shape index: {}]   ;;  %s968_s1 = inlined_call_operand.vmem [shape: bf16[640,128], index: 1, kind: input, shape index: {}]   ;;  %s969_s2 = inlined_call_operand.vmem [shape: f32[1,128], index: 2, kind: input, shape index: {}]   ;;  %s970_s3 = inlined_call_operand.vmem [shape: f32[1,128], index: 3, kind: input, shape index: {}]   ;;  %s971_s4 = inlined_call_operand.vmem [shape: bf16[32,128], index: 4, kind: output, shape index: {}]  }
   0x1   :  { %s875_s17 = smov 0   ;;  %s877_s18 = smov 0  }
   0x2   :  { %s879_s19 = smov 0  }
   0x3 LB: > { %s23_s20 = sadd.s32 1, %s839_s18  ;;  %p40_p1 = scmp.ne.s32.totalorder %s831_s16, %s827_s15  ;;  %s843_s19 = sphi %s879_s19, %s14_s19   ;;  %s839_s18 = sphi %s877_s18, %s975_s18   ;;  %s835_s17 = sphi %s875_s17, %s974_s17   ;;  %s831_s16 = sphi %s873_s16, %s973_s16   ;;  %s827_s15 = sphi %s871_s15, %s972_s15  }
   0x4   : > { %p24_p0 = scmp.ge.s32.totalorder %s23_s20, 5  ;;  %p41_p2 = scmp.eq.s32.totalorder %s843_s19, 0 }
   0x5   : > { %s33_s22 = sadd.s32 1, %s831_s16  ;;  %p680_p5 = scmp.ge.s32.totalorder %s843_s19, 5 }
   0x6   : > { %s977_s20 = smov (%p24_p0, %s23_s20), 0  ;;  %p42_p3 = por %p41_p2, %p40_p1 }
   0x7   : > { %s30_s21 = ssub.s32 %s839_s18, %s977_s20  ;;  %184 = sbr.rel (%p680_p5) target bundleno = 18 (0x12), region = 24 }
   0x8   : > { %p31_p4 = scmp.eq.s32.totalorder %s30_s21, 0 }
   0xa   : > { %s906_s23 = scalar_select %p31_p4, %s831_s16, %s33_s22  }
   0xc   : > { %187 = sbr.rel (!%p42_p3) target bundleno = 18 (0x12), region = 28  ;;  %s189_s24 = sand.u32 (%p42_p3), 1, %s831_s16  }
   0xd   : > { %s682_s25 = sshll.u32 (%p42_p3), %s839_s18, 2  ;;  %s681_s26 = sshll.u32 (%p42_p3), %s189_s24, 4 }
   0xe   : > { %s193_s29 = scalar_lea.vmem (%p42_p3), %s967_s0, %s682_s25  ;;  %s191_s30 = scalar_lea.vmem (%p42_p3), [#allocation3], %s681_s26 }
   0xf   : > { %v210_v0 = vld [vmem:[%s193_s29] sm:$0xf] (%p42_p3)  ;;  %v212_v1 = vld [vmem:[%s193_s29 + $0x14] sm:$0xf] (%p42_p3)  ;;  %v214_v2 = vld [vmem:[%s193_s29 + $0x28] sm:$0xf] (%p42_p3) }
  0x10   : > { %211 = vst [vmem:[%s191_s30] sm:$0xf] (%p42_p3), %v210_v0  ;;  %213 = vst [vmem:[%s191_s30 + $0x4] sm:$0xf] (%p42_p3), %v212_v1  ;;  %v216_v3 = vld [vmem:[%s193_s29 + $0x3c] sm:$0xf] (%p42_p3) }
  0x11   : > { %215 = vst [vmem:[%s191_s30 + $0x8] sm:$0xf] %v214_v2  ;;  %217 = vst [vmem:[%s191_s30 + $0xc] sm:$0xf] %v216_v3 }
  0x12 PF: > { %p683_p6 = scmp.ge.s32.totalorder %s843_s19, 1  ;;  %p260_p7 = scmp.lt.s32.totalorder %s843_s19, 6 }
  0x14   : > { %p261_p8 = pnand %p683_p6, %p260_p7 }
  0x15   : > { %s267_s5 = sand.u32 (!%p261_p8), 1, %s827_s15   ;;  %s685_s6 = sshll.u32 (!%p261_p8), %s835_s17, 4 }
  0x16   : > { %264 = sbr.rel (%p261_p8) target bundleno = 350 (0x15e), region = 73  ;;  %s918_s7 = sshll.u32 (!%p261_p8), %s267_s5, 4 }
  0x17   : > { %p306_p9 = scmp.lt.s32.totalorder (!%p261_p8), %s685_s6, 79  ;;  %s269_s12 = scalar_lea.vmem (!%p261_p8), [#allocation3], %s918_s7 }
  0x18   : > { %p687_p10 = scmp.ne.s32.totalorder (!%p261_p8), %s835_s17, 0 }
  0x1b   : > { %s979_s6 = smov (!%p306_p9, %s685_s6), 79  ;;  %328 = sbr.rel (%p687_p10) target bundleno = 35 (0x23), region = 81 }
  0x1c   : > { %s686_s8 = sshll.u32 %s979_s6, 2 }
  0x1d   : > { %s923_s11 = scalar_lea.vmem %s968_s1, %s686_s8 }
  0x20   : > { %v845_v4 = vmov 0.0  }
  0x21   : > { %329 = vst [vmem:[#allocation2 + $0x10] sm:$0xff] %v845_v4  ;;  %330 = vst [vmem:[#allocation2] sm:$0xff] %v845_v4 }
  0x22   : > { %331 = vst [vmem:[#allocation2 + $0x18] sm:$0xff] %v845_v4  ;;  %332 = vst [vmem:[#allocation2 + $0x8] sm:$0xff] %v845_v4 }
  0x23 PF: > { %v793_v5 = vld [vmem:[%s923_s11 + $0x38] sm:$0xff]   ;;  %v794_v6 = vld [vmem:[%s923_s11 + $0x30] sm:$0xff]   ;;  %v795_v7 = vld [vmem:[%s923_s11 + $0x28] sm:$0xff]   ;;  %p698_p11 = scmp.ne.s32.totalorder %s835_s17, 4 }
  0x24   : > { %732 = vmatprep.subr.bf16.mxu0 %v793_v5  ;;  %v796_v8 = vld [vmem:[%s923_s11 + $0x20] sm:$0xff]   ;;  %v797_v10 = vld [vmem:[%s923_s11 + $0x18] sm:$0xff]   ;;  %v798_v11 = vld [vmem:[%s923_s11 + $0x10] sm:$0xff]  }
  0x25   : > { %733 = vmatpush3.bf16.msra.mxu0 %v793_v5  ;;  %v801_v9 = vld [vmem:[%s269_s12] sm:$0xff]   ;;  %v799_v12 = vld [vmem:[%s923_s11 + $0x8] sm:$0xff]  }
  0x26   : > { %734 = vmatprep.subr.bf16.mxu0 %v794_v6  ;;  %748 = vmatprep.mubr.bf16.mxu0 %v801_v9  ;;  %v800_v13 = vld [vmem:[%s923_s11] sm:$0xff]   ;;  %v802_v14 = vld [vmem:[%s269_s12 + $0x8] sm:$0xff]  }
  0x28   : > { %v333_v17 = vld [vmem:[#allocation2 + $0x10] sm:$0xff]  ;;  %v334_v23 = vld [vmem:[#allocation2] sm:$0xff] }
  0x29   : > { %735 = vmatpush3.bf16.msra.mxu0 %v794_v6  ;;  %v335_v15 = vld [vmem:[#allocation2 + $0x18] sm:$0xff]  ;;  %v336_v20 = vld [vmem:[#allocation2 + $0x8] sm:$0xff] }
  0x2a   : > { %736 = vmatprep.subr.bf16.mxu0 %v795_v7 }
  0x2d   : > { %737 = vmatpush3.bf16.msra.mxu0 %v795_v7 }
  0x2e   : > { %738 = vmatprep.subr.bf16.mxu0 %v796_v8 }
  0x31   : > { %739 = vmatpush3.bf16.msra.mxu0 %v796_v8 }
  0x32   : > { %740 = vmatprep.subr.bf16.mxu0 %v797_v10 }
  0x35   : > { %741 = vmatpush3.bf16.msra.mxu0 %v797_v10 }
  0x36   : > { %742 = vmatprep.subr.bf16.mxu0 %v798_v11 }
  0x39   : > { %743 = vmatpush3.bf16.msra.mxu0 %v798_v11 }
  0x3a   : > { %744 = vmatprep.subr.bf16.mxu0 %v799_v12 }
  0x3d   : > { %745 = vmatpush3.bf16.msra.mxu0 %v799_v12 }
  0x3e   : > { %746 = vmatprep.subr.bf16.mxu0 %v800_v13 }
  0x41   : > { %747 = vmatpush3.bf16.msra.mxu0 %v800_v13 }
  0x44   : > { %749 = vmatmul.mubr.bf16.vlgmr.msra.gmra.mxu0 %v802_v14 }
 0x104   : > { %v750_v16 = vpop.f32.mrf.mxu0 }
 0x105   : > { %v468_v18 = vadd.f32 %v750_v16, %v335_v15 }
 0x106   : > { %v451_v19 = vpop.f32.mrf.mxu0 }
 0x107   : > { %472 = vst [vmem:[#allocation2 + $0x18] sm:$0xff] %v468_v18  ;;  %v466_v21 = vadd.f32 %v451_v19, %v333_v17 }
 0x108   : > { %v751_v22 = vpop.f32.mrf.mxu0 }
 0x109   : > { %470 = vst [vmem:[#allocation2 + $0x10] sm:$0xff] %v466_v21  ;;  %v469_v24 = vadd.f32 %v751_v22, %v336_v20  ;;  %477 = sbr.rel (%p698_p11) target bundleno = 350 (0x15e), region = 85 }
 0x10a   : > { %v454_v25 = vpop.f32.mrf.mxu0 }
 0x10b   : > { %473 = vst [vmem:[#allocation2 + $0x8] sm:$0xff] %v469_v24  ;;  %v467_v26 = vadd.f32 %v454_v25, %v334_v23 }
 0x10d   : > { %471 = vst [vmem:[#allocation2] sm:$0xff] %v467_v26 }
 0x10e   : > { %v480_v29 = vld [vmem:[#allocation2 + $0x18] sm:$0xff]  ;;  %v529_v60 = vlaneseq  ;;  %v482_v62 = vld [vmem:[%s969_s2] sm:$0x1] }
 0x10f   : > { %v699_v3 = vld [vmem:[%s970_s3] ss:$0 sm:$0xff] }
 0x110   : > { %v478_v27 = vld [vmem:[#allocation2 + $0x10] sm:$0xff]  ;;  %v530_v61 = vshrl.u32 %v529_v60, 7 }
 0x112   : > { %v481_v31 = vld [vmem:[#allocation2 + $0x8] sm:$0xff]  ;;  %v531_v63 = vsub.s32 0, %v530_v61 }
 0x114   : > { %v479_v28 = vld [vmem:[#allocation2] sm:$0xff] }
 0x115   : > { %v484_v30 = vadd.f32 %v479_v28, %v478_v27 }
 0x117   : > { %v485_v32 = vadd.f32 %v484_v30, %v480_v29 }
 0x119   : > { %v486_v33 = vadd.f32 %v485_v32, %v481_v31 }
 0x11b   : > { %v487_v34 = vrot.slane %v486_v33, 4 }
 0x11d   : > { %v488_v35 = vadd.f32 %v487_v34, %v486_v33 }
 0x11f   : > { %v489_v36 = vrot.slane %v488_v35, 2 }
 0x121   : > { %v490_v37 = vadd.f32 %v489_v36, %v488_v35 }
 0x123   : > { %v491_v38 = vrot.slane %v490_v37, 1 }
 0x125   : > { %v492_v39 = vadd.f32 %v491_v38, %v490_v37 }
 0x127   : > { %v493_v40 = vmul.f32 0.03125, %v492_v39 }
 0x129   : > { %v503_v41 = vsub.f32 %v478_v27, %v493_v40  ;;  %v504_v42 = vsub.f32 %v479_v28, %v493_v40  ;;  %v505_v43 = vsub.f32 %v480_v29, %v493_v40  ;;  %v506_v44 = vsub.f32 %v481_v31, %v493_v40 }
 0x12b   : > { %v511_v45 = vmul.f32 %v503_v41, %v503_v41  ;;  %v512_v46 = vmul.f32 %v504_v42, %v504_v42  ;;  %v513_v47 = vmul.f32 %v505_v43, %v505_v43  ;;  %v514_v48 = vmul.f32 %v506_v44, %v506_v44 }
 0x12d   : > { %v515_v49 = vadd.f32 %v512_v46, %v511_v45 }
 0x12f   : > { %v516_v50 = vadd.f32 %v515_v49, %v513_v47 }
 0x131   : > { %v517_v51 = vadd.f32 %v516_v50, %v514_v48 }
 0x133   : > { %v518_v52 = vrot.slane %v517_v51, 4 }
 0x135   : > { %v519_v53 = vadd.f32 %v518_v52, %v517_v51 }
 0x137   : > { %v520_v54 = vrot.slane %v519_v53, 2 }
 0x139   : > { %v521_v55 = vadd.f32 %v520_v54, %v519_v53 }
 0x13b   : > { %v522_v56 = vrot.slane %v521_v55, 1 }
 0x13d   : > { %v523_v57 = vadd.f32 %v522_v56, %v521_v55 }
 0x13f   : > { %v524_v58 = vmul.f32 0.03125, %v523_v57 }
 0x141   : > { %v525_v59 = vadd.f32 1e-05, %v524_v58 }
 0x143   : > { %803 = vrsqrt.f32 %v525_v59 }
 0x150   : > { %v804_v0 = vpop.eup %803 }
 0x151   : > { %v527_v1 = vmul.f32 %v804_v0, %v482_v62 }
 0x153   : > { %v532_v2 = vrot.slane %v527_v1, %v531_v63 }
 0x155   : > { %v534_v4 = vmul.f32 %v532_v2, %v503_v41  ;;  %v535_v5 = vmul.f32 %v532_v2, %v504_v42  ;;  %v536_v6 = vmul.f32 %v532_v2, %v505_v43  ;;  %v537_v7 = vmul.f32 %v532_v2, %v506_v44 }
 0x157   : > { %v544_v8 = vadd.f32 %v699_v3, %v534_v4  ;;  %v545_v9 = vadd.f32 %v699_v3, %v535_v5  ;;  %v546_v10 = vadd.f32 %v699_v3, %v536_v6  ;;  %v547_v11 = vadd.f32 %v699_v3, %v537_v7 }
 0x159   : > { %v548_v12 = vmax.f32 %v544_v8, 0.0  ;;  %v549_v13 = vmax.f32 %v545_v9, 0.0  ;;  %v550_v14 = vmax.f32 %v546_v10, 0.0  ;;  %v551_v15 = vmax.f32 %v547_v11, 0.0 }
 0x15b   : > { %v714_v16 = vpack.c.bf16 %v549_v13, %v548_v12  ;;  %v719_v17 = vpack.c.bf16 %v551_v15, %v550_v14 }
 0x15d   : > { %715 = vst [vmem:[%s971_s4] sm:$0xff] %v714_v16   ;;  %721 = vst [vmem:[%s971_s4 + $0x8] sm:$0xff] %v719_v17  }
 0x15e PF: > { %s14_s19 = sadd.s32 1, %s843_s19   ;;  %s972_s15 = smov %s831_s16 }
 0x15f   : > { %p11_p12 = scmp.ge.s32.totalorder %s14_s19, 7   ;;  %s973_s16 = smov %s906_s23 }
 0x160   : > { %s974_s17 = smov %s839_s18  ;;  %s975_s18 = smov %s977_s20 }
 0x161   :  { %13 = sbr.rel (!%p11_p12) target bundleno = 3 (0x3), region = 129 }

// kernel: resnet_forward.30
= control target key start
LH: loop header
LB: loop body
LE: loop exit
PB: predicated region body
PF: predicated region fallthrough
CT: control target
= control target key end

     0   :  { %s335_s1 = inlined_call_operand.vmem [shape: bf16[128,128], index: 1, kind: input, shape index: {}]   ;;  %s336_s0 = inlined_call_operand.vmem [shape: bf16[32,128], index: 0, kind: input, shape index: {}]   ;;  %s337_s2 = inlined_call_operand.vmem [shape: f32[1,128], index: 2, kind: input, shape index: {}]   ;;  %s338_s3 = inlined_call_operand.vmem [shape: bf16[32,128], index: 3, kind: output, shape index: {}]  }
   0x1   :  { %v266_v0 = vld [vmem:[%s335_s1 + $0x38] sm:$0xff]   ;;  %v267_v1 = vld [vmem:[%s335_s1 + $0x30] sm:$0xff]   ;;  %v268_v2 = vld [vmem:[%s335_s1 + $0x28] sm:$0xff]  }
   0x2   :  { %246 = vmatprep.subr.bf16.mxu0 %v266_v0  ;;  %v269_v3 = vld [vmem:[%s335_s1 + $0x20] sm:$0xff]   ;;  %v270_v5 = vld [vmem:[%s335_s1 + $0x18] sm:$0xff]   ;;  %v271_v6 = vld [vmem:[%s335_s1 + $0x10] sm:$0xff]  }
   0x3   :  { %247 = vmatpush3.bf16.msra.mxu0 %v266_v0  ;;  %v274_v4 = vld [vmem:[%s336_s0] sm:$0xff]   ;;  %v272_v7 = vld [vmem:[%s335_s1 + $0x8] sm:$0xff]  }
   0x4   :  { %248 = vmatprep.subr.bf16.mxu0 %v267_v1  ;;  %262 = vmatprep.mubr.bf16.mxu0 %v274_v4  ;;  %v273_v8 = vld [vmem:[%s335_s1] sm:$0xff]   ;;  %v275_v9 = vld [vmem:[%s336_s0 + $0x8] sm:$0xff]  }
   0x5   :  { %v216_v11 = vld [vmem:[%s337_s2] ss:$0 sm:$0xff] }
   0x7   :  { %249 = vmatpush3.bf16.msra.mxu0 %v267_v1 }
   0x8   :  { %250 = vmatprep.subr.bf16.mxu0 %v268_v2 }
   0xb   :  { %251 = vmatpush3.bf16.msra.mxu0 %v268_v2 }
   0xc   :  { %252 = vmatprep.subr.bf16.mxu0 %v269_v3 }
   0xf   :  { %253 = vmatpush3.bf16.msra.mxu0 %v269_v3 }
  0x10   :  { %254 = vmatprep.subr.bf16.mxu0 %v270_v5 }
  0x13   :  { %255 = vmatpush3.bf16.msra.mxu0 %v270_v5 }
  0x14   :  { %256 = vmatprep.subr.bf16.mxu0 %v271_v6 }
  0x17   :  { %257 = vmatpush3.bf16.msra.mxu0 %v271_v6 }
  0x18   :  { %258 = vmatprep.subr.bf16.mxu0 %v272_v7 }
  0x1b   :  { %259 = vmatpush3.bf16.msra.mxu0 %v272_v7 }
  0x1c   :  { %260 = vmatprep.subr.bf16.mxu0 %v273_v8 }
  0x1f   :  { %261 = vmatpush3.bf16.msra.mxu0 %v273_v8 }
  0x22   :  { %263 = vmatmul.mubr.bf16.vlgmr.msra.gmra.mxu0 %v275_v9 }
  0xe2   :  { %v264_v10 = vpop.f32.mrf.mxu0 }
  0xe3   :  { %v180_v14 = vadd.f32 %v264_v10, %v216_v11 }
  0xe4   :  { %v141_v12 = vpop.f32.mrf.mxu0 }
  0xe5   :  { %v178_v17 = vadd.f32 %v216_v11, %v141_v12 }
  0xe6   :  { %v265_v13 = vpop.f32.mrf.mxu0 }
  0xe7   :  { %v181_v15 = vadd.f32 %v265_v13, %v216_v11 }
  0xe8   :  { %v144_v16 = vpop.f32.mrf.mxu0 }
  0xe9   :  { %v233_v18 = vpack.c.bf16 %v181_v15, %v180_v14  ;;  %v179_v19 = vadd.f32 %v216_v11, %v144_v16 }
  0xeb   :  { %235 = vst [vmem:[%s338_s3 + $0x8] sm:$0xff] %v233_v18   ;;  %v228_v20 = vpack.c.bf16 %v179_v19, %v178_v17 }
  0xed   :  { %229 = vst [vmem:[%s338_s3] sm:$0xff] %v228_v20  }

// kernel: resnet_forward.31
= control target key start
LH: loop header
LB: loop body
LE: loop exit
PB: predicated region body
PF: predicated region fallthrough
CT: control target
= control target key end

     0   :  { %s957_s18 = smov 0   ;;  %s959_s19 = smov 0   ;;  %s1059_s0 = inlined_call_operand.vmem [shape: bf16[32,1152], index: 0, kind: input, shape index: {}]   ;;  %s1060_s1 = inlined_call_operand.vmem [shape: bf16[1152,128], index: 1, kind: input, shape index: {}]   ;;  %s1061_s2 = inlined_call_operand.vmem [shape: f32[1,128], index: 2, kind: input, shape index: {}]   ;;  %s1062_s3 = inlined_call_operand.vmem [shape: f32[1,128], index: 3, kind: input, shape index: {}]   ;;  %s1063_s4 = inlined_call_operand.vmem [shape: bf16[32,128], index: 4, kind: input, shape index: {}]   ;;  %s1064_s5 = inlined_call_operand.vmem [shape: bf16[32,128], index: 5, kind: output, shape index: {}]  }
   0x1   :  { %s961_s20 = smov 0   ;;  %s963_s21 = smov 0  }
   0x2   :  { %s965_s22 = smov 0  }
   0x3 LB: > { %s24_s23 = sadd.s32 1, %s920_s21  ;;  %p41_p1 = scmp.ne.s32.totalorder %s912_s19, %s908_s18  ;;  %s924_s22 = sphi %s965_s22, %s15_s22   ;;  %s920_s21 = sphi %s963_s21, %s1068_s21   ;;  %s916_s20 = sphi %s961_s20, %s1067_s20   ;;  %s912_s19 = sphi %s959_s19, %s1066_s19   ;;  %s908_s18 = sphi %s957_s18, %s1065_s18  }
   0x4   : > { %p25_p0 = scmp.ge.s32.totalorder %s24_s23, 9  ;;  %p42_p2 = scmp.eq.s32.totalorder %s924_s22, 0 }
   0x5   : > { %s34_s25 = sadd.s32 1, %s912_s19  ;;  %p752_p5 = scmp.ge.s32.totalorder %s924_s22, 9 }
   0x6   : > { %s1070_s23 = smov (%p25_p0, %s24_s23), 0  ;;  %p43_p3 = por %p42_p2, %p41_p1 }
   0x7   : > { %s31_s24 = ssub.s32 %s920_s21, %s1070_s23  ;;  %218 = sbr.rel (%p752_p5) target bundleno = 18 (0x12), region = 28 }
   0x8   : > { %p32_p4 = scmp.eq.s32.totalorder %s31_s24, 0 }
   0xa   : > { %s992_s26 = scalar_select %p32_p4, %s912_s19, %s34_s25  }
   0xc   : > { %221 = sbr.rel (!%p43_p3) target bundleno = 18 (0x12), region = 32  ;;  %s223_s27 = sand.u32 (%p43_p3), 1, %s912_s19  }
   0xd   : > { %s754_s28 = sshll.u32 (%p43_p3), %s920_s21, 2  ;;  %s753_s29 = sshll.u32 (%p43_p3), %s223_s27, 4 }
   0xe   : > { %s227_s7 = scalar_lea.vmem (%p43_p3), %s1059_s0, %s754_s28  ;;  %s225_s8 = scalar_lea.vmem (%p43_p3), [#allocation3], %s753_s29 }
   0xf   : > { %v244_v0 = vld [vmem:[%s227_s7] sm:$0xf] (%p43_p3)  ;;  %v246_v1 = vld [vmem:[%s227_s7 + $0x24] sm:$0xf] (%p43_p3)  ;;  %v248_v2 = vld [vmem:[%s227_s7 + $0x48] sm:$0xf] (%p43_p3) }
  0x10   : > { %245 = vst [vmem:[%s225_s8] sm:$0xf] (%p43_p3), %v244_v0  ;;  %247 = vst [vmem:[%s225_s8 + $0x4] sm:$0xf] (%p43_p3), %v246_v1  ;;  %v250_v3 = vld [vmem:[%s227_s7 + $0x6c] sm:$0xf] (%p43_p3) }
  0x11   : > { %249 = vst [vmem:[%s225_s8 + $0x8] sm:$0xf] %v248_v2  ;;  %251 = vst [vmem:[%s225_s8 + $0xc] sm:$0xf] %v250_v3 }
  0x12 PF: > { %p755_p6 = scmp.ge.s32.totalorder %s924_s22, 1  ;;  %p294_p7 = scmp.lt.s32.totalorder %s924_s22, 10 }
  0x14   : > { %p295_p8 = pnand %p755_p6, %p294_p7 }
  0x15   : > { %s301_s9 = sand.u32 (!%p295_p8), 1, %s908_s18   ;;  %s757_s10 = sshll.u32 (!%p295_p8), %s916_s20, 4 }
  0x16   : > { %298 = sbr.rel (%p295_p8) target bundleno = 352 (0x160), region = 77  ;;  %s1004_s11 = sshll.u32 (!%p295_p8), %s301_s9, 4 }
  0x17   : > { %p346_p9 = scmp.lt.s32.totalorder (!%p295_p8), %s757_s10, 143  ;;  %s303_s16 = scalar_lea.vmem (!%p295_p8), [#allocation3], %s1004_s11 }
  0x18   : > { %p759_p10 = scmp.ne.s32.totalorder (!%p295_p8), %s916_s20, 0 }
  0x1b   : > { %s1072_s10 = smov (!%p346_p9, %s757_s10), 143  ;;  %372 = sbr.rel (%p759_p10) target bundleno = 35 (0x23), region = 85 }
  0x1c   : > { %s758_s12 = sshll.u32 %s1072_s10, 2 }
  0x1d   : > { %s1009_s15 = scalar_lea.vmem %s1060_s1, %s758_s12 }
  0x20   : > { %v926_v4 = vmov 0.0  }
  0x21   : > { %373 = vst [vmem:[#allocation2 + $0x10] sm:$0xff] %v926_v4  ;;  %374 = vst [vmem:[#allocation2] sm:$0xff] %v926_v4 }
  0x22   : > { %375 = vst [vmem:[#allocation2 + $0x18] sm:$0xff] %v926_v4  ;;  %376 = vst [vmem:[#allocation2 + $0x8] sm:$0xff] %v926_v4 }
  0x23 PF: > { %v874_v5 = vld [vmem:[%s1009_s15 + $0x38] sm:$0xff]   ;;  %v875_v6 = vld [vmem:[%s1009_s15 + $0x30] sm:$0xff]   ;;  %v876_v7 = vld [vmem:[%s1009_s15 + $0x28] sm:$0xff]   ;;  %p770_p11 = scmp.ne.s32.totalorder %s916_s20, 8 }
  0x24   : > { %813 = vmatprep.subr.bf16.mxu0 %v874_v5  ;;  %v877_v8 = vld [vmem:[%s1009_s15 + $0x20] sm:$0xff]   ;;  %v878_v10 = vld [vmem:[%s1009_s15 + $0x18] sm:$0xff]   ;;  %v879_v11 = vld [vmem:[%s1009_s15 + $0x10] sm:$0xff]  }
  0x25   : > { %814 = vmatpush3.bf16.msra.mxu0 %v874_v5  ;;  %v882_v9 = vld [vmem:[%s303_s16] sm:$0xff]   ;;  %v880_v12 = vld [vmem:[%s1009_s15 + $0x8] sm:$0xff]  }
  0x26   : > { %815 = vmatprep.subr.bf16.mxu0 %v875_v6  ;;  %829 = vmatprep.mubr.bf16.mxu0 %v882_v9  ;;  %v881_v13 = vld [vmem:[%s1009_s15] sm:$0xff]   ;;  %v883_v14 = vld [vmem:[%s303_s16 + $0x8] sm:$0xff]  }
  0x28   : > { %v377_v17 = vld [vmem:[#allocation2 + $0x10] sm:$0xff]  ;;  %v378_v23 = vld [vmem:[#allocation2] sm:$0xff] }
  0x29   : > { %816 = vmatpush3.bf16.msra.mxu0 %v875_v6  ;;  %v379_v15 = vld [vmem:[#allocation2 + $0x18] sm:$0xff]  ;;  %v380_v20 = vld [vmem:[#allocation2 + $0x8] sm:$0xff] }
  0x2a   : > { %817 = vmatprep.subr.bf16.mxu0 %v876_v7 }
  0x2d   : > { %818 = vmatpush3.bf16.msra.mxu0 %v876_v7 }
  0x2e   : > { %819 = vmatprep.subr.bf16.mxu0 %v877_v8 }
  0x31   : > { %820 = vmatpush3.bf16.msra.mxu0 %v877_v8 }
  0x32   : > { %821 = vmatprep.subr.bf16.mxu0 %v878_v10 }
  0x35   : > { %822 = vmatpush3.bf16.msra.mxu0 %v878_v10 }
  0x36   : > { %823 = vmatprep.subr.bf16.mxu0 %v879_v11 }
  0x39   : > { %824 = vmatpush3.bf16.msra.mxu0 %v879_v11 }
  0x3a   : > { %825 = vmatprep.subr.bf16.mxu0 %v880_v12 }
  0x3d   : > { %826 = vmatpush3.bf16.msra.mxu0 %v880_v12 }
  0x3e   : > { %827 = vmatprep.subr.bf16.mxu0 %v881_v13 }
  0x41   : > { %828 = vmatpush3.bf16.msra.mxu0 %v881_v13 }
  0x44   : > { %830 = vmatmul.mubr.bf16.vlgmr.msra.gmra.mxu0 %v883_v14 }
 0x104   : > { %v831_v16 = vpop.f32.mrf.mxu0 }
 0x105   : > { %v512_v18 = vadd.f32 %v831_v16, %v379_v15 }
 0x106   : > { %v495_v19 = vpop.f32.mrf.mxu0 }
 0x107   : > { %516 = vst [vmem:[#allocation2 + $0x18] sm:$0xff] %v512_v18  ;;  %v510_v21 = vadd.f32 %v495_v19, %v377_v17 }
 0x108   : > { %v832_v22 = vpop.f32.mrf.mxu0 }
 0x109   : > { %514 = vst [vmem:[#allocation2 + $0x10] sm:$0xff] %v510_v21  ;;  %v513_v24 = vadd.f32 %v832_v22, %v380_v20  ;;  %521 = sbr.rel (%p770_p11) target bundleno = 352 (0x160), region = 89 }
 0x10a   : > { %v498_v25 = vpop.f32.mrf.mxu0 }
 0x10b   : > { %517 = vst [vmem:[#allocation2 + $0x8] sm:$0xff] %v513_v24  ;;  %v511_v26 = vadd.f32 %v498_v25, %v378_v23 }
 0x10d   : > { %515 = vst [vmem:[#allocation2] sm:$0xff] %v511_v26 }
 0x10e   : > { %v524_v29 = vld [vmem:[#allocation2 + $0x18] sm:$0xff]  ;;  %v577_v60 = vlaneseq  ;;  %v526_v62 = vld [vmem:[%s1061_s2] sm:$0x1]  ;;  %v801_v3 = vld [vmem:[%s1063_s4 + $0x8] sm:$0xff]  }
 0x10f   : > { %v784_v1 = vld [vmem:[%s1063_s4] sm:$0xff]   ;;  %v789_v8 = vunpack.c.l.bf16 %v801_v3  ;;  %v790_v9 = vunpack.c.h.bf16 %v801_v3 }
 0x110   : > { %v522_v27 = vld [vmem:[#allocation2 + $0x10] sm:$0xff]  ;;  %v578_v61 = vshrl.u32 %v577_v60, 7  ;;  %v771_v5 = vld [vmem:[%s1062_s3] ss:$0 sm:$0xff]  ;;  %v785_v6 = vunpack.c.l.bf16 %v784_v1  ;;  %v786_v7 = vunpack.c.h.bf16 %v784_v1 }
 0x112   : > { %v525_v31 = vld [vmem:[#allocation2 + $0x8] sm:$0xff]  ;;  %v579_v63 = vsub.s32 0, %v578_v61 }
 0x114   : > { %v523_v28 = vld [vmem:[#allocation2] sm:$0xff] }
 0x115   : > { %v532_v30 = vadd.f32 %v523_v28, %v522_v27 }
 0x117   : > { %v533_v32 = vadd.f32 %v532_v30, %v524_v29 }
 0x119   : > { %v534_v33 = vadd.f32 %v533_v32, %v525_v31 }
 0x11b   : > { %v535_v34 = vrot.slane %v534_v33, 4 }
 0x11d   : > { %v536_v35 = vadd.f32 %v535_v34, %v534_v33 }
 0x11f   : > { %v537_v36 = vrot.slane %v536_v35, 2 }
 0x121   : > { %v538_v37 = vadd.f32 %v537_v36, %v536_v35 }
 0x123   : > { %v539_v38 = vrot.slane %v538_v37, 1 }
 0x125   : > { %v540_v39 = vadd.f32 %v539_v38, %v538_v37 }
 0x127   : > { %v541_v40 = vmul.f32 0.03125, %v540_v39 }
 0x129   : > { %v551_v41 = vsub.f32 %v522_v27, %v541_v40  ;;  %v552_v42 = vsub.f32 %v523_v28, %v541_v40  ;;  %v553_v43 = vsub.f32 %v524_v29, %v541_v40  ;;  %v554_v44 = vsub.f32 %v525_v31, %v541_v40 }
 0x12b   : > { %v559_v45 = vmul.f32 %v551_v41, %v551_v41  ;;  %v560_v46 = vmul.f32 %v552_v42, %v552_v42  ;;  %v561_v47 = vmul.f32 %v553_v43, %v553_v43  ;;  %v562_v48 = vmul.f32 %v554_v44, %v554_v44 }
 0x12d   : > { %v563_v49 = vadd.f32 %v560_v46, %v559_v45 }
 0x12f   : > { %v564_v50 = vadd.f32 %v563_v49, %v561_v47 }
 0x131   : > { %v565_v51 = vadd.f32 %v564_v50, %v562_v48 }
 0x133   : > { %v566_v52 = vrot.slane %v565_v51, 4 }
 0x135   : > { %v567_v53 = vadd.f32 %v566_v52, %v565_v51 }
 0x137   : > { %v568_v54 = vrot.slane %v567_v53, 2 }
 0x139   : > { %v569_v55 = vadd.f32 %v568_v54, %v567_v53 }
 0x13b   : > { %v570_v56 = vrot.slane %v569_v55, 1 }
 0x13d   : > { %v571_v57 = vadd.f32 %v570_v56, %v569_v55 }
 0x13f   : > { %v572_v58 = vmul.f32 0.03125, %v571_v57 }
 0x141   : > { %v573_v59 = vadd.f32 1e-05, %v572_v58 }
 0x143   : > { %884 = vrsqrt.f32 %v573_v59 }
 0x150   : > { %v885_v0 = vpop.eup %884 }
 0x151   : > { %v575_v2 = vmul.f32 %v885_v0, %v526_v62 }
 0x153   : > { %v580_v4 = vrot.slane %v575_v2, %v579_v63 }
 0x155   : > { %v582_v10 = vmul.f32 %v580_v4, %v551_v41  ;;  %v583_v11 = vmul.f32 %v580_v4, %v552_v42  ;;  %v584_v12 = vmul.f32 %v580_v4, %v553_v43  ;;  %v585_v13 = vmul.f32 %v580_v4, %v554_v44 }
 0x157   : > { %v592_v14 = vadd.f32 %v771_v5, %v582_v10  ;;  %v593_v15 = vadd.f32 %v771_v5, %v583_v11  ;;  %v594_v16 = vadd.f32 %v771_v5, %v584_v12  ;;  %v595_v17 = vadd.f32 %v771_v5, %v585_v13 }
 0x159   : > { %v600_v18 = vadd.f32 %v785_v6, %v592_v14  ;;  %v601_v19 = vadd.f32 %v786_v7, %v593_v15  ;;  %v602_v20 = vadd.f32 %v789_v8, %v594_v16  ;;  %v603_v21 = vadd.f32 %v790_v9, %v595_v17 }
 0x15b   : > { %v604_v22 = vmax.f32 %v600_v18, 0.0  ;;  %v605_v23 = vmax.f32 %v601_v19, 0.0  ;;  %v606_v24 = vmax.f32 %v602_v20, 0.0  ;;  %v607_v25 = vmax.f32 %v603_v21, 0.0 }
 0x15d   : > { %v794_v26 = vpack.c.bf16 %v605_v23, %v604_v22  ;;  %v799_v27 = vpack.c.bf16 %v607_v25, %v606_v24 }
 0x15f   : > { %795 = vst [vmem:[%s1064_s5] sm:$0xff] %v794_v26   ;;  %802 = vst [vmem:[%s1064_s5 + $0x8] sm:$0xff] %v799_v27  }
 0x160 PF: > { %s15_s22 = sadd.s32 1, %s924_s22   ;;  %s1065_s18 = smov %s912_s19 }
 0x161   : > { %p12_p12 = scmp.ge.s32.totalorder %s15_s22, 11   ;;  %s1066_s19 = smov %s992_s26 }
 0x162   : > { %s1067_s20 = smov %s920_s21  ;;  %s1068_s21 = smov %s1070_s23 }
 0x163   :  { %14 = sbr.rel (!%p12_p12) target bundleno = 3 (0x3), region = 136 }

// kernel: resnet_forward.32
= control target key start
LH: loop header
LB: loop body
LE: loop exit
PB: predicated region body
PF: predicated region fallthrough
CT: control target
= control target key end

     0   :  { %s871_s15 = smov 0   ;;  %s873_s16 = smov 0   ;;  %s967_s0 = inlined_call_operand.vmem [shape: bf16[32,1152], index: 0, kind: input, shape index: {}]   ;;  %s968_s1 = inlined_call_operand.vmem [shape: bf16[1152,128], index: 1, kind: input, shape index: {}]   ;;  %s969_s2 = inlined_call_operand.vmem [shape: f32[1,128], index: 2, kind: input, shape index: {}]   ;;  %s970_s3 = inlined_call_operand.vmem [shape: f32[1,128], index: 3, kind: input, shape index: {}]   ;;  %s971_s4 = inlined_call_operand.vmem [shape: bf16[32,128], index: 4, kind: output, shape index: {}]  }
   0x1   :  { %s875_s17 = smov 0   ;;  %s877_s18 = smov 0  }
   0x2   :  { %s879_s19 = smov 0  }
   0x3 LB: > { %s23_s20 = sadd.s32 1, %s839_s18  ;;  %p40_p1 = scmp.ne.s32.totalorder %s831_s16, %s827_s15  ;;  %s843_s19 = sphi %s879_s19, %s14_s19   ;;  %s839_s18 = sphi %s877_s18, %s975_s18   ;;  %s835_s17 = sphi %s875_s17, %s974_s17   ;;  %s831_s16 = sphi %s873_s16, %s973_s16   ;;  %s827_s15 = sphi %s871_s15, %s972_s15  }
   0x4   : > { %p24_p0 = scmp.ge.s32.totalorder %s23_s20, 9  ;;  %p41_p2 = scmp.eq.s32.totalorder %s843_s19, 0 }
   0x5   : > { %s33_s22 = sadd.s32 1, %s831_s16  ;;  %p680_p5 = scmp.ge.s32.totalorder %s843_s19, 9 }
   0x6   : > { %s977_s20 = smov (%p24_p0, %s23_s20), 0  ;;  %p42_p3 = por %p41_p2, %p40_p1 }
   0x7   : > { %s30_s21 = ssub.s32 %s839_s18, %s977_s20  ;;  %184 = sbr.rel (%p680_p5) target bundleno = 18 (0x12), region = 24 }
   0x8   : > { %p31_p4 = scmp.eq.s32.totalorder %s30_s21, 0 }
   0xa   : > { %s906_s23 = scalar_select %p31_p4, %s831_s16, %s33_s22  }
   0xc   : > { %187 = sbr.rel (!%p42_p3) target bundleno = 18 (0x12), region = 28  ;;  %s189_s24 = sand.u32 (%p42_p3), 1, %s831_s16  }
   0xd   : > { %s682_s25 = sshll.u32 (%p42_p3), %s839_s18, 2  ;;  %s681_s26 = sshll.u32 (%p42_p3), %s189_s24, 4 }
   0xe   : > { %s193_s29 = scalar_lea.vmem (%p42_p3), %s967_s0, %s682_s25  ;;  %s191_s30 = scalar_lea.vmem (%p42_p3), [#allocation3], %s681_s26 }
   0xf   : > { %v210_v0 = vld [vmem:[%s193_s29] sm:$0xf] (%p42_p3)  ;;  %v212_v1 = vld [vmem:[%s193_s29 + $0x24] sm:$0xf] (%p42_p3)  ;;  %v214_v2 = vld [vmem:[%s193_s29 + $0x48] sm:$0xf] (%p42_p3) }
  0x10   : > { %211 = vst [vmem:[%s191_s30] sm:$0xf] (%p42_p3), %v210_v0  ;;  %213 = vst [vmem:[%s191_s30 + $0x4] sm:$0xf] (%p42_p3), %v212_v1  ;;  %v216_v3 = vld [vmem:[%s193_s29 + $0x6c] sm:$0xf] (%p42_p3) }
  0x11   : > { %215 = vst [vmem:[%s191_s30 + $0x8] sm:$0xf] %v214_v2  ;;  %217 = vst [vmem:[%s191_s30 + $0xc] sm:$0xf] %v216_v3 }
  0x12 PF: > { %p683_p6 = scmp.ge.s32.totalorder %s843_s19, 1  ;;  %p260_p7 = scmp.lt.s32.totalorder %s843_s19, 10 }
  0x14   : > { %p261_p8 = pnand %p683_p6, %p260_p7 }
  0x15   : > { %s267_s5 = sand.u32 (!%p261_p8), 1, %s827_s15   ;;  %s685_s6 = sshll.u32 (!%p261_p8), %s835_s17, 4 }
  0x16   : > { %264 = sbr.rel (%p261_p8) target bundleno = 350 (0x15e), region = 73  ;;  %s918_s7 = sshll.u32 (!%p261_p8), %s267_s5, 4 }
  0x17   : > { %p306_p9 = scmp.lt.s32.totalorder (!%p261_p8), %s685_s6, 143  ;;  %s269_s12 = scalar_lea.vmem (!%p261_p8), [#allocation3], %s918_s7 }
  0x18   : > { %p687_p10 = scmp.ne.s32.totalorder (!%p261_p8), %s835_s17, 0 }
  0x1b   : > { %s979_s6 = smov (!%p306_p9, %s685_s6), 143  ;;  %328 = sbr.rel (%p687_p10) target bundleno = 35 (0x23), region = 81 }
  0x1c   : > { %s686_s8 = sshll.u32 %s979_s6, 2 }
  0x1d   : > { %s923_s11 = scalar_lea.vmem %s968_s1, %s686_s8 }
  0x20   : > { %v845_v4 = vmov 0.0  }
  0x21   : > { %329 = vst [vmem:[#allocation2 + $0x10] sm:$0xff] %v845_v4  ;;  %330 = vst [vmem:[#allocation2] sm:$0xff] %v845_v4 }
  0x22   : > { %331 = vst [vmem:[#allocation2 + $0x18] sm:$0xff] %v845_v4  ;;  %332 = vst [vmem:[#allocation2 + $0x8] sm:$0xff] %v845_v4 }
  0x23 PF: > { %v793_v5 = vld [vmem:[%s923_s11 + $0x38] sm:$0xff]   ;;  %v794_v6 = vld [vmem:[%s923_s11 + $0x30] sm:$0xff]   ;;  %v795_v7 = vld [vmem:[%s923_s11 + $0x28] sm:$0xff]   ;;  %p698_p11 = scmp.ne.s32.totalorder %s835_s17, 8 }
  0x24   : > { %732 = vmatprep.subr.bf16.mxu0 %v793_v5  ;;  %v796_v8 = vld [vmem:[%s923_s11 + $0x20] sm:$0xff]   ;;  %v797_v10 = vld [vmem:[%s923_s11 + $0x18] sm:$0xff]   ;;  %v798_v11 = vld [vmem:[%s923_s11 + $0x10] sm:$0xff]  }
  0x25   : > { %733 = vmatpush3.bf16.msra.mxu0 %v793_v5  ;;  %v801_v9 = vld [vmem:[%s269_s12] sm:$0xff]   ;;  %v799_v12 = vld [vmem:[%s923_s11 + $0x8] sm:$0xff]  }
  0x26   : > { %734 = vmatprep.subr.bf16.mxu0 %v794_v6  ;;  %748 = vmatprep.mubr.bf16.mxu0 %v801_v9  ;;  %v800_v13 = vld [vmem:[%s923_s11] sm:$0xff]   ;;  %v802_v14 = vld [vmem:[%s269_s12 + $0x8] sm:$0xff]  }
  0x28   : > { %v333_v17 = vld [vmem:[#allocation2 + $0x10] sm:$0xff]  ;;  %v334_v23 = vld [vmem:[#allocation2] sm:$0xff] }
  0x29   : > { %735 = vmatpush3.bf16.msra.mxu0 %v794_v6  ;;  %v335_v15 = vld [vmem:[#allocation2 + $0x18] sm:$0xff]  ;;  %v336_v20 = vld [vmem:[#allocation2 + $0x8] sm:$0xff] }
  0x2a   : > { %736 = vmatprep.subr.bf16.mxu0 %v795_v7 }
  0x2d   : > { %737 = vmatpush3.bf16.msra.mxu0 %v795_v7 }
  0x2e   : > { %738 = vmatprep.subr.bf16.mxu0 %v796_v8 }
  0x31   : > { %739 = vmatpush3.bf16.msra.mxu0 %v796_v8 }
  0x32   : > { %740 = vmatprep.subr.bf16.mxu0 %v797_v10 }
  0x35   : > { %741 = vmatpush3.bf16.msra.mxu0 %v797_v10 }
  0x36   : > { %742 = vmatprep.subr.bf16.mxu0 %v798_v11 }
  0x39   : > { %743 = vmatpush3.bf16.msra.mxu0 %v798_v11 }
  0x3a   : > { %744 = vmatprep.subr.bf16.mxu0 %v799_v12 }
  0x3d   : > { %745 = vmatpush3.bf16.msra.mxu0 %v799_v12 }
  0x3e   : > { %746 = vmatprep.subr.bf16.mxu0 %v800_v13 }
  0x41   : > { %747 = vmatpush3.bf16.msra.mxu0 %v800_v13 }
  0x44   : > { %749 = vmatmul.mubr.bf16.vlgmr.msra.gmra.mxu0 %v802_v14 }
 0x104   : > { %v750_v16 = vpop.f32.mrf.mxu0 }
 0x105   : > { %v468_v18 = vadd.f32 %v750_v16, %v335_v15 }
 0x106   : > { %v451_v19 = vpop.f32.mrf.mxu0 }
 0x107   : > { %472 = vst [vmem:[#allocation2 + $0x18] sm:$0xff] %v468_v18  ;;  %v466_v21 = vadd.f32 %v451_v19, %v333_v17 }
 0x108   : > { %v751_v22 = vpop.f32.mrf.mxu0 }
 0x109   : > { %470 = vst [vmem:[#allocation2 + $0x10] sm:$0xff] %v466_v21  ;;  %v469_v24 = vadd.f32 %v751_v22, %v336_v20  ;;  %477 = sbr.rel (%p698_p11) target bundleno = 350 (0x15e), region = 85 }
 0x10a   : > { %v454_v25 = vpop.f32.mrf.mxu0 }
 0x10b   : > { %473 = vst [vmem:[#allocation2 + $0x8] sm:$0xff] %v469_v24  ;;  %v467_v26 = vadd.f32 %v454_v25, %v334_v23 }
 0x10d   : > { %471 = vst [vmem:[#allocation2] sm:$0xff] %v467_v26 }
 0x10e   : > { %v480_v29 = vld [vmem:[#allocation2 + $0x18] sm:$0xff]  ;;  %v529_v60 = vlaneseq  ;;  %v482_v62 = vld [vmem:[%s969_s2] sm:$0x1] }
 0x10f   : > { %v699_v3 = vld [vmem:[%s970_s3] ss:$0 sm:$0xff] }
 0x110   : > { %v478_v27 = vld [vmem:[#allocation2 + $0x10] sm:$0xff]  ;;  %v530_v61 = vshrl.u32 %v529_v60, 7 }
 0x112   : > { %v481_v31 = vld [vmem:[#allocation2 + $0x8] sm:$0xff]  ;;  %v531_v63 = vsub.s32 0, %v530_v61 }
 0x114   : > { %v479_v28 = vld [vmem:[#allocation2] sm:$0xff] }
 0x115   : > { %v484_v30 = vadd.f32 %v479_v28, %v478_v27 }
 0x117   : > { %v485_v32 = vadd.f32 %v484_v30, %v480_v29 }
 0x119   : > { %v486_v33 = vadd.f32 %v485_v32, %v481_v31 }
 0x11b   : > { %v487_v34 = vrot.slane %v486_v33, 4 }
 0x11d   : > { %v488_v35 = vadd.f32 %v487_v34, %v486_v33 }
 0x11f   : > { %v489_v36 = vrot.slane %v488_v35, 2 }
 0x121   : > { %v490_v37 = vadd.f32 %v489_v36, %v488_v35 }
 0x123   : > { %v491_v38 = vrot.slane %v490_v37, 1 }
 0x125   : > { %v492_v39 = vadd.f32 %v491_v38, %v490_v37 }
 0x127   : > { %v493_v40 = vmul.f32 0.03125, %v492_v39 }
 0x129   : > { %v503_v41 = vsub.f32 %v478_v27, %v493_v40  ;;  %v504_v42 = vsub.f32 %v479_v28, %v493_v40  ;;  %v505_v43 = vsub.f32 %v480_v29, %v493_v40  ;;  %v506_v44 = vsub.f32 %v481_v31, %v493_v40 }
 0x12b   : > { %v511_v45 = vmul.f32 %v503_v41, %v503_v41  ;;  %v512_v46 = vmul.f32 %v504_v42, %v504_v42  ;;  %v513_v47 = vmul.f32 %v505_v43, %v505_v43  ;;  %v514_v48 = vmul.f32 %v506_v44, %v506_v44 }
 0x12d   : > { %v515_v49 = vadd.f32 %v512_v46, %v511_v45 }
 0x12f   : > { %v516_v50 = vadd.f32 %v515_v49, %v513_v47 }
 0x131   : > { %v517_v51 = vadd.f32 %v516_v50, %v514_v48 }
 0x133   : > { %v518_v52 = vrot.slane %v517_v51, 4 }
 0x135   : > { %v519_v53 = vadd.f32 %v518_v52, %v517_v51 }
 0x137   : > { %v520_v54 = vrot.slane %v519_v53, 2 }
 0x139   : > { %v521_v55 = vadd.f32 %v520_v54, %v519_v53 }
 0x13b   : > { %v522_v56 = vrot.slane %v521_v55, 1 }
 0x13d   : > { %v523_v57 = vadd.f32 %v522_v56, %v521_v55 }
 0x13f   : > { %v524_v58 = vmul.f32 0.03125, %v523_v57 }
 0x141   : > { %v525_v59 = vadd.f32 1e-05, %v524_v58 }
 0x143   : > { %803 = vrsqrt.f32 %v525_v59 }
 0x150   : > { %v804_v0 = vpop.eup %803 }
 0x151   : > { %v527_v1 = vmul.f32 %v804_v0, %v482_v62 }
 0x153   : > { %v532_v2 = vrot.slane %v527_v1, %v531_v63 }
 0x155   : > { %v534_v4 = vmul.f32 %v532_v2, %v503_v41  ;;  %v535_v5 = vmul.f32 %v532_v2, %v504_v42  ;;  %v536_v6 = vmul.f32 %v532_v2, %v505_v43  ;;  %v537_v7 = vmul.f32 %v532_v2, %v506_v44 }
 0x157   : > { %v544_v8 = vadd.f32 %v699_v3, %v534_v4  ;;  %v545_v9 = vadd.f32 %v699_v3, %v535_v5  ;;  %v546_v10 = vadd.f32 %v699_v3, %v536_v6  ;;  %v547_v11 = vadd.f32 %v699_v3, %v537_v7 }
 0x159   : > { %v548_v12 = vmax.f32 %v544_v8, 0.0  ;;  %v549_v13 = vmax.f32 %v545_v9, 0.0  ;;  %v550_v14 = vmax.f32 %v546_v10, 0.0  ;;  %v551_v15 = vmax.f32 %v547_v11, 0.0 }
 0x15b   : > { %v714_v16 = vpack.c.bf16 %v549_v13, %v548_v12  ;;  %v719_v17 = vpack.c.bf16 %v551_v15, %v550_v14 }
 0x15d   : > { %715 = vst [vmem:[%s971_s4] sm:$0xff] %v714_v16   ;;  %721 = vst [vmem:[%s971_s4 + $0x8] sm:$0xff] %v719_v17  }
 0x15e PF: > { %s14_s19 = sadd.s32 1, %s843_s19   ;;  %s972_s15 = smov %s831_s16 }
 0x15f   : > { %p11_p12 = scmp.ge.s32.totalorder %s14_s19, 11   ;;  %s973_s16 = smov %s906_s23 }
 0x160   : > { %s974_s17 = smov %s839_s18  ;;  %s975_s18 = smov %s977_s20 }
 0x161   :  { %13 = sbr.rel (!%p11_p12) target bundleno = 3 (0x3), region = 129 }

// kernel: resnet_forward.34
= control target key start
LH: loop header
LB: loop body
LE: loop exit
PB: predicated region body
PF: predicated region fallthrough
CT: control target
= control target key end

     0   :  { %s925_s15 = smov 0   ;;  %s927_s16 = smov 0   ;;  %s1027_s0 = inlined_call_operand.vmem [shape: bf16[16,1152], index: 0, kind: input, shape index: {}]   ;;  %s1028_s1 = inlined_call_operand.vmem [shape: bf16[1152,256], index: 1, kind: input, shape index: {}]   ;;  %s1029_s2 = inlined_call_operand.vmem [shape: f32[1,256], index: 2, kind: input, shape index: {}]   ;;  %s1030_s3 = inlined_call_operand.vmem [shape: f32[1,256], index: 3, kind: input, shape index: {}]   ;;  %s1031_s4 = inlined_call_operand.vmem [shape: bf16[16,256], index: 4, kind: output, shape index: {}]  }
   0x1   :  { %s929_s17 = smov 0   ;;  %s931_s18 = smov 0  }
   0x2   :  { %s933_s19 = smov 0  }
   0x3 LB: > { %s23_s20 = sadd.s32 1, %s891_s18  ;;  %p40_p1 = scmp.ne.s32.totalorder %s883_s16, %s879_s15  ;;  %s895_s19 = sphi %s933_s19, %s14_s19   ;;  %s891_s18 = sphi %s931_s18, %s1035_s18   ;;  %s887_s17 = sphi %s929_s17, %s1034_s17   ;;  %s883_s16 = sphi %s927_s16, %s1033_s16   ;;  %s879_s15 = sphi %s925_s15, %s1032_s15  }
   0x4   : > { %p24_p0 = scmp.ge.s32.totalorder %s23_s20, 9  ;;  %p41_p2 = scmp.eq.s32.totalorder %s895_s19, 0 }
   0x5   : > { %s33_s22 = sadd.s32 1, %s883_s16  ;;  %p749_p5 = scmp.ge.s32.totalorder %s895_s19, 9 }
   0x6   : > { %s1037_s20 = smov (%p24_p0, %s23_s20), 0  ;;  %p42_p3 = por %p41_p2, %p40_p1 }
   0x7   : > { %s30_s21 = ssub.s32 %s891_s18, %s1037_s20  ;;  %188 = sbr.rel (%p749_p5) target bundleno = 17 (0x11), region = 24 }
   0x8   : > { %p31_p4 = scmp.eq.s32.totalorder %s30_s21, 0 }
   0xa   : > { %s960_s23 = scalar_select %p31_p4, %s883_s16, %s33_s22  }
   0xc   : > { %191 = sbr.rel (!%p42_p3) target bundleno = 17 (0x11), region = 28  ;;  %s193_s24 = sand.u32 (%p42_p3), 1, %s883_s16  }
   0xd   : > { %s751_s25 = sshll.u32 (%p42_p3), %s891_s18, 2  ;;  %s750_s26 = sshll.u32 (%p42_p3), %s193_s24, 3 }
   0xe   : > { %s197_s29 = scalar_lea.vmem (%p42_p3), %s1027_s0, %s751_s25  ;;  %s195_s30 = scalar_lea.vmem (%p42_p3), [#allocation3], %s750_s26 }
   0xf   : > { %v214_v0 = vld [vmem:[%s197_s29] sm:$0xf] (%p42_p3)  ;;  %v216_v1 = vld [vmem:[%s197_s29 + $0x24] sm:$0xf] (%p42_p3) }
  0x10   : > { %215 = vst [vmem:[%s195_s30] sm:$0xf] (%p42_p3), %v214_v0  ;;  %217 = vst [vmem:[%s195_s30 + $0x4] sm:$0xf] (%p42_p3), %v216_v1 }
  0x11 PF: > { %p752_p6 = scmp.ge.s32.totalorder %s895_s19, 1  ;;  %p259_p7 = scmp.lt.s32.totalorder %s895_s19, 10 }
  0x13   : > { %p260_p8 = pnand %p752_p6, %p259_p7 }
  0x14   : > { %s266_s5 = sand.u32 (!%p260_p8), 1, %s879_s15   ;;  %s754_s6 = sshll.u32 (!%p260_p8), %s887_s17, 4 }
  0x15   : > { %263 = sbr.rel (%p260_p8) target bundleno = 345 (0x159), region = 73  ;;  %s972_s7 = sshll.u32 (!%p260_p8), %s266_s5, 3 }
  0x16   : > { %p311_p9 = scmp.lt.s32.totalorder (!%p260_p8), %s754_s6, 143  ;;  %s268_s12 = scalar_lea.vmem (!%p260_p8), [#allocation3], %s972_s7 }
  0x17   : > { %p757_p10 = scmp.ne.s32.totalorder (!%p260_p8), %s887_s17, 0 }
  0x1a   : > { %s1039_s6 = smov (!%p311_p9, %s754_s6), 143  ;;  %341 = sbr.rel (%p757_p10) target bundleno = 34 (0x22), region = 81 }
  0x1b   : > { %s782_s8 = sshll.u32 %s1039_s6, 3 }
  0x1c   : > { %s977_s11 = scalar_lea.vmem %s1028_s1, %s782_s8 }
  0x1f   : > { %v897_v2 = vmov 0.0  }
  0x20   : > { %342 = vst [vmem:[#allocation2 + $0x10] sm:$0xff] %v897_v2  ;;  %343 = vst [vmem:[#allocation2] sm:$0xff] %v897_v2 }
  0x21   : > { %344 = vst [vmem:[#allocation2 + $0x18] sm:$0xff] %v897_v2  ;;  %345 = vst [vmem:[#allocation2 + $0x8] sm:$0xff] %v897_v2 }
  0x22 PF: > { %v828_v3 = vld [vmem:[%s977_s11 + $0x74] ss:$8 sps:$4 sm:$0xff]   ;;  %v830_v4 = vld [vmem:[%s977_s11 + $0x70] ss:$8 sps:$4 sm:$0xff]   ;;  %v898_v5 = vmov 0   ;;  %v852_v20 = vld [vmem:[%s268_s12] sm:$0xff]  }
  0x23   : > { %486 = vmatprep.mubr.bf16.mxu0 %v898_v5  ;;  %454 = vmatprep.subr.bf16.mxu0 %v828_v3  ;;  %v831_v6 = vld [vmem:[%s977_s11 + $0x64] ss:$8 sps:$4 sm:$0xff]   ;;  %v833_v7 = vld [vmem:[%s977_s11 + $0x60] ss:$8 sps:$4 sm:$0xff]   ;;  %v834_v8 = vld [vmem:[%s977_s11 + $0x54] ss:$8 sps:$4 sm:$0xff]  }
  0x24   : > { %455 = vmatpush1.bf16.msra.mxu0 %v830_v4  ;;  %v836_v9 = vld [vmem:[%s977_s11 + $0x50] ss:$8 sps:$4 sm:$0xff]   ;;  %v837_v10 = vld [vmem:[%s977_s11 + $0x44] ss:$8 sps:$4 sm:$0xff]   ;;  %v839_v11 = vld [vmem:[%s977_s11 + $0x40] ss:$8 sps:$4 sm:$0xff]  }
  0x25   : > { %456 = vmatprep.subr.bf16.mxu0 %v831_v6  ;;  %v840_v12 = vld [vmem:[%s977_s11 + $0x34] ss:$8 sps:$4 sm:$0xff]   ;;  %v842_v13 = vld [vmem:[%s977_s11 + $0x30] ss:$8 sps:$4 sm:$0xff]   ;;  %v843_v14 = vld [vmem:[%s977_s11 + $0x24] ss:$8 sps:$4 sm:$0xff]  }
  0x26   : > { %v845_v15 = vld [vmem:[%s977_s11 + $0x20] ss:$8 sps:$4 sm:$0xff]   ;;  %v846_v16 = vld [vmem:[%s977_s11 + $0x14] ss:$8 sps:$4 sm:$0xff]   ;;  %v848_v17 = vld [vmem:[%s977_s11 + $0x10] ss:$8 sps:$4 sm:$0xff]  }
  0x27   : > { %v849_v18 = vld [vmem:[%s977_s11 + $0x4] ss:$8 sps:$4 sm:$0xff]   ;;  %v851_v19 = vld [vmem:[%s977_s11] ss:$8 sps:$4 sm:$0xff]   ;;  %v346_v21 = vld [vmem:[#allocation2 + $0x10] sm:$0xff]  ;;  %p775_p11 = scmp.ne.s32.totalorder %s887_s17, 8 }
  0x28   : > { %457 = vmatpush1.bf16.msra.mxu0 %v833_v7  ;;  %v347_v23 = vld [vmem:[#allocation2] sm:$0xff]  ;;  %v348_v26 = vld [vmem:[#allocation2 + $0x18] sm:$0xff]  ;;  %v349_v29 = vld [vmem:[#allocation2 + $0x8] sm:$0xff] }
  0x29   : > { %458 = vmatprep.subr.bf16.mxu0 %v834_v8 }
  0x2c   : > { %459 = vmatpush1.bf16.msra.mxu0 %v836_v9 }
  0x2d   : > { %460 = vmatprep.subr.bf16.mxu0 %v837_v10 }
  0x30   : > { %461 = vmatpush1.bf16.msra.mxu0 %v839_v11 }
  0x31   : > { %462 = vmatprep.subr.bf16.mxu0 %v840_v12 }
  0x34   : > { %463 = vmatpush1.bf16.msra.mxu0 %v842_v13 }
  0x35   : > { %464 = vmatprep.subr.bf16.mxu0 %v843_v14 }
  0x38   : > { %465 = vmatpush1.bf16.msra.mxu0 %v845_v15 }
  0x39   : > { %466 = vmatprep.subr.bf16.mxu0 %v846_v16 }
  0x3c   : > { %467 = vmatpush1.bf16.msra.mxu0 %v848_v17 }
  0x3d   : > { %468 = vmatprep.subr.bf16.mxu0 %v849_v18 }
  0x40   : > { %469 = vmatpush1.bf16.msra.mxu0 %v851_v19 }
  0x43   : > { %487 = vmatmul.mubr.bf16.vlgmr.msra.gmra.mxu0 %v852_v20 }
 0x103   : > { %v488_v22 = vpop.f32.mrf.mxu0 }
 0x104   : > { %v497_v24 = vadd.f32 %v488_v22, %v346_v21 }
 0x105   : > { %v490_v25 = vpop.f32.mrf.mxu0 }
 0x106   : > { %501 = vst [vmem:[#allocation2 + $0x10] sm:$0xff] %v497_v24  ;;  %v498_v27 = vadd.f32 %v490_v25, %v347_v23 }
 0x107   : > { %v492_v28 = vpop.f32.mrf.mxu0 }
 0x108   : > { %502 = vst [vmem:[#allocation2] sm:$0xff] %v498_v27  ;;  %v499_v30 = vadd.f32 %v492_v28, %v348_v26  ;;  %508 = sbr.rel (%p775_p11) target bundleno = 345 (0x159), region = 85 }
 0x109   : > { %v494_v31 = vpop.f32.mrf.mxu0 }
 0x10a   : > { %503 = vst [vmem:[#allocation2 + $0x18] sm:$0xff] %v499_v30  ;;  %v500_v32 = vadd.f32 %v494_v31, %v349_v29 }
 0x10c   : > { %504 = vst [vmem:[#allocation2 + $0x8] sm:$0xff] %v500_v32 }
 0x10d   : > { %v509_v33 = vld [vmem:[#allocation2 + $0x10] sm:$0xff]  ;;  %v899_v9 = vmov 1966171168   ;;  %v574_v11 = vlaneseq  ;;  %v513_v19 = vld [vmem:[%s1029_s2] sm:$0x3] }
 0x10e   : > { %v572_v10 = vunpack.c.l.s4 %v899_v9  ;;  %v514_v23 = vld [vmem:[%s1030_s3] sm:$0x3] }
 0x10f   : > { %v510_v34 = vld [vmem:[#allocation2] sm:$0xff]  ;;  %v575_v13 = vshrl.u32 %v574_v11, 7 }
 0x110   : > { %v573_v12 = vunpack.c.0.s8 %v572_v10 }
 0x111   : > { %v511_v35 = vld [vmem:[#allocation2 + $0x18] sm:$0xff]  ;;  %v590_v21 = vsub.s32 0, %v575_v13  ;;  %v594_v22 = vsub.s32 1, %v575_v13 }
 0x112   : > { %v515_v37 = vadd.f32 %v511_v35, %v509_v33  ;;  %v576_v15 = vsub.s32 %v573_v12, %v575_v13 }
 0x113   : > { %v512_v36 = vld [vmem:[#allocation2 + $0x8] sm:$0xff]  ;;  %v606_v27 = vrot.slane %v514_v23, %v590_v21  ;;  %v610_v28 = vrot.slane %v514_v23, %v594_v22 }
 0x114   : > { %v522_v38 = vadd.f32 %v512_v36, %v510_v34  ;;  %v516_v39 = vrot.slane %v515_v37, 4 }
 0x116   : > { %v523_v40 = vrot.slane %v522_v38, 4  ;;  %v517_v41 = vadd.f32 %v516_v39, %v515_v37 }
 0x118   : > { %v524_v42 = vadd.f32 %v523_v40, %v522_v38  ;;  %v518_v43 = vrot.slane %v517_v41, 2 }
 0x11a   : > { %v525_v44 = vrot.slane %v524_v42, 2  ;;  %v519_v45 = vadd.f32 %v518_v43, %v517_v41 }
 0x11c   : > { %v526_v46 = vadd.f32 %v525_v44, %v524_v42  ;;  %v520_v47 = vrot.slane %v519_v45, 1 }
 0x11e   : > { %v527_v48 = vrot.slane %v526_v46, 1  ;;  %v521_v49 = vadd.f32 %v520_v47, %v519_v45 }
 0x120   : > { %v528_v50 = vadd.f32 %v527_v48, %v526_v46  ;;  %v529_v51 = vmul.f32 0.125, %v521_v49 }
 0x122   : > { %v530_v52 = vmul.f32 0.125, %v528_v50  ;;  %v536_v53 = vsub.f32 %v509_v33, %v529_v51 }
 0x124   : > { %v537_v54 = vsub.f32 %v510_v34, %v530_v52  ;;  %v544_v55 = vmul.f32 %v536_v53, %v536_v53 }
 0x126   : > { %v545_v56 = vmul.f32 %v537_v54, %v537_v54  ;;  %v549_v57 = vrot.slane %v544_v55, 4 }
 0x128   : > { %v556_v58 = vrot.slane %v545_v56, 4  ;;  %v550_v59 = vadd.f32 %v549_v57, %v544_v55 }
 0x12a   : > { %v557_v60 = vadd.f32 %v556_v58, %v545_v56  ;;  %v551_v61 = vrot.slane %v550_v59, 2 }
 0x12c   : > { %v558_v62 = vrot.slane %v557_v60, 2  ;;  %v552_v63 = vadd.f32 %v551_v61, %v550_v59 }
 0x12e   : > { %v559_v0 = vadd.f32 %v558_v62, %v557_v60  ;;  %v553_v1 = vrot.slane %v552_v63, 1 }
 0x130   : > { %v560_v2 = vrot.slane %v559_v0, 1  ;;  %v554_v3 = vadd.f32 %v553_v1, %v552_v63 }
 0x132   : > { %v561_v4 = vadd.f32 %v560_v2, %v559_v0  ;;  %v562_v5 = vmul.f32 0.125, %v554_v3 }
 0x134   : > { %v563_v6 = vmul.f32 0.125, %v561_v4  ;;  %v564_v7 = vadd.f32 1e-05, %v562_v5 }
 0x136   : > { %v565_v8 = vadd.f32 1e-05, %v563_v6  ;;  %853 = vrsqrt.f32 %v564_v7 }
 0x138   : > { %855 = vrsqrt.f32 %v565_v8 }
 0x143   : > { %v854_v14 = vpop.eup %853 }
 0x145   : > { %v856_v16 = vpop.eup %855 }
 0x146   : > { %v570_v17 = vcombine.low %v854_v14, %v856_v16 }
 0x148   : > { %v577_v18 = vrot.slane %v570_v17, %v576_v15 }
 0x14a   : > { %v584_v20 = vrot.slane %v577_v18, %v576_v15 }
 0x14c   : > { %v586_v24 = vmul.f32 %v584_v20, %v513_v19 }
 0x14e   : > { %v591_v25 = vrot.slane %v586_v24, %v590_v21  ;;  %v595_v26 = vrot.slane %v586_v24, %v594_v22 }
 0x150   : > { %v598_v29 = vmul.f32 %v591_v25, %v536_v53  ;;  %v599_v30 = vmul.f32 %v595_v26, %v537_v54  ;;  %v600_v31 = vmul.f32 0.0, %v591_v25  ;;  %v601_v32 = vmul.f32 0.0, %v595_v26 }
 0x152   : > { %v613_v33 = vadd.f32 %v606_v27, %v598_v29  ;;  %v614_v34 = vadd.f32 %v610_v28, %v599_v30  ;;  %v615_v35 = vadd.f32 %v606_v27, %v600_v31  ;;  %v616_v36 = vadd.f32 %v610_v28, %v601_v32 }
 0x154   : > { %v617_v37 = vmax.f32 %v613_v33, 0.0  ;;  %v618_v38 = vmax.f32 %v614_v34, 0.0  ;;  %v619_v39 = vmax.f32 %v615_v35, 0.0  ;;  %v620_v40 = vmax.f32 %v616_v36, 0.0 }
 0x156   : > { %v783_v41 = vpack.c.bf16 %v618_v38, %v617_v37  ;;  %v784_v42 = vpack.c.bf16 %v620_v40, %v619_v39 }
 0x158   : > { %633 = vst [vmem:[%s1031_s4] sm:$0xff] %v783_v41  ;;  %634 = vst [vmem:[%s1031_s4 + $0x8] sm:$0xff] %v784_v42 }
 0x159 PF: > { %s14_s19 = sadd.s32 1, %s895_s19   ;;  %s1032_s15 = smov %s883_s16 }
 0x15a   : > { %p11_p12 = scmp.ge.s32.totalorder %s14_s19, 11   ;;  %s1033_s16 = smov %s960_s23 }
 0x15b   : > { %s1034_s17 = smov %s891_s18  ;;  %s1035_s18 = smov %s1037_s20 }
 0x15c   :  { %13 = sbr.rel (!%p11_p12) target bundleno = 3 (0x3), region = 129 }

// kernel: resnet_forward.35
= control target key start
LH: loop header
LB: loop body
LE: loop exit
PB: predicated region body
PF: predicated region fallthrough
CT: control target
= control target key end

     0   :  { %v270_v1 = vmov 0   ;;  %v191_v18 = vlaneseq  ;;  %s351_s1 = inlined_call_operand.vmem [shape: bf16[128,256], index: 1, kind: input, shape index: {}]   ;;  %s352_s0 = inlined_call_operand.vmem [shape: bf16[16,128], index: 0, kind: input, shape index: {}]   ;;  %s353_s2 = inlined_call_operand.vmem [shape: f32[1,256], index: 2, kind: input, shape index: {}]   ;;  %s354_s3 = inlined_call_operand.vmem [shape: bf16[16,256], index: 3, kind: output, shape index: {}]  }
   0x1   :  { %v245_v0 = vld [vmem:[%s351_s1 + $0x74] ss:$8 sps:$4 sm:$0xff]   ;;  %163 = vmatprep.mubr.bf16.mxu0 %v270_v1  ;;  %v247_v2 = vld [vmem:[%s351_s1 + $0x70] ss:$8 sps:$4 sm:$0xff]   ;;  %v248_v3 = vld [vmem:[%s351_s1 + $0x64] ss:$8 sps:$4 sm:$0xff]  }
   0x2   :  { %131 = vmatprep.subr.bf16.mxu0 %v245_v0  ;;  %v250_v4 = vld [vmem:[%s351_s1 + $0x60] ss:$8 sps:$4 sm:$0xff]   ;;  %v251_v5 = vld [vmem:[%s351_s1 + $0x54] ss:$8 sps:$4 sm:$0xff]   ;;  %v253_v6 = vld [vmem:[%s351_s1 + $0x50] ss:$8 sps:$4 sm:$0xff]  }
   0x3   :  { %132 = vmatpush1.bf16.msra.mxu0 %v247_v2  ;;  %v254_v7 = vld [vmem:[%s351_s1 + $0x44] ss:$8 sps:$4 sm:$0xff]   ;;  %v256_v8 = vld [vmem:[%s351_s1 + $0x40] ss:$8 sps:$4 sm:$0xff]   ;;  %v257_v9 = vld [vmem:[%s351_s1 + $0x34] ss:$8 sps:$4 sm:$0xff]  }
   0x4   :  { %133 = vmatprep.subr.bf16.mxu0 %v248_v3  ;;  %v259_v10 = vld [vmem:[%s351_s1 + $0x30] ss:$8 sps:$4 sm:$0xff]   ;;  %v260_v11 = vld [vmem:[%s351_s1 + $0x24] ss:$8 sps:$4 sm:$0xff]   ;;  %v262_v12 = vld [vmem:[%s351_s1 + $0x20] ss:$8 sps:$4 sm:$0xff]  }
   0x5   :  { %v263_v13 = vld [vmem:[%s351_s1 + $0x14] ss:$8 sps:$4 sm:$0xff]   ;;  %v265_v14 = vld [vmem:[%s351_s1 + $0x10] ss:$8 sps:$4 sm:$0xff]   ;;  %v266_v15 = vld [vmem:[%s351_s1 + $0x4] ss:$8 sps:$4 sm:$0xff]  }
   0x6   :  { %v268_v16 = vld [vmem:[%s351_s1] ss:$8 sps:$4 sm:$0xff]   ;;  %v192_v19 = vshrl.u32 %v191_v18, 7 }
   0x7   :  { %134 = vmatpush1.bf16.msra.mxu0 %v250_v4  ;;  %v269_v17 = vld [vmem:[%s352_s0] sm:$0xff]  }
   0x8   :  { %135 = vmatprep.subr.bf16.mxu0 %v251_v5  ;;  %v193_v20 = vsub.s32 0, %v192_v19  ;;  %v197_v21 = vsub.s32 1, %v192_v19  ;;  %v189_v22 = vld [vmem:[%s353_s2] sm:$0x3] }
   0xa   :  { %v194_v23 = vrot.slane %v189_v22, %v193_v20  ;;  %v198_v24 = vrot.slane %v189_v22, %v197_v21 }
   0xb   :  { %136 = vmatpush1.bf16.msra.mxu0 %v253_v6 }
   0xc   :  { %137 = vmatprep.subr.bf16.mxu0 %v254_v7 }
   0xf   :  { %138 = vmatpush1.bf16.msra.mxu0 %v256_v8 }
  0x10   :  { %139 = vmatprep.subr.bf16.mxu0 %v257_v9 }
  0x13   :  { %140 = vmatpush1.bf16.msra.mxu0 %v259_v10 }
  0x14   :  { %141 = vmatprep.subr.bf16.mxu0 %v260_v11 }
  0x17   :  { %142 = vmatpush1.bf16.msra.mxu0 %v262_v12 }
  0x18   :  { %143 = vmatprep.subr.bf16.mxu0 %v263_v13 }
  0x1b   :  { %144 = vmatpush1.bf16.msra.mxu0 %v265_v14 }
  0x1c   :  { %145 = vmatprep.subr.bf16.mxu0 %v266_v15 }
  0x1f   :  { %146 = vmatpush1.bf16.msra.mxu0 %v268_v16 }
  0x22   :  { %164 = vmatmul.mubr.bf16.vlgmr.msra.gmra.mxu0 %v269_v17 }
  0xe2   :  { %v165_v25 = vpop.f32.mrf.mxu0 }
  0xe3   :  { %v201_v27 = vadd.f32 %v194_v23, %v165_v25 }
  0xe4   :  { %v167_v26 = vpop.f32.mrf.mxu0 }
  0xe5   :  { %v202_v28 = vadd.f32 %v198_v24, %v167_v26 }
  0xe6   :  { %v169_v29 = vpop.f32.mrf.mxu0 }
  0xe7   :  { %v242_v30 = vpack.c.bf16 %v202_v28, %v201_v27  ;;  %v203_v32 = vadd.f32 %v194_v23, %v169_v29 }
  0xe8   :  { %v171_v31 = vpop.f32.mrf.mxu0 }
  0xe9   :  { %217 = vst [vmem:[%s354_s3] sm:$0xff] %v242_v30  ;;  %v204_v33 = vadd.f32 %v198_v24, %v171_v31 }
  0xeb   :  { %v243_v34 = vpack.c.bf16 %v204_v33, %v203_v32 }
  0xed   :  { %218 = vst [vmem:[%s354_s3 + $0x8] sm:$0xff] %v243_v34 }

// kernel: resnet_forward.36
= control target key start
LH: loop header
LB: loop body
LE: loop exit
PB: predicated region body
PF: predicated region fallthrough
CT: control target
= control target key end

     0   :  { %s1141_s18 = smov 0   ;;  %s1143_s19 = smov 0   ;;  %s1267_s0 = inlined_call_operand.vmem [shape: bf16[16,2304], index: 0, kind: input, shape index: {}]   ;;  %s1268_s1 = inlined_call_operand.vmem [shape: bf16[2304,256], index: 1, kind: input, shape index: {}]   ;;  %s1269_s2 = inlined_call_operand.vmem [shape: f32[1,256], index: 2, kind: input, shape index: {}]   ;;  %s1270_s3 = inlined_call_operand.vmem [shape: f32[1,256], index: 3, kind: input, shape index: {}]   ;;  %s1271_s4 = inlined_call_operand.vmem [shape: bf16[16,256], index: 4, kind: input, shape index: {}]   ;;  %s1272_s5 = inlined_call_operand.vmem [shape: bf16[16,256], index: 5, kind: output, shape index: {}]  }
   0x1   :  { %s1145_s20 = smov 0   ;;  %s1147_s21 = smov 0  }
   0x2   :  { %s1149_s22 = smov 0  }
   0x3 LB: > { %s24_s23 = sadd.s32 1, %s1103_s21  ;;  %p41_p1 = scmp.ne.s32.totalorder %s1095_s19, %s1091_s18  ;;  %s1107_s22 = sphi %s1149_s22, %s15_s22   ;;  %s1103_s21 = sphi %s1147_s21, %s1276_s21   ;;  %s1099_s20 = sphi %s1145_s20, %s1275_s20   ;;  %s1095_s19 = sphi %s1143_s19, %s1274_s19   ;;  %s1091_s18 = sphi %s1141_s18, %s1273_s18  }
   0x4   : > { %p25_p0 = scmp.ge.s32.totalorder %s24_s23, 9  ;;  %p42_p2 = scmp.eq.s32.totalorder %s1107_s22, 0 }
   0x5   : > { %s34_s25 = sadd.s32 1, %s1095_s19  ;;  %p917_p5 = scmp.ge.s32.totalorder %s1107_s22, 9 }
   0x6   : > { %s1278_s23 = smov (%p25_p0, %s24_s23), 0  ;;  %p43_p3 = por %p42_p2, %p41_p1 }
   0x7   : > { %s31_s24 = ssub.s32 %s1103_s21, %s1278_s23  ;;  %224 = sbr.rel (%p917_p5) target bundleno = 17 (0x11), region = 28 }
   0x8   : > { %p32_p4 = scmp.eq.s32.totalorder %s31_s24, 0 }
   0xa   : > { %s1176_s26 = scalar_select %p32_p4, %s1095_s19, %s34_s25  }
   0xc   : > { %227 = sbr.rel (!%p43_p3) target bundleno = 17 (0x11), region = 32  ;;  %s229_s27 = sand.u32 (%p43_p3), 1, %s1095_s19  }
   0xd   : > { %s968_s28 = sshll.u32 (%p43_p3), %s1103_s21, 3  ;;  %s918_s29 = sshll.u32 (%p43_p3), %s229_s27, 4 }
   0xe   : > { %s234_s7 = scalar_lea.vmem (%p43_p3), %s1267_s0, %s968_s28  ;;  %s231_s8 = scalar_lea.vmem (%p43_p3), [#allocation3], %s918_s29 }
   0xf   : > { %v265_v0 = vld [vmem:[%s234_s7] sm:$0xff] (%p43_p3)  ;;  %v267_v1 = vld [vmem:[%s234_s7 + $0x48] sm:$0xff] (%p43_p3) }
  0x10   : > { %266 = vst [vmem:[%s231_s8] sm:$0xff] (%p43_p3), %v265_v0  ;;  %268 = vst [vmem:[%s231_s8 + $0x8] sm:$0xff] (%p43_p3), %v267_v1 }
  0x11 PF: > { %p921_p6 = scmp.ge.s32.totalorder %s1107_s22, 1  ;;  %p288_p7 = scmp.lt.s32.totalorder %s1107_s22, 10 }
  0x13   : > { %p289_p8 = pnand %p921_p6, %p288_p7 }
  0x14   : > { %s295_s9 = sand.u32 (!%p289_p8), 1, %s1091_s18   ;;  %s923_s10 = sshll.u32 (!%p289_p8), %s1099_s20, 5 }
  0x15   : > { %292 = sbr.rel (%p289_p8) target bundleno = 379 (0x17b), region = 74  ;;  %s1188_s11 = sshll.u32 (!%p289_p8), %s295_s9, 4 }
  0x16   : > { %p348_p9 = scmp.lt.s32.totalorder (!%p289_p8), %s923_s10, 287  ;;  %s297_s16 = scalar_lea.vmem (!%p289_p8), [#allocation3], %s1188_s11 }
  0x17   : > { %p926_p10 = scmp.ne.s32.totalorder (!%p289_p8), %s1099_s20, 0 }
  0x1a   : > { %s1280_s10 = smov (!%p348_p9, %s923_s10), 287  ;;  %383 = sbr.rel (%p926_p10) target bundleno = 34 (0x22), region = 82 }
  0x1b   : > { %s969_s12 = sshll.u32 %s1280_s10, 3 }
  0x1c   : > { %s1193_s15 = scalar_lea.vmem %s1268_s1, %s969_s12 }
  0x1f   : > { %v1109_v2 = vmov 0.0  }
  0x20   : > { %384 = vst [vmem:[#allocation2 + $0x10] sm:$0xff] %v1109_v2  ;;  %385 = vst [vmem:[#allocation2] sm:$0xff] %v1109_v2 }
  0x21   : > { %386 = vst [vmem:[#allocation2 + $0x18] sm:$0xff] %v1109_v2  ;;  %387 = vst [vmem:[#allocation2 + $0x8] sm:$0xff] %v1109_v2 }
  0x22 PF: > { %v1014_v3 = vld [vmem:[%s1193_s15 + $0x74] ss:$8 sps:$4 sm:$0xff]   ;;  %v1016_v4 = vld [vmem:[%s1193_s15 + $0x70] ss:$8 sps:$4 sm:$0xff]   ;;  %v1017_v5 = vld [vmem:[%s1193_s15 + $0x64] ss:$8 sps:$4 sm:$0xff]  }
  0x23   : > { %596 = vmatprep.subr.bf16.mxu0 %v1014_v3  ;;  %v1019_v6 = vld [vmem:[%s1193_s15 + $0x60] ss:$8 sps:$4 sm:$0xff]   ;;  %v1020_v7 = vld [vmem:[%s1193_s15 + $0x54] ss:$8 sps:$4 sm:$0xff]   ;;  %v1022_v8 = vld [vmem:[%s1193_s15 + $0x50] ss:$8 sps:$4 sm:$0xff]  }
  0x24   : > { %597 = vmatpush1.bf16.msra.mxu0 %v1016_v4  ;;  %v1023_v9 = vld [vmem:[%s1193_s15 + $0x44] ss:$8 sps:$4 sm:$0xff]   ;;  %v1025_v10 = vld [vmem:[%s1193_s15 + $0x40] ss:$8 sps:$4 sm:$0xff]   ;;  %v1026_v11 = vld [vmem:[%s1193_s15 + $0x34] ss:$8 sps:$4 sm:$0xff]  }
  0x25   : > { %598 = vmatprep.subr.bf16.mxu0 %v1017_v5  ;;  %v1028_v12 = vld [vmem:[%s1193_s15 + $0x30] ss:$8 sps:$4 sm:$0xff]   ;;  %v1029_v13 = vld [vmem:[%s1193_s15 + $0x24] ss:$8 sps:$4 sm:$0xff]   ;;  %v1031_v14 = vld [vmem:[%s1193_s15 + $0x20] ss:$8 sps:$4 sm:$0xff]  }
  0x26   : > { %v1032_v15 = vld [vmem:[%s1193_s15 + $0x14] ss:$8 sps:$4 sm:$0xff]   ;;  %v1034_v17 = vld [vmem:[%s1193_s15 + $0x10] ss:$8 sps:$4 sm:$0xff]   ;;  %v1035_v18 = vld [vmem:[%s1193_s15 + $0x4] ss:$8 sps:$4 sm:$0xff]  }
  0x27   : > { %v1064_v16 = vld [vmem:[%s297_s16 + $0x4] ss:$8 sps:$4 sm:$0xff]   ;;  %v1037_v19 = vld [vmem:[%s1193_s15] ss:$8 sps:$4 sm:$0xff]   ;;  %v1040_v21 = vld [vmem:[%s1193_s15 + $0xf0] ss:$8 sps:$4 sm:$0xff]  }
  0x28   : > { %599 = vmatpush1.bf16.msra.mxu0 %v1019_v6  ;;  %628 = vmatprep.mubr.bf16.mxu0 %v1064_v16  ;;  %v1038_v20 = vld [vmem:[%s1193_s15 + $0xf4] ss:$8 sps:$4 sm:$0xff]   ;;  %v1041_v22 = vld [vmem:[%s1193_s15 + $0xe4] ss:$8 sps:$4 sm:$0xff]   ;;  %v1043_v23 = vld [vmem:[%s1193_s15 + $0xe0] ss:$8 sps:$4 sm:$0xff]  }
  0x29   : > { %600 = vmatprep.subr.bf16.mxu0 %v1020_v7  ;;  %v1044_v24 = vld [vmem:[%s1193_s15 + $0xd4] ss:$8 sps:$4 sm:$0xff]   ;;  %v1046_v25 = vld [vmem:[%s1193_s15 + $0xd0] ss:$8 sps:$4 sm:$0xff]   ;;  %v1047_v26 = vld [vmem:[%s1193_s15 + $0xc4] ss:$8 sps:$4 sm:$0xff]  }
  0x2a   : > { %v1049_v27 = vld [vmem:[%s1193_s15 + $0xc0] ss:$8 sps:$4 sm:$0xff]   ;;  %v1050_v28 = vld [vmem:[%s1193_s15 + $0xb4] ss:$8 sps:$4 sm:$0xff]   ;;  %v1052_v29 = vld [vmem:[%s1193_s15 + $0xb0] ss:$8 sps:$4 sm:$0xff]  }
  0x2b   : > { %v1053_v30 = vld [vmem:[%s1193_s15 + $0xa4] ss:$8 sps:$4 sm:$0xff]   ;;  %v1055_v31 = vld [vmem:[%s1193_s15 + $0xa0] ss:$8 sps:$4 sm:$0xff]   ;;  %v1056_v32 = vld [vmem:[%s1193_s15 + $0x94] ss:$8 sps:$4 sm:$0xff]  }
  0x2c   : > { %601 = vmatpush1.bf16.msra.mxu0 %v1022_v8  ;;  %v1058_v33 = vld [vmem:[%s1193_s15 + $0x90] ss:$8 sps:$4 sm:$0xff]   ;;  %v1059_v34 = vld [vmem:[%s1193_s15 + $0x84] ss:$8 sps:$4 sm:$0xff]   ;;  %v1061_v35 = vld [vmem:[%s1193_s15 + $0x80] ss:$8 sps:$4 sm:$0xff]  }
  0x2d   : > { %602 = vmatprep.subr.bf16.mxu0 %v1023_v9  ;;  %v1062_v36 = vld [vmem:[%s297_s16] ss:$8 sps:$4 sm:$0xff]   ;;  %p961_p11 = scmp.ne.s32.totalorder %s1099_s20, 8 }
  0x2e   : > { %v388_v37 = vld [vmem:[#allocation2 + $0x10] sm:$0xff]  ;;  %v389_v39 = vld [vmem:[#allocation2] sm:$0xff]  ;;  %v390_v42 = vld [vmem:[#allocation2 + $0x18] sm:$0xff] }
  0x2f   : > { %v391_v45 = vld [vmem:[#allocation2 + $0x8] sm:$0xff] }
  0x30   : > { %603 = vmatpush1.bf16.msra.mxu0 %v1025_v10 }
  0x31   : > { %604 = vmatprep.subr.bf16.mxu0 %v1026_v11 }
  0x34   : > { %605 = vmatpush1.bf16.msra.mxu0 %v1028_v12 }
  0x35   : > { %606 = vmatprep.subr.bf16.mxu0 %v1029_v13 }
  0x38   : > { %607 = vmatpush1.bf16.msra.mxu0 %v1031_v14 }
  0x39   : > { %608 = vmatprep.subr.bf16.mxu0 %v1032_v15 }
  0x3c   : > { %609 = vmatpush1.bf16.msra.mxu0 %v1034_v17 }
  0x3d   : > { %610 = vmatprep.subr.bf16.mxu0 %v1035_v18 }
  0x40   : > { %611 = vmatpush1.bf16.msra.mxu0 %v1037_v19 }
  0x41   : > { %612 = vmatprep.subr.bf16.mxu0 %v1038_v20 }
  0x44   : > { %613 = vmatpush2.bf16.msra.mxu0 %v1040_v21 }
  0x45   : > { %614 = vmatprep.subr.bf16.mxu0 %v1041_v22 }
  0x48   : > { %615 = vmatpush2.bf16.msra.mxu0 %v1043_v23 }
  0x49   : > { %616 = vmatprep.subr.bf16.mxu0 %v1044_v24 }
  0x4c   : > { %617 = vmatpush2.bf16.msra.mxu0 %v1046_v25 }
  0x4d   : > { %618 = vmatprep.subr.bf16.mxu0 %v1047_v26 }
  0x50   : > { %619 = vmatpush2.bf16.msra.mxu0 %v1049_v27 }
  0x51   : > { %620 = vmatprep.subr.bf16.mxu0 %v1050_v28 }
  0x54   : > { %621 = vmatpush2.bf16.msra.mxu0 %v1052_v29 }
  0x55   : > { %622 = vmatprep.subr.bf16.mxu0 %v1053_v30 }
  0x58   : > { %623 = vmatpush2.bf16.msra.mxu0 %v1055_v31 }
  0x59   : > { %624 = vmatprep.subr.bf16.mxu0 %v1056_v32 }
  0x5c   : > { %625 = vmatpush2.bf16.msra.mxu0 %v1058_v33 }
  0x5d   : > { %626 = vmatprep.subr.bf16.mxu0 %v1059_v34 }
  0x60   : > { %627 = vmatpush2.bf16.msra.mxu0 %v1061_v35 }
  0x63   : > { %629 = vmatmul.mubr.bf16.vlgmr.msra.gmra.mxu0 %v1062_v36 }
 0x123   : > { %v630_v38 = vpop.f32.mrf.mxu0 }
 0x124   : > { %v639_v40 = vadd.f32 %v630_v38, %v388_v37 }
 0x125   : > { %v632_v41 = vpop.f32.mrf.mxu0 }
 0x126   : > { %643 = vst [vmem:[#allocation2 + $0x10] sm:$0xff] %v639_v40  ;;  %v640_v43 = vadd.f32 %v632_v41, %v389_v39 }
 0x127   : > { %v634_v44 = vpop.f32.mrf.mxu0 }
 0x128   : > { %644 = vst [vmem:[#allocation2] sm:$0xff] %v640_v43  ;;  %v641_v46 = vadd.f32 %v634_v44, %v390_v42  ;;  %650 = sbr.rel (%p961_p11) target bundleno = 379 (0x17b), region = 86 }
 0x129   : > { %v636_v47 = vpop.f32.mrf.mxu0 }
 0x12a   : > { %645 = vst [vmem:[#allocation2 + $0x18] sm:$0xff] %v641_v46  ;;  %v642_v48 = vadd.f32 %v636_v47, %v391_v45 }
 0x12c   : > { %646 = vst [vmem:[#allocation2 + $0x8] sm:$0xff] %v642_v48 }
 0x12d   : > { %v651_v49 = vld [vmem:[#allocation2 + $0x10] sm:$0xff]  ;;  %v1110_v25 = vmov 1966171168   ;;  %v718_v27 = vlaneseq  ;;  %v655_v35 = vld [vmem:[%s1269_s2] sm:$0x3]  ;;  %v658_v42 = vld [vmem:[%s1271_s4 + $0x8] sm:$0xff] }
 0x12e   : > { %v716_v26 = vunpack.c.l.s4 %v1110_v25  ;;  %v656_v39 = vld [vmem:[%s1270_s3] sm:$0x3] }
 0x12f   : > { %v652_v50 = vld [vmem:[#allocation2] sm:$0xff]  ;;  %v719_v29 = vshrl.u32 %v718_v27, 7 }
 0x130   : > { %v717_v28 = vunpack.c.0.s8 %v716_v26  ;;  %v657_v40 = vld [vmem:[%s1271_s4] sm:$0xff] }
 0x131   : > { %v653_v51 = vld [vmem:[#allocation2 + $0x18] sm:$0xff]  ;;  %v734_v37 = vsub.s32 0, %v719_v29  ;;  %v738_v38 = vsub.s32 1, %v719_v29  ;;  %v761_v47 = vunpack.c.l.bf16 %v657_v40  ;;  %v762_v48 = vunpack.c.h.bf16 %v657_v40 }
 0x132   : > { %v659_v53 = vadd.f32 %v653_v51, %v651_v49  ;;  %v720_v31 = vsub.s32 %v717_v28, %v719_v29 }
 0x133   : > { %v654_v52 = vld [vmem:[#allocation2 + $0x8] sm:$0xff]  ;;  %v750_v45 = vrot.slane %v656_v39, %v734_v37  ;;  %v754_v46 = vrot.slane %v656_v39, %v738_v38 }
 0x134   : > { %v666_v54 = vadd.f32 %v654_v52, %v652_v50  ;;  %v660_v55 = vrot.slane %v659_v53, 4 }
 0x136   : > { %v667_v56 = vrot.slane %v666_v54, 4  ;;  %v661_v57 = vadd.f32 %v660_v55, %v659_v53 }
 0x138   : > { %v668_v58 = vadd.f32 %v667_v56, %v666_v54  ;;  %v662_v59 = vrot.slane %v661_v57, 2 }
 0x13a   : > { %v669_v60 = vrot.slane %v668_v58, 2  ;;  %v663_v61 = vadd.f32 %v662_v59, %v661_v57 }
 0x13c   : > { %v670_v62 = vadd.f32 %v669_v60, %v668_v58  ;;  %v664_v63 = vrot.slane %v663_v61, 1 }
 0x13e   : > { %v671_v0 = vrot.slane %v670_v62, 1  ;;  %v665_v1 = vadd.f32 %v664_v63, %v663_v61 }
 0x140   : > { %v672_v2 = vadd.f32 %v671_v0, %v670_v62  ;;  %v673_v3 = vmul.f32 0.125, %v665_v1 }
 0x142   : > { %v674_v4 = vmul.f32 0.125, %v672_v2  ;;  %v680_v5 = vsub.f32 %v651_v49, %v673_v3  ;;  %v763_v49 = vunpack.c.l.bf16 %v658_v42 }
 0x144   : > { %v681_v6 = vsub.f32 %v652_v50, %v674_v4  ;;  %v688_v7 = vmul.f32 %v680_v5, %v680_v5  ;;  %v764_v50 = vunpack.c.h.bf16 %v658_v42 }
 0x146   : > { %v689_v8 = vmul.f32 %v681_v6, %v681_v6  ;;  %v693_v9 = vrot.slane %v688_v7, 4 }
 0x148   : > { %v700_v10 = vrot.slane %v689_v8, 4  ;;  %v694_v11 = vadd.f32 %v693_v9, %v688_v7 }
 0x14a   : > { %v701_v12 = vadd.f32 %v700_v10, %v689_v8  ;;  %v695_v13 = vrot.slane %v694_v11, 2 }
 0x14c   : > { %v702_v14 = vrot.slane %v701_v12, 2  ;;  %v696_v15 = vadd.f32 %v695_v13, %v694_v11 }
 0x14e   : > { %v703_v16 = vadd.f32 %v702_v14, %v701_v12  ;;  %v697_v17 = vrot.slane %v696_v15, 1 }
 0x150   : > { %v704_v18 = vrot.slane %v703_v16, 1  ;;  %v698_v19 = vadd.f32 %v697_v17, %v696_v15 }
 0x152   : > { %v705_v20 = vadd.f32 %v704_v18, %v703_v16  ;;  %v706_v21 = vmul.f32 0.125, %v698_v19 }
 0x154   : > { %v707_v22 = vmul.f32 0.125, %v705_v20  ;;  %v708_v23 = vadd.f32 1e-05, %v706_v21 }
 0x156   : > { %v709_v24 = vadd.f32 1e-05, %v707_v22  ;;  %1065 = vrsqrt.f32 %v708_v23 }
 0x158   : > { %1067 = vrsqrt.f32 %v709_v24 }
 0x163   : > { %v1066_v30 = vpop.eup %1065 }
 0x165   : > { %v1068_v32 = vpop.eup %1067 }
 0x166   : > { %v714_v33 = vcombine.low %v1066_v30, %v1068_v32 }
 0x168   : > { %v721_v34 = vrot.slane %v714_v33, %v720_v31 }
 0x16a   : > { %v728_v36 = vrot.slane %v721_v34, %v720_v31 }
 0x16c   : > { %v730_v41 = vmul.f32 %v728_v36, %v655_v35 }
 0x16e   : > { %v735_v43 = vrot.slane %v730_v41, %v734_v37  ;;  %v739_v44 = vrot.slane %v730_v41, %v738_v38 }
 0x170   : > { %v742_v51 = vmul.f32 %v735_v43, %v680_v5  ;;  %v743_v52 = vmul.f32 %v739_v44, %v681_v6  ;;  %v744_v53 = vmul.f32 0.0, %v735_v43  ;;  %v745_v54 = vmul.f32 0.0, %v739_v44 }
 0x172   : > { %v757_v55 = vadd.f32 %v750_v45, %v742_v51  ;;  %v758_v56 = vadd.f32 %v754_v46, %v743_v52  ;;  %v759_v57 = vadd.f32 %v750_v45, %v744_v53  ;;  %v760_v58 = vadd.f32 %v754_v46, %v745_v54 }
 0x174   : > { %v765_v59 = vadd.f32 %v761_v47, %v757_v55  ;;  %v766_v60 = vadd.f32 %v762_v48, %v758_v56  ;;  %v767_v61 = vadd.f32 %v763_v49, %v759_v57  ;;  %v768_v62 = vadd.f32 %v764_v50, %v760_v58 }
 0x176   : > { %v769_v63 = vmax.f32 %v765_v59, 0.0  ;;  %v770_v0 = vmax.f32 %v766_v60, 0.0  ;;  %v771_v1 = vmax.f32 %v767_v61, 0.0  ;;  %v772_v2 = vmax.f32 %v768_v62, 0.0 }
 0x178   : > { %v970_v3 = vpack.c.bf16 %v770_v0, %v769_v63  ;;  %v971_v4 = vpack.c.bf16 %v772_v2, %v771_v1 }
 0x17a   : > { %785 = vst [vmem:[%s1272_s5] sm:$0xff] %v970_v3  ;;  %786 = vst [vmem:[%s1272_s5 + $0x8] sm:$0xff] %v971_v4 }
 0x17b PF: > { %s15_s22 = sadd.s32 1, %s1107_s22   ;;  %s1273_s18 = smov %s1095_s19 }
 0x17c   : > { %p12_p12 = scmp.ge.s32.totalorder %s15_s22, 11   ;;  %s1274_s19 = smov %s1176_s26 }
 0x17d   : > { %s1275_s20 = smov %s1103_s21  ;;  %s1276_s21 = smov %s1278_s23 }
 0x17e   :  { %14 = sbr.rel (!%p12_p12) target bundleno = 3 (0x3), region = 133 }

// kernel: resnet_forward.37
= control target key start
LH: loop header
LB: loop body
LE: loop exit
PB: predicated region body
PF: predicated region fallthrough
CT: control target
= control target key end

     0   :  { %s1061_s15 = smov 0   ;;  %s1063_s16 = smov 0   ;;  %s1181_s0 = inlined_call_operand.vmem [shape: bf16[16,2304], index: 0, kind: input, shape index: {}]   ;;  %s1182_s1 = inlined_call_operand.vmem [shape: bf16[2304,256], index: 1, kind: input, shape index: {}]   ;;  %s1183_s2 = inlined_call_operand.vmem [shape: f32[1,256], index: 2, kind: input, shape index: {}]   ;;  %s1184_s3 = inlined_call_operand.vmem [shape: f32[1,256], index: 3, kind: input, shape index: {}]   ;;  %s1185_s4 = inlined_call_operand.vmem [shape: bf16[16,256], index: 4, kind: output, shape index: {}]  }
   0x1   :  { %s1065_s17 = smov 0   ;;  %s1067_s18 = smov 0  }
   0x2   :  { %s1069_s19 = smov 0  }
   0x3 LB: > { %s23_s20 = sadd.s32 1, %s1028_s18  ;;  %p40_p1 = scmp.ne.s32.totalorder %s1020_s16, %s1016_s15  ;;  %s1032_s19 = sphi %s1069_s19, %s14_s19   ;;  %s1028_s18 = sphi %s1067_s18, %s1189_s18   ;;  %s1024_s17 = sphi %s1065_s17, %s1188_s17   ;;  %s1020_s16 = sphi %s1063_s16, %s1187_s16   ;;  %s1016_s15 = sphi %s1061_s15, %s1186_s15  }
   0x4   : > { %p24_p0 = scmp.ge.s32.totalorder %s23_s20, 9  ;;  %p41_p2 = scmp.eq.s32.totalorder %s1032_s19, 0 }
   0x5   : > { %s33_s22 = sadd.s32 1, %s1020_s16  ;;  %p842_p5 = scmp.ge.s32.totalorder %s1032_s19, 9 }
   0x6   : > { %s1191_s20 = smov (%p24_p0, %s23_s20), 0  ;;  %p42_p3 = por %p41_p2, %p40_p1 }
   0x7   : > { %s30_s21 = ssub.s32 %s1028_s18, %s1191_s20  ;;  %188 = sbr.rel (%p842_p5) target bundleno = 17 (0x11), region = 24 }
   0x8   : > { %p31_p4 = scmp.eq.s32.totalorder %s30_s21, 0 }
   0xa   : > { %s1096_s23 = scalar_select %p31_p4, %s1020_s16, %s33_s22  }
   0xc   : > { %191 = sbr.rel (!%p42_p3) target bundleno = 17 (0x11), region = 28  ;;  %s193_s24 = sand.u32 (%p42_p3), 1, %s1020_s16  }
   0xd   : > { %s893_s25 = sshll.u32 (%p42_p3), %s1028_s18, 3  ;;  %s843_s26 = sshll.u32 (%p42_p3), %s193_s24, 4 }
   0xe   : > { %s198_s29 = scalar_lea.vmem (%p42_p3), %s1181_s0, %s893_s25  ;;  %s195_s30 = scalar_lea.vmem (%p42_p3), [#allocation3], %s843_s26 }
   0xf   : > { %v229_v0 = vld [vmem:[%s198_s29] sm:$0xff] (%p42_p3)  ;;  %v231_v1 = vld [vmem:[%s198_s29 + $0x48] sm:$0xff] (%p42_p3) }
  0x10   : > { %230 = vst [vmem:[%s195_s30] sm:$0xff] (%p42_p3), %v229_v0  ;;  %232 = vst [vmem:[%s195_s30 + $0x8] sm:$0xff] (%p42_p3), %v231_v1 }
  0x11 PF: > { %p846_p6 = scmp.ge.s32.totalorder %s1032_s19, 1  ;;  %p252_p7 = scmp.lt.s32.totalorder %s1032_s19, 10 }
  0x13   : > { %p253_p8 = pnand %p846_p6, %p252_p7 }
  0x14   : > { %s259_s5 = sand.u32 (!%p253_p8), 1, %s1016_s15   ;;  %s848_s6 = sshll.u32 (!%p253_p8), %s1024_s17, 5 }
  0x15   : > { %256 = sbr.rel (%p253_p8) target bundleno = 377 (0x179), region = 70  ;;  %s1108_s7 = sshll.u32 (!%p253_p8), %s259_s5, 4 }
  0x16   : > { %p305_p9 = scmp.lt.s32.totalorder (!%p253_p8), %s848_s6, 287  ;;  %s261_s12 = scalar_lea.vmem (!%p253_p8), [#allocation3], %s1108_s7 }
  0x17   : > { %p851_p10 = scmp.ne.s32.totalorder (!%p253_p8), %s1024_s17, 0 }
  0x1a   : > { %s1193_s6 = smov (!%p305_p9, %s848_s6), 287  ;;  %334 = sbr.rel (%p851_p10) target bundleno = 34 (0x22), region = 78 }
  0x1b   : > { %s894_s8 = sshll.u32 %s1193_s6, 3 }
  0x1c   : > { %s1113_s11 = scalar_lea.vmem %s1182_s1, %s894_s8 }
  0x1f   : > { %v1034_v2 = vmov 0.0  }
  0x20   : > { %335 = vst [vmem:[#allocation2 + $0x10] sm:$0xff] %v1034_v2  ;;  %336 = vst [vmem:[#allocation2] sm:$0xff] %v1034_v2 }
  0x21   : > { %337 = vst [vmem:[#allocation2 + $0x18] sm:$0xff] %v1034_v2  ;;  %338 = vst [vmem:[#allocation2 + $0x8] sm:$0xff] %v1034_v2 }
  0x22 PF: > { %v939_v3 = vld [vmem:[%s1113_s11 + $0x74] ss:$8 sps:$4 sm:$0xff]   ;;  %v941_v4 = vld [vmem:[%s1113_s11 + $0x70] ss:$8 sps:$4 sm:$0xff]   ;;  %v942_v5 = vld [vmem:[%s1113_s11 + $0x64] ss:$8 sps:$4 sm:$0xff]  }
  0x23   : > { %547 = vmatprep.subr.bf16.mxu0 %v939_v3  ;;  %v944_v6 = vld [vmem:[%s1113_s11 + $0x60] ss:$8 sps:$4 sm:$0xff]   ;;  %v945_v7 = vld [vmem:[%s1113_s11 + $0x54] ss:$8 sps:$4 sm:$0xff]   ;;  %v947_v8 = vld [vmem:[%s1113_s11 + $0x50] ss:$8 sps:$4 sm:$0xff]  }
  0x24   : > { %548 = vmatpush1.bf16.msra.mxu0 %v941_v4  ;;  %v948_v9 = vld [vmem:[%s1113_s11 + $0x44] ss:$8 sps:$4 sm:$0xff]   ;;  %v950_v10 = vld [vmem:[%s1113_s11 + $0x40] ss:$8 sps:$4 sm:$0xff]   ;;  %v951_v11 = vld [vmem:[%s1113_s11 + $0x34] ss:$8 sps:$4 sm:$0xff]  }
  0x25   : > { %549 = vmatprep.subr.bf16.mxu0 %v942_v5  ;;  %v953_v12 = vld [vmem:[%s1113_s11 + $0x30] ss:$8 sps:$4 sm:$0xff]   ;;  %v954_v13 = vld [vmem:[%s1113_s11 + $0x24] ss:$8 sps:$4 sm:$0xff]   ;;  %v956_v14 = vld [vmem:[%s1113_s11 + $0x20] ss:$8 sps:$4 sm:$0xff]  }
  0x26   : > { %v957_v15 = vld [vmem:[%s1113_s11 + $0x14] ss:$8 sps:$4 sm:$0xff]   ;;  %v959_v17 = vld [vmem:[%s1113_s11 + $0x10] ss:$8 sps:$4 sm:$0xff]   ;;  %v960_v18 = vld [vmem:[%s1113_s11 + $0x4] ss:$8 sps:$4 sm:$0xff]  }
  0x27   : > { %v989_v16 = vld [vmem:[%s261_s12 + $0x4] ss:$8 sps:$4 sm:$0xff]   ;;  %v962_v19 = vld [vmem:[%s1113_s11] ss:$8 sps:$4 sm:$0xff]   ;;  %v965_v21 = vld [vmem:[%s1113_s11 + $0xf0] ss:$8 sps:$4 sm:$0xff]  }
  0x28   : > { %550 = vmatpush1.bf16.msra.mxu0 %v944_v6  ;;  %579 = vmatprep.mubr.bf16.mxu0 %v989_v16  ;;  %v963_v20 = vld [vmem:[%s1113_s11 + $0xf4] ss:$8 sps:$4 sm:$0xff]   ;;  %v966_v22 = vld [vmem:[%s1113_s11 + $0xe4] ss:$8 sps:$4 sm:$0xff]   ;;  %v968_v23 = vld [vmem:[%s1113_s11 + $0xe0] ss:$8 sps:$4 sm:$0xff]  }
  0x29   : > { %551 = vmatprep.subr.bf16.mxu0 %v945_v7  ;;  %v969_v24 = vld [vmem:[%s1113_s11 + $0xd4] ss:$8 sps:$4 sm:$0xff]   ;;  %v971_v25 = vld [vmem:[%s1113_s11 + $0xd0] ss:$8 sps:$4 sm:$0xff]   ;;  %v972_v26 = vld [vmem:[%s1113_s11 + $0xc4] ss:$8 sps:$4 sm:$0xff]  }
  0x2a   : > { %v974_v27 = vld [vmem:[%s1113_s11 + $0xc0] ss:$8 sps:$4 sm:$0xff]   ;;  %v975_v28 = vld [vmem:[%s1113_s11 + $0xb4] ss:$8 sps:$4 sm:$0xff]   ;;  %v977_v29 = vld [vmem:[%s1113_s11 + $0xb0] ss:$8 sps:$4 sm:$0xff]  }
  0x2b   : > { %v978_v30 = vld [vmem:[%s1113_s11 + $0xa4] ss:$8 sps:$4 sm:$0xff]   ;;  %v980_v31 = vld [vmem:[%s1113_s11 + $0xa0] ss:$8 sps:$4 sm:$0xff]   ;;  %v981_v32 = vld [vmem:[%s1113_s11 + $0x94] ss:$8 sps:$4 sm:$0xff]  }
  0x2c   : > { %552 = vmatpush1.bf16.msra.mxu0 %v947_v8  ;;  %v983_v33 = vld [vmem:[%s1113_s11 + $0x90] ss:$8 sps:$4 sm:$0xff]   ;;  %v984_v34 = vld [vmem:[%s1113_s11 + $0x84] ss:$8 sps:$4 sm:$0xff]   ;;  %v986_v35 = vld [vmem:[%s1113_s11 + $0x80] ss:$8 sps:$4 sm:$0xff]  }
  0x2d   : > { %553 = vmatprep.subr.bf16.mxu0 %v948_v9  ;;  %v987_v36 = vld [vmem:[%s261_s12] ss:$8 sps:$4 sm:$0xff]   ;;  %p886_p11 = scmp.ne.s32.totalorder %s1024_s17, 8 }
  0x2e   : > { %v339_v37 = vld [vmem:[#allocation2 + $0x10] sm:$0xff]  ;;  %v340_v39 = vld [vmem:[#allocation2] sm:$0xff]  ;;  %v341_v42 = vld [vmem:[#allocation2 + $0x18] sm:$0xff] }
  0x2f   : > { %v342_v45 = vld [vmem:[#allocation2 + $0x8] sm:$0xff] }
  0x30   : > { %554 = vmatpush1.bf16.msra.mxu0 %v950_v10 }
  0x31   : > { %555 = vmatprep.subr.bf16.mxu0 %v951_v11 }
  0x34   : > { %556 = vmatpush1.bf16.msra.mxu0 %v953_v12 }
  0x35   : > { %557 = vmatprep.subr.bf16.mxu0 %v954_v13 }
  0x38   : > { %558 = vmatpush1.bf16.msra.mxu0 %v956_v14 }
  0x39   : > { %559 = vmatprep.subr.bf16.mxu0 %v957_v15 }
  0x3c   : > { %560 = vmatpush1.bf16.msra.mxu0 %v959_v17 }
  0x3d   : > { %561 = vmatprep.subr.bf16.mxu0 %v960_v18 }
  0x40   : > { %562 = vmatpush1.bf16.msra.mxu0 %v962_v19 }
  0x41   : > { %563 = vmatprep.subr.bf16.mxu0 %v963_v20 }
  0x44   : > { %564 = vmatpush2.bf16.msra.mxu0 %v965_v21 }
  0x45   : > { %565 = vmatprep.subr.bf16.mxu0 %v966_v22 }
  0x48   : > { %566 = vmatpush2.bf16.msra.mxu0 %v968_v23 }
  0x49   : > { %567 = vmatprep.subr.bf16.mxu0 %v969_v24 }
  0x4c   : > { %568 = vmatpush2.bf16.msra.mxu0 %v971_v25 }
  0x4d   : > { %569 = vmatprep.subr.bf16.mxu0 %v972_v26 }
  0x50   : > { %570 = vmatpush2.bf16.msra.mxu0 %v974_v27 }
  0x51   : > { %571 = vmatprep.subr.bf16.mxu0 %v975_v28 }
  0x54   : > { %572 = vmatpush2.bf16.msra.mxu0 %v977_v29 }
  0x55   : > { %573 = vmatprep.subr.bf16.mxu0 %v978_v30 }
  0x58   : > { %574 = vmatpush2.bf16.msra.mxu0 %v980_v31 }
  0x59   : > { %575 = vmatprep.subr.bf16.mxu0 %v981_v32 }
  0x5c   : > { %576 = vmatpush2.bf16.msra.mxu0 %v983_v33 }
  0x5d   : > { %577 = vmatprep.subr.bf16.mxu0 %v984_v34 }
  0x60   : > { %578 = vmatpush2.bf16.msra.mxu0 %v986_v35 }
  0x63   : > { %580 = vmatmul.mubr.bf16.vlgmr.msra.gmra.mxu0 %v987_v36 }
 0x123   : > { %v581_v38 = vpop.f32.mrf.mxu0 }
 0x124   : > { %v590_v40 = vadd.f32 %v581_v38, %v339_v37 }
 0x125   : > { %v583_v41 = vpop.f32.mrf.mxu0 }
 0x126   : > { %594 = vst [vmem:[#allocation2 + $0x10] sm:$0xff] %v590_v40  ;;  %v591_v43 = vadd.f32 %v583_v41, %v340_v39 }
 0x127   : > { %v585_v44 = vpop.f32.mrf.mxu0 }
 0x128   : > { %595 = vst [vmem:[#allocation2] sm:$0xff] %v591_v43  ;;  %v592_v46 = vadd.f32 %v585_v44, %v341_v42  ;;  %601 = sbr.rel (%p886_p11) target bundleno = 377 (0x179), region = 82 }
 0x129   : > { %v587_v47 = vpop.f32.mrf.mxu0 }
 0x12a   : > { %596 = vst [vmem:[#allocation2 + $0x18] sm:$0xff] %v592_v46  ;;  %v593_v48 = vadd.f32 %v587_v47, %v342_v45 }
 0x12c   : > { %597 = vst [vmem:[#allocation2 + $0x8] sm:$0xff] %v593_v48 }
 0x12d   : > { %v602_v49 = vld [vmem:[#allocation2 + $0x10] sm:$0xff]  ;;  %v1035_v25 = vmov 1966171168   ;;  %v667_v27 = vlaneseq  ;;  %v606_v35 = vld [vmem:[%s1183_s2] sm:$0x3] }
 0x12e   : > { %v665_v26 = vunpack.c.l.s4 %v1035_v25  ;;  %v607_v39 = vld [vmem:[%s1184_s3] sm:$0x3] }
 0x12f   : > { %v603_v50 = vld [vmem:[#allocation2] sm:$0xff]  ;;  %v668_v29 = vshrl.u32 %v667_v27, 7 }
 0x130   : > { %v666_v28 = vunpack.c.0.s8 %v665_v26 }
 0x131   : > { %v604_v51 = vld [vmem:[#allocation2 + $0x18] sm:$0xff]  ;;  %v683_v37 = vsub.s32 0, %v668_v29  ;;  %v687_v38 = vsub.s32 1, %v668_v29 }
 0x132   : > { %v608_v53 = vadd.f32 %v604_v51, %v602_v49  ;;  %v669_v31 = vsub.s32 %v666_v28, %v668_v29 }
 0x133   : > { %v605_v52 = vld [vmem:[#allocation2 + $0x8] sm:$0xff]  ;;  %v699_v43 = vrot.slane %v607_v39, %v683_v37  ;;  %v703_v44 = vrot.slane %v607_v39, %v687_v38 }
 0x134   : > { %v615_v54 = vadd.f32 %v605_v52, %v603_v50  ;;  %v609_v55 = vrot.slane %v608_v53, 4 }
 0x136   : > { %v616_v56 = vrot.slane %v615_v54, 4  ;;  %v610_v57 = vadd.f32 %v609_v55, %v608_v53 }
 0x138   : > { %v617_v58 = vadd.f32 %v616_v56, %v615_v54  ;;  %v611_v59 = vrot.slane %v610_v57, 2 }
 0x13a   : > { %v618_v60 = vrot.slane %v617_v58, 2  ;;  %v612_v61 = vadd.f32 %v611_v59, %v610_v57 }
 0x13c   : > { %v619_v62 = vadd.f32 %v618_v60, %v617_v58  ;;  %v613_v63 = vrot.slane %v612_v61, 1 }
 0x13e   : > { %v620_v0 = vrot.slane %v619_v62, 1  ;;  %v614_v1 = vadd.f32 %v613_v63, %v612_v61 }
 0x140   : > { %v621_v2 = vadd.f32 %v620_v0, %v619_v62  ;;  %v622_v3 = vmul.f32 0.125, %v614_v1 }
 0x142   : > { %v623_v4 = vmul.f32 0.125, %v621_v2  ;;  %v629_v5 = vsub.f32 %v602_v49, %v622_v3 }
 0x144   : > { %v630_v6 = vsub.f32 %v603_v50, %v623_v4  ;;  %v637_v7 = vmul.f32 %v629_v5, %v629_v5 }
 0x146   : > { %v638_v8 = vmul.f32 %v630_v6, %v630_v6  ;;  %v642_v9 = vrot.slane %v637_v7, 4 }
 0x148   : > { %v649_v10 = vrot.slane %v638_v8, 4  ;;  %v643_v11 = vadd.f32 %v642_v9, %v637_v7 }
 0x14a   : > { %v650_v12 = vadd.f32 %v649_v10, %v638_v8  ;;  %v644_v13 = vrot.slane %v643_v11, 2 }
 0x14c   : > { %v651_v14 = vrot.slane %v650_v12, 2  ;;  %v645_v15 = vadd.f32 %v644_v13, %v643_v11 }
 0x14e   : > { %v652_v16 = vadd.f32 %v651_v14, %v650_v12  ;;  %v646_v17 = vrot.slane %v645_v15, 1 }
 0x150   : > { %v653_v18 = vrot.slane %v652_v16, 1  ;;  %v647_v19 = vadd.f32 %v646_v17, %v645_v15 }
 0x152   : > { %v654_v20 = vadd.f32 %v653_v18, %v652_v16  ;;  %v655_v21 = vmul.f32 0.125, %v647_v19 }
 0x154   : > { %v656_v22 = vmul.f32 0.125, %v654_v20  ;;  %v657_v23 = vadd.f32 1e-05, %v655_v21 }
 0x156   : > { %v658_v24 = vadd.f32 1e-05, %v656_v22  ;;  %990 = vrsqrt.f32 %v657_v23 }
 0x158   : > { %992 = vrsqrt.f32 %v658_v24 }
 0x163   : > { %v991_v30 = vpop.eup %990 }
 0x165   : > { %v993_v32 = vpop.eup %992 }
 0x166   : > { %v663_v33 = vcombine.low %v991_v30, %v993_v32 }
 0x168   : > { %v670_v34 = vrot.slane %v663_v33, %v669_v31 }
 0x16a   : > { %v677_v36 = vrot.slane %v670_v34, %v669_v31 }
 0x16c   : > { %v679_v40 = vmul.f32 %v677_v36, %v606_v35 }
 0x16e   : > { %v684_v41 = vrot.slane %v679_v40, %v683_v37  ;;  %v688_v42 = vrot.slane %v679_v40, %v687_v38 }
 0x170   : > { %v691_v45 = vmul.f32 %v684_v41, %v629_v5  ;;  %v692_v46 = vmul.f32 %v688_v42, %v630_v6  ;;  %v693_v47 = vmul.f32 0.0, %v684_v41  ;;  %v694_v48 = vmul.f32 0.0, %v688_v42 }
 0x172   : > { %v706_v49 = vadd.f32 %v699_v43, %v691_v45  ;;  %v707_v50 = vadd.f32 %v703_v44, %v692_v46  ;;  %v708_v51 = vadd.f32 %v699_v43, %v693_v47  ;;  %v709_v52 = vadd.f32 %v703_v44, %v694_v48 }
 0x174   : > { %v710_v53 = vmax.f32 %v706_v49, 0.0  ;;  %v711_v54 = vmax.f32 %v707_v50, 0.0  ;;  %v712_v55 = vmax.f32 %v708_v51, 0.0  ;;  %v713_v56 = vmax.f32 %v709_v52, 0.0 }
 0x176   : > { %v895_v57 = vpack.c.bf16 %v711_v54, %v710_v53  ;;  %v896_v58 = vpack.c.bf16 %v713_v56, %v712_v55 }
 0x178   : > { %726 = vst [vmem:[%s1185_s4] sm:$0xff] %v895_v57  ;;  %727 = vst [vmem:[%s1185_s4 + $0x8] sm:$0xff] %v896_v58 }
 0x179 PF: > { %s14_s19 = sadd.s32 1, %s1032_s19   ;;  %s1186_s15 = smov %s1020_s16 }
 0x17a   : > { %p11_p12 = scmp.ge.s32.totalorder %s14_s19, 11   ;;  %s1187_s16 = smov %s1096_s23 }
 0x17b   : > { %s1188_s17 = smov %s1028_s18  ;;  %s1189_s18 = smov %s1191_s20 }
 0x17c   :  { %13 = sbr.rel (!%p11_p12) target bundleno = 3 (0x3), region = 126 }

// kernel: resnet_forward.39
= control target key start
LH: loop header
LB: loop body
LE: loop exit
PB: predicated region body
PF: predicated region fallthrough
CT: control target
= control target key end

     0   :  { %s1348_s15 = smov 0   ;;  %s1350_s16 = smov 0   ;;  %s1644_s0 = inlined_call_operand.vmem [shape: bf16[16,2304], index: 0, kind: input, shape index: {}]   ;;  %s1645_s1 = inlined_call_operand.vmem [shape: bf16[2304,512], index: 1, kind: input, shape index: {}]   ;;  %s1646_s2 = inlined_call_operand.vmem [shape: f32[1,512], index: 2, kind: input, shape index: {}]   ;;  %s1647_s3 = inlined_call_operand.vmem [shape: f32[1,512], index: 3, kind: input, shape index: {}]   ;;  %s1648_s4 = inlined_call_operand.vmem [shape: bf16[16,512], index: 4, kind: output, shape index: {}]  }
   0x1   :  { %s1352_s17 = smov 0   ;;  %s1354_s18 = smov 0  }
   0x2   :  { %s1356_s19 = smov 0   ;;  %s1358_s20 = smov 0  }
   0x3   :  { %s1360_s21 = smov 0   ;;  %s1362_s22 = smov 0  }
   0x4   :  { %s1364_s23 = smov 0   ;;  %s1366_s24 = smov 0  }
   0x5   :  { %s1368_s25 = smov 0  }
   0x6 LB: > { %1652 = sst [smem:[#allocation6_spill]] %s1299_s20  ;;  %s1022_s26 = sadd.s32 4294967295, %s1319_s25   ;;  %s1319_s25 = sphi %s1368_s25, %s14_s25   ;;  %s1315_s24 = sphi %s1366_s24, %s1670_s24   ;;  %s1311_s23 = sphi %s1364_s23, %s1669_s23   ;;  %s1307_s22 = sphi %s1362_s22, %s1668_s22   ;;  %s1303_s21 = sphi %s1360_s21, %s1667_s21   ;;  %s1299_s20 = sphi %s1358_s20, %s1660_s20   ;;  %s1295_s19 = sphi %s1356_s19, %s1659_s19   ;;  %s1291_s18 = sphi %s1354_s18, %s1666_s18   ;;  %s1287_s17 = sphi %s1352_s17, %s1665_s17   ;;  %s1283_s16 = sphi %s1350_s16, %s1664_s16   ;;  %s1279_s15 = sphi %s1348_s15, %s1663_s15  }
   0x7   : > { %s23_s27 = sadd.s32 1, %s1311_s23  ;;  %s26_s28 = sadd.s32 1, %s1315_s24 }
   0x8   : > { %p24_p0 = scmp.ge.s32.totalorder %s23_s27, 9  ;;  %s33_s29 = sadd.s32 1, %s1299_s20 }
   0x9   : > { %p40_p1 = scmp.ne.s32.totalorder %s1299_s20, %s1295_s19  ;;  %p41_p2 = scmp.eq.s32.totalorder %s1319_s25, 0 }
   0xa   : > { %s1672_s27 = smov (%p24_p0, %s23_s27), 0  ;;  %s1674_s28 = smov (!%p24_p0, %s26_s28), %s1315_s24 }
   0xb   : > { %1653 = sst [smem:[#allocation7_spill]] %s1672_s27  ;;  %s30_s30 = ssub.s32 %s1311_s23, %s1672_s27 }
   0xc   : > { %p28_p3 = scmp.ge.s32.totalorder %s1674_s28, 2  ;;  %p31_p4 = scmp.eq.s32.totalorder %s30_s30, 0 }
   0xd   : > { %p1415_p5 = por %p41_p2, %p40_p1  ;;  %s61_s6 = sadd.s32 1, %s1291_s18 }
   0xe   : > { %s1676_s28 = smov (%p28_p3, %s1674_s28), 0  ;;  %p68_p6 = scmp.ne.s32.totalorder %s1291_s18, %s1287_s17 }
   0xf   : > { %1655 = sst [smem:[#allocation8_spill]] %s1676_s28  ;;  %s57_s8 = ssub.s32 %s1315_s24, %s1676_s28 }
  0x10   : > { %s1423_s7 = scalar_select %p31_p4, %s1299_s20, %s33_s29  }
  0x11   : > { %s58_s9 = sor.u32 %s57_s8, %s30_s30  ;;  %p137_p7 = scmp.eq.s32.totalorder %s57_s8, 0 }
  0x12   : > { %1656 = sst [smem:[#allocation9_spill]] %s1423_s7  ;;  %p59_p8 = scmp.eq.s32.totalorder %s58_s9, 0 }
  0x13   : > { %p1429_p9 = por %p68_p6, %p41_p2  ;;  %s139_s11 = sadd.s32 1, %s1283_s16 }
  0x14   : > { %p149_p10 = scmp.ne.s32.totalorder %s1283_s16, %s1279_s15  ;;  %p150_p11 = scmp.eq.s32.totalorder %s1022_s26, 17 }
  0x15   : > { %s1437_s12 = scalar_select %p59_p8, %s1291_s18, %s61_s6  }
  0x16   : > { %s1440_s13 = scalar_select %p137_p7, %s1283_s16, %s139_s11  }
  0x17   : > { %p1442_p12 = por %p150_p11, %p149_p10  ;;  %p1025_p13 = scmp.ge.s32.totalorder %s1319_s25, 18 }
  0x19   : > { %172 = sbr.rel (%p1025_p13) target bundleno = 58 (0x3a), region = 16 }
  0x1e   : > { %175 = sbr.rel (!%p1415_p5) target bundleno = 35 (0x23), region = 20  ;;  %s177_s29 = sand.u32 (%p1415_p5), 1, %s1299_s20  }
  0x1f   : > { %s1083_s30 = sshll.u32 (%p1415_p5), %s1311_s23, 3  ;;  %s1026_s8 = sshll.u32 (%p1415_p5), %s177_s29, 4 }
  0x20   : > { %s182_s11 = scalar_lea.vmem (%p1415_p5), %s1644_s0, %s1083_s30  ;;  %s179_s26 = scalar_lea.vmem (%p1415_p5), [#allocation3], %s1026_s8 }
  0x21   : > { %v213_v0 = vld [vmem:[%s182_s11] sm:$0xff] (%p1415_p5)  ;;  %v215_v1 = vld [vmem:[%s182_s11 + $0x48] sm:$0xff] (%p1415_p5) }
  0x22   : > { %214 = vst [vmem:[%s179_s26] sm:$0xff] (%p1415_p5), %v213_v0  ;;  %216 = vst [vmem:[%s179_s26 + $0x8] sm:$0xff] (%p1415_p5), %v215_v1 }
  0x23 PF: > { %222 = sbr.rel (!%p1429_p9) target bundleno = 58 (0x3a), region = 58  ;;  %s224_s5 = sand.u32 (%p1429_p9), 1, %s1291_s18  }
  0x24   : > { %s1031_s28 = sshll.u32 (%p1429_p9), %s1315_s24, 1  ;;  %s1029_s27 = sshll.u32 (%p1429_p9), %s224_s5, 8 }
  0x25   : > { %s1084_s29 = sshll.u32 (%p1429_p9), %s1311_s23, 7  ;;  %s1467_s10 = scalar_lea.vmem (%p1429_p9), [#allocation4], %s1029_s27 }
  0x26   : > { %s230_s7 = sadd.s32 (%p1429_p9), %s1084_s29, %s1031_s28 }
  0x27   : > { %s1033_s20 = sshll.u32 (%p1429_p9), %s230_s7, 2 }
  0x28   : > { %s1462_s9 = scalar_lea.vmem %s1645_s1, %s1033_s20 }
  0x29   : > { %v323_v2 = vld [vmem:[%s1462_s9] sm:$0xff]  ;;  %v325_v3 = vld [vmem:[%s1462_s9 + $0x10] sm:$0xff] }
  0x2a   : > { %v327_v4 = vld [vmem:[%s1462_s9 + $0x20] sm:$0xff]  ;;  %324 = vst [vmem:[%s1467_s10] sm:$0xff] %v323_v2  ;;  %326 = vst [vmem:[%s1467_s10 + $0x8] sm:$0xff] %v325_v3  ;;  %v329_v5 = vld [vmem:[%s1462_s9 + $0x30] sm:$0xff] }
  0x2b   : > { %328 = vst [vmem:[%s1467_s10 + $0x10] sm:$0xff] %v327_v4  ;;  %v331_v6 = vld [vmem:[%s1462_s9 + $0x40] sm:$0xff]  ;;  %v333_v7 = vld [vmem:[%s1462_s9 + $0x50] sm:$0xff]  ;;  %330 = vst [vmem:[%s1467_s10 + $0x18] sm:$0xff] %v329_v5 }
  0x2c   : > { %332 = vst [vmem:[%s1467_s10 + $0x20] sm:$0xff] %v331_v6  ;;  %334 = vst [vmem:[%s1467_s10 + $0x28] sm:$0xff] %v333_v7  ;;  %v335_v8 = vld [vmem:[%s1462_s9 + $0x60] sm:$0xff]  ;;  %v337_v9 = vld [vmem:[%s1462_s9 + $0x70] sm:$0xff] }
  0x2d   : > { %v339_v10 = vld [vmem:[%s1462_s9 + $0x80] sm:$0xff]  ;;  %336 = vst [vmem:[%s1467_s10 + $0x30] sm:$0xff] %v335_v8  ;;  %338 = vst [vmem:[%s1467_s10 + $0x38] sm:$0xff] %v337_v9  ;;  %v341_v11 = vld [vmem:[%s1462_s9 + $0x90] sm:$0xff] }
  0x2e   : > { %340 = vst [vmem:[%s1467_s10 + $0x40] sm:$0xff] %v339_v10  ;;  %v343_v12 = vld [vmem:[%s1462_s9 + $0xa0] sm:$0xff]  ;;  %v345_v13 = vld [vmem:[%s1462_s9 + $0xb0] sm:$0xff]  ;;  %342 = vst [vmem:[%s1467_s10 + $0x48] sm:$0xff] %v341_v11 }
  0x2f   : > { %344 = vst [vmem:[%s1467_s10 + $0x50] sm:$0xff] %v343_v12  ;;  %346 = vst [vmem:[%s1467_s10 + $0x58] sm:$0xff] %v345_v13  ;;  %v347_v14 = vld [vmem:[%s1462_s9 + $0xc0] sm:$0xff]  ;;  %v349_v15 = vld [vmem:[%s1462_s9 + $0xd0] sm:$0xff] }
  0x30   : > { %v351_v16 = vld [vmem:[%s1462_s9 + $0xe0] sm:$0xff]  ;;  %348 = vst [vmem:[%s1467_s10 + $0x60] sm:$0xff] %v347_v14  ;;  %350 = vst [vmem:[%s1467_s10 + $0x68] sm:$0xff] %v349_v15  ;;  %v353_v17 = vld [vmem:[%s1462_s9 + $0xf0] sm:$0xff] }
  0x31   : > { %352 = vst [vmem:[%s1467_s10 + $0x70] sm:$0xff] %v351_v16  ;;  %v355_v18 = vld [vmem:[%s1462_s9 + $0x100] sm:$0xff]  ;;  %v357_v19 = vld [vmem:[%s1462_s9 + $0x110] sm:$0xff]  ;;  %354 = vst [vmem:[%s1467_s10 + $0x78] sm:$0xff] %v353_v17 }
  0x32   : > { %356 = vst [vmem:[%s1467_s10 + $0x80] sm:$0xff] %v355_v18  ;;  %358 = vst [vmem:[%s1467_s10 + $0x88] sm:$0xff] %v357_v19  ;;  %v359_v20 = vld [vmem:[%s1462_s9 + $0x120] sm:$0xff]  ;;  %v361_v21 = vld [vmem:[%s1462_s9 + $0x130] sm:$0xff] }
  0x33   : > { %v363_v22 = vld [vmem:[%s1462_s9 + $0x140] sm:$0xff]  ;;  %360 = vst [vmem:[%s1467_s10 + $0x90] sm:$0xff] %v359_v20  ;;  %362 = vst [vmem:[%s1467_s10 + $0x98] sm:$0xff] %v361_v21  ;;  %v365_v23 = vld [vmem:[%s1462_s9 + $0x150] sm:$0xff] }
  0x34   : > { %364 = vst [vmem:[%s1467_s10 + $0xa0] sm:$0xff] %v363_v22  ;;  %v367_v24 = vld [vmem:[%s1462_s9 + $0x160] sm:$0xff]  ;;  %v369_v25 = vld [vmem:[%s1462_s9 + $0x170] sm:$0xff]  ;;  %366 = vst [vmem:[%s1467_s10 + $0xa8] sm:$0xff] %v365_v23 }
  0x35   : > { %368 = vst [vmem:[%s1467_s10 + $0xb0] sm:$0xff] %v367_v24  ;;  %370 = vst [vmem:[%s1467_s10 + $0xb8] sm:$0xff] %v369_v25  ;;  %v371_v26 = vld [vmem:[%s1462_s9 + $0x180] sm:$0xff]  ;;  %v373_v27 = vld [vmem:[%s1462_s9 + $0x190] sm:$0xff] }
  0x36   : > { %v375_v28 = vld [vmem:[%s1462_s9 + $0x1a0] sm:$0xff]  ;;  %372 = vst [vmem:[%s1467_s10 + $0xc0] sm:$0xff] %v371_v26  ;;  %374 = vst [vmem:[%s1467_s10 + $0xc8] sm:$0xff] %v373_v27  ;;  %v377_v29 = vld [vmem:[%s1462_s9 + $0x1b0] sm:$0xff] }
  0x37   : > { %376 = vst [vmem:[%s1467_s10 + $0xd0] sm:$0xff] %v375_v28  ;;  %v379_v30 = vld [vmem:[%s1462_s9 + $0x1c0] sm:$0xff]  ;;  %v381_v31 = vld [vmem:[%s1462_s9 + $0x1d0] sm:$0xff]  ;;  %378 = vst [vmem:[%s1467_s10 + $0xd8] sm:$0xff] %v377_v29 }
  0x38   : > { %380 = vst [vmem:[%s1467_s10 + $0xe0] sm:$0xff] %v379_v30  ;;  %382 = vst [vmem:[%s1467_s10 + $0xe8] sm:$0xff] %v381_v31  ;;  %v383_v32 = vld [vmem:[%s1462_s9 + $0x1e0] sm:$0xff]  ;;  %v385_v33 = vld [vmem:[%s1462_s9 + $0x1f0] sm:$0xff] }
  0x39   : > { %384 = vst [vmem:[%s1467_s10 + $0xf0] sm:$0xff] %v383_v32  ;;  %386 = vst [vmem:[%s1467_s10 + $0xf8] sm:$0xff] %v385_v33 }
  0x3a PF: > { %p1034_p0 = scmp.ge.s32.totalorder %s1319_s25, 1  ;;  %p407_p1 = scmp.lt.s32.totalorder %s1319_s25, 19 }
  0x3c   : > { %p408_p2 = pnand %p1034_p0, %p407_p1 }
  0x3d   : > { %s414_s20 = sand.u32 (!%p408_p2), 1, %s1295_s19   ;;  %s421_s27 = sand.u32 (!%p408_p2), 1, %s1287_s17  }
  0x3e   : > { %411 = sbr.rel (%p408_p2) target bundleno = 429 (0x1ad), region = 104  ;;  %s1534_s28 = sshll.u32 (!%p408_p2), %s414_s20, 4 }
  0x3f   : > { %s1036_s7 = sshll.u32 (!%p408_p2), %s421_s27, 8  ;;  %s454_s8 = sand.u32 (!%p408_p2), 1, %s1279_s15  }
  0x40   : > { %s1038_s11 = sshll.u32 (!%p408_p2), %s1307_s22, 1  ;;  %s1037_s26 = sshll.u32 (!%p408_p2), %s454_s8, 4 }
  0x41   : > { %p461_p3 = scmp.lt.s32.totalorder (!%p408_p2), %s1038_s11, 3  ;;  %s416_s19 = scalar_lea.vmem (!%p408_p2), [#allocation3], %s1534_s28 }
  0x42   : > { %s1549_s10 = scalar_lea.vmem (!%p408_p2), [#allocation4], %s1036_s7  ;;  %s1551_s20 = scalar_lea.vmem (!%p408_p2), [#allocation5], %s1037_s26 }
  0x43   : > { %s1678_s11 = smov (!%p461_p3, %s1038_s11), 3  ;;  %p1040_p4 = scmp.ne.s32.totalorder %s1303_s21, 0 }
  0x44   : > { %s463_s6 = scalar_lea.vmem %s1646_s2, %s1678_s11  ;;  %s468_s17 = scalar_lea.vmem %s1647_s3, %s1678_s11 }
  0x45   : > { %474 = sbr.rel (%p1040_p4) target bundleno = 77 (0x4d), region = 116 }
  0x4a   : > { %v1321_v34 = vmov 0.0  }
  0x4b   : > { %475 = vst [vmem:[#allocation2 + $0x10] sm:$0xff] %v1321_v34  ;;  %476 = vst [vmem:[#allocation2] sm:$0xff] %v1321_v34 }
  0x4c   : > { %477 = vst [vmem:[#allocation2 + $0x18] sm:$0xff] %v1321_v34  ;;  %478 = vst [vmem:[#allocation2 + $0x8] sm:$0xff] %v1321_v34 }
  0x4d PF: > { %v1178_v35 = vld [vmem:[%s1549_s10 + $0x74] ss:$8 sps:$4 sm:$0xff]   ;;  %v1180_v36 = vld [vmem:[%s1549_s10 + $0x70] ss:$8 sps:$4 sm:$0xff]   ;;  %v1181_v37 = vld [vmem:[%s1549_s10 + $0x64] ss:$8 sps:$4 sm:$0xff]  }
  0x4e   : > { %687 = vmatprep.subr.bf16.mxu0 %v1178_v35  ;;  %v1183_v38 = vld [vmem:[%s1549_s10 + $0x60] ss:$8 sps:$4 sm:$0xff]   ;;  %v1184_v39 = vld [vmem:[%s1549_s10 + $0x54] ss:$8 sps:$4 sm:$0xff]   ;;  %v1186_v40 = vld [vmem:[%s1549_s10 + $0x50] ss:$8 sps:$4 sm:$0xff]  }
  0x4f   : > { %688 = vmatpush1.bf16.msra.mxu0 %v1180_v36  ;;  %v1187_v41 = vld [vmem:[%s1549_s10 + $0x44] ss:$8 sps:$4 sm:$0xff]   ;;  %v1189_v42 = vld [vmem:[%s1549_s10 + $0x40] ss:$8 sps:$4 sm:$0xff]   ;;  %v1190_v43 = vld [vmem:[%s1549_s10 + $0x34] ss:$8 sps:$4 sm:$0xff]  }
  0x50   : > { %689 = vmatprep.subr.bf16.mxu0 %v1181_v37  ;;  %v1192_v44 = vld [vmem:[%s1549_s10 + $0x30] ss:$8 sps:$4 sm:$0xff]   ;;  %v1193_v45 = vld [vmem:[%s1549_s10 + $0x24] ss:$8 sps:$4 sm:$0xff]   ;;  %v1195_v46 = vld [vmem:[%s1549_s10 + $0x20] ss:$8 sps:$4 sm:$0xff]  }
  0x51   : > { %v1196_v47 = vld [vmem:[%s1549_s10 + $0x14] ss:$8 sps:$4 sm:$0xff]   ;;  %v1198_v49 = vld [vmem:[%s1549_s10 + $0x10] ss:$8 sps:$4 sm:$0xff]   ;;  %v1199_v50 = vld [vmem:[%s1549_s10 + $0x4] ss:$8 sps:$4 sm:$0xff]  }
  0x52   : > { %v1228_v48 = vld [vmem:[%s416_s19 + $0x4] ss:$8 sps:$4 sm:$0xff]   ;;  %v1201_v51 = vld [vmem:[%s1549_s10] ss:$8 sps:$4 sm:$0xff]   ;;  %v1204_v53 = vld [vmem:[%s1549_s10 + $0xf0] ss:$8 sps:$4 sm:$0xff]  }
  0x53   : > { %690 = vmatpush1.bf16.msra.mxu0 %v1183_v38  ;;  %719 = vmatprep.mubr.bf16.mxu0 %v1228_v48  ;;  %v1202_v52 = vld [vmem:[%s1549_s10 + $0xf4] ss:$8 sps:$4 sm:$0xff]   ;;  %v1205_v54 = vld [vmem:[%s1549_s10 + $0xe4] ss:$8 sps:$4 sm:$0xff]   ;;  %v1207_v55 = vld [vmem:[%s1549_s10 + $0xe0] ss:$8 sps:$4 sm:$0xff]  }
  0x54   : > { %691 = vmatprep.subr.bf16.mxu0 %v1184_v39  ;;  %v1208_v56 = vld [vmem:[%s1549_s10 + $0xd4] ss:$8 sps:$4 sm:$0xff]   ;;  %v1210_v57 = vld [vmem:[%s1549_s10 + $0xd0] ss:$8 sps:$4 sm:$0xff]   ;;  %v1211_v58 = vld [vmem:[%s1549_s10 + $0xc4] ss:$8 sps:$4 sm:$0xff]  }
  0x55   : > { %v1213_v59 = vld [vmem:[%s1549_s10 + $0xc0] ss:$8 sps:$4 sm:$0xff]   ;;  %v1214_v60 = vld [vmem:[%s1549_s10 + $0xb4] ss:$8 sps:$4 sm:$0xff]   ;;  %v1216_v61 = vld [vmem:[%s1549_s10 + $0xb0] ss:$8 sps:$4 sm:$0xff]  }
  0x56   : > { %v1217_v62 = vld [vmem:[%s1549_s10 + $0xa4] ss:$8 sps:$4 sm:$0xff]   ;;  %v1219_v63 = vld [vmem:[%s1549_s10 + $0xa0] ss:$8 sps:$4 sm:$0xff]   ;;  %v1220_v0 = vld [vmem:[%s1549_s10 + $0x94] ss:$8 sps:$4 sm:$0xff]  }
  0x57   : > { %692 = vmatpush1.bf16.msra.mxu0 %v1186_v40  ;;  %v1222_v1 = vld [vmem:[%s1549_s10 + $0x90] ss:$8 sps:$4 sm:$0xff]   ;;  %v1223_v2 = vld [vmem:[%s1549_s10 + $0x84] ss:$8 sps:$4 sm:$0xff]   ;;  %v1225_v3 = vld [vmem:[%s1549_s10 + $0x80] ss:$8 sps:$4 sm:$0xff]  }
  0x58   : > { %693 = vmatprep.subr.bf16.mxu0 %v1187_v41  ;;  %v1226_v4 = vld [vmem:[%s416_s19] ss:$8 sps:$4 sm:$0xff]   ;;  %p1075_p5 = scmp.ne.s32.totalorder %s1303_s21, 8 }
  0x59   : > { %v479_v5 = vld [vmem:[#allocation2 + $0x10] sm:$0xff]  ;;  %v480_v7 = vld [vmem:[#allocation2] sm:$0xff]  ;;  %v481_v10 = vld [vmem:[#allocation2 + $0x18] sm:$0xff] }
  0x5a   : > { %v482_v13 = vld [vmem:[#allocation2 + $0x8] sm:$0xff] }
  0x5b   : > { %694 = vmatpush1.bf16.msra.mxu0 %v1189_v42 }
  0x5c   : > { %695 = vmatprep.subr.bf16.mxu0 %v1190_v43 }
  0x5f   : > { %696 = vmatpush1.bf16.msra.mxu0 %v1192_v44 }
  0x60   : > { %697 = vmatprep.subr.bf16.mxu0 %v1193_v45 }
  0x63   : > { %698 = vmatpush1.bf16.msra.mxu0 %v1195_v46 }
  0x64   : > { %699 = vmatprep.subr.bf16.mxu0 %v1196_v47 }
  0x67   : > { %700 = vmatpush1.bf16.msra.mxu0 %v1198_v49 }
  0x68   : > { %701 = vmatprep.subr.bf16.mxu0 %v1199_v50 }
  0x6b   : > { %702 = vmatpush1.bf16.msra.mxu0 %v1201_v51 }
  0x6c   : > { %703 = vmatprep.subr.bf16.mxu0 %v1202_v52 }
  0x6f   : > { %704 = vmatpush2.bf16.msra.mxu0 %v1204_v53 }
  0x70   : > { %705 = vmatprep.subr.bf16.mxu0 %v1205_v54 }
  0x73   : > { %706 = vmatpush2.bf16.msra.mxu0 %v1207_v55 }
  0x74   : > { %707 = vmatprep.subr.bf16.mxu0 %v1208_v56 }
  0x77   : > { %708 = vmatpush2.bf16.msra.mxu0 %v1210_v57 }
  0x78   : > { %709 = vmatprep.subr.bf16.mxu0 %v1211_v58 }
  0x7b   : > { %710 = vmatpush2.bf16.msra.mxu0 %v1213_v59 }
  0x7c   : > { %711 = vmatprep.subr.bf16.mxu0 %v1214_v60 }
  0x7f   : > { %712 = vmatpush2.bf16.msra.mxu0 %v1216_v61 }
  0x80   : > { %713 = vmatprep.subr.bf16.mxu0 %v1217_v62 }
  0x83   : > { %714 = vmatpush2.bf16.msra.mxu0 %v1219_v63 }
  0x84   : > { %715 = vmatprep.subr.bf16.mxu0 %v1220_v0 }
  0x87   : > { %716 = vmatpush2.bf16.msra.mxu0 %v1222_v1 }
  0x88   : > { %717 = vmatprep.subr.bf16.mxu0 %v1223_v2 }
  0x8b   : > { %718 = vmatpush2.bf16.msra.mxu0 %v1225_v3 }
  0x8e   : > { %720 = vmatmul.mubr.bf16.vlgmr.msra.gmra.mxu0 %v1226_v4 }
 0x14e   : > { %v721_v6 = vpop.f32.mrf.mxu0 }
 0x14f   : > { %v730_v8 = vadd.f32 %v721_v6, %v479_v5 }
 0x150   : > { %v723_v9 = vpop.f32.mrf.mxu0 }
 0x151   : > { %734 = vst [vmem:[#allocation2 + $0x10] sm:$0xff] %v730_v8  ;;  %v731_v11 = vadd.f32 %v723_v9, %v480_v7 }
 0x152   : > { %v725_v12 = vpop.f32.mrf.mxu0 }
 0x153   : > { %735 = vst [vmem:[#allocation2] sm:$0xff] %v731_v11  ;;  %v732_v14 = vadd.f32 %v725_v12, %v481_v10  ;;  %741 = sbr.rel (%p1075_p5) target bundleno = 421 (0x1a5), region = 120 }
 0x154   : > { %v727_v15 = vpop.f32.mrf.mxu0 }
 0x155   : > { %736 = vst [vmem:[#allocation2 + $0x18] sm:$0xff] %v732_v14  ;;  %v733_v16 = vadd.f32 %v727_v15, %v482_v13 }
 0x157   : > { %737 = vst [vmem:[#allocation2 + $0x8] sm:$0xff] %v733_v16 }
 0x158   : > { %v742_v17 = vld [vmem:[#allocation2 + $0x10] sm:$0xff]  ;;  %v764_v29 = vlaneseq  ;;  %v1322_v61 = vmov 1966171168   ;;  %v746_v5 = vld [vmem:[%s463_s6] sm:$0x3] }
 0x159   : > { %v805_v62 = vunpack.c.l.s4 %v1322_v61  ;;  %v747_v9 = vld [vmem:[%s468_s17] sm:$0x3] }
 0x15a   : > { %v743_v18 = vld [vmem:[#allocation2] sm:$0xff]  ;;  %v765_v34 = vshrl.u32 %v764_v29, 7 }
 0x15b   : > { %v806_v63 = vunpack.c.0.s8 %v805_v62 }
 0x15c   : > { %v744_v19 = vld [vmem:[#allocation2 + $0x18] sm:$0xff]  ;;  %vm767_vm0 = vcmp.lt.s32.totalorder %v765_v34, 2  ;;  %v823_v7 = vsub.s32 0, %v765_v34  ;;  %v827_v8 = vsub.s32 1, %v765_v34 }
 0x15d   : > { %v748_v21 = vadd.f32 %v744_v19, %v742_v17  ;;  %v809_v1 = vsub.s32 %v806_v63, %v765_v34 }
 0x15e   : > { %v745_v20 = vld [vmem:[#allocation2 + $0x8] sm:$0xff]  ;;  %v839_v13 = vrot.slane %v747_v9, %v823_v7  ;;  %v843_v14 = vrot.slane %v747_v9, %v827_v8 }
 0x15f   : > { %v755_v22 = vadd.f32 %v745_v20, %v743_v18  ;;  %v749_v23 = vrot.slane %v748_v21, 4 }
 0x161   : > { %v756_v24 = vrot.slane %v755_v22, 4  ;;  %v750_v25 = vadd.f32 %v749_v23, %v748_v21 }
 0x163   : > { %v757_v26 = vadd.f32 %v756_v24, %v755_v22  ;;  %v751_v27 = vrot.slane %v750_v25, 2 }
 0x165   : > { %v758_v28 = vrot.slane %v757_v26, 2  ;;  %v752_v30 = vadd.f32 %v751_v27, %v750_v25 }
 0x167   : > { %v759_v31 = vadd.f32 %v758_v28, %v757_v26  ;;  %v753_v32 = vrot.slane %v752_v30, 1 }
 0x169   : > { %v760_v33 = vrot.slane %v759_v31, 1  ;;  %v754_v35 = vadd.f32 %v753_v32, %v752_v30 }
 0x16b   : > { %v761_v36 = vadd.f32 %v760_v33, %v759_v31  ;;  %v762_v37 = vmul.f32 0.5, %v754_v35 }
 0x16d   : > { %v763_v38 = vmul.f32 0.5, %v761_v36  ;;  %v769_v39 = vsub.f32 %v742_v17, %v762_v37 }
 0x16f   : > { %v770_v40 = vsub.f32 %v743_v18, %v763_v38  ;;  %v773_v41 = vsel %vm767_vm0, %v769_v39, 0.0 }
 0x170   : > { %v777_v43 = vmul.f32 %v773_v41, %v773_v41 }
 0x171   : > { %v774_v42 = vsel %vm767_vm0, %v770_v40, 0.0 }
 0x172   : > { %v778_v44 = vmul.f32 %v774_v42, %v774_v42  ;;  %v782_v45 = vrot.slane %v777_v43, 4 }
 0x174   : > { %v789_v46 = vrot.slane %v778_v44, 4  ;;  %v783_v47 = vadd.f32 %v782_v45, %v777_v43 }
 0x176   : > { %v790_v48 = vadd.f32 %v789_v46, %v778_v44  ;;  %v784_v49 = vrot.slane %v783_v47, 2 }
 0x178   : > { %v791_v50 = vrot.slane %v790_v48, 2  ;;  %v785_v51 = vadd.f32 %v784_v49, %v783_v47 }
 0x17a   : > { %v792_v52 = vadd.f32 %v791_v50, %v790_v48  ;;  %v786_v53 = vrot.slane %v785_v51, 1 }
 0x17c   : > { %v793_v54 = vrot.slane %v792_v52, 1  ;;  %v787_v55 = vadd.f32 %v786_v53, %v785_v51 }
 0x17e   : > { %v794_v56 = vadd.f32 %v793_v54, %v792_v52  ;;  %v795_v57 = vmul.f32 0.5, %v787_v55 }
 0x180   : > { %v796_v58 = vmul.f32 0.5, %v794_v56  ;;  %v797_v59 = vadd.f32 1e-05, %v795_v57 }
 0x182   : > { %v798_v60 = vadd.f32 1e-05, %v796_v58  ;;  %1229 = vrsqrt.f32 %v797_v59 }
 0x184   : > { %1231 = vrsqrt.f32 %v798_v60 }
 0x18f   : > { %v1230_v0 = vpop.eup %1229 }
 0x191   : > { %v1232_v2 = vpop.eup %1231 }
 0x192   : > { %v803_v3 = vcombine.low %v1230_v0, %v1232_v2 }
 0x194   : > { %v810_v4 = vrot.slane %v803_v3, %v809_v1 }
 0x196   : > { %v817_v6 = vrot.slane %v810_v4, %v809_v1 }
 0x198   : > { %v819_v10 = vmul.f32 %v817_v6, %v746_v5 }
 0x19a   : > { %v824_v11 = vrot.slane %v819_v10, %v823_v7  ;;  %v828_v12 = vrot.slane %v819_v10, %v827_v8 }
 0x19c   : > { %v831_v15 = vmul.f32 %v824_v11, %v773_v41  ;;  %v832_v16 = vmul.f32 %v828_v12, %v774_v42  ;;  %v833_v17 = vmul.f32 0.0, %v824_v11  ;;  %v834_v18 = vmul.f32 0.0, %v828_v12 }
 0x19e   : > { %v846_v19 = vadd.f32 %v839_v13, %v831_v15  ;;  %v847_v20 = vadd.f32 %v843_v14, %v832_v16  ;;  %v848_v21 = vadd.f32 %v839_v13, %v833_v17  ;;  %v849_v22 = vadd.f32 %v843_v14, %v834_v18 }
 0x1a0   : > { %v850_v23 = vmax.f32 %v846_v19, 0.0  ;;  %v851_v24 = vmax.f32 %v847_v20, 0.0  ;;  %v852_v25 = vmax.f32 %v848_v21, 0.0  ;;  %v853_v26 = vmax.f32 %v849_v22, 0.0 }
 0x1a2   : > { %v1085_v27 = vpack.c.bf16 %v851_v24, %v850_v23  ;;  %v1086_v28 = vpack.c.bf16 %v853_v26, %v852_v25 }
 0x1a4   : > { %866 = vst [vmem:[%s1551_s20] sm:$0xff] %v1085_v27  ;;  %867 = vst [vmem:[%s1551_s20 + $0x8] sm:$0xff] %v1086_v28 }
 0x1a5 PF: > { %874 = sbr.rel (!%p1442_p12) target bundleno = 429 (0x1ad), region = 124  ;;  %s1087_s7 = sshll.u32 (%p1442_p12), %s1307_s22, 3 }
 0x1a6   : > { %s877_s26 = scalar_lea.vmem (%p1442_p12), %s1648_s4, %s1087_s7 }
 0x1ab   : > { %v908_v29 = vld [vmem:[%s1551_s20] sm:$0xff]  ;;  %v910_v30 = vld [vmem:[%s1551_s20 + $0x8] sm:$0xff] }
 0x1ac   : > { %909 = vst [vmem:[%s877_s26] sm:$0xff] %v908_v29  ;;  %911 = vst [vmem:[%s877_s26 + $0x10] sm:$0xff] %v910_v30 }
 0x1ad PF: > { %s14_s25 = sadd.s32 1, %s1319_s25   ;;  %s1659_s19 = sld [smem:[#allocation6_spill]] }
 0x1ae   : > { %p11_p6 = scmp.ge.s32.totalorder %s14_s25, 20   ;;  %s1660_s20 = sld [smem:[#allocation9_spill]] }
 0x1af   : > { %s1661_s14 = sld [smem:[#allocation7_spill]]  ;;  %s1663_s15 = smov %s1283_s16 }
 0x1b0   : > { %s1662_s5 = sld [smem:[#allocation8_spill]]  ;;  %s1664_s16 = smov %s1440_s13 }
 0x1b1   : > { %s1665_s17 = smov %s1291_s18  ;;  %s1666_s18 = smov %s1437_s12 }
 0x1b2   : > { %s1667_s21 = smov %s1311_s23  ;;  %s1668_s22 = smov %s1315_s24 }
 0x1b3   :  { %13 = sbr.rel (!%p11_p6) target bundleno = 6 (0x6), region = 207 }
 0x1b5   : > { %s1669_s23 = smov %s1661_s14 }
 0x1b6   : > { %s1670_s24 = smov %s1662_s5 }

// kernel: resnet_forward.40
= control target key start
LH: loop header
LB: loop body
LE: loop exit
PB: predicated region body
PF: predicated region fallthrough
CT: control target
= control target key end

     0   :  { %s1037_s12 = smov 0   ;;  %s1039_s13 = smov 0   ;;  %s1225_s0 = inlined_call_operand.vmem [shape: bf16[16,256], index: 0, kind: input, shape index: {}]   ;;  %s1226_s1 = inlined_call_operand.vmem [shape: bf16[256,512], index: 1, kind: input, shape index: {}]   ;;  %s1227_s2 = inlined_call_operand.vmem [shape: f32[1,512], index: 2, kind: input, shape index: {}]   ;;  %s1228_s3 = inlined_call_operand.vmem [shape: bf16[16,512], index: 3, kind: output, shape index: {}]  }
   0x1   :  { %s1041_s14 = smov 0   ;;  %s1043_s15 = smov 0  }
   0x2   :  { %s1045_s16 = smov 0  }
   0x3 LB: > { %s25_s17 = sadd.s32 1, %s1011_s15  ;;  %s829_s18 = sadd.s32 4294967295, %s1015_s16   ;;  %s1015_s16 = sphi %s1045_s16, %s13_s16   ;;  %s1011_s15 = sphi %s1043_s15, %s1233_s15   ;;  %s1007_s14 = sphi %s1041_s14, %s1232_s14   ;;  %s1003_s13 = sphi %s1039_s13, %s1231_s13   ;;  %s999_s12 = sphi %s1037_s12, %s1230_s12  }
   0x4   : > { %p27_p0 = scmp.ge.s32.totalorder %s25_s17, 2  ;;  %p67_p1 = scmp.ne.s32.totalorder %s1003_s13, %s999_s12 }
   0x5   : > { %p68_p2 = scmp.eq.s32.totalorder %s1015_s16, 0  ;;  %p123_p4 = scmp.eq.s32.totalorder %s829_s18, 1 }
   0x6   : > { %s1235_s17 = smov (%p27_p0, %s25_s17), 0  ;;  %s60_s20 = sadd.s32 1, %s1003_s13 }
   0x7   : > { %p69_p3 = por %p68_p2, %p67_p1  ;;  %s56_s19 = ssub.s32 %s1011_s15, %s1235_s17 }
   0x8   : > { %p58_p5 = scmp.eq.s32.totalorder %s56_s19, 0  ;;  %p1072_p6 = por %p123_p4, %p67_p1 }
   0x9   : > { %p833_p7 = scmp.ge.s32.totalorder %s1015_s16, 2 }
   0xa   : > { %s1077_s22 = scalar_select %p58_p5, %s1003_s13, %s60_s20  }
   0xb   : > { %154 = sbr.rel (%p833_p7) target bundleno = 36 (0x24), region = 20 }
  0x10   : > { %157 = sbr.rel (!%p69_p3) target bundleno = 36 (0x24), region = 24  ;;  %s159_s23 = sand.u32 (%p69_p3), 1, %s1003_s13  }
  0x11   : > { %s882_s24 = sshll.u32 (%p69_p3), %s1011_s15, 3  ;;  %s834_s25 = sshll.u32 (%p69_p3), %s159_s23, 8 }
  0x12   : > { %s1085_s28 = scalar_lea.vmem (%p69_p3), %s1226_s1, %s882_s24  ;;  %s1090_s29 = scalar_lea.vmem (%p69_p3), [#allocation3], %s834_s25 }
  0x13   : > { %v258_v0 = vld [vmem:[%s1085_s28] sm:$0xff] (%p69_p3)  ;;  %v260_v1 = vld [vmem:[%s1085_s28 + $0x10] sm:$0xff] (%p69_p3) }
  0x14   : > { %v262_v2 = vld [vmem:[%s1085_s28 + $0x20] sm:$0xff] (%p69_p3)  ;;  %259 = vst [vmem:[%s1090_s29] sm:$0xff] (%p69_p3), %v258_v0  ;;  %261 = vst [vmem:[%s1090_s29 + $0x8] sm:$0xff] (%p69_p3), %v260_v1  ;;  %v264_v3 = vld [vmem:[%s1085_s28 + $0x30] sm:$0xff] (%p69_p3) }
  0x15   : > { %263 = vst [vmem:[%s1090_s29 + $0x10] sm:$0xff] %v262_v2  ;;  %v266_v4 = vld [vmem:[%s1085_s28 + $0x40] sm:$0xff]  ;;  %v268_v5 = vld [vmem:[%s1085_s28 + $0x50] sm:$0xff]  ;;  %265 = vst [vmem:[%s1090_s29 + $0x18] sm:$0xff] %v264_v3 }
  0x16   : > { %267 = vst [vmem:[%s1090_s29 + $0x20] sm:$0xff] %v266_v4  ;;  %269 = vst [vmem:[%s1090_s29 + $0x28] sm:$0xff] %v268_v5  ;;  %v270_v6 = vld [vmem:[%s1085_s28 + $0x60] sm:$0xff]  ;;  %v272_v7 = vld [vmem:[%s1085_s28 + $0x70] sm:$0xff] }
  0x17   : > { %v274_v8 = vld [vmem:[%s1085_s28 + $0x80] sm:$0xff]  ;;  %271 = vst [vmem:[%s1090_s29 + $0x30] sm:$0xff] %v270_v6  ;;  %273 = vst [vmem:[%s1090_s29 + $0x38] sm:$0xff] %v272_v7  ;;  %v276_v9 = vld [vmem:[%s1085_s28 + $0x90] sm:$0xff] }
  0x18   : > { %275 = vst [vmem:[%s1090_s29 + $0x40] sm:$0xff] %v274_v8  ;;  %v278_v10 = vld [vmem:[%s1085_s28 + $0xa0] sm:$0xff]  ;;  %v280_v11 = vld [vmem:[%s1085_s28 + $0xb0] sm:$0xff]  ;;  %277 = vst [vmem:[%s1090_s29 + $0x48] sm:$0xff] %v276_v9 }
  0x19   : > { %279 = vst [vmem:[%s1090_s29 + $0x50] sm:$0xff] %v278_v10  ;;  %281 = vst [vmem:[%s1090_s29 + $0x58] sm:$0xff] %v280_v11  ;;  %v282_v12 = vld [vmem:[%s1085_s28 + $0xc0] sm:$0xff]  ;;  %v284_v13 = vld [vmem:[%s1085_s28 + $0xd0] sm:$0xff] }
  0x1a   : > { %v286_v14 = vld [vmem:[%s1085_s28 + $0xe0] sm:$0xff]  ;;  %283 = vst [vmem:[%s1090_s29 + $0x60] sm:$0xff] %v282_v12  ;;  %285 = vst [vmem:[%s1090_s29 + $0x68] sm:$0xff] %v284_v13  ;;  %v288_v15 = vld [vmem:[%s1085_s28 + $0xf0] sm:$0xff] }
  0x1b   : > { %287 = vst [vmem:[%s1090_s29 + $0x70] sm:$0xff] %v286_v14  ;;  %v290_v16 = vld [vmem:[%s1085_s28 + $0x100] sm:$0xff]  ;;  %v292_v17 = vld [vmem:[%s1085_s28 + $0x110] sm:$0xff]  ;;  %289 = vst [vmem:[%s1090_s29 + $0x78] sm:$0xff] %v288_v15 }
  0x1c   : > { %291 = vst [vmem:[%s1090_s29 + $0x80] sm:$0xff] %v290_v16  ;;  %293 = vst [vmem:[%s1090_s29 + $0x88] sm:$0xff] %v292_v17  ;;  %v294_v18 = vld [vmem:[%s1085_s28 + $0x120] sm:$0xff]  ;;  %v296_v19 = vld [vmem:[%s1085_s28 + $0x130] sm:$0xff] }
  0x1d   : > { %v298_v20 = vld [vmem:[%s1085_s28 + $0x140] sm:$0xff]  ;;  %295 = vst [vmem:[%s1090_s29 + $0x90] sm:$0xff] %v294_v18  ;;  %297 = vst [vmem:[%s1090_s29 + $0x98] sm:$0xff] %v296_v19  ;;  %v300_v21 = vld [vmem:[%s1085_s28 + $0x150] sm:$0xff] }
  0x1e   : > { %299 = vst [vmem:[%s1090_s29 + $0xa0] sm:$0xff] %v298_v20  ;;  %v302_v22 = vld [vmem:[%s1085_s28 + $0x160] sm:$0xff]  ;;  %v304_v23 = vld [vmem:[%s1085_s28 + $0x170] sm:$0xff]  ;;  %301 = vst [vmem:[%s1090_s29 + $0xa8] sm:$0xff] %v300_v21 }
  0x1f   : > { %303 = vst [vmem:[%s1090_s29 + $0xb0] sm:$0xff] %v302_v22  ;;  %305 = vst [vmem:[%s1090_s29 + $0xb8] sm:$0xff] %v304_v23  ;;  %v306_v24 = vld [vmem:[%s1085_s28 + $0x180] sm:$0xff]  ;;  %v308_v25 = vld [vmem:[%s1085_s28 + $0x190] sm:$0xff] }
  0x20   : > { %v310_v26 = vld [vmem:[%s1085_s28 + $0x1a0] sm:$0xff]  ;;  %307 = vst [vmem:[%s1090_s29 + $0xc0] sm:$0xff] %v306_v24  ;;  %309 = vst [vmem:[%s1090_s29 + $0xc8] sm:$0xff] %v308_v25  ;;  %v312_v27 = vld [vmem:[%s1085_s28 + $0x1b0] sm:$0xff] }
  0x21   : > { %311 = vst [vmem:[%s1090_s29 + $0xd0] sm:$0xff] %v310_v26  ;;  %v314_v28 = vld [vmem:[%s1085_s28 + $0x1c0] sm:$0xff]  ;;  %v316_v29 = vld [vmem:[%s1085_s28 + $0x1d0] sm:$0xff]  ;;  %313 = vst [vmem:[%s1090_s29 + $0xd8] sm:$0xff] %v312_v27 }
  0x22   : > { %315 = vst [vmem:[%s1090_s29 + $0xe0] sm:$0xff] %v314_v28  ;;  %317 = vst [vmem:[%s1090_s29 + $0xe8] sm:$0xff] %v316_v29  ;;  %v318_v30 = vld [vmem:[%s1085_s28 + $0x1e0] sm:$0xff]  ;;  %v320_v31 = vld [vmem:[%s1085_s28 + $0x1f0] sm:$0xff] }
  0x23   : > { %319 = vst [vmem:[%s1090_s29 + $0xf0] sm:$0xff] %v318_v30  ;;  %321 = vst [vmem:[%s1090_s29 + $0xf8] sm:$0xff] %v320_v31 }
  0x24 PF: > { %p837_p8 = scmp.ge.s32.totalorder %s1015_s16, 1  ;;  %p334_p9 = scmp.lt.s32.totalorder %s1015_s16, 3 }
  0x26   : > { %p335_p10 = pnand %p837_p8, %p334_p9 }
  0x27   : > { %s341_s30 = sand.u32 (!%p335_p10), 1, %s999_s12   ;;  %s840_s10 = sshll.u32 (!%p335_p10), %s1007_s14, 1 }
  0x28   : > { %338 = sbr.rel (%p335_p10) target bundleno = 322 (0x142), region = 66  ;;  %s838_s4 = sshll.u32 (!%p335_p10), %s341_s30, 8 }
  0x29   : > { %s1161_s7 = scalar_lea.vmem (!%p335_p10), [#allocation3], %s838_s4  ;;  %p381_p11 = scmp.lt.s32.totalorder (!%p335_p10), %s840_s10, 3 }
  0x2a   : > { %s839_s20 = sshll.u32 (!%p335_p10), %s341_s30, 4 }
  0x2b   : > { %s371_s23 = scalar_lea.vmem (!%p335_p10), [#allocation4], %s839_s20 }
  0x2d   : > { %v976_v32 = vld [vmem:[%s1225_s0 + $0x4] ss:$8 sps:$4 sm:$0xff]   ;;  %v926_v33 = vld [vmem:[%s1161_s7 + $0x74] ss:$8 sps:$4 sm:$0xff]   ;;  %v928_v34 = vld [vmem:[%s1161_s7 + $0x70] ss:$8 sps:$4 sm:$0xff]   ;;  %v662_v2 = vlaneseq }
  0x2e   : > { %634 = vmatprep.mubr.bf16.mxu0 %v976_v32  ;;  %602 = vmatprep.subr.bf16.mxu0 %v926_v33  ;;  %v929_v35 = vld [vmem:[%s1161_s7 + $0x64] ss:$8 sps:$4 sm:$0xff]   ;;  %v931_v36 = vld [vmem:[%s1161_s7 + $0x60] ss:$8 sps:$4 sm:$0xff]   ;;  %v932_v37 = vld [vmem:[%s1161_s7 + $0x54] ss:$8 sps:$4 sm:$0xff]  }
  0x2f   : > { %603 = vmatpush1.bf16.msra.mxu0 %v928_v34  ;;  %v934_v38 = vld [vmem:[%s1161_s7 + $0x50] ss:$8 sps:$4 sm:$0xff]   ;;  %v935_v39 = vld [vmem:[%s1161_s7 + $0x44] ss:$8 sps:$4 sm:$0xff]   ;;  %v937_v40 = vld [vmem:[%s1161_s7 + $0x40] ss:$8 sps:$4 sm:$0xff]  }
  0x30   : > { %604 = vmatprep.subr.bf16.mxu0 %v929_v35  ;;  %v938_v41 = vld [vmem:[%s1161_s7 + $0x34] ss:$8 sps:$4 sm:$0xff]   ;;  %v940_v42 = vld [vmem:[%s1161_s7 + $0x30] ss:$8 sps:$4 sm:$0xff]   ;;  %v941_v43 = vld [vmem:[%s1161_s7 + $0x24] ss:$8 sps:$4 sm:$0xff]  }
  0x31   : > { %v943_v44 = vld [vmem:[%s1161_s7 + $0x20] ss:$8 sps:$4 sm:$0xff]   ;;  %v944_v45 = vld [vmem:[%s1161_s7 + $0x14] ss:$8 sps:$4 sm:$0xff]   ;;  %v946_v46 = vld [vmem:[%s1161_s7 + $0x10] ss:$8 sps:$4 sm:$0xff]  }
  0x32   : > { %v947_v47 = vld [vmem:[%s1161_s7 + $0x4] ss:$8 sps:$4 sm:$0xff]   ;;  %v949_v48 = vld [vmem:[%s1161_s7] ss:$8 sps:$4 sm:$0xff]   ;;  %v950_v49 = vld [vmem:[%s1161_s7 + $0xf4] ss:$8 sps:$4 sm:$0xff]  }
  0x33   : > { %605 = vmatpush1.bf16.msra.mxu0 %v931_v36  ;;  %v952_v50 = vld [vmem:[%s1161_s7 + $0xf0] ss:$8 sps:$4 sm:$0xff]   ;;  %v953_v51 = vld [vmem:[%s1161_s7 + $0xe4] ss:$8 sps:$4 sm:$0xff]   ;;  %v955_v52 = vld [vmem:[%s1161_s7 + $0xe0] ss:$8 sps:$4 sm:$0xff]  }
  0x34   : > { %606 = vmatprep.subr.bf16.mxu0 %v932_v37  ;;  %v956_v53 = vld [vmem:[%s1161_s7 + $0xd4] ss:$8 sps:$4 sm:$0xff]   ;;  %v958_v54 = vld [vmem:[%s1161_s7 + $0xd0] ss:$8 sps:$4 sm:$0xff]   ;;  %v959_v55 = vld [vmem:[%s1161_s7 + $0xc4] ss:$8 sps:$4 sm:$0xff]  }
  0x35   : > { %v961_v56 = vld [vmem:[%s1161_s7 + $0xc0] ss:$8 sps:$4 sm:$0xff]   ;;  %v962_v57 = vld [vmem:[%s1161_s7 + $0xb4] ss:$8 sps:$4 sm:$0xff]   ;;  %v964_v58 = vld [vmem:[%s1161_s7 + $0xb0] ss:$8 sps:$4 sm:$0xff]  }
  0x36   : > { %v965_v59 = vld [vmem:[%s1161_s7 + $0xa4] ss:$8 sps:$4 sm:$0xff]   ;;  %v967_v60 = vld [vmem:[%s1161_s7 + $0xa0] ss:$8 sps:$4 sm:$0xff]   ;;  %v968_v61 = vld [vmem:[%s1161_s7 + $0x94] ss:$8 sps:$4 sm:$0xff]  }
  0x37   : > { %607 = vmatpush1.bf16.msra.mxu0 %v934_v38  ;;  %v970_v62 = vld [vmem:[%s1161_s7 + $0x90] ss:$8 sps:$4 sm:$0xff]   ;;  %v971_v63 = vld [vmem:[%s1161_s7 + $0x84] ss:$8 sps:$4 sm:$0xff]   ;;  %v973_v0 = vld [vmem:[%s1161_s7 + $0x80] ss:$8 sps:$4 sm:$0xff]  }
  0x38   : > { %608 = vmatprep.subr.bf16.mxu0 %v935_v39  ;;  %v974_v1 = vld [vmem:[%s1225_s0] ss:$8 sps:$4 sm:$0xff]   ;;  %s1237_s10 = smov (!%p381_p11, %s840_s10), 3  ;;  %v663_v3 = vshrl.u32 %v662_v2, 7  ;;  %s885_s24 = sshll.u32 (%p1072_p6), %s1007_s14, 3 }
  0x39   : > { %s383_s19 = scalar_lea.vmem %s1227_s2, %s1237_s10  ;;  %s699_s26 = scalar_lea.vmem (%p1072_p6), %s1228_s3, %s885_s24 }
  0x3a   : > { %v664_v4 = vsub.s32 0, %v663_v3  ;;  %v668_v5 = vsub.s32 1, %v663_v3  ;;  %v660_v6 = vld [vmem:[%s383_s19] sm:$0x3] }
  0x3b   : > { %609 = vmatpush1.bf16.msra.mxu0 %v937_v40 }
  0x3c   : > { %610 = vmatprep.subr.bf16.mxu0 %v938_v41  ;;  %v665_v7 = vrot.slane %v660_v6, %v664_v4  ;;  %v669_v8 = vrot.slane %v660_v6, %v668_v5 }
  0x3f   : > { %611 = vmatpush1.bf16.msra.mxu0 %v940_v42 }
  0x40   : > { %612 = vmatprep.subr.bf16.mxu0 %v941_v43 }
  0x43   : > { %613 = vmatpush1.bf16.msra.mxu0 %v943_v44 }
  0x44   : > { %614 = vmatprep.subr.bf16.mxu0 %v944_v45 }
  0x47   : > { %615 = vmatpush1.bf16.msra.mxu0 %v946_v46 }
  0x48   : > { %616 = vmatprep.subr.bf16.mxu0 %v947_v47 }
  0x4b   : > { %617 = vmatpush1.bf16.msra.mxu0 %v949_v48 }
  0x4c   : > { %618 = vmatprep.subr.bf16.mxu0 %v950_v49 }
  0x4f   : > { %619 = vmatpush2.bf16.msra.mxu0 %v952_v50 }
  0x50   : > { %620 = vmatprep.subr.bf16.mxu0 %v953_v51 }
  0x53   : > { %621 = vmatpush2.bf16.msra.mxu0 %v955_v52 }
  0x54   : > { %622 = vmatprep.subr.bf16.mxu0 %v956_v53 }
  0x57   : > { %623 = vmatpush2.bf16.msra.mxu0 %v958_v54 }
  0x58   : > { %624 = vmatprep.subr.bf16.mxu0 %v959_v55 }
  0x5b   : > { %625 = vmatpush2.bf16.msra.mxu0 %v961_v56 }
  0x5c   : > { %626 = vmatprep.subr.bf16.mxu0 %v962_v57 }
  0x5f   : > { %627 = vmatpush2.bf16.msra.mxu0 %v964_v58 }
  0x60   : > { %628 = vmatprep.subr.bf16.mxu0 %v965_v59 }
  0x63   : > { %629 = vmatpush2.bf16.msra.mxu0 %v967_v60 }
  0x64   : > { %630 = vmatprep.subr.bf16.mxu0 %v968_v61 }
  0x67   : > { %631 = vmatpush2.bf16.msra.mxu0 %v970_v62 }
  0x68   : > { %632 = vmatprep.subr.bf16.mxu0 %v971_v63 }
  0x6b   : > { %633 = vmatpush2.bf16.msra.mxu0 %v973_v0 }
  0x6e   : > { %635 = vmatmul.mubr.bf16.vlgmr.msra.gmra.mxu0 %v974_v1 }
 0x12e   : > { %v636_v9 = vpop.f32.mrf.mxu0 }
 0x12f   : > { %v672_v11 = vadd.f32 %v665_v7, %v636_v9 }
 0x130   : > { %v638_v10 = vpop.f32.mrf.mxu0 }
 0x131   : > { %v673_v12 = vadd.f32 %v669_v8, %v638_v10 }
 0x132   : > { %v640_v13 = vpop.f32.mrf.mxu0 }
 0x133   : > { %v883_v14 = vpack.c.bf16 %v673_v12, %v672_v11  ;;  %v674_v16 = vadd.f32 %v665_v7, %v640_v13 }
 0x134   : > { %v642_v15 = vpop.f32.mrf.mxu0 }
 0x135   : > { %688 = vst [vmem:[%s371_s23] sm:$0xff] %v883_v14  ;;  %v675_v17 = vadd.f32 %v669_v8, %v642_v15  ;;  %696 = sbr.rel (!%p1072_p6) target bundleno = 322 (0x142), region = 82 }
 0x137   : > { %v884_v18 = vpack.c.bf16 %v675_v17, %v674_v16 }
 0x139   : > { %689 = vst [vmem:[%s371_s23 + $0x8] sm:$0xff] %v884_v18 }
 0x13c   : > { %v730_v19 = vld [vmem:[%s371_s23] sm:$0xff] }
 0x13d   : > { %731 = vst [vmem:[%s699_s26] sm:$0xff] %v730_v19 }
 0x140   : > { %v732_v20 = vld [vmem:[%s371_s23 + $0x8] sm:$0xff] }
 0x141   : > { %733 = vst [vmem:[%s699_s26 + $0x10] sm:$0xff] %v732_v20 }
 0x142 PF: > { %s13_s16 = sadd.s32 1, %s1015_s16   ;;  %s1230_s12 = smov %s1003_s13 }
 0x143   : > { %p10_p12 = scmp.ge.s32.totalorder %s13_s16, 4   ;;  %s1231_s13 = smov %s1077_s22 }
 0x144   : > { %s1232_s14 = smov %s1011_s15  ;;  %s1233_s15 = smov %s1235_s17 }
 0x145   :  { %12 = sbr.rel (!%p10_p12) target bundleno = 3 (0x3), region = 157 }

// kernel: resnet_forward.41
= control target key start
LH: loop header
LB: loop body
LE: loop exit
PB: predicated region body
PF: predicated region fallthrough
CT: control target
= control target key end

     0   :  { %s1474_s18 = smov 0   ;;  %s1476_s19 = smov 0   ;;  %s1795_s0 = inlined_call_operand.vmem [shape: bf16[16,4608], index: 0, kind: input, shape index: {}]   ;;  %s1796_s1 = inlined_call_operand.vmem [shape: bf16[4608,512], index: 1, kind: input, shape index: {}]   ;;  %s1797_s2 = inlined_call_operand.vmem [shape: f32[1,512], index: 2, kind: input, shape index: {}]   ;;  %s1798_s3 = inlined_call_operand.vmem [shape: f32[1,512], index: 3, kind: input, shape index: {}]   ;;  %s1799_s4 = inlined_call_operand.vmem [shape: bf16[16,512], index: 4, kind: input, shape index: {}]   ;;  %s1800_s5 = inlined_call_operand.vmem [shape: bf16[16,512], index: 5, kind: output, shape index: {}]  }
   0x1   :  { %s1478_s20 = smov 0   ;;  %s1480_s21 = smov 0  }
   0x2   :  { %s1482_s22 = smov 0   ;;  %s1484_s23 = smov 0  }
   0x3   :  { %s1486_s24 = smov 0   ;;  %s1488_s25 = smov 0  }
   0x4   :  { %s1490_s26 = smov 0   ;;  %s1492_s27 = smov 0  }
   0x5   :  { %s1494_s28 = smov 0  }
   0x6 LB: > { %1804 = sst [smem:[#allocation7_spill]] %s1420_s23  ;;  %s1138_s29 = sadd.s32 4294967295, %s1440_s28   ;;  %s1440_s28 = sphi %s1494_s28, %s15_s28   ;;  %s1436_s27 = sphi %s1492_s27, %s1828_s27   ;;  %s1432_s26 = sphi %s1490_s26, %s1827_s26   ;;  %s1428_s25 = sphi %s1488_s25, %s1826_s25   ;;  %s1424_s24 = sphi %s1486_s24, %s1825_s24   ;;  %s1420_s23 = sphi %s1484_s23, %s1824_s23   ;;  %s1416_s22 = sphi %s1482_s22, %s1816_s22   ;;  %s1412_s21 = sphi %s1480_s21, %s1823_s21   ;;  %s1408_s20 = sphi %s1478_s20, %s1822_s20   ;;  %s1404_s19 = sphi %s1476_s19, %s1821_s19   ;;  %s1400_s18 = sphi %s1474_s18, %s1820_s18  }
   0x7   : > { %s24_s30 = sadd.s32 1, %s1432_s26  ;;  %s27_s6 = sadd.s32 1, %s1436_s27 }
   0x8   : > { %p25_p0 = scmp.ge.s32.totalorder %s24_s30, 18  ;;  %s34_s7 = sadd.s32 1, %s1420_s23 }
   0x9   : > { %p41_p1 = scmp.ne.s32.totalorder %s1420_s23, %s1416_s22  ;;  %p42_p2 = scmp.eq.s32.totalorder %s1440_s28, 0 }
   0xa   : > { %s1830_s30 = smov (%p25_p0, %s24_s30), 0  ;;  %s1832_s6 = smov (!%p25_p0, %s27_s6), %s1436_s27 }
   0xb   : > { %1805 = sst [smem:[#allocation8_spill]] %s1830_s30  ;;  %s31_s8 = ssub.s32 %s1432_s26, %s1830_s30 }
   0xc   : > { %p29_p3 = scmp.ge.s32.totalorder %s1832_s6, 2  ;;  %p32_p4 = scmp.eq.s32.totalorder %s31_s8, 0 }
   0xd   : > { %p1543_p5 = por %p42_p2, %p41_p1  ;;  %s62_s10 = sadd.s32 1, %s1412_s21 }
   0xe   : > { %s1834_s6 = smov (%p29_p3, %s1832_s6), 0  ;;  %p69_p6 = scmp.ne.s32.totalorder %s1412_s21, %s1408_s20 }
   0xf   : > { %1807 = sst [smem:[#allocation9_spill]] %s1834_s6  ;;  %s58_s12 = ssub.s32 %s1436_s27, %s1834_s6 }
  0x10   : > { %s1551_s11 = scalar_select %p32_p4, %s1420_s23, %s34_s7  }
  0x11   : > { %s59_s13 = sor.u32 %s58_s12, %s31_s8  ;;  %p138_p7 = scmp.eq.s32.totalorder %s58_s12, 0 }
  0x12   : > { %1808 = sst [smem:[#allocation10_spill]] %s1551_s11  ;;  %p60_p8 = scmp.eq.s32.totalorder %s59_s13, 0 }
  0x13   : > { %p1559_p9 = por %p69_p6, %p42_p2  ;;  %s140_s15 = sadd.s32 1, %s1404_s19 }
  0x14   : > { %p147_p10 = scmp.ne.s32.totalorder %s1404_s19, %s1400_s18  ;;  %p177_p12 = scmp.eq.s32.totalorder %s1138_s29, 35 }
  0x15   : > { %s1567_s16 = scalar_select %p60_p8, %s1412_s21, %s62_s10  }
  0x16   : > { %s1570_s17 = scalar_select %p138_p7, %s1404_s19, %s140_s15  }
  0x17   : > { %1810 = sst [smem:[#allocation11_spill]] %s1567_s16  ;;  %p1574_p11 = por %p147_p10, %p42_p2 }
  0x18   : > { %1811 = sst [smem:[#allocation12_spill]] %s1570_s17  ;;  %p1578_p13 = por %p177_p12, %p147_p10 }
  0x19   : > { %p1141_p0 = scmp.ge.s32.totalorder %s1440_s28, 36 }
  0x1b   : > { %199 = sbr.rel (%p1141_p0) target bundleno = 65 (0x41), region = 16 }
  0x20   : > { %202 = sbr.rel (!%p1543_p5) target bundleno = 37 (0x25), region = 20  ;;  %s204_s10 = sand.u32 (%p1543_p5), 1, %s1420_s23  }
  0x21   : > { %s1203_s12 = sshll.u32 (%p1543_p5), %s1432_s26, 3  ;;  %s1142_s13 = sshll.u32 (%p1543_p5), %s204_s10, 4 }
  0x22   : > { %s209_s30 = scalar_lea.vmem (%p1543_p5), %s1795_s0, %s1203_s12  ;;  %s206_s29 = scalar_lea.vmem (%p1543_p5), [#allocation3], %s1142_s13 }
  0x23   : > { %v240_v0 = vld [vmem:[%s209_s30] sm:$0xff] (%p1543_p5)  ;;  %v242_v1 = vld [vmem:[%s209_s30 + $0x90] sm:$0xff] (%p1543_p5) }
  0x24   : > { %241 = vst [vmem:[%s206_s29] sm:$0xff] (%p1543_p5), %v240_v0  ;;  %243 = vst [vmem:[%s206_s29 + $0x8] sm:$0xff] (%p1543_p5), %v242_v1 }
  0x25 PF: > { %249 = sbr.rel (!%p1559_p9) target bundleno = 60 (0x3c), region = 58  ;;  %s251_s9 = sand.u32 (%p1559_p9), 1, %s1412_s21  }
  0x26   : > { %s1147_s11 = sshll.u32 (%p1559_p9), %s1436_s27, 1  ;;  %s1145_s23 = sshll.u32 (%p1559_p9), %s251_s9, 8 }
  0x27   : > { %s1204_s10 = sshll.u32 (%p1559_p9), %s1432_s26, 7  ;;  %s1603_s14 = scalar_lea.vmem (%p1559_p9), [#allocation4], %s1145_s23 }
  0x28   : > { %s257_s16 = sadd.s32 (%p1559_p9), %s1204_s10, %s1147_s11 }
  0x29   : > { %s1149_s17 = sshll.u32 (%p1559_p9), %s257_s16, 2 }
  0x2a   : > { %s1598_s30 = scalar_lea.vmem %s1796_s1, %s1149_s17 }
  0x2b   : > { %v350_v2 = vld [vmem:[%s1598_s30] sm:$0xff]  ;;  %v352_v3 = vld [vmem:[%s1598_s30 + $0x10] sm:$0xff] }
  0x2c   : > { %v354_v4 = vld [vmem:[%s1598_s30 + $0x20] sm:$0xff]  ;;  %351 = vst [vmem:[%s1603_s14] sm:$0xff] %v350_v2  ;;  %353 = vst [vmem:[%s1603_s14 + $0x8] sm:$0xff] %v352_v3  ;;  %v356_v5 = vld [vmem:[%s1598_s30 + $0x30] sm:$0xff] }
  0x2d   : > { %355 = vst [vmem:[%s1603_s14 + $0x10] sm:$0xff] %v354_v4  ;;  %v358_v6 = vld [vmem:[%s1598_s30 + $0x40] sm:$0xff]  ;;  %v360_v7 = vld [vmem:[%s1598_s30 + $0x50] sm:$0xff]  ;;  %357 = vst [vmem:[%s1603_s14 + $0x18] sm:$0xff] %v356_v5 }
  0x2e   : > { %359 = vst [vmem:[%s1603_s14 + $0x20] sm:$0xff] %v358_v6  ;;  %361 = vst [vmem:[%s1603_s14 + $0x28] sm:$0xff] %v360_v7  ;;  %v362_v8 = vld [vmem:[%s1598_s30 + $0x60] sm:$0xff]  ;;  %v364_v9 = vld [vmem:[%s1598_s30 + $0x70] sm:$0xff] }
  0x2f   : > { %v366_v10 = vld [vmem:[%s1598_s30 + $0x80] sm:$0xff]  ;;  %363 = vst [vmem:[%s1603_s14 + $0x30] sm:$0xff] %v362_v8  ;;  %365 = vst [vmem:[%s1603_s14 + $0x38] sm:$0xff] %v364_v9  ;;  %v368_v11 = vld [vmem:[%s1598_s30 + $0x90] sm:$0xff] }
  0x30   : > { %367 = vst [vmem:[%s1603_s14 + $0x40] sm:$0xff] %v366_v10  ;;  %v370_v12 = vld [vmem:[%s1598_s30 + $0xa0] sm:$0xff]  ;;  %v372_v13 = vld [vmem:[%s1598_s30 + $0xb0] sm:$0xff]  ;;  %369 = vst [vmem:[%s1603_s14 + $0x48] sm:$0xff] %v368_v11 }
  0x31   : > { %371 = vst [vmem:[%s1603_s14 + $0x50] sm:$0xff] %v370_v12  ;;  %373 = vst [vmem:[%s1603_s14 + $0x58] sm:$0xff] %v372_v13  ;;  %v374_v14 = vld [vmem:[%s1598_s30 + $0xc0] sm:$0xff]  ;;  %v376_v15 = vld [vmem:[%s1598_s30 + $0xd0] sm:$0xff] }
  0x32   : > { %v378_v16 = vld [vmem:[%s1598_s30 + $0xe0] sm:$0xff]  ;;  %375 = vst [vmem:[%s1603_s14 + $0x60] sm:$0xff] %v374_v14  ;;  %377 = vst [vmem:[%s1603_s14 + $0x68] sm:$0xff] %v376_v15  ;;  %v380_v17 = vld [vmem:[%s1598_s30 + $0xf0] sm:$0xff] }
  0x33   : > { %379 = vst [vmem:[%s1603_s14 + $0x70] sm:$0xff] %v378_v16  ;;  %v382_v18 = vld [vmem:[%s1598_s30 + $0x100] sm:$0xff]  ;;  %v384_v19 = vld [vmem:[%s1598_s30 + $0x110] sm:$0xff]  ;;  %381 = vst [vmem:[%s1603_s14 + $0x78] sm:$0xff] %v380_v17 }
  0x34   : > { %383 = vst [vmem:[%s1603_s14 + $0x80] sm:$0xff] %v382_v18  ;;  %385 = vst [vmem:[%s1603_s14 + $0x88] sm:$0xff] %v384_v19  ;;  %v386_v20 = vld [vmem:[%s1598_s30 + $0x120] sm:$0xff]  ;;  %v388_v21 = vld [vmem:[%s1598_s30 + $0x130] sm:$0xff] }
  0x35   : > { %v390_v22 = vld [vmem:[%s1598_s30 + $0x140] sm:$0xff]  ;;  %387 = vst [vmem:[%s1603_s14 + $0x90] sm:$0xff] %v386_v20  ;;  %389 = vst [vmem:[%s1603_s14 + $0x98] sm:$0xff] %v388_v21  ;;  %v392_v23 = vld [vmem:[%s1598_s30 + $0x150] sm:$0xff] }
  0x36   : > { %391 = vst [vmem:[%s1603_s14 + $0xa0] sm:$0xff] %v390_v22  ;;  %v394_v24 = vld [vmem:[%s1598_s30 + $0x160] sm:$0xff]  ;;  %v396_v25 = vld [vmem:[%s1598_s30 + $0x170] sm:$0xff]  ;;  %393 = vst [vmem:[%s1603_s14 + $0xa8] sm:$0xff] %v392_v23 }
  0x37   : > { %395 = vst [vmem:[%s1603_s14 + $0xb0] sm:$0xff] %v394_v24  ;;  %397 = vst [vmem:[%s1603_s14 + $0xb8] sm:$0xff] %v396_v25  ;;  %v398_v26 = vld [vmem:[%s1598_s30 + $0x180] sm:$0xff]  ;;  %v400_v27 = vld [vmem:[%s1598_s30 + $0x190] sm:$0xff] }
  0x38   : > { %v402_v28 = vld [vmem:[%s1598_s30 + $0x1a0] sm:$0xff]  ;;  %399 = vst [vmem:[%s1603_s14 + $0xc0] sm:$0xff] %v398_v26  ;;  %401 = vst [vmem:[%s1603_s14 + $0xc8] sm:$0xff] %v400_v27  ;;  %v404_v29 = vld [vmem:[%s1598_s30 + $0x1b0] sm:$0xff] }
  0x39   : > { %403 = vst [vmem:[%s1603_s14 + $0xd0] sm:$0xff] %v402_v28  ;;  %v406_v30 = vld [vmem:[%s1598_s30 + $0x1c0] sm:$0xff]  ;;  %v408_v31 = vld [vmem:[%s1598_s30 + $0x1d0] sm:$0xff]  ;;  %405 = vst [vmem:[%s1603_s14 + $0xd8] sm:$0xff] %v404_v29 }
  0x3a   : > { %407 = vst [vmem:[%s1603_s14 + $0xe0] sm:$0xff] %v406_v30  ;;  %409 = vst [vmem:[%s1603_s14 + $0xe8] sm:$0xff] %v408_v31  ;;  %v410_v32 = vld [vmem:[%s1598_s30 + $0x1e0] sm:$0xff]  ;;  %v412_v33 = vld [vmem:[%s1598_s30 + $0x1f0] sm:$0xff] }
  0x3b   : > { %411 = vst [vmem:[%s1603_s14 + $0xf0] sm:$0xff] %v410_v32  ;;  %413 = vst [vmem:[%s1603_s14 + $0xf8] sm:$0xff] %v412_v33 }
  0x3c PF: > { %435 = sbr.rel (!%p1574_p11) target bundleno = 65 (0x41), region = 104  ;;  %s437_s23 = sand.u32 (%p1574_p11), 1, %s1404_s19  }
  0x3d   : > { %s1205_s11 = sshll.u32 (%p1574_p11), %s1436_s27, 3  ;;  %s1150_s16 = sshll.u32 (%p1574_p11), %s437_s23, 4 }
  0x3e   : > { %s442_s15 = scalar_lea.vmem (%p1574_p11), %s1799_s4, %s1205_s11  ;;  %s439_s29 = scalar_lea.vmem (%p1574_p11), [#allocation5], %s1150_s16 }
  0x3f   : > { %v473_v34 = vld [vmem:[%s442_s15] sm:$0xff] (%p1574_p11)  ;;  %v475_v35 = vld [vmem:[%s442_s15 + $0x10] sm:$0xff] (%p1574_p11) }
  0x40   : > { %474 = vst [vmem:[%s439_s29] sm:$0xff] (%p1574_p11), %v473_v34  ;;  %476 = vst [vmem:[%s439_s29 + $0x8] sm:$0xff] (%p1574_p11), %v475_v35 }
  0x41 PF: > { %p1153_p1 = scmp.ge.s32.totalorder %s1440_s28, 1  ;;  %p481_p2 = scmp.lt.s32.totalorder %s1440_s28, 37 }
  0x43   : > { %p482_p3 = pnand %p1153_p1, %p481_p2 }
  0x44   : > { %s488_s7 = sand.u32 (!%p482_p3), 1, %s1416_s22   ;;  %s495_s9 = sand.u32 (!%p482_p3), 1, %s1408_s20  }
  0x45   : > { %485 = sbr.rel (%p482_p3) target bundleno = 440 (0x1b8), region = 142  ;;  %s1677_s10 = sshll.u32 (!%p482_p3), %s488_s7, 4 }
  0x46   : > { %s1155_s6 = sshll.u32 (!%p482_p3), %s495_s9, 8  ;;  %s502_s12 = sand.u32 (!%p482_p3), 1, %s1400_s18  }
  0x47   : > { %s1158_s30 = sshll.u32 (!%p482_p3), %s1428_s25, 1  ;;  %s1681_s14 = sshll.u32 (!%p482_p3), %s502_s12, 4 }
  0x48   : > { %p548_p4 = scmp.lt.s32.totalorder (!%p482_p3), %s1158_s30, 3  ;;  %s490_s13 = scalar_lea.vmem (!%p482_p3), [#allocation3], %s1677_s10 }
  0x49   : > { %s1694_s18 = scalar_lea.vmem (!%p482_p3), [#allocation4], %s1155_s6  ;;  %s504_s15 = scalar_lea.vmem (!%p482_p3), [#allocation5], %s1681_s14 }
  0x4a   : > { %s1836_s30 = smov (!%p548_p4, %s1158_s30), 3  ;;  %s1698_s29 = scalar_lea.vmem [#allocation6], %s1681_s14 }
  0x4b   : > { %s550_s22 = scalar_lea.vmem %s1797_s2, %s1836_s30  ;;  %s555_s17 = scalar_lea.vmem %s1798_s3, %s1836_s30 }
  0x4c   : > { %p1160_p5 = scmp.ne.s32.totalorder %s1424_s24, 0 }
  0x4e   : > { %562 = sbr.rel (%p1160_p5) target bundleno = 86 (0x56), region = 158 }
  0x53   : > { %v1442_v36 = vmov 0.0  }
  0x54   : > { %563 = vst [vmem:[#allocation2 + $0x10] sm:$0xff] %v1442_v36  ;;  %564 = vst [vmem:[#allocation2] sm:$0xff] %v1442_v36 }
  0x55   : > { %565 = vst [vmem:[#allocation2 + $0x18] sm:$0xff] %v1442_v36  ;;  %566 = vst [vmem:[#allocation2 + $0x8] sm:$0xff] %v1442_v36 }
  0x56 PF: > { %v1299_v37 = vld [vmem:[%s1694_s18 + $0x74] ss:$8 sps:$4 sm:$0xff]   ;;  %v1301_v38 = vld [vmem:[%s1694_s18 + $0x70] ss:$8 sps:$4 sm:$0xff]   ;;  %v1302_v39 = vld [vmem:[%s1694_s18 + $0x64] ss:$8 sps:$4 sm:$0xff]  }
  0x57   : > { %775 = vmatprep.subr.bf16.mxu0 %v1299_v37  ;;  %v1304_v40 = vld [vmem:[%s1694_s18 + $0x60] ss:$8 sps:$4 sm:$0xff]   ;;  %v1305_v41 = vld [vmem:[%s1694_s18 + $0x54] ss:$8 sps:$4 sm:$0xff]   ;;  %v1307_v42 = vld [vmem:[%s1694_s18 + $0x50] ss:$8 sps:$4 sm:$0xff]  }
  0x58   : > { %776 = vmatpush1.bf16.msra.mxu0 %v1301_v38  ;;  %v1308_v43 = vld [vmem:[%s1694_s18 + $0x44] ss:$8 sps:$4 sm:$0xff]   ;;  %v1310_v44 = vld [vmem:[%s1694_s18 + $0x40] ss:$8 sps:$4 sm:$0xff]   ;;  %v1311_v45 = vld [vmem:[%s1694_s18 + $0x34] ss:$8 sps:$4 sm:$0xff]  }
  0x59   : > { %777 = vmatprep.subr.bf16.mxu0 %v1302_v39  ;;  %v1313_v46 = vld [vmem:[%s1694_s18 + $0x30] ss:$8 sps:$4 sm:$0xff]   ;;  %v1314_v47 = vld [vmem:[%s1694_s18 + $0x24] ss:$8 sps:$4 sm:$0xff]   ;;  %v1316_v48 = vld [vmem:[%s1694_s18 + $0x20] ss:$8 sps:$4 sm:$0xff]  }
  0x5a   : > { %v1317_v49 = vld [vmem:[%s1694_s18 + $0x14] ss:$8 sps:$4 sm:$0xff]   ;;  %v1319_v51 = vld [vmem:[%s1694_s18 + $0x10] ss:$8 sps:$4 sm:$0xff]   ;;  %v1320_v52 = vld [vmem:[%s1694_s18 + $0x4] ss:$8 sps:$4 sm:$0xff]  }
  0x5b   : > { %v1349_v50 = vld [vmem:[%s490_s13 + $0x4] ss:$8 sps:$4 sm:$0xff]   ;;  %v1322_v53 = vld [vmem:[%s1694_s18] ss:$8 sps:$4 sm:$0xff]   ;;  %v1325_v55 = vld [vmem:[%s1694_s18 + $0xf0] ss:$8 sps:$4 sm:$0xff]  }
  0x5c   : > { %778 = vmatpush1.bf16.msra.mxu0 %v1304_v40  ;;  %807 = vmatprep.mubr.bf16.mxu0 %v1349_v50  ;;  %v1323_v54 = vld [vmem:[%s1694_s18 + $0xf4] ss:$8 sps:$4 sm:$0xff]   ;;  %v1326_v56 = vld [vmem:[%s1694_s18 + $0xe4] ss:$8 sps:$4 sm:$0xff]   ;;  %v1328_v57 = vld [vmem:[%s1694_s18 + $0xe0] ss:$8 sps:$4 sm:$0xff]  }
  0x5d   : > { %779 = vmatprep.subr.bf16.mxu0 %v1305_v41  ;;  %v1329_v58 = vld [vmem:[%s1694_s18 + $0xd4] ss:$8 sps:$4 sm:$0xff]   ;;  %v1331_v59 = vld [vmem:[%s1694_s18 + $0xd0] ss:$8 sps:$4 sm:$0xff]   ;;  %v1332_v60 = vld [vmem:[%s1694_s18 + $0xc4] ss:$8 sps:$4 sm:$0xff]  }
  0x5e   : > { %v1334_v61 = vld [vmem:[%s1694_s18 + $0xc0] ss:$8 sps:$4 sm:$0xff]   ;;  %v1335_v62 = vld [vmem:[%s1694_s18 + $0xb4] ss:$8 sps:$4 sm:$0xff]   ;;  %v1337_v63 = vld [vmem:[%s1694_s18 + $0xb0] ss:$8 sps:$4 sm:$0xff]  }
  0x5f   : > { %v1338_v0 = vld [vmem:[%s1694_s18 + $0xa4] ss:$8 sps:$4 sm:$0xff]   ;;  %v1340_v1 = vld [vmem:[%s1694_s18 + $0xa0] ss:$8 sps:$4 sm:$0xff]   ;;  %v1341_v2 = vld [vmem:[%s1694_s18 + $0x94] ss:$8 sps:$4 sm:$0xff]  }
  0x60   : > { %780 = vmatpush1.bf16.msra.mxu0 %v1307_v42  ;;  %v1343_v3 = vld [vmem:[%s1694_s18 + $0x90] ss:$8 sps:$4 sm:$0xff]   ;;  %v1344_v4 = vld [vmem:[%s1694_s18 + $0x84] ss:$8 sps:$4 sm:$0xff]   ;;  %v1346_v5 = vld [vmem:[%s1694_s18 + $0x80] ss:$8 sps:$4 sm:$0xff]  }
  0x61   : > { %781 = vmatprep.subr.bf16.mxu0 %v1308_v43  ;;  %v1347_v6 = vld [vmem:[%s490_s13] ss:$8 sps:$4 sm:$0xff]   ;;  %p1195_p6 = scmp.ne.s32.totalorder %s1424_s24, 17 }
  0x62   : > { %v567_v7 = vld [vmem:[#allocation2 + $0x10] sm:$0xff]  ;;  %v568_v9 = vld [vmem:[#allocation2] sm:$0xff]  ;;  %v569_v12 = vld [vmem:[#allocation2 + $0x18] sm:$0xff] }
  0x63   : > { %v570_v15 = vld [vmem:[#allocation2 + $0x8] sm:$0xff] }
  0x64   : > { %782 = vmatpush1.bf16.msra.mxu0 %v1310_v44 }
  0x65   : > { %783 = vmatprep.subr.bf16.mxu0 %v1311_v45 }
  0x68   : > { %784 = vmatpush1.bf16.msra.mxu0 %v1313_v46 }
  0x69   : > { %785 = vmatprep.subr.bf16.mxu0 %v1314_v47 }
  0x6c   : > { %786 = vmatpush1.bf16.msra.mxu0 %v1316_v48 }
  0x6d   : > { %787 = vmatprep.subr.bf16.mxu0 %v1317_v49 }
  0x70   : > { %788 = vmatpush1.bf16.msra.mxu0 %v1319_v51 }
  0x71   : > { %789 = vmatprep.subr.bf16.mxu0 %v1320_v52 }
  0x74   : > { %790 = vmatpush1.bf16.msra.mxu0 %v1322_v53 }
  0x75   : > { %791 = vmatprep.subr.bf16.mxu0 %v1323_v54 }
  0x78   : > { %792 = vmatpush2.bf16.msra.mxu0 %v1325_v55 }
  0x79   : > { %793 = vmatprep.subr.bf16.mxu0 %v1326_v56 }
  0x7c   : > { %794 = vmatpush2.bf16.msra.mxu0 %v1328_v57 }
  0x7d   : > { %795 = vmatprep.subr.bf16.mxu0 %v1329_v58 }
  0x80   : > { %796 = vmatpush2.bf16.msra.mxu0 %v1331_v59 }
  0x81   : > { %797 = vmatprep.subr.bf16.mxu0 %v1332_v60 }
  0x84   : > { %798 = vmatpush2.bf16.msra.mxu0 %v1334_v61 }
  0x85   : > { %799 = vmatprep.subr.bf16.mxu0 %v1335_v62 }
  0x88   : > { %800 = vmatpush2.bf16.msra.mxu0 %v1337_v63 }
  0x89   : > { %801 = vmatprep.subr.bf16.mxu0 %v1338_v0 }
  0x8c   : > { %802 = vmatpush2.bf16.msra.mxu0 %v1340_v1 }
  0x8d   : > { %803 = vmatprep.subr.bf16.mxu0 %v1341_v2 }
  0x90   : > { %804 = vmatpush2.bf16.msra.mxu0 %v1343_v3 }
  0x91   : > { %805 = vmatprep.subr.bf16.mxu0 %v1344_v4 }
  0x94   : > { %806 = vmatpush2.bf16.msra.mxu0 %v1346_v5 }
  0x97   : > { %808 = vmatmul.mubr.bf16.vlgmr.msra.gmra.mxu0 %v1347_v6 }
 0x157   : > { %v809_v8 = vpop.f32.mrf.mxu0 }
 0x158   : > { %v818_v10 = vadd.f32 %v809_v8, %v567_v7 }
 0x159   : > { %v811_v11 = vpop.f32.mrf.mxu0 }
 0x15a   : > { %822 = vst [vmem:[#allocation2 + $0x10] sm:$0xff] %v818_v10  ;;  %v819_v13 = vadd.f32 %v811_v11, %v568_v9 }
 0x15b   : > { %v813_v14 = vpop.f32.mrf.mxu0 }
 0x15c   : > { %823 = vst [vmem:[#allocation2] sm:$0xff] %v819_v13  ;;  %v820_v16 = vadd.f32 %v813_v14, %v569_v12  ;;  %829 = sbr.rel (%p1195_p6) target bundleno = 432 (0x1b0), region = 162 }
 0x15d   : > { %v815_v17 = vpop.f32.mrf.mxu0 }
 0x15e   : > { %824 = vst [vmem:[#allocation2 + $0x18] sm:$0xff] %v820_v16  ;;  %v821_v18 = vadd.f32 %v815_v17, %v570_v15 }
 0x160   : > { %825 = vst [vmem:[#allocation2 + $0x8] sm:$0xff] %v821_v18 }
 0x161   : > { %v830_v19 = vld [vmem:[#allocation2 + $0x10] sm:$0xff]  ;;  %v854_v31 = vlaneseq  ;;  %v1443_v63 = vmov 1966171168   ;;  %v834_v7 = vld [vmem:[%s550_s22] sm:$0x3]  ;;  %v837_v14 = vld [vmem:[%s504_s15 + $0x8] sm:$0xff] }
 0x162   : > { %v895_v0 = vunpack.c.l.s4 %v1443_v63  ;;  %v835_v11 = vld [vmem:[%s555_s17] sm:$0x3] }
 0x163   : > { %v831_v20 = vld [vmem:[#allocation2] sm:$0xff]  ;;  %v855_v36 = vshrl.u32 %v854_v31, 7 }
 0x164   : > { %v896_v1 = vunpack.c.0.s8 %v895_v0  ;;  %v836_v12 = vld [vmem:[%s504_s15] sm:$0xff] }
 0x165   : > { %v832_v21 = vld [vmem:[#allocation2 + $0x18] sm:$0xff]  ;;  %vm857_vm0 = vcmp.lt.s32.totalorder %v855_v36, 2  ;;  %v913_v9 = vsub.s32 0, %v855_v36  ;;  %v917_v10 = vsub.s32 1, %v855_v36 }
 0x166   : > { %v838_v23 = vadd.f32 %v832_v21, %v830_v19  ;;  %v899_v3 = vsub.s32 %v896_v1, %v855_v36  ;;  %v942_v21 = vunpack.c.l.bf16 %v837_v14 }
 0x167   : > { %v833_v22 = vld [vmem:[#allocation2 + $0x8] sm:$0xff]  ;;  %v929_v17 = vrot.slane %v835_v11, %v913_v9  ;;  %v933_v18 = vrot.slane %v835_v11, %v917_v10 }
 0x168   : > { %v845_v24 = vadd.f32 %v833_v22, %v831_v20  ;;  %v839_v25 = vrot.slane %v838_v23, 4  ;;  %v943_v22 = vunpack.c.h.bf16 %v837_v14 }
 0x16a   : > { %v846_v26 = vrot.slane %v845_v24, 4  ;;  %v840_v27 = vadd.f32 %v839_v25, %v838_v23 }
 0x16c   : > { %v847_v28 = vadd.f32 %v846_v26, %v845_v24  ;;  %v841_v29 = vrot.slane %v840_v27, 2 }
 0x16e   : > { %v848_v30 = vrot.slane %v847_v28, 2  ;;  %v842_v32 = vadd.f32 %v841_v29, %v840_v27 }
 0x170   : > { %v849_v33 = vadd.f32 %v848_v30, %v847_v28  ;;  %v843_v34 = vrot.slane %v842_v32, 1 }
 0x172   : > { %v850_v35 = vrot.slane %v849_v33, 1  ;;  %v844_v37 = vadd.f32 %v843_v34, %v842_v32 }
 0x174   : > { %v851_v38 = vadd.f32 %v850_v35, %v849_v33  ;;  %v852_v39 = vmul.f32 0.5, %v844_v37 }
 0x176   : > { %v853_v40 = vmul.f32 0.5, %v851_v38  ;;  %v859_v41 = vsub.f32 %v830_v19, %v852_v39  ;;  %v940_v19 = vunpack.c.l.bf16 %v836_v12 }
 0x178   : > { %v860_v42 = vsub.f32 %v831_v20, %v853_v40  ;;  %v863_v43 = vsel %vm857_vm0, %v859_v41, 0.0  ;;  %v941_v20 = vunpack.c.h.bf16 %v836_v12 }
 0x179   : > { %v867_v45 = vmul.f32 %v863_v43, %v863_v43 }
 0x17a   : > { %v864_v44 = vsel %vm857_vm0, %v860_v42, 0.0 }
 0x17b   : > { %v868_v46 = vmul.f32 %v864_v44, %v864_v44  ;;  %v872_v47 = vrot.slane %v867_v45, 4 }
 0x17d   : > { %v879_v48 = vrot.slane %v868_v46, 4  ;;  %v873_v49 = vadd.f32 %v872_v47, %v867_v45 }
 0x17f   : > { %v880_v50 = vadd.f32 %v879_v48, %v868_v46  ;;  %v874_v51 = vrot.slane %v873_v49, 2 }
 0x181   : > { %v881_v52 = vrot.slane %v880_v50, 2  ;;  %v875_v53 = vadd.f32 %v874_v51, %v873_v49 }
 0x183   : > { %v882_v54 = vadd.f32 %v881_v52, %v880_v50  ;;  %v876_v55 = vrot.slane %v875_v53, 1 }
 0x185   : > { %v883_v56 = vrot.slane %v882_v54, 1  ;;  %v877_v57 = vadd.f32 %v876_v55, %v875_v53 }
 0x187   : > { %v884_v58 = vadd.f32 %v883_v56, %v882_v54  ;;  %v885_v59 = vmul.f32 0.5, %v877_v57 }
 0x189   : > { %v886_v60 = vmul.f32 0.5, %v884_v58  ;;  %v887_v61 = vadd.f32 1e-05, %v885_v59 }
 0x18b   : > { %v888_v62 = vadd.f32 1e-05, %v886_v60  ;;  %1350 = vrsqrt.f32 %v887_v61 }
 0x18d   : > { %1352 = vrsqrt.f32 %v888_v62 }
 0x198   : > { %v1351_v2 = vpop.eup %1350 }
 0x19a   : > { %v1353_v4 = vpop.eup %1352 }
 0x19b   : > { %v893_v5 = vcombine.low %v1351_v2, %v1353_v4 }
 0x19d   : > { %v900_v6 = vrot.slane %v893_v5, %v899_v3 }
 0x19f   : > { %v907_v8 = vrot.slane %v900_v6, %v899_v3 }
 0x1a1   : > { %v909_v13 = vmul.f32 %v907_v8, %v834_v7 }
 0x1a3   : > { %v914_v15 = vrot.slane %v909_v13, %v913_v9  ;;  %v918_v16 = vrot.slane %v909_v13, %v917_v10 }
 0x1a5   : > { %v921_v23 = vmul.f32 %v914_v15, %v863_v43  ;;  %v922_v24 = vmul.f32 %v918_v16, %v864_v44  ;;  %v923_v25 = vmul.f32 0.0, %v914_v15  ;;  %v924_v26 = vmul.f32 0.0, %v918_v16 }
 0x1a7   : > { %v936_v27 = vadd.f32 %v929_v17, %v921_v23  ;;  %v937_v28 = vadd.f32 %v933_v18, %v922_v24  ;;  %v938_v29 = vadd.f32 %v929_v17, %v923_v25  ;;  %v939_v30 = vadd.f32 %v933_v18, %v924_v26 }
 0x1a9   : > { %v944_v31 = vadd.f32 %v940_v19, %v936_v27  ;;  %v945_v32 = vadd.f32 %v941_v20, %v937_v28  ;;  %v946_v33 = vadd.f32 %v942_v21, %v938_v29  ;;  %v947_v34 = vadd.f32 %v943_v22, %v939_v30 }
 0x1ab   : > { %v948_v35 = vmax.f32 %v944_v31, 0.0  ;;  %v949_v36 = vmax.f32 %v945_v32, 0.0  ;;  %v950_v37 = vmax.f32 %v946_v33, 0.0  ;;  %v951_v38 = vmax.f32 %v947_v34, 0.0 }
 0x1ad   : > { %v1206_v39 = vpack.c.bf16 %v949_v36, %v948_v35  ;;  %v1207_v40 = vpack.c.bf16 %v951_v38, %v950_v37 }
 0x1af   : > { %964 = vst [vmem:[%s1698_s29] sm:$0xff] %v1206_v39  ;;  %965 = vst [vmem:[%s1698_s29 + $0x8] sm:$0xff] %v1207_v40 }
 0x1b0 PF: > { %972 = sbr.rel (!%p1578_p13) target bundleno = 440 (0x1b8), region = 166  ;;  %s1208_s6 = sshll.u32 (%p1578_p13), %s1428_s25, 3 }
 0x1b1   : > { %s975_s14 = scalar_lea.vmem (%p1578_p13), %s1800_s5, %s1208_s6 }
 0x1b6   : > { %v1006_v41 = vld [vmem:[%s1698_s29] sm:$0xff]  ;;  %v1008_v42 = vld [vmem:[%s1698_s29 + $0x8] sm:$0xff] }
 0x1b7   : > { %1007 = vst [vmem:[%s975_s14] sm:$0xff] %v1006_v41  ;;  %1009 = vst [vmem:[%s975_s14 + $0x10] sm:$0xff] %v1008_v42 }
 0x1b8 PF: > { %s15_s28 = sadd.s32 1, %s1440_s28   ;;  %s1814_s8 = sld [smem:[#allocation12_spill]] }
 0x1b9   : > { %p12_p7 = scmp.ge.s32.totalorder %s15_s28, 38   ;;  %s1815_s23 = sld [smem:[#allocation11_spill]] }
 0x1ba   : > { %s1816_s22 = sld [smem:[#allocation7_spill]]  ;;  %s1820_s18 = smov %s1404_s19 }
 0x1bb   : > { %s1817_s11 = sld [smem:[#allocation10_spill]]  ;;  %s1822_s20 = smov %s1412_s21 }
 0x1bc   : > { %s1818_s16 = sld [smem:[#allocation8_spill]]  ;;  %s1825_s24 = smov %s1432_s26 }
 0x1bd   : > { %s1819_s17 = sld [smem:[#allocation9_spill]]  ;;  %s1826_s25 = smov %s1436_s27 }
 0x1be   : > { %s1821_s19 = smov %s1814_s8 }
 0x1bf   : > { %s1823_s21 = smov %s1815_s23  ;;  %14 = sbr.rel (!%p12_p7) target bundleno = 6 (0x6), region = 257 }
 0x1c1   : > { %s1824_s23 = smov %s1817_s11 }
 0x1c2   : > { %s1827_s26 = smov %s1818_s16 }
 0x1c3   : > { %s1828_s27 = smov %s1819_s17 }

// kernel: resnet_forward.42
= control target key start
LH: loop header
LB: loop body
LE: loop exit
PB: predicated region body
PF: predicated region fallthrough
CT: control target
= control target key end

     0   :  { %s1348_s15 = smov 0   ;;  %s1350_s16 = smov 0   ;;  %s1644_s0 = inlined_call_operand.vmem [shape: bf16[16,4608], index: 0, kind: input, shape index: {}]   ;;  %s1645_s1 = inlined_call_operand.vmem [shape: bf16[4608,512], index: 1, kind: input, shape index: {}]   ;;  %s1646_s2 = inlined_call_operand.vmem [shape: f32[1,512], index: 2, kind: input, shape index: {}]   ;;  %s1647_s3 = inlined_call_operand.vmem [shape: f32[1,512], index: 3, kind: input, shape index: {}]   ;;  %s1648_s4 = inlined_call_operand.vmem [shape: bf16[16,512], index: 4, kind: output, shape index: {}]  }
   0x1   :  { %s1352_s17 = smov 0   ;;  %s1354_s18 = smov 0  }
   0x2   :  { %s1356_s19 = smov 0   ;;  %s1358_s20 = smov 0  }
   0x3   :  { %s1360_s21 = smov 0   ;;  %s1362_s22 = smov 0  }
   0x4   :  { %s1364_s23 = smov 0   ;;  %s1366_s24 = smov 0  }
   0x5   :  { %s1368_s25 = smov 0  }
   0x6 LB: > { %1652 = sst [smem:[#allocation6_spill]] %s1299_s20  ;;  %s1022_s26 = sadd.s32 4294967295, %s1319_s25   ;;  %s1319_s25 = sphi %s1368_s25, %s14_s25   ;;  %s1315_s24 = sphi %s1366_s24, %s1670_s24   ;;  %s1311_s23 = sphi %s1364_s23, %s1669_s23   ;;  %s1307_s22 = sphi %s1362_s22, %s1668_s22   ;;  %s1303_s21 = sphi %s1360_s21, %s1667_s21   ;;  %s1299_s20 = sphi %s1358_s20, %s1660_s20   ;;  %s1295_s19 = sphi %s1356_s19, %s1659_s19   ;;  %s1291_s18 = sphi %s1354_s18, %s1666_s18   ;;  %s1287_s17 = sphi %s1352_s17, %s1665_s17   ;;  %s1283_s16 = sphi %s1350_s16, %s1664_s16   ;;  %s1279_s15 = sphi %s1348_s15, %s1663_s15  }
   0x7   : > { %s23_s27 = sadd.s32 1, %s1311_s23  ;;  %s26_s28 = sadd.s32 1, %s1315_s24 }
   0x8   : > { %p24_p0 = scmp.ge.s32.totalorder %s23_s27, 18  ;;  %s33_s29 = sadd.s32 1, %s1299_s20 }
   0x9   : > { %p40_p1 = scmp.ne.s32.totalorder %s1299_s20, %s1295_s19  ;;  %p41_p2 = scmp.eq.s32.totalorder %s1319_s25, 0 }
   0xa   : > { %s1672_s27 = smov (%p24_p0, %s23_s27), 0  ;;  %s1674_s28 = smov (!%p24_p0, %s26_s28), %s1315_s24 }
   0xb   : > { %1653 = sst [smem:[#allocation7_spill]] %s1672_s27  ;;  %s30_s30 = ssub.s32 %s1311_s23, %s1672_s27 }
   0xc   : > { %p28_p3 = scmp.ge.s32.totalorder %s1674_s28, 2  ;;  %p31_p4 = scmp.eq.s32.totalorder %s30_s30, 0 }
   0xd   : > { %p1415_p5 = por %p41_p2, %p40_p1  ;;  %s61_s6 = sadd.s32 1, %s1291_s18 }
   0xe   : > { %s1676_s28 = smov (%p28_p3, %s1674_s28), 0  ;;  %p68_p6 = scmp.ne.s32.totalorder %s1291_s18, %s1287_s17 }
   0xf   : > { %1655 = sst [smem:[#allocation8_spill]] %s1676_s28  ;;  %s57_s8 = ssub.s32 %s1315_s24, %s1676_s28 }
  0x10   : > { %s1423_s7 = scalar_select %p31_p4, %s1299_s20, %s33_s29  }
  0x11   : > { %s58_s9 = sor.u32 %s57_s8, %s30_s30  ;;  %p137_p7 = scmp.eq.s32.totalorder %s57_s8, 0 }
  0x12   : > { %1656 = sst [smem:[#allocation9_spill]] %s1423_s7  ;;  %p59_p8 = scmp.eq.s32.totalorder %s58_s9, 0 }
  0x13   : > { %p1429_p9 = por %p68_p6, %p41_p2  ;;  %s139_s11 = sadd.s32 1, %s1283_s16 }
  0x14   : > { %p149_p10 = scmp.ne.s32.totalorder %s1283_s16, %s1279_s15  ;;  %p150_p11 = scmp.eq.s32.totalorder %s1022_s26, 35 }
  0x15   : > { %s1437_s12 = scalar_select %p59_p8, %s1291_s18, %s61_s6  }
  0x16   : > { %s1440_s13 = scalar_select %p137_p7, %s1283_s16, %s139_s11  }
  0x17   : > { %p1442_p12 = por %p150_p11, %p149_p10  ;;  %p1025_p13 = scmp.ge.s32.totalorder %s1319_s25, 36 }
  0x19   : > { %172 = sbr.rel (%p1025_p13) target bundleno = 58 (0x3a), region = 16 }
  0x1e   : > { %175 = sbr.rel (!%p1415_p5) target bundleno = 35 (0x23), region = 20  ;;  %s177_s29 = sand.u32 (%p1415_p5), 1, %s1299_s20  }
  0x1f   : > { %s1083_s30 = sshll.u32 (%p1415_p5), %s1311_s23, 3  ;;  %s1026_s8 = sshll.u32 (%p1415_p5), %s177_s29, 4 }
  0x20   : > { %s182_s11 = scalar_lea.vmem (%p1415_p5), %s1644_s0, %s1083_s30  ;;  %s179_s26 = scalar_lea.vmem (%p1415_p5), [#allocation3], %s1026_s8 }
  0x21   : > { %v213_v0 = vld [vmem:[%s182_s11] sm:$0xff] (%p1415_p5)  ;;  %v215_v1 = vld [vmem:[%s182_s11 + $0x90] sm:$0xff] (%p1415_p5) }
  0x22   : > { %214 = vst [vmem:[%s179_s26] sm:$0xff] (%p1415_p5), %v213_v0  ;;  %216 = vst [vmem:[%s179_s26 + $0x8] sm:$0xff] (%p1415_p5), %v215_v1 }
  0x23 PF: > { %222 = sbr.rel (!%p1429_p9) target bundleno = 58 (0x3a), region = 58  ;;  %s224_s5 = sand.u32 (%p1429_p9), 1, %s1291_s18  }
  0x24   : > { %s1031_s28 = sshll.u32 (%p1429_p9), %s1315_s24, 1  ;;  %s1029_s27 = sshll.u32 (%p1429_p9), %s224_s5, 8 }
  0x25   : > { %s1084_s29 = sshll.u32 (%p1429_p9), %s1311_s23, 7  ;;  %s1467_s10 = scalar_lea.vmem (%p1429_p9), [#allocation4], %s1029_s27 }
  0x26   : > { %s230_s7 = sadd.s32 (%p1429_p9), %s1084_s29, %s1031_s28 }
  0x27   : > { %s1033_s20 = sshll.u32 (%p1429_p9), %s230_s7, 2 }
  0x28   : > { %s1462_s9 = scalar_lea.vmem %s1645_s1, %s1033_s20 }
  0x29   : > { %v323_v2 = vld [vmem:[%s1462_s9] sm:$0xff]  ;;  %v325_v3 = vld [vmem:[%s1462_s9 + $0x10] sm:$0xff] }
  0x2a   : > { %v327_v4 = vld [vmem:[%s1462_s9 + $0x20] sm:$0xff]  ;;  %324 = vst [vmem:[%s1467_s10] sm:$0xff] %v323_v2  ;;  %326 = vst [vmem:[%s1467_s10 + $0x8] sm:$0xff] %v325_v3  ;;  %v329_v5 = vld [vmem:[%s1462_s9 + $0x30] sm:$0xff] }
  0x2b   : > { %328 = vst [vmem:[%s1467_s10 + $0x10] sm:$0xff] %v327_v4  ;;  %v331_v6 = vld [vmem:[%s1462_s9 + $0x40] sm:$0xff]  ;;  %v333_v7 = vld [vmem:[%s1462_s9 + $0x50] sm:$0xff]  ;;  %330 = vst [vmem:[%s1467_s10 + $0x18] sm:$0xff] %v329_v5 }
  0x2c   : > { %332 = vst [vmem:[%s1467_s10 + $0x20] sm:$0xff] %v331_v6  ;;  %334 = vst [vmem:[%s1467_s10 + $0x28] sm:$0xff] %v333_v7  ;;  %v335_v8 = vld [vmem:[%s1462_s9 + $0x60] sm:$0xff]  ;;  %v337_v9 = vld [vmem:[%s1462_s9 + $0x70] sm:$0xff] }
  0x2d   : > { %v339_v10 = vld [vmem:[%s1462_s9 + $0x80] sm:$0xff]  ;;  %336 = vst [vmem:[%s1467_s10 + $0x30] sm:$0xff] %v335_v8  ;;  %338 = vst [vmem:[%s1467_s10 + $0x38] sm:$0xff] %v337_v9  ;;  %v341_v11 = vld [vmem:[%s1462_s9 + $0x90] sm:$0xff] }
  0x2e   : > { %340 = vst [vmem:[%s1467_s10 + $0x40] sm:$0xff] %v339_v10  ;;  %v343_v12 = vld [vmem:[%s1462_s9 + $0xa0] sm:$0xff]  ;;  %v345_v13 = vld [vmem:[%s1462_s9 + $0xb0] sm:$0xff]  ;;  %342 = vst [vmem:[%s1467_s10 + $0x48] sm:$0xff] %v341_v11 }
  0x2f   : > { %344 = vst [vmem:[%s1467_s10 + $0x50] sm:$0xff] %v343_v12  ;;  %346 = vst [vmem:[%s1467_s10 + $0x58] sm:$0xff] %v345_v13  ;;  %v347_v14 = vld [vmem:[%s1462_s9 + $0xc0] sm:$0xff]  ;;  %v349_v15 = vld [vmem:[%s1462_s9 + $0xd0] sm:$0xff] }
  0x30   : > { %v351_v16 = vld [vmem:[%s1462_s9 + $0xe0] sm:$0xff]  ;;  %348 = vst [vmem:[%s1467_s10 + $0x60] sm:$0xff] %v347_v14  ;;  %350 = vst [vmem:[%s1467_s10 + $0x68] sm:$0xff] %v349_v15  ;;  %v353_v17 = vld [vmem:[%s1462_s9 + $0xf0] sm:$0xff] }
  0x31   : > { %352 = vst [vmem:[%s1467_s10 + $0x70] sm:$0xff] %v351_v16  ;;  %v355_v18 = vld [vmem:[%s1462_s9 + $0x100] sm:$0xff]  ;;  %v357_v19 = vld [vmem:[%s1462_s9 + $0x110] sm:$0xff]  ;;  %354 = vst [vmem:[%s1467_s10 + $0x78] sm:$0xff] %v353_v17 }
  0x32   : > { %356 = vst [vmem:[%s1467_s10 + $0x80] sm:$0xff] %v355_v18  ;;  %358 = vst [vmem:[%s1467_s10 + $0x88] sm:$0xff] %v357_v19  ;;  %v359_v20 = vld [vmem:[%s1462_s9 + $0x120] sm:$0xff]  ;;  %v361_v21 = vld [vmem:[%s1462_s9 + $0x130] sm:$0xff] }
  0x33   : > { %v363_v22 = vld [vmem:[%s1462_s9 + $0x140] sm:$0xff]  ;;  %360 = vst [vmem:[%s1467_s10 + $0x90] sm:$0xff] %v359_v20  ;;  %362 = vst [vmem:[%s1467_s10 + $0x98] sm:$0xff] %v361_v21  ;;  %v365_v23 = vld [vmem:[%s1462_s9 + $0x150] sm:$0xff] }
  0x34   : > { %364 = vst [vmem:[%s1467_s10 + $0xa0] sm:$0xff] %v363_v22  ;;  %v367_v24 = vld [vmem:[%s1462_s9 + $0x160] sm:$0xff]  ;;  %v369_v25 = vld [vmem:[%s1462_s9 + $0x170] sm:$0xff]  ;;  %366 = vst [vmem:[%s1467_s10 + $0xa8] sm:$0xff] %v365_v23 }
  0x35   : > { %368 = vst [vmem:[%s1467_s10 + $0xb0] sm:$0xff] %v367_v24  ;;  %370 = vst [vmem:[%s1467_s10 + $0xb8] sm:$0xff] %v369_v25  ;;  %v371_v26 = vld [vmem:[%s1462_s9 + $0x180] sm:$0xff]  ;;  %v373_v27 = vld [vmem:[%s1462_s9 + $0x190] sm:$0xff] }
  0x36   : > { %v375_v28 = vld [vmem:[%s1462_s9 + $0x1a0] sm:$0xff]  ;;  %372 = vst [vmem:[%s1467_s10 + $0xc0] sm:$0xff] %v371_v26  ;;  %374 = vst [vmem:[%s1467_s10 + $0xc8] sm:$0xff] %v373_v27  ;;  %v377_v29 = vld [vmem:[%s1462_s9 + $0x1b0] sm:$0xff] }
  0x37   : > { %376 = vst [vmem:[%s1467_s10 + $0xd0] sm:$0xff] %v375_v28  ;;  %v379_v30 = vld [vmem:[%s1462_s9 + $0x1c0] sm:$0xff]  ;;  %v381_v31 = vld [vmem:[%s1462_s9 + $0x1d0] sm:$0xff]  ;;  %378 = vst [vmem:[%s1467_s10 + $0xd8] sm:$0xff] %v377_v29 }
  0x38   : > { %380 = vst [vmem:[%s1467_s10 + $0xe0] sm:$0xff] %v379_v30  ;;  %382 = vst [vmem:[%s1467_s10 + $0xe8] sm:$0xff] %v381_v31  ;;  %v383_v32 = vld [vmem:[%s1462_s9 + $0x1e0] sm:$0xff]  ;;  %v385_v33 = vld [vmem:[%s1462_s9 + $0x1f0] sm:$0xff] }
  0x39   : > { %384 = vst [vmem:[%s1467_s10 + $0xf0] sm:$0xff] %v383_v32  ;;  %386 = vst [vmem:[%s1467_s10 + $0xf8] sm:$0xff] %v385_v33 }
  0x3a PF: > { %p1034_p0 = scmp.ge.s32.totalorder %s1319_s25, 1  ;;  %p407_p1 = scmp.lt.s32.totalorder %s1319_s25, 37 }
  0x3c   : > { %p408_p2 = pnand %p1034_p0, %p407_p1 }
  0x3d   : > { %s414_s20 = sand.u32 (!%p408_p2), 1, %s1295_s19   ;;  %s421_s27 = sand.u32 (!%p408_p2), 1, %s1287_s17  }
  0x3e   : > { %411 = sbr.rel (%p408_p2) target bundleno = 429 (0x1ad), region = 104  ;;  %s1534_s28 = sshll.u32 (!%p408_p2), %s414_s20, 4 }
  0x3f   : > { %s1036_s7 = sshll.u32 (!%p408_p2), %s421_s27, 8  ;;  %s454_s8 = sand.u32 (!%p408_p2), 1, %s1279_s15  }
  0x40   : > { %s1038_s11 = sshll.u32 (!%p408_p2), %s1307_s22, 1  ;;  %s1037_s26 = sshll.u32 (!%p408_p2), %s454_s8, 4 }
  0x41   : > { %p461_p3 = scmp.lt.s32.totalorder (!%p408_p2), %s1038_s11, 3  ;;  %s416_s19 = scalar_lea.vmem (!%p408_p2), [#allocation3], %s1534_s28 }
  0x42   : > { %s1549_s10 = scalar_lea.vmem (!%p408_p2), [#allocation4], %s1036_s7  ;;  %s1551_s20 = scalar_lea.vmem (!%p408_p2), [#allocation5], %s1037_s26 }
  0x43   : > { %s1678_s11 = smov (!%p461_p3, %s1038_s11), 3  ;;  %p1040_p4 = scmp.ne.s32.totalorder %s1303_s21, 0 }
  0x44   : > { %s463_s6 = scalar_lea.vmem %s1646_s2, %s1678_s11  ;;  %s468_s17 = scalar_lea.vmem %s1647_s3, %s1678_s11 }
  0x45   : > { %474 = sbr.rel (%p1040_p4) target bundleno = 77 (0x4d), region = 116 }
  0x4a   : > { %v1321_v34 = vmov 0.0  }
  0x4b   : > { %475 = vst [vmem:[#allocation2 + $0x10] sm:$0xff] %v1321_v34  ;;  %476 = vst [vmem:[#allocation2] sm:$0xff] %v1321_v34 }
  0x4c   : > { %477 = vst [vmem:[#allocation2 + $0x18] sm:$0xff] %v1321_v34  ;;  %478 = vst [vmem:[#allocation2 + $0x8] sm:$0xff] %v1321_v34 }
  0x4d PF: > { %v1178_v35 = vld [vmem:[%s1549_s10 + $0x74] ss:$8 sps:$4 sm:$0xff]   ;;  %v1180_v36 = vld [vmem:[%s1549_s10 + $0x70] ss:$8 sps:$4 sm:$0xff]   ;;  %v1181_v37 = vld [vmem:[%s1549_s10 + $0x64] ss:$8 sps:$4 sm:$0xff]  }
  0x4e   : > { %687 = vmatprep.subr.bf16.mxu0 %v1178_v35  ;;  %v1183_v38 = vld [vmem:[%s1549_s10 + $0x60] ss:$8 sps:$4 sm:$0xff]   ;;  %v1184_v39 = vld [vmem:[%s1549_s10 + $0x54] ss:$8 sps:$4 sm:$0xff]   ;;  %v1186_v40 = vld [vmem:[%s1549_s10 + $0x50] ss:$8 sps:$4 sm:$0xff]  }
  0x4f   : > { %688 = vmatpush1.bf16.msra.mxu0 %v1180_v36  ;;  %v1187_v41 = vld [vmem:[%s1549_s10 + $0x44] ss:$8 sps:$4 sm:$0xff]   ;;  %v1189_v42 = vld [vmem:[%s1549_s10 + $0x40] ss:$8 sps:$4 sm:$0xff]   ;;  %v1190_v43 = vld [vmem:[%s1549_s10 + $0x34] ss:$8 sps:$4 sm:$0xff]  }
  0x50   : > { %689 = vmatprep.subr.bf16.mxu0 %v1181_v37  ;;  %v1192_v44 = vld [vmem:[%s1549_s10 + $0x30] ss:$8 sps:$4 sm:$0xff]   ;;  %v1193_v45 = vld [vmem:[%s1549_s10 + $0x24] ss:$8 sps:$4 sm:$0xff]   ;;  %v1195_v46 = vld [vmem:[%s1549_s10 + $0x20] ss:$8 sps:$4 sm:$0xff]  }
  0x51   : > { %v1196_v47 = vld [vmem:[%s1549_s10 + $0x14] ss:$8 sps:$4 sm:$0xff]   ;;  %v1198_v49 = vld [vmem:[%s1549_s10 + $0x10] ss:$8 sps:$4 sm:$0xff]   ;;  %v1199_v50 = vld [vmem:[%s1549_s10 + $0x4] ss:$8 sps:$4 sm:$0xff]  }
  0x52   : > { %v1228_v48 = vld [vmem:[%s416_s19 + $0x4] ss:$8 sps:$4 sm:$0xff]   ;;  %v1201_v51 = vld [vmem:[%s1549_s10] ss:$8 sps:$4 sm:$0xff]   ;;  %v1204_v53 = vld [vmem:[%s1549_s10 + $0xf0] ss:$8 sps:$4 sm:$0xff]  }
  0x53   : > { %690 = vmatpush1.bf16.msra.mxu0 %v1183_v38  ;;  %719 = vmatprep.mubr.bf16.mxu0 %v1228_v48  ;;  %v1202_v52 = vld [vmem:[%s1549_s10 + $0xf4] ss:$8 sps:$4 sm:$0xff]   ;;  %v1205_v54 = vld [vmem:[%s1549_s10 + $0xe4] ss:$8 sps:$4 sm:$0xff]   ;;  %v1207_v55 = vld [vmem:[%s1549_s10 + $0xe0] ss:$8 sps:$4 sm:$0xff]  }
  0x54   : > { %691 = vmatprep.subr.bf16.mxu0 %v1184_v39  ;;  %v1208_v56 = vld [vmem:[%s1549_s10 + $0xd4] ss:$8 sps:$4 sm:$0xff]   ;;  %v1210_v57 = vld [vmem:[%s1549_s10 + $0xd0] ss:$8 sps:$4 sm:$0xff]   ;;  %v1211_v58 = vld [vmem:[%s1549_s10 + $0xc4] ss:$8 sps:$4 sm:$0xff]  }
  0x55   : > { %v1213_v59 = vld [vmem:[%s1549_s10 + $0xc0] ss:$8 sps:$4 sm:$0xff]   ;;  %v1214_v60 = vld [vmem:[%s1549_s10 + $0xb4] ss:$8 sps:$4 sm:$0xff]   ;;  %v1216_v61 = vld [vmem:[%s1549_s10 + $0xb0] ss:$8 sps:$4 sm:$0xff]  }
  0x56   : > { %v1217_v62 = vld [vmem:[%s1549_s10 + $0xa4] ss:$8 sps:$4 sm:$0xff]   ;;  %v1219_v63 = vld [vmem:[%s1549_s10 + $0xa0] ss:$8 sps:$4 sm:$0xff]   ;;  %v1220_v0 = vld [vmem:[%s1549_s10 + $0x94] ss:$8 sps:$4 sm:$0xff]  }
  0x57   : > { %692 = vmatpush1.bf16.msra.mxu0 %v1186_v40  ;;  %v1222_v1 = vld [vmem:[%s1549_s10 + $0x90] ss:$8 sps:$4 sm:$0xff]   ;;  %v1223_v2 = vld [vmem:[%s1549_s10 + $0x84] ss:$8 sps:$4 sm:$0xff]   ;;  %v1225_v3 = vld [vmem:[%s1549_s10 + $0x80] ss:$8 sps:$4 sm:$0xff]  }
  0x58   : > { %693 = vmatprep.subr.bf16.mxu0 %v1187_v41  ;;  %v1226_v4 = vld [vmem:[%s416_s19] ss:$8 sps:$4 sm:$0xff]   ;;  %p1075_p5 = scmp.ne.s32.totalorder %s1303_s21, 17 }
  0x59   : > { %v479_v5 = vld [vmem:[#allocation2 + $0x10] sm:$0xff]  ;;  %v480_v7 = vld [vmem:[#allocation2] sm:$0xff]  ;;  %v481_v10 = vld [vmem:[#allocation2 + $0x18] sm:$0xff] }
  0x5a   : > { %v482_v13 = vld [vmem:[#allocation2 + $0x8] sm:$0xff] }
  0x5b   : > { %694 = vmatpush1.bf16.msra.mxu0 %v1189_v42 }
  0x5c   : > { %695 = vmatprep.subr.bf16.mxu0 %v1190_v43 }
  0x5f   : > { %696 = vmatpush1.bf16.msra.mxu0 %v1192_v44 }
  0x60   : > { %697 = vmatprep.subr.bf16.mxu0 %v1193_v45 }
  0x63   : > { %698 = vmatpush1.bf16.msra.mxu0 %v1195_v46 }
  0x64   : > { %699 = vmatprep.subr.bf16.mxu0 %v1196_v47 }
  0x67   : > { %700 = vmatpush1.bf16.msra.mxu0 %v1198_v49 }
  0x68   : > { %701 = vmatprep.subr.bf16.mxu0 %v1199_v50 }
  0x6b   : > { %702 = vmatpush1.bf16.msra.mxu0 %v1201_v51 }
  0x6c   : > { %703 = vmatprep.subr.bf16.mxu0 %v1202_v52 }
  0x6f   : > { %704 = vmatpush2.bf16.msra.mxu0 %v1204_v53 }
  0x70   : > { %705 = vmatprep.subr.bf16.mxu0 %v1205_v54 }
  0x73   : > { %706 = vmatpush2.bf16.msra.mxu0 %v1207_v55 }
  0x74   : > { %707 = vmatprep.subr.bf16.mxu0 %v1208_v56 }
  0x77   : > { %708 = vmatpush2.bf16.msra.mxu0 %v1210_v57 }
  0x78   : > { %709 = vmatprep.subr.bf16.mxu0 %v1211_v58 }
  0x7b   : > { %710 = vmatpush2.bf16.msra.mxu0 %v1213_v59 }
  0x7c   : > { %711 = vmatprep.subr.bf16.mxu0 %v1214_v60 }
  0x7f   : > { %712 = vmatpush2.bf16.msra.mxu0 %v1216_v61 }
  0x80   : > { %713 = vmatprep.subr.bf16.mxu0 %v1217_v62 }
  0x83   : > { %714 = vmatpush2.bf16.msra.mxu0 %v1219_v63 }
  0x84   : > { %715 = vmatprep.subr.bf16.mxu0 %v1220_v0 }
  0x87   : > { %716 = vmatpush2.bf16.msra.mxu0 %v1222_v1 }
  0x88   : > { %717 = vmatprep.subr.bf16.mxu0 %v1223_v2 }
  0x8b   : > { %718 = vmatpush2.bf16.msra.mxu0 %v1225_v3 }
  0x8e   : > { %720 = vmatmul.mubr.bf16.vlgmr.msra.gmra.mxu0 %v1226_v4 }
 0x14e   : > { %v721_v6 = vpop.f32.mrf.mxu0 }
 0x14f   : > { %v730_v8 = vadd.f32 %v721_v6, %v479_v5 }
 0x150   : > { %v723_v9 = vpop.f32.mrf.mxu0 }
 0x151   : > { %734 = vst [vmem:[#allocation2 + $0x10] sm:$0xff] %v730_v8  ;;  %v731_v11 = vadd.f32 %v723_v9, %v480_v7 }
 0x152   : > { %v725_v12 = vpop.f32.mrf.mxu0 }
 0x153   : > { %735 = vst [vmem:[#allocation2] sm:$0xff] %v731_v11  ;;  %v732_v14 = vadd.f32 %v725_v12, %v481_v10  ;;  %741 = sbr.rel (%p1075_p5) target bundleno = 421 (0x1a5), region = 120 }
 0x154   : > { %v727_v15 = vpop.f32.mrf.mxu0 }
 0x155   : > { %736 = vst [vmem:[#allocation2 + $0x18] sm:$0xff] %v732_v14  ;;  %v733_v16 = vadd.f32 %v727_v15, %v482_v13 }
 0x157   : > { %737 = vst [vmem:[#allocation2 + $0x8] sm:$0xff] %v733_v16 }
 0x158   : > { %v742_v17 = vld [vmem:[#allocation2 + $0x10] sm:$0xff]  ;;  %v764_v29 = vlaneseq  ;;  %v1322_v61 = vmov 1966171168   ;;  %v746_v5 = vld [vmem:[%s463_s6] sm:$0x3] }
 0x159   : > { %v805_v62 = vunpack.c.l.s4 %v1322_v61  ;;  %v747_v9 = vld [vmem:[%s468_s17] sm:$0x3] }
 0x15a   : > { %v743_v18 = vld [vmem:[#allocation2] sm:$0xff]  ;;  %v765_v34 = vshrl.u32 %v764_v29, 7 }
 0x15b   : > { %v806_v63 = vunpack.c.0.s8 %v805_v62 }
 0x15c   : > { %v744_v19 = vld [vmem:[#allocation2 + $0x18] sm:$0xff]  ;;  %vm767_vm0 = vcmp.lt.s32.totalorder %v765_v34, 2  ;;  %v823_v7 = vsub.s32 0, %v765_v34  ;;  %v827_v8 = vsub.s32 1, %v765_v34 }
 0x15d   : > { %v748_v21 = vadd.f32 %v744_v19, %v742_v17  ;;  %v809_v1 = vsub.s32 %v806_v63, %v765_v34 }
 0x15e   : > { %v745_v20 = vld [vmem:[#allocation2 + $0x8] sm:$0xff]  ;;  %v839_v13 = vrot.slane %v747_v9, %v823_v7  ;;  %v843_v14 = vrot.slane %v747_v9, %v827_v8 }
 0x15f   : > { %v755_v22 = vadd.f32 %v745_v20, %v743_v18  ;;  %v749_v23 = vrot.slane %v748_v21, 4 }
 0x161   : > { %v756_v24 = vrot.slane %v755_v22, 4  ;;  %v750_v25 = vadd.f32 %v749_v23, %v748_v21 }
 0x163   : > { %v757_v26 = vadd.f32 %v756_v24, %v755_v22  ;;  %v751_v27 = vrot.slane %v750_v25, 2 }
 0x165   : > { %v758_v28 = vrot.slane %v757_v26, 2  ;;  %v752_v30 = vadd.f32 %v751_v27, %v750_v25 }
 0x167   : > { %v759_v31 = vadd.f32 %v758_v28, %v757_v26  ;;  %v753_v32 = vrot.slane %v752_v30, 1 }
 0x169   : > { %v760_v33 = vrot.slane %v759_v31, 1  ;;  %v754_v35 = vadd.f32 %v753_v32, %v752_v30 }
 0x16b   : > { %v761_v36 = vadd.f32 %v760_v33, %v759_v31  ;;  %v762_v37 = vmul.f32 0.5, %v754_v35 }
 0x16d   : > { %v763_v38 = vmul.f32 0.5, %v761_v36  ;;  %v769_v39 = vsub.f32 %v742_v17, %v762_v37 }
 0x16f   : > { %v770_v40 = vsub.f32 %v743_v18, %v763_v38  ;;  %v773_v41 = vsel %vm767_vm0, %v769_v39, 0.0 }
 0x170   : > { %v777_v43 = vmul.f32 %v773_v41, %v773_v41 }
 0x171   : > { %v774_v42 = vsel %vm767_vm0, %v770_v40, 0.0 }
 0x172   : > { %v778_v44 = vmul.f32 %v774_v42, %v774_v42  ;;  %v782_v45 = vrot.slane %v777_v43, 4 }
 0x174   : > { %v789_v46 = vrot.slane %v778_v44, 4  ;;  %v783_v47 = vadd.f32 %v782_v45, %v777_v43 }
 0x176   : > { %v790_v48 = vadd.f32 %v789_v46, %v778_v44  ;;  %v784_v49 = vrot.slane %v783_v47, 2 }
 0x178   : > { %v791_v50 = vrot.slane %v790_v48, 2  ;;  %v785_v51 = vadd.f32 %v784_v49, %v783_v47 }
 0x17a   : > { %v792_v52 = vadd.f32 %v791_v50, %v790_v48  ;;  %v786_v53 = vrot.slane %v785_v51, 1 }
 0x17c   : > { %v793_v54 = vrot.slane %v792_v52, 1  ;;  %v787_v55 = vadd.f32 %v786_v53, %v785_v51 }
 0x17e   : > { %v794_v56 = vadd.f32 %v793_v54, %v792_v52  ;;  %v795_v57 = vmul.f32 0.5, %v787_v55 }
 0x180   : > { %v796_v58 = vmul.f32 0.5, %v794_v56  ;;  %v797_v59 = vadd.f32 1e-05, %v795_v57 }
 0x182   : > { %v798_v60 = vadd.f32 1e-05, %v796_v58  ;;  %1229 = vrsqrt.f32 %v797_v59 }
 0x184   : > { %1231 = vrsqrt.f32 %v798_v60 }
 0x18f   : > { %v1230_v0 = vpop.eup %1229 }
 0x191   : > { %v1232_v2 = vpop.eup %1231 }
 0x192   : > { %v803_v3 = vcombine.low %v1230_v0, %v1232_v2 }
 0x194   : > { %v810_v4 = vrot.slane %v803_v3, %v809_v1 }
 0x196   : > { %v817_v6 = vrot.slane %v810_v4, %v809_v1 }
 0x198   : > { %v819_v10 = vmul.f32 %v817_v6, %v746_v5 }
 0x19a   : > { %v824_v11 = vrot.slane %v819_v10, %v823_v7  ;;  %v828_v12 = vrot.slane %v819_v10, %v827_v8 }
 0x19c   : > { %v831_v15 = vmul.f32 %v824_v11, %v773_v41  ;;  %v832_v16 = vmul.f32 %v828_v12, %v774_v42  ;;  %v833_v17 = vmul.f32 0.0, %v824_v11  ;;  %v834_v18 = vmul.f32 0.0, %v828_v12 }
 0x19e   : > { %v846_v19 = vadd.f32 %v839_v13, %v831_v15  ;;  %v847_v20 = vadd.f32 %v843_v14, %v832_v16  ;;  %v848_v21 = vadd.f32 %v839_v13, %v833_v17  ;;  %v849_v22 = vadd.f32 %v843_v14, %v834_v18 }
 0x1a0   : > { %v850_v23 = vmax.f32 %v846_v19, 0.0  ;;  %v851_v24 = vmax.f32 %v847_v20, 0.0  ;;  %v852_v25 = vmax.f32 %v848_v21, 0.0  ;;  %v853_v26 = vmax.f32 %v849_v22, 0.0 }
 0x1a2   : > { %v1085_v27 = vpack.c.bf16 %v851_v24, %v850_v23  ;;  %v1086_v28 = vpack.c.bf16 %v853_v26, %v852_v25 }
 0x1a4   : > { %866 = vst [vmem:[%s1551_s20] sm:$0xff] %v1085_v27  ;;  %867 = vst [vmem:[%s1551_s20 + $0x8] sm:$0xff] %v1086_v28 }
 0x1a5 PF: > { %874 = sbr.rel (!%p1442_p12) target bundleno = 429 (0x1ad), region = 124  ;;  %s1087_s7 = sshll.u32 (%p1442_p12), %s1307_s22, 3 }
 0x1a6   : > { %s877_s26 = scalar_lea.vmem (%p1442_p12), %s1648_s4, %s1087_s7 }
 0x1ab   : > { %v908_v29 = vld [vmem:[%s1551_s20] sm:$0xff]  ;;  %v910_v30 = vld [vmem:[%s1551_s20 + $0x8] sm:$0xff] }
 0x1ac   : > { %909 = vst [vmem:[%s877_s26] sm:$0xff] %v908_v29  ;;  %911 = vst [vmem:[%s877_s26 + $0x10] sm:$0xff] %v910_v30 }
 0x1ad PF: > { %s14_s25 = sadd.s32 1, %s1319_s25   ;;  %s1659_s19 = sld [smem:[#allocation6_spill]] }
 0x1ae   : > { %p11_p6 = scmp.ge.s32.totalorder %s14_s25, 38   ;;  %s1660_s20 = sld [smem:[#allocation9_spill]] }
 0x1af   : > { %s1661_s14 = sld [smem:[#allocation7_spill]]  ;;  %s1663_s15 = smov %s1283_s16 }
 0x1b0   : > { %s1662_s5 = sld [smem:[#allocation8_spill]]  ;;  %s1664_s16 = smov %s1440_s13 }
 0x1b1   : > { %s1665_s17 = smov %s1291_s18  ;;  %s1666_s18 = smov %s1437_s12 }
 0x1b2   : > { %s1667_s21 = smov %s1311_s23  ;;  %s1668_s22 = smov %s1315_s24 }
 0x1b3   :  { %13 = sbr.rel (!%p11_p6) target bundleno = 6 (0x6), region = 207 }
 0x1b5   : > { %s1669_s23 = smov %s1661_s14 }
 0x1b6   : > { %s1670_s24 = smov %s1662_s5 }

// kernel: resnet_forward.44
= control target key start
LH: loop header
LB: loop body
LE: loop exit
PB: predicated region body
PF: predicated region fallthrough
CT: control target
= control target key end

     0   :  { %s54_s0 = inlined_call_operand.vmem [shape: bf16[1,8,512], index: 0, kind: input, shape index: {}]   ;;  %s55_s1 = inlined_call_operand.vmem [shape: f32[8,512], index: 1, kind: output, shape index: {}]  }
   0x1   :  { %v8_v0 = vld [vmem:[%s54_s0] sm:$0xff]  ;;  %v9_v1 = vld [vmem:[%s54_s0 + $0x8] sm:$0xff] }
   0x2   :  { %v10_v2 = vunpack.c.l.bf16 %v8_v0  ;;  %v11_v3 = vunpack.c.h.bf16 %v8_v0  ;;  %v12_v4 = vunpack.c.l.bf16 %v9_v1  ;;  %v13_v5 = vunpack.c.h.bf16 %v9_v1 }
   0x4   :  { %18 = vst [vmem:[%s55_s1] sm:$0xff] %v10_v2  ;;  %19 = vst [vmem:[%s55_s1 + $0x8] sm:$0xff] %v11_v3 }
   0x5   :  { %20 = vst [vmem:[%s55_s1 + $0x10] sm:$0xff] %v12_v4  ;;  %21 = vst [vmem:[%s55_s1 + $0x18] sm:$0xff] %v13_v5 }

// kernel: resnet_forward.45
= control target key start
LH: loop header
LB: loop body
LE: loop exit
PB: predicated region body
PF: predicated region fallthrough
CT: control target
= control target key end

     0   :  { %s751_s12 = smov 0   ;;  %s753_s13 = smov 0   ;;  %s852_s0 = inlined_call_operand.vmem [shape: bf16[16,512], index: 0, kind: input, shape index: {}]   ;;  %s853_s1 = inlined_call_operand.vmem [shape: bf16[512,128], index: 1, kind: input, shape index: {}]   ;;  %s854_s2 = inlined_call_operand.vmem [shape: f32[1,128], index: 2, kind: input, shape index: {}]   ;;  %s855_s3 = inlined_call_operand.vmem [shape: f32[16,128], index: 3, kind: output, shape index: {}]  }
   0x1   :  { %s755_s14 = smov 0   ;;  %s757_s15 = smov 0  }
   0x2   :  { %s759_s16 = smov 0  }
   0x3 LB: > { %s22_s17 = sadd.s32 1, %s724_s15  ;;  %p39_p1 = scmp.ne.s32.totalorder %s716_s13, %s712_s12  ;;  %s728_s16 = sphi %s759_s16, %s13_s16   ;;  %s724_s15 = sphi %s757_s15, %s859_s15   ;;  %s720_s14 = sphi %s755_s14, %s858_s14   ;;  %s716_s13 = sphi %s753_s13, %s857_s13   ;;  %s712_s12 = sphi %s751_s12, %s856_s12  }
   0x4   : > { %p23_p0 = scmp.ge.s32.totalorder %s22_s17, 2  ;;  %p40_p2 = scmp.eq.s32.totalorder %s728_s16, 0 }
   0x5   : > { %s32_s19 = sadd.s32 1, %s716_s13  ;;  %p575_p5 = scmp.ge.s32.totalorder %s728_s16, 2 }
   0x6   : > { %s861_s17 = smov (%p23_p0, %s22_s17), 0  ;;  %p41_p3 = por %p40_p2, %p39_p1 }
   0x7   : > { %s29_s18 = ssub.s32 %s724_s15, %s861_s17  ;;  %151 = sbr.rel (%p575_p5) target bundleno = 17 (0x11), region = 20 }
   0x8   : > { %p30_p4 = scmp.eq.s32.totalorder %s29_s18, 0 }
   0xa   : > { %s786_s20 = scalar_select %p30_p4, %s716_s13, %s32_s19  }
   0xc   : > { %154 = sbr.rel (!%p41_p3) target bundleno = 17 (0x11), region = 24  ;;  %s156_s21 = sand.u32 (%p41_p3), 1, %s716_s13  }
   0xd   : > { %s607_s22 = sshll.u32 (%p41_p3), %s724_s15, 3  ;;  %s576_s23 = sshll.u32 (%p41_p3), %s156_s21, 4 }
   0xe   : > { %s161_s26 = scalar_lea.vmem (%p41_p3), %s852_s0, %s607_s22  ;;  %s158_s27 = scalar_lea.vmem (%p41_p3), [#allocation3], %s576_s23 }
   0xf   : > { %v192_v0 = vld [vmem:[%s161_s26] sm:$0xff] (%p41_p3)  ;;  %v194_v1 = vld [vmem:[%s161_s26 + $0x10] sm:$0xff] (%p41_p3) }
  0x10   : > { %193 = vst [vmem:[%s158_s27] sm:$0xff] (%p41_p3), %v192_v0  ;;  %195 = vst [vmem:[%s158_s27 + $0x8] sm:$0xff] (%p41_p3), %v194_v1 }
  0x11 PF: > { %p579_p6 = scmp.ge.s32.totalorder %s728_s16, 1  ;;  %p212_p7 = scmp.lt.s32.totalorder %s728_s16, 3 }
  0x13   : > { %p213_p8 = pnand %p579_p6, %p212_p7 }
  0x14   : > { %s219_s28 = sand.u32 (!%p213_p8), 1, %s712_s12   ;;  %s581_s29 = sshll.u32 (!%p213_p8), %s720_s14, 5 }
  0x15   : > { %216 = sbr.rel (%p213_p8) target bundleno = 280 (0x118), region = 66  ;;  %s798_s30 = sshll.u32 (!%p213_p8), %s219_s28, 4 }
  0x16   : > { %p254_p9 = scmp.lt.s32.totalorder (!%p213_p8), %s581_s29, 63  ;;  %s221_s8 = scalar_lea.vmem (!%p213_p8), [#allocation3], %s798_s30 }
  0x17   : > { %p583_p10 = scmp.ne.s32.totalorder (!%p213_p8), %s720_s14, 0 }
  0x1a   : > { %s863_s29 = smov (!%p254_p9, %s581_s29), 63  ;;  %273 = sbr.rel (%p583_p10) target bundleno = 33 (0x21), region = 74 }
  0x1b   : > { %s582_s4 = sshll.u32 %s863_s29, 2 }
  0x1c   : > { %s803_s7 = scalar_lea.vmem %s853_s1, %s582_s4 }
  0x1f   : > { %v730_v2 = vmov 0.0  }
  0x20   : > { %274 = vst [vmem:[#allocation2] sm:$0xff] %v730_v2  ;;  %275 = vst [vmem:[#allocation2 + $0x8] sm:$0xff] %v730_v2 }
  0x21 PF: > { %v671_v3 = vld [vmem:[%s803_s7 + $0x78] sm:$0xff]   ;;  %v673_v5 = vld [vmem:[%s803_s7 + $0x70] sm:$0xff]   ;;  %v675_v7 = vld [vmem:[%s803_s7 + $0x68] sm:$0xff]   ;;  %p602_p11 = scmp.ne.s32.totalorder %s720_s14, 1 }
  0x22   : > { %v672_v4 = vld [vmem:[%s803_s7 + $0x38] sm:$0xff]   ;;  %608 = vmatprep.subr.bf16.mxu0 %v671_v3  ;;  %v674_v6 = vld [vmem:[%s803_s7 + $0x30] sm:$0xff]   ;;  %v676_v8 = vld [vmem:[%s803_s7 + $0x28] sm:$0xff]  }
  0x23   : > { %609 = vmatpush3.bf16.msra.mxu0 %v672_v4  ;;  %v677_v9 = vld [vmem:[%s803_s7 + $0x60] sm:$0xff]   ;;  %v679_v11 = vld [vmem:[%s803_s7 + $0x58] sm:$0xff]   ;;  %v681_v13 = vld [vmem:[%s803_s7 + $0x50] sm:$0xff]  }
  0x24   : > { %610 = vmatprep.subr.bf16.mxu0 %v673_v5  ;;  %v678_v10 = vld [vmem:[%s803_s7 + $0x20] sm:$0xff]   ;;  %v680_v12 = vld [vmem:[%s803_s7 + $0x18] sm:$0xff]   ;;  %v682_v15 = vld [vmem:[%s803_s7 + $0x10] sm:$0xff]  }
  0x25   : > { %v689_v14 = vld [vmem:[%s221_s8 + $0x4] ss:$8 sps:$4 sm:$0xff]   ;;  %v687_v20 = vld [vmem:[%s221_s8] ss:$8 sps:$4 sm:$0xff]  }
  0x26   : > { %450 = vmatprep.mubr.bf16.mxu0 %v689_v14  ;;  %v683_v16 = vld [vmem:[%s803_s7 + $0x48] sm:$0xff]   ;;  %v685_v18 = vld [vmem:[%s803_s7 + $0x40] sm:$0xff]  }
  0x27   : > { %611 = vmatpush3.bf16.msra.mxu0 %v674_v6  ;;  %v684_v17 = vld [vmem:[%s803_s7 + $0x8] sm:$0xff]   ;;  %v686_v19 = vld [vmem:[%s803_s7] sm:$0xff]  }
  0x28   : > { %612 = vmatprep.subr.bf16.mxu0 %v675_v7  ;;  %v276_v22 = vld [vmem:[#allocation2] sm:$0xff]  ;;  %v277_v27 = vld [vmem:[#allocation2 + $0x8] sm:$0xff] }
  0x2b   : > { %613 = vmatpush3.bf16.msra.mxu0 %v676_v8 }
  0x2c   : > { %614 = vmatprep.subr.bf16.mxu0 %v677_v9 }
  0x2f   : > { %615 = vmatpush3.bf16.msra.mxu0 %v678_v10 }
  0x30   : > { %616 = vmatprep.subr.bf16.mxu0 %v679_v11 }
  0x33   : > { %617 = vmatpush3.bf16.msra.mxu0 %v680_v12 }
  0x34   : > { %618 = vmatprep.subr.bf16.mxu0 %v681_v13 }
  0x37   : > { %619 = vmatpush3.bf16.msra.mxu0 %v682_v15 }
  0x38   : > { %620 = vmatprep.subr.bf16.mxu0 %v683_v16 }
  0x3b   : > { %621 = vmatpush3.bf16.msra.mxu0 %v684_v17 }
  0x3c   : > { %622 = vmatprep.subr.bf16.mxu0 %v685_v18 }
  0x3f   : > { %623 = vmatpush3.bf16.msra.mxu0 %v686_v19 }
  0x42   : > { %451 = vmatmul.mubr.bf16.vlgmr.msra.gmra.mxu0 %v687_v20 }
 0x102   : > { %v624_v21 = vpop.f32.mrf.mxu0 }
 0x104   : > { %v625_v23 = vpop.f32.mrf.mxu0 }
 0x105   : > { %v626_v24 = vadd.f32 %v625_v23, %v624_v21 }
 0x106   : > { %v627_v25 = vpop.f32.mrf.mxu0 }
 0x107   : > { %v459_v26 = vadd.f32 %v626_v24, %v276_v22 }
 0x108   : > { %v628_v28 = vpop.f32.mrf.mxu0 }
 0x109   : > { %461 = vst [vmem:[#allocation2] sm:$0xff] %v459_v26  ;;  %v629_v29 = vadd.f32 %v628_v28, %v627_v25  ;;  %466 = sbr.rel (%p602_p11) target bundleno = 280 (0x118), region = 78 }
 0x10b   : > { %v460_v30 = vadd.f32 %v629_v29, %v277_v27 }
 0x10d   : > { %462 = vst [vmem:[#allocation2 + $0x8] sm:$0xff] %v460_v30 }
 0x10e   : > { %v603_v32 = vld [vmem:[%s854_s2] ss:$0 sm:$0xff] }
 0x110   : > { %v467_v31 = vld [vmem:[#allocation2] sm:$0xff] }
 0x111   : > { %v476_v34 = vadd.f32 %v603_v32, %v467_v31 }
 0x113   : > { %478 = vst [vmem:[%s855_s3] sm:$0xff] %v476_v34 }
 0x114   : > { %v468_v33 = vld [vmem:[#allocation2 + $0x8] sm:$0xff] }
 0x115   : > { %v477_v35 = vadd.f32 %v603_v32, %v468_v33 }
 0x117   : > { %479 = vst [vmem:[%s855_s3 + $0x8] sm:$0xff] %v477_v35 }
 0x118 PF: > { %s13_s16 = sadd.s32 1, %s728_s16   ;;  %s856_s12 = smov %s716_s13 }
 0x119   : > { %p10_p12 = scmp.ge.s32.totalorder %s13_s16, 4   ;;  %s857_s13 = smov %s786_s20 }
 0x11a   : > { %s858_s14 = smov %s724_s15  ;;  %s859_s15 = smov %s861_s17 }
 0x11b   :  { %12 = sbr.rel (!%p10_p12) target bundleno = 3 (0x3), region = 119 }

</bundles_post_ra>
